<compile_context>
chip_gen: v7x
topology: tpu7x:2x2x1
jax: 0.10.0
libtpu: 0.0.40
codegen_flags: <defaults>
</compile_context>

<pallas_src>
import functools

import jax
import jax.numpy as jnp
from jax.experimental import pallas as pl
from jax.experimental.pallas import tpu as pltpu

_SQRT1_2 = 0.7071067811865476


def _gelu_exact(x):
    # nn.GELU() default = exact erf-based GELU. (The tanh approximation would
    # route through the EUP slot but changes numerics, so it is not used.)
    return 0.5 * x * (1.0 + jax.lax.erf(x * _SQRT1_2))


def _conv3x3_patch_dot(src_ref, w_ref, P, Np):
    """3x3 / stride-1 / pad-1 conv on an extended padded-flat (Next, C) buffer.

    src_ref rows are flattened (H+2, W+2) padded-image coordinates with P+1
    rows of slack on each end, so tap (kh, kw) is the static row slice
    [kh*P + kw, kh*P + kw + Np).  The 9 taps are concatenated on the lane axis
    and contracted with the (9*C, Cout) weight in a single MXU matmul
    (bf16 operands, f32 accumulation).
    """
    taps = [src_ref[kh * P + kw: kh * P + kw + Np, :]
            for kh in range(3) for kw in range(3)]
    patch = jnp.concatenate(taps, axis=-1).astype(jnp.bfloat16)   # (Np, 9*C)
    return jnp.dot(patch, w_ref[...],                             # (Np, Cout) f32
                   preferred_element_type=jnp.float32)


def _basic_block_kernel(x_ref, mask_ref, w1_ref, s1_ref, b1_ref,
                        w2_ref, s2_ref, b2_ref, out_ref, mid_ref, *, H, W):
    P = W + 2
    Np = (H + 2) * P
    ext = P + 1
    Cmid = mid_ref.shape[-1]

    mask = mask_ref[...]                                   # (Np, 1): 1.0 at real pixels

    # conv1 -> bn1 (folded) -> GELU
    h1 = _conv3x3_patch_dot(x_ref, w1_ref, P, Np)          # (Np, Cmid) f32
    h1 = _gelu_exact(h1 * s1_ref[...] + b1_ref[...])

    # Stage conv2's padded input: zero the slack rows every step (no reliance
    # on grid order -> safe with "parallel" batch axis) and zero the padding
    # ring of the image via the hoisted interior mask.
    zeros_ext = jnp.zeros((ext, Cmid), mid_ref.dtype)
    mid_ref[0:ext, :] = zeros_ext
    mid_ref[ext + Np:ext + Np + ext, :] = zeros_ext
    mid_ref[ext:ext + Np, :] = (h1 * mask).astype(mid_ref.dtype)

    # conv2 -> bn2 (folded) -> +residual -> GELU
    h2 = _conv3x3_patch_dot(mid_ref, w2_ref, P, Np)        # (Np, Cout) f32
    h2 = h2 * s2_ref[...] + b2_ref[...]
    residual = x_ref[ext:ext + Np, :].astype(jnp.float32)  # = x (0 on pad ring)
    out_ref[...] = _gelu_exact(h2 + residual).astype(out_ref.dtype)


def basic_block_forward(x_nchw, params):
    N, Cin, H, W = x_nchw.shape
    Cmid = params["s1"].shape[-1]
    Cout = params["s2"].shape[-1]
    assert Cin == Cout, "identity residual requires inplanes == planes"

    P = W + 2
    Np = (H + 2) * P          # flattened padded-image rows
    ext = P + 1               # slack rows on each side so tap slices stay in bounds
    Next = Np + 2 * ext

    # NCHW -> extended padded, flattened channels-last layout (see header).
    x_nhwc = jnp.transpose(x_nchw, (0, 2, 3, 1)).astype(jnp.float32)
    x_pad = jnp.pad(x_nhwc, ((0, 0), (1, 1), (1, 1), (0, 0)))
    x_ext = jnp.pad(x_pad.reshape(N, Np, Cin), ((0, 0), (ext, ext), (0, 0)))

    # Interior mask (1.0 at real pixels of the padded image), hoisted out of
    # the kernel and shared by every grid step / both cores.
    hp = jnp.arange(H + 2)
    wp = jnp.arange(W + 2)
    interior = ((hp >= 1) & (hp <= H))[:, None] & ((wp >= 1) & (wp <= W))[None, :]
    mask = interior.astype(jnp.float32).reshape(Np, 1)

    # VMEM budget from the actual buffer sizes (double-buffered in/out blocks,
    # f32 scratch, weights, patch/f32 temporaries) with 2x headroom.
    vmem_bytes = (2 * Next * Cin * 4 + 2 * Np * Cout * 4
                  + Next * Cmid * 4
                  + 9 * Cin * Cmid * 2 + 9 * Cmid * Cout * 2
                  + 4 * Np * 9 * max(Cin, Cmid) * 4
                  + 4 * Np * max(Cmid, Cout) * 4)
    vmem_limit = int(min(112 * 1024 * 1024,
                         max(32 * 1024 * 1024, 2 * vmem_bytes)))

    kernel = functools.partial(_basic_block_kernel, H=H, W=W)
    out_pad = pl.pallas_call(
        kernel,
        out_shape=jax.ShapeDtypeStruct((N, Np, Cout), x_nchw.dtype),
        grid_spec=pltpu.PrefetchScalarGridSpec(
            num_scalar_prefetch=0,
            grid=(N,),
            in_specs=[
                pl.BlockSpec((None, Next, Cin), lambda n: (n, 0, 0)),   # x (extended)
                pl.BlockSpec((Np, 1), lambda n: (0, 0)),                # interior mask
                pl.BlockSpec((9 * Cin, Cmid), lambda n: (0, 0)),        # w1 (bf16)
                pl.BlockSpec((1, Cmid), lambda n: (0, 0)),              # s1
                pl.BlockSpec((1, Cmid), lambda n: (0, 0)),              # b1
                pl.BlockSpec((9 * Cmid, Cout), lambda n: (0, 0)),       # w2 (bf16)
                pl.BlockSpec((1, Cout), lambda n: (0, 0)),              # s2
                pl.BlockSpec((1, Cout), lambda n: (0, 0)),              # b2
            ],
            out_specs=pl.BlockSpec((None, Np, Cout), lambda n: (n, 0, 0)),
            scratch_shapes=[pltpu.VMEM((Next, Cmid), jnp.float32)],
        ),
        compiler_params=pltpu.CompilerParams(
            dimension_semantics=("parallel",),
            vmem_limit_bytes=vmem_limit),
    )(x_ext, mask, params["w1_taps"], params["s1"], params["b1"],
      params["w2_taps"], params["s2"], params["b2"])

    out = out_pad.reshape(N, H + 2, W + 2, Cout)[:, 1:H + 1, 1:W + 1, :]
    return jnp.transpose(out, (0, 3, 1, 2))


def init_params(key, inplanes, planes, eps=1e-5):
    ks = jax.random.split(key, 10)
    w1_t = 0.1 * jax.random.normal(ks[0], (planes, inplanes, 3, 3), jnp.float32)
    w2_t = 0.1 * jax.random.normal(ks[1], (planes, planes, 3, 3), jnp.float32)
    g1 = 1.0 + 0.1 * jax.random.normal(ks[2], (planes,), jnp.float32)
    beta1 = 0.1 * jax.random.normal(ks[3], (planes,), jnp.float32)
    m1 = 0.1 * jax.random.normal(ks[4], (planes,), jnp.float32)
    v1 = jax.random.uniform(ks[5], (planes,), jnp.float32, 0.5, 1.5)
    g2 = 1.0 + 0.1 * jax.random.normal(ks[6], (planes,), jnp.float32)
    beta2 = 0.1 * jax.random.normal(ks[7], (planes,), jnp.float32)
    m2 = 0.1 * jax.random.normal(ks[8], (planes,), jnp.float32)
    v2 = jax.random.uniform(ks[9], (planes,), jnp.float32, 0.5, 1.5)

    # Fold BatchNorm (eval mode): y = x * s + b
    s1 = g1 / jnp.sqrt(v1 + eps)
    b1 = beta1 - m1 * s1
    s2 = g2 / jnp.sqrt(v2 + eps)
    b2 = beta2 - m2 * s2

    def to_taps(wt):  # (O, I, 3, 3) -> (9*I, O), tap-major / cin-minor, bf16
        o, i = wt.shape[0], wt.shape[1]
        return jnp.transpose(wt, (2, 3, 1, 0)).reshape(9 * i, o).astype(jnp.bfloat16)

    kernel_params = dict(
        w1_taps=to_taps(w1_t), w2_taps=to_taps(w2_t),
        s1=s1[None, :], b1=b1[None, :], s2=s2[None, :], b2=b2[None, :])
    torch_like = dict(w1=w1_t, w2=w2_t, s1=s1, b1=b1, s2=s2, b2=b2)
    return kernel_params, torch_like


def basic_block_ref(x, p):
    """Pure-JAX f32 reference (NCHW, PyTorch-convention weights)."""
    def conv(x, w):
        return jax.lax.conv_general_dilated(
            x, w, window_strides=(1, 1), padding=((1, 1), (1, 1)),
            dimension_numbers=("NCHW", "OIHW", "NCHW"))

    def bn(x, s, b):
        return x * s[None, :, None, None] + b[None, :, None, None]

    out = jax.nn.gelu(bn(conv(x, p["w1"]), p["s1"], p["b1"]), approximate=False)
    out = bn(conv(out, p["w2"]), p["s2"], p["b2"])
    return jax.nn.gelu(out + x, approximate=False)


if __name__ == "__main__":
    key = jax.random.PRNGKey(0)
    kx, kp = jax.random.split(key)
    N, C, H, W = 2, 8, 16, 16   # BasicBlock(inplanes=8, planes=8, stride=1)
    x = jax.random.normal(kx, (N, C, H, W), jnp.float32)
    params, torch_like = init_params(kp, C, C)

    out = jax.block_until_ready(basic_block_forward(x, params))

    ref = basic_block_ref(x, torch_like)
    err = float(jnp.max(jnp.abs(out - ref)))
    assert out.shape == x.shape, (out.shape, x.shape)
    # bf16 MXU operands (f32 accumulation) => ~1e-2-scale deviation vs the
    # pure-f32 reference; 5e-2 gives comfortable margin.
    assert err < 5e-2, f"max abs err {err}"
    print("KERNEL_OK")
</pallas_src>

<mosaic_0001>
module attributes {stable_mosaic.version = 11 : i64} {
  func.func @_basic_block_kernel(%arg0: i32, %arg1: memref<1x362x8xf32, #tpu.memory_space<vmem>>, %arg2: memref<324x1xf32, #tpu.memory_space<vmem>>, %arg3: memref<72x8xbf16, #tpu.memory_space<vmem>>, %arg4: memref<1x8xf32, #tpu.memory_space<vmem>>, %arg5: memref<1x8xf32, #tpu.memory_space<vmem>>, %arg6: memref<72x8xbf16, #tpu.memory_space<vmem>>, %arg7: memref<1x8xf32, #tpu.memory_space<vmem>>, %arg8: memref<1x8xf32, #tpu.memory_space<vmem>>, %arg9: memref<1x324x8xf32, #tpu.memory_space<vmem>>, %arg10: memref<362x8xf32, #tpu.memory_space<vmem>>) attributes {dimension_semantics = [#tpu.dimension_semantics<parallel>], iteration_bounds = array<i64: 2>, scalar_prefetch = 0 : i64, scratch_operands = 1 : i64, tpu.core_type = #tpu.core_type<tc>, window_params = [{transform_indices = @transform_0, window_bounds = array<i64: 1, 362, 8>}, {pipeline_mode = #tpu.pipeline_mode<synchronous>, transform_indices = @transform_1, window_bounds = array<i64: 324, 1>}, {pipeline_mode = #tpu.pipeline_mode<synchronous>, transform_indices = @transform_2, window_bounds = array<i64: 72, 8>}, {pipeline_mode = #tpu.pipeline_mode<synchronous>, transform_indices = @transform_3, window_bounds = array<i64: 1, 8>}, {pipeline_mode = #tpu.pipeline_mode<synchronous>, transform_indices = @transform_4, window_bounds = array<i64: 1, 8>}, {pipeline_mode = #tpu.pipeline_mode<synchronous>, transform_indices = @transform_5, window_bounds = array<i64: 72, 8>}, {pipeline_mode = #tpu.pipeline_mode<synchronous>, transform_indices = @transform_6, window_bounds = array<i64: 1, 8>}, {pipeline_mode = #tpu.pipeline_mode<synchronous>, transform_indices = @transform_7, window_bounds = array<i64: 1, 8>}, {transform_indices = @transform_8, window_bounds = array<i64: 1, 324, 8>}]} {
    %c0 = arith.constant 0 : index
    %c0_0 = arith.constant 0 : index
    %0 = vector.load %arg2[%c0, %c0_0] : memref<324x1xf32, #tpu.memory_space<vmem>>, vector<324x1xf32>
    %c0_1 = arith.constant 0 : index
    %c0_2 = arith.constant 0 : index
    %c0_3 = arith.constant 0 : index
    %1 = vector.load %arg1[%c0_1, %c0_2, %c0_3] : memref<1x362x8xf32, #tpu.memory_space<vmem>>, vector<1x324x8xf32>
    %2 = vector.shape_cast %1 : vector<1x324x8xf32> to vector<324x8xf32>
    %c0_4 = arith.constant 0 : index
    %c1 = arith.constant 1 : index
    %c0_5 = arith.constant 0 : index
    %3 = vector.load %arg1[%c0_4, %c1, %c0_5] : memref<1x362x8xf32, #tpu.memory_space<vmem>>, vector<1x324x8xf32>
    %4 = vector.shape_cast %3 : vector<1x324x8xf32> to vector<324x8xf32>
    %c0_6 = arith.constant 0 : index
    %c2 = arith.constant 2 : index
    %c0_7 = arith.constant 0 : index
    %5 = vector.load %arg1[%c0_6, %c2, %c0_7] : memref<1x362x8xf32, #tpu.memory_space<vmem>>, vector<1x324x8xf32>
    %6 = vector.shape_cast %5 : vector<1x324x8xf32> to vector<324x8xf32>
    %c0_8 = arith.constant 0 : index
    %c18 = arith.constant 18 : index
    %c0_9 = arith.constant 0 : index
    %7 = vector.load %arg1[%c0_8, %c18, %c0_9] : memref<1x362x8xf32, #tpu.memory_space<vmem>>, vector<1x324x8xf32>
    %8 = vector.shape_cast %7 : vector<1x324x8xf32> to vector<324x8xf32>
    %c0_10 = arith.constant 0 : index
    %c19 = arith.constant 19 : index
    %c0_11 = arith.constant 0 : index
    %9 = vector.load %arg1[%c0_10, %c19, %c0_11] : memref<1x362x8xf32, #tpu.memory_space<vmem>>, vector<1x324x8xf32>
    %10 = vector.shape_cast %9 : vector<1x324x8xf32> to vector<324x8xf32>
    %c0_12 = arith.constant 0 : index
    %c20 = arith.constant 20 : index
    %c0_13 = arith.constant 0 : index
    %11 = vector.load %arg1[%c0_12, %c20, %c0_13] : memref<1x362x8xf32, #tpu.memory_space<vmem>>, vector<1x324x8xf32>
    %12 = vector.shape_cast %11 : vector<1x324x8xf32> to vector<324x8xf32>
    %c0_14 = arith.constant 0 : index
    %c36 = arith.constant 36 : index
    %c0_15 = arith.constant 0 : index
    %13 = vector.load %arg1[%c0_14, %c36, %c0_15] : memref<1x362x8xf32, #tpu.memory_space<vmem>>, vector<1x324x8xf32>
    %14 = vector.shape_cast %13 : vector<1x324x8xf32> to vector<324x8xf32>
    %c0_16 = arith.constant 0 : index
    %c37 = arith.constant 37 : index
    %c0_17 = arith.constant 0 : index
    %15 = vector.load %arg1[%c0_16, %c37, %c0_17] : memref<1x362x8xf32, #tpu.memory_space<vmem>>, vector<1x324x8xf32>
    %16 = vector.shape_cast %15 : vector<1x324x8xf32> to vector<324x8xf32>
    %c0_18 = arith.constant 0 : index
    %c38 = arith.constant 38 : index
    %c0_19 = arith.constant 0 : index
    %17 = vector.load %arg1[%c0_18, %c38, %c0_19] : memref<1x362x8xf32, #tpu.memory_space<vmem>>, vector<1x324x8xf32>
    %18 = vector.shape_cast %17 : vector<1x324x8xf32> to vector<324x8xf32>
    %19 = tpu.concatenate %2, %4, %6, %8, %10, %12, %14, %16, %18 in 1 : vector<324x8xf32>, vector<324x8xf32>, vector<324x8xf32>, vector<324x8xf32>, vector<324x8xf32>, vector<324x8xf32>, vector<324x8xf32>, vector<324x8xf32>, vector<324x8xf32> -> vector<324x72xf32>
    %20 = arith.truncf %19 : vector<324x72xf32> to vector<324x72xbf16>
    %c0_20 = arith.constant 0 : index
    %c0_21 = arith.constant 0 : index
    %21 = vector.load %arg3[%c0_20, %c0_21] : memref<72x8xbf16, #tpu.memory_space<vmem>>, vector<72x8xbf16>
    %cst = arith.constant dense<0.000000e+00> : vector<324x8xf32>
    %22 = tpu.matmul %20, %21, %cst {dimension_numbers = #tpu.dot_dimension_numbers<[1], [0], [0], [1], [0, 0, 1, 1], [], []>} : vector<324x72xbf16>, vector<72x8xbf16>, vector<324x8xf32> -> vector<324x8xf32>
    %c0_22 = arith.constant 0 : index
    %c0_23 = arith.constant 0 : index
    %23 = vector.load %arg4[%c0_22, %c0_23] : memref<1x8xf32, #tpu.memory_space<vmem>>, vector<1x8xf32>
    %24 = vector.broadcast %23 : vector<1x8xf32> to vector<324x8xf32>
    %25 = arith.mulf %22, %24 : vector<324x8xf32>
    %c0_24 = arith.constant 0 : index
    %c0_25 = arith.constant 0 : index
    %26 = vector.load %arg5[%c0_24, %c0_25] : memref<1x8xf32, #tpu.memory_space<vmem>>, vector<1x8xf32>
    %27 = vector.broadcast %26 : vector<1x8xf32> to vector<324x8xf32>
    %28 = arith.addf %25, %27 : vector<324x8xf32>
    %cst_26 = arith.constant 5.000000e-01 : f32
    %29 = vector.broadcast %cst_26 : f32 to vector<324x8xf32>
    %30 = arith.mulf %29, %28 : vector<324x8xf32>
    %cst_27 = arith.constant 0.707106769 : f32
    %31 = vector.broadcast %cst_27 : f32 to vector<324x8xf32>
    %32 = arith.mulf %28, %31 : vector<324x8xf32>
    %33 = math.erf %32 : vector<324x8xf32>
    %cst_28 = arith.constant 1.000000e+00 : f32
    %34 = vector.broadcast %cst_28 : f32 to vector<324x8xf32>
    %35 = arith.addf %34, %33 : vector<324x8xf32>
    %36 = arith.mulf %30, %35 : vector<324x8xf32>
    %cst_29 = arith.constant 0.000000e+00 : f32
    %37 = vector.broadcast %cst_29 : f32 to vector<19x8xf32>
    %c0_30 = arith.constant 0 : index
    %c0_31 = arith.constant 0 : index
    %38 = vector.load %arg10[%c0_30, %c0_31] : memref<362x8xf32, #tpu.memory_space<vmem>>, vector<19x8xf32>
    tpu.vector_store %arg10[%c0_30, %c0_31], %37 {strides = array<i32>} : memref<362x8xf32, #tpu.memory_space<vmem>>, vector<19x8xf32>,
    %c343 = arith.constant 343 : index
    %c0_32 = arith.constant 0 : index
    %39 = vector.load %arg10[%c343, %c0_32] : memref<362x8xf32, #tpu.memory_space<vmem>>, vector<19x8xf32>
    tpu.vector_store %arg10[%c343, %c0_32], %37 {strides = array<i32>} : memref<362x8xf32, #tpu.memory_space<vmem>>, vector<19x8xf32>,
    %40 = vector.broadcast %0 : vector<324x1xf32> to vector<324x8xf32>
    %41 = arith.mulf %36, %40 : vector<324x8xf32>
    %c19_33 = arith.constant 19 : index
    %c0_34 = arith.constant 0 : index
    %42 = vector.load %arg10[%c19_33, %c0_34] : memref<362x8xf32, #tpu.memory_space<vmem>>, vector<324x8xf32>
    tpu.vector_store %arg10[%c19_33, %c0_34], %41 {strides = array<i32>} : memref<362x8xf32, #tpu.memory_space<vmem>>, vector<324x8xf32>,
    %c0_35 = arith.constant 0 : index
    %c0_36 = arith.constant 0 : index
    %43 = vector.load %arg10[%c0_35, %c0_36] : memref<362x8xf32, #tpu.memory_space<vmem>>, vector<324x8xf32>
    %c1_37 = arith.constant 1 : index
    %c0_38 = arith.constant 0 : index
    %44 = vector.load %arg10[%c1_37, %c0_38] : memref<362x8xf32, #tpu.memory_space<vmem>>, vector<324x8xf32>
    %c2_39 = arith.constant 2 : index
    %c0_40 = arith.constant 0 : index
    %45 = vector.load %arg10[%c2_39, %c0_40] : memref<362x8xf32, #tpu.memory_space<vmem>>, vector<324x8xf32>
    %c18_41 = arith.constant 18 : index
    %c0_42 = arith.constant 0 : index
    %46 = vector.load %arg10[%c18_41, %c0_42] : memref<362x8xf32, #tpu.memory_space<vmem>>, vector<324x8xf32>
    %c19_43 = arith.constant 19 : index
    %c0_44 = arith.constant 0 : index
    %47 = vector.load %arg10[%c19_43, %c0_44] : memref<362x8xf32, #tpu.memory_space<vmem>>, vector<324x8xf32>
    %c20_45 = arith.constant 20 : index
    %c0_46 = arith.constant 0 : index
    %48 = vector.load %arg10[%c20_45, %c0_46] : memref<362x8xf32, #tpu.memory_space<vmem>>, vector<324x8xf32>
    %c36_47 = arith.constant 36 : index
    %c0_48 = arith.constant 0 : index
    %49 = vector.load %arg10[%c36_47, %c0_48] : memref<362x8xf32, #tpu.memory_space<vmem>>, vector<324x8xf32>
    %c37_49 = arith.constant 37 : index
    %c0_50 = arith.constant 0 : index
    %50 = vector.load %arg10[%c37_49, %c0_50] : memref<362x8xf32, #tpu.memory_space<vmem>>, vector<324x8xf32>
    %c38_51 = arith.constant 38 : index
    %c0_52 = arith.constant 0 : index
    %51 = vector.load %arg10[%c38_51, %c0_52] : memref<362x8xf32, #tpu.memory_space<vmem>>, vector<324x8xf32>
    %52 = tpu.concatenate %43, %44, %45, %46, %47, %48, %49, %50, %51 in 1 : vector<324x8xf32>, vector<324x8xf32>, vector<324x8xf32>, vector<324x8xf32>, vector<324x8xf32>, vector<324x8xf32>, vector<324x8xf32>, vector<324x8xf32>, vector<324x8xf32> -> vector<324x72xf32>
    %53 = arith.truncf %52 : vector<324x72xf32> to vector<324x72xbf16>
    %c0_53 = arith.constant 0 : index
    %c0_54 = arith.constant 0 : index
    %54 = vector.load %arg6[%c0_53, %c0_54] : memref<72x8xbf16, #tpu.memory_space<vmem>>, vector<72x8xbf16>
    %cst_55 = arith.constant dense<0.000000e+00> : vector<324x8xf32>
    %55 = tpu.matmul %53, %54, %cst_55 {dimension_numbers = #tpu.dot_dimension_numbers<[1], [0], [0], [1], [0, 0, 1, 1], [], []>} : vector<324x72xbf16>, vector<72x8xbf16>, vector<324x8xf32> -> vector<324x8xf32>
    %c0_56 = arith.constant 0 : index
    %c0_57 = arith.constant 0 : index
    %56 = vector.load %arg7[%c0_56, %c0_57] : memref<1x8xf32, #tpu.memory_space<vmem>>, vector<1x8xf32>
    %57 = vector.broadcast %56 : vector<1x8xf32> to vector<324x8xf32>
    %58 = arith.mulf %55, %57 : vector<324x8xf32>
    %c0_58 = arith.constant 0 : index
    %c0_59 = arith.constant 0 : index
    %59 = vector.load %arg8[%c0_58, %c0_59] : memref<1x8xf32, #tpu.memory_space<vmem>>, vector<1x8xf32>
    %60 = vector.broadcast %59 : vector<1x8xf32> to vector<324x8xf32>
    %61 = arith.addf %58, %60 : vector<324x8xf32>
    %c0_60 = arith.constant 0 : index
    %c19_61 = arith.constant 19 : index
    %c0_62 = arith.constant 0 : index
    %62 = vector.load %arg1[%c0_60, %c19_61, %c0_62] : memref<1x362x8xf32, #tpu.memory_space<vmem>>, vector<1x324x8xf32>
    %63 = vector.shape_cast %62 : vector<1x324x8xf32> to vector<324x8xf32>
    %64 = arith.addf %61, %63 : vector<324x8xf32>
    %cst_63 = arith.constant 5.000000e-01 : f32
    %65 = vector.broadcast %cst_63 : f32 to vector<324x8xf32>
    %66 = arith.mulf %65, %64 : vector<324x8xf32>
    %cst_64 = arith.constant 0.707106769 : f32
    %67 = vector.broadcast %cst_64 : f32 to vector<324x8xf32>
    %68 = arith.mulf %64, %67 : vector<324x8xf32>
    %69 = math.erf %68 : vector<324x8xf32>
    %cst_65 = arith.constant 1.000000e+00 : f32
    %70 = vector.broadcast %cst_65 : f32 to vector<324x8xf32>
    %71 = arith.addf %70, %69 : vector<324x8xf32>
    %72 = arith.mulf %66, %71 : vector<324x8xf32>
    %c0_66 = arith.constant 0 : index
    %c0_67 = arith.constant 0 : index
    %c0_68 = arith.constant 0 : index
    %73 = vector.load %arg9[%c0_66, %c0_67, %c0_68] : memref<1x324x8xf32, #tpu.memory_space<vmem>>, vector<1x324x8xf32>
    %74 = vector.shape_cast %73 : vector<1x324x8xf32> to vector<324x8xf32>
    %75 = vector.shape_cast %72 : vector<324x8xf32> to vector<1x324x8xf32>
    tpu.vector_store %arg9[%c0_66, %c0_67, %c0_68], %75 {strides = array<i32>} : memref<1x324x8xf32, #tpu.memory_space<vmem>>, vector<1x324x8xf32>,
    return
  }
  func.func @transform_0(%arg0: i32) -> (i32, i32, i32) {
    %c0_i32 = arith.constant 0 : i32
    %c0_i32_0 = arith.constant 0 : i32
    %c0_i32_1 = arith.constant 0 : i32
    return %arg0, %c0_i32, %c0_i32_0 : i32, i32, i32
  }
  func.func @transform_1(%arg0: i32) -> (i32, i32) {
    %c0_i32 = arith.constant 0 : i32
    %c0_i32_0 = arith.constant 0 : i32
    %c0_i32_1 = arith.constant 0 : i32
    return %c0_i32, %c0_i32_0 : i32, i32
  }
  func.func @transform_2(%arg0: i32) -> (i32, i32) {
    %c0_i32 = arith.constant 0 : i32
    %c0_i32_0 = arith.constant 0 : i32
    %c0_i32_1 = arith.constant 0 : i32
    return %c0_i32, %c0_i32_0 : i32, i32
  }
  func.func @transform_3(%arg0: i32) -> (i32, i32) {
    %c0_i32 = arith.constant 0 : i32
    %c0_i32_0 = arith.constant 0 : i32
    %c0_i32_1 = arith.constant 0 : i32
    return %c0_i32, %c0_i32_0 : i32, i32
  }
  func.func @transform_4(%arg0: i32) -> (i32, i32) {
    %c0_i32 = arith.constant 0 : i32
    %c0_i32_0 = arith.constant 0 : i32
    %c0_i32_1 = arith.constant 0 : i32
    return %c0_i32, %c0_i32_0 : i32, i32
  }
  func.func @transform_5(%arg0: i32) -> (i32, i32) {
    %c0_i32 = arith.constant 0 : i32
    %c0_i32_0 = arith.constant 0 : i32
    %c0_i32_1 = arith.constant 0 : i32
    return %c0_i32, %c0_i32_0 : i32, i32
  }
  func.func @transform_6(%arg0: i32) -> (i32, i32) {
    %c0_i32 = arith.constant 0 : i32
    %c0_i32_0 = arith.constant 0 : i32
    %c0_i32_1 = arith.constant 0 : i32
    return %c0_i32, %c0_i32_0 : i32, i32
  }
  func.func @transform_7(%arg0: i32) -> (i32, i32) {
    %c0_i32 = arith.constant 0 : i32
    %c0_i32_0 = arith.constant 0 : i32
    %c0_i32_1 = arith.constant 0 : i32
    return %c0_i32, %c0_i32_0 : i32, i32
  }
  func.func @transform_8(%arg0: i32) -> (i32, i32, i32) {
    %c0_i32 = arith.constant 0 : i32
    %c0_i32_0 = arith.constant 0 : i32
    %c0_i32_1 = arith.constant 0 : i32
    return %arg0, %c0_i32, %c0_i32_0 : i32, i32, i32
  }
}

</mosaic_0001>

<bundles_post_ra>
// kernel: tpu_custom_call.1
= control target key start
LH: loop header
LB: loop body
LE: loop exit
PB: predicated region body
PF: predicated region fallthrough
CT: control target
= control target key end

     0   :  { %s7973_s27 = smov 0   ;;  %s11208_s0 = inlined_call_operand.vmem [shape: f32[2,362,8], index: 0, kind: input, shape index: {}]   ;;  %s11209_s1 = inlined_call_operand.vmem [shape: f32[324,1], index: 1, kind: input, shape index: {}]   ;;  %s11210_s2 = inlined_call_operand.vmem [shape: bf16[72,8], index: 2, kind: input, shape index: {}]   ;;  %s11211_s3 = inlined_call_operand.vmem [shape: f32[1,8], index: 3, kind: input, shape index: {}]   ;;  %s11212_s4 = inlined_call_operand.vmem [shape: f32[1,8], index: 4, kind: input, shape index: {}]   ;;  %s11213_s5 = inlined_call_operand.vmem [shape: bf16[72,8], index: 5, kind: input, shape index: {}]   ;;  %s11214_s6 = inlined_call_operand.vmem [shape: f32[1,8], index: 6, kind: input, shape index: {}]   ;;  %s11215_s7 = inlined_call_operand.vmem [shape: f32[1,8], index: 7, kind: input, shape index: {}]   ;;  %s11216_s8 = inlined_call_operand.vmem [shape: f32[2,324,8], index: 8, kind: output, shape index: {}]  }
   0x1 LB: > { %s5793_s28 = sadd.s32 4294967295, %s7915_s27   ;;  %p5797_p0 = scmp.ge.s32.totalorder %s7915_s27, 1  ;;  %s7915_s27 = sphi %s7973_s27, %s18_s27  }
   0x2   : > { %p262_p1 = scmp.lt.s32.totalorder %s7915_s27, 3 }
   0x4   : > { %p263_p2 = pnand %p5797_p0, %p262_p1 }
   0x6   : > { %266 = sbr.rel (%p263_p2) target bundleno = 1410 (0x582), region = 52 }
   0xd   : > { %p296_p3 = scmp.lt.s32.totalorder %s5793_s28, 1  ;;  %vm1877_vm0 = vcmask 64512   ;;  %v11217_v0 = vmov 0.0   ;;  %s7918_s11 = smov 8   ;;  %vm2334_vm1 = vcmask 1043456   ;;  %vm7925_vm2 = vmmov 0  }
   0xe   : > { %2839 = vst.msk [vmem:[#allocation2] sm:$0xff] %vm1877_vm0, %v11217_v0  ;;  %2840 = vst.msk [vmem:[#allocation2 + $0x8] sm:$0xff] %vm1877_vm0, %v11217_v0  ;;  %5910 = vmatprep.subr.bf16.mxu0 %v11217_v0  ;;  %6004 = vmatprep.subr.bf16.mxu1 %v11217_v0  ;;  %s7919_s12 = smov 16   ;;  %s7920_s13 = smov 24   ;;  %vm1919_vm3 = vcmask 130048   ;;  %vm1961_vm4 = vcmask 195584  }
   0xf   : > { %2843 = vst.msk [vmem:[#allocation2 + $0x157] sm:$0xff] %vm1877_vm0, %v11217_v0  ;;  %2844 = vst.msk [vmem:[#allocation2 + $0x15f] sm:$0xff] %vm1877_vm0, %v11217_v0  ;;  %s11609_s28 = smov (!%p296_p3, %s5793_s28), 1  ;;  %s7921_s14 = smov 32   ;;  %vm2003_vm5 = vcmask 261120   ;;  %vm2045_vm6 = vcmask 326656  }
  0x10   : > { %s6098_s29 = smul.u32 368, %s11609_s28  ;;  %s7922_s15 = smov 40   ;;  %vm2087_vm7 = vcmask 392192   ;;  %vm2129_vm8 = vcmask 457728   ;;  %vm2171_vm9 = vcmask 523264   ;;  %vm2270_vm10 = vcmask 588800  }
  0x11   : > { %s7923_s16 = smov 48   ;;  %s7924_s17 = smov 56   ;;  %vm2841_vm11 = vcmask 59392   ;;  %vm3132_vm12 = vcmask 60416  }
  0x12   : > { %s7997_s10 = scalar_lea.vmem %s11208_s0, %s6098_s29  ;;  %s7926_s30 = smov 64  }
  0x13   : > { %v393_v1 = vld [vmem:[%s7997_s10 + $0x21] sm:$0xff]  ;;  %v394_v2 = vld [vmem:[%s7997_s10 + $0x29] sm:$0xff]  ;;  %v395_v6 = vld [vmem:[%s7997_s10 + $0x31] sm:$0xff] }
  0x14   : > { %v389_v3 = vld [vmem:[%s7997_s10 + $0x1] sm:$0xff]  ;;  %v6129_v4 = vpack.i.bf16 %v394_v2, %v393_v1  ;;  %v390_v5 = vld [vmem:[%s7997_s10 + $0x9] sm:$0xff]  ;;  %v396_v7 = vld [vmem:[%s7997_s10 + $0x39] sm:$0xff] }
  0x15   : > { %v6119_v8 = vpack.i.bf16 %v390_v5, %v389_v3  ;;  %v391_v9 = vld [vmem:[%s7997_s10 + $0x11] sm:$0xff]  ;;  %v392_v10 = vld [vmem:[%s7997_s10 + $0x19] sm:$0xff]  ;;  %v6134_v11 = vpack.i.bf16 %v396_v7, %v395_v6  ;;  %v397_v15 = vld [vmem:[%s7997_s10 + $0x41] sm:$0xff] }
  0x16   : > { %6130 = vrot.lane.b32.xlu1 %v6129_v4, %s7918_s11  ;;  %v6124_v12 = vpack.i.bf16 %v392_v10, %v391_v9  ;;  %v399_v13 = vld [vmem:[%s7997_s10 + $0x51] sm:$0xff]  ;;  %v400_v14 = vld [vmem:[%s7997_s10 + $0x59] sm:$0xff]  ;;  %v398_v16 = vld [vmem:[%s7997_s10 + $0x49] sm:$0xff] }
  0x17   : > { %6120 = vrot.lane.b32.xlu0 %v6119_v8, %s7918_s11  ;;  %v6144_v17 = vpack.i.bf16 %v400_v14, %v399_v13  ;;  %v6139_v18 = vpack.i.bf16 %v398_v16, %v397_v15  ;;  %v403_v19 = vld [vmem:[%s7997_s10 + $0x71] sm:$0xff]  ;;  %v404_v20 = vld [vmem:[%s7997_s10 + $0x79] sm:$0xff]  ;;  %v401_v21 = vld [vmem:[%s7997_s10 + $0x61] sm:$0xff] }
  0x18   : > { %v402_v22 = vld [vmem:[%s7997_s10 + $0x69] sm:$0xff]  ;;  %v6154_v23 = vpack.i.bf16 %v404_v20, %v403_v19  ;;  %v407_v25 = vld [vmem:[%s7997_s10 + $0x91] sm:$0xff]  ;;  %v408_v26 = vld [vmem:[%s7997_s10 + $0x99] sm:$0xff] }
  0x19   : > { %v6149_v24 = vpack.i.bf16 %v402_v22, %v401_v21  ;;  %v405_v27 = vld [vmem:[%s7997_s10 + $0x81] sm:$0xff]  ;;  %v406_v28 = vld [vmem:[%s7997_s10 + $0x89] sm:$0xff]  ;;  %v6164_v29 = vpack.i.bf16 %v408_v26, %v407_v25  ;;  %v411_v31 = vld [vmem:[%s7997_s10 + $0xb1] sm:$0xff] }
  0x1a   : > { %6135 = vrot.lane.b32.xlu1 %v6134_v11, %s7918_s11  ;;  %v6159_v30 = vpack.i.bf16 %v406_v28, %v405_v27  ;;  %v412_v32 = vld [vmem:[%s7997_s10 + $0xb9] sm:$0xff]  ;;  %v409_v33 = vld [vmem:[%s7997_s10 + $0xa1] sm:$0xff]  ;;  %v410_v34 = vld [vmem:[%s7997_s10 + $0xa9] sm:$0xff] }
  0x1b   : > { %6125 = vrot.lane.b32.xlu0 %v6124_v12, %s7918_s11  ;;  %v6174_v35 = vpack.i.bf16 %v412_v32, %v411_v31  ;;  %v6169_v36 = vpack.i.bf16 %v410_v34, %v409_v33  ;;  %v415_v37 = vld [vmem:[%s7997_s10 + $0xd1] sm:$0xff]  ;;  %v416_v38 = vld [vmem:[%s7997_s10 + $0xd9] sm:$0xff]  ;;  %v413_v39 = vld [vmem:[%s7997_s10 + $0xc1] sm:$0xff] }
  0x1c   : > { %v414_v40 = vld [vmem:[%s7997_s10 + $0xc9] sm:$0xff]  ;;  %v6184_v41 = vpack.i.bf16 %v416_v38, %v415_v37  ;;  %v419_v43 = vld [vmem:[%s7997_s10 + $0xf1] sm:$0xff]  ;;  %v420_v44 = vld [vmem:[%s7997_s10 + $0xf9] sm:$0xff] }
  0x1d   : > { %v6179_v42 = vpack.i.bf16 %v414_v40, %v413_v39  ;;  %v417_v45 = vld [vmem:[%s7997_s10 + $0xe1] sm:$0xff]  ;;  %v418_v46 = vld [vmem:[%s7997_s10 + $0xe9] sm:$0xff]  ;;  %v6194_v47 = vpack.i.bf16 %v420_v44, %v419_v43  ;;  %v423_v49 = vld [vmem:[%s7997_s10 + $0x111] sm:$0xff] }
  0x1e   : > { %6145 = vrot.lane.b32.xlu1 %v6144_v17, %s7918_s11  ;;  %v6189_v48 = vpack.i.bf16 %v418_v46, %v417_v45  ;;  %v424_v50 = vld [vmem:[%s7997_s10 + $0x119] sm:$0xff]  ;;  %v421_v51 = vld [vmem:[%s7997_s10 + $0x101] sm:$0xff]  ;;  %v422_v52 = vld [vmem:[%s7997_s10 + $0x109] sm:$0xff] }
  0x1f   : > { %6140 = vrot.lane.b32.xlu0 %v6139_v18, %s7918_s11  ;;  %v6204_v53 = vpack.i.bf16 %v424_v50, %v423_v49  ;;  %v6199_v54 = vpack.i.bf16 %v422_v52, %v421_v51  ;;  %v427_v55 = vld [vmem:[%s7997_s10 + $0x131] sm:$0xff]  ;;  %v428_v56 = vld [vmem:[%s7997_s10 + $0x139] sm:$0xff]  ;;  %v425_v57 = vld [vmem:[%s7997_s10 + $0x121] sm:$0xff] }
  0x20   : > { %v426_v58 = vld [vmem:[%s7997_s10 + $0x129] sm:$0xff]  ;;  %v6214_v59 = vpack.i.bf16 %v428_v56, %v427_v55  ;;  %v429_v63 = vld [vmem:[%s7997_s10 + $0x141] sm:$0xf]  ;;  %v432_v6 = vld [vmem:[%s7997_s10 + $0x12] sm:$0xff] }
  0x21   : > { %v6209_v60 = vpack.i.bf16 %v426_v58, %v425_v57  ;;  %v430_v61 = vld [vmem:[%s7997_s10 + $0x2] sm:$0xff]  ;;  %v431_v62 = vld [vmem:[%s7997_s10 + $0xa] sm:$0xff]  ;;  %v433_v7 = vld [vmem:[%s7997_s10 + $0x1a] sm:$0xff] }
  0x22   : > { %6155 = vrot.lane.b32.xlu1 %v6154_v23, %s7918_s11  ;;  %v3175_v1 = vld [vmem:[#allocation2 + $0x1] sm:$0xff]  ;;  %v6224_v2 = vpack.i.bf16 %v431_v62, %v430_v61  ;;  %v435_v5 = vld [vmem:[%s7997_s10 + $0x2a] sm:$0xff]  ;;  %v8070_v9 = vpack.i.bf16 %v433_v7, %v432_v6  ;;  %v436_v12 = vld [vmem:[%s7997_s10 + $0x32] sm:$0xff] }
  0x23   : > { %6150 = vrot.lane.b32.xlu0 %v6149_v24, %s7918_s11  ;;  %v6219_v3 = vpack.i.bf16 %v3175_v1, %v429_v63  ;;  %v434_v4 = vld [vmem:[%s7997_s10 + $0x22] sm:$0xff]  ;;  %v439_v11 = vld [vmem:[%s7997_s10 + $0x4a] sm:$0xff]  ;;  %v437_v13 = vld [vmem:[%s7997_s10 + $0x3a] sm:$0xff] }
  0x24   : > { %v8067_v8 = vpack.i.bf16 %v435_v5, %v434_v4  ;;  %v438_v10 = vld [vmem:[%s7997_s10 + $0x42] sm:$0xff]  ;;  %v8082_v15 = vpack.i.bf16 %v437_v13, %v436_v12  ;;  %v443_v17 = vld [vmem:[%s7997_s10 + $0x6a] sm:$0xff]  ;;  %v440_v18 = vld [vmem:[%s7997_s10 + $0x52] sm:$0xff] }
  0x25   : > { %v8078_v14 = vpack.i.bf16 %v439_v11, %v438_v10  ;;  %v442_v16 = vld [vmem:[%s7997_s10 + $0x62] sm:$0xff]  ;;  %v441_v19 = vld [vmem:[%s7997_s10 + $0x5a] sm:$0xff]  ;;  %v447_v23 = vld [vmem:[%s7997_s10 + $0x8a] sm:$0xff] }
  0x26   : > { %6165 = vrot.lane.b32.xlu1 %v6164_v29, %s7918_s11  ;;  %v8090_v20 = vpack.i.bf16 %v443_v17, %v442_v16  ;;  %v8094_v21 = vpack.i.bf16 %v441_v19, %v440_v18  ;;  %v446_v22 = vld [vmem:[%s7997_s10 + $0x82] sm:$0xff]  ;;  %v444_v24 = vld [vmem:[%s7997_s10 + $0x72] sm:$0xff]  ;;  %v445_v25 = vld [vmem:[%s7997_s10 + $0x7a] sm:$0xff] }
  0x27   : > { %6160 = vrot.lane.b32.xlu0 %v6159_v30, %s7918_s11  ;;  %v6264_v26 = vpack.i.bf16 %v447_v23, %v446_v22  ;;  %v6259_v27 = vpack.i.bf16 %v445_v25, %v444_v24  ;;  %v450_v28 = vld [vmem:[%s7997_s10 + $0xa2] sm:$0xff]  ;;  %v451_v29 = vld [vmem:[%s7997_s10 + $0xaa] sm:$0xff]  ;;  %v448_v30 = vld [vmem:[%s7997_s10 + $0x92] sm:$0xff] }
  0x28   : > { %v449_v31 = vld [vmem:[%s7997_s10 + $0x9a] sm:$0xff]  ;;  %v6274_v32 = vpack.i.bf16 %v451_v29, %v450_v28  ;;  %v454_v34 = vld [vmem:[%s7997_s10 + $0xc2] sm:$0xff]  ;;  %v477_v16 = vld [vmem:[%s7997_s10 + $0x2b] sm:$0xff] }
  0x29   : > { %v6269_v33 = vpack.i.bf16 %v449_v31, %v448_v30  ;;  %v453_v37 = vld [vmem:[%s7997_s10 + $0xba] sm:$0xff]  ;;  %v458_v40 = vld [vmem:[%s7997_s10 + $0xe2] sm:$0xff]  ;;  %v481_v24 = vld [vmem:[%s7997_s10 + $0x4b] sm:$0xff] }
  0x2a   : > { %6175 = vrot.lane.b32.xlu1 %v6174_v35, %s7918_s11  ;;  %v455_v35 = vld [vmem:[%s7997_s10 + $0xca] sm:$0xff]  ;;  %v457_v43 = vld [vmem:[%s7997_s10 + $0xda] sm:$0xff]  ;;  %v462_v46 = vld [vmem:[%s7997_s10 + $0x102] sm:$0xff] }
  0x2b   : > { %6170 = vrot.lane.b32.xlu0 %v6169_v36, %s7918_s11  ;;  %v452_v36 = vld [vmem:[%s7997_s10 + $0xb2] sm:$0xff]  ;;  %v6284_v38 = vpack.i.bf16 %v455_v35, %v454_v34  ;;  %v461_v49 = vld [vmem:[%s7997_s10 + $0xfa] sm:$0xff]  ;;  %v466_v52 = vld [vmem:[%s7997_s10 + $0x122] sm:$0xff] }
  0x2c   : > { %v6279_v39 = vpack.i.bf16 %v453_v37, %v452_v36  ;;  %v465_v55 = vld [vmem:[%s7997_s10 + $0x11a] sm:$0xff]  ;;  %v470_v58 = vld [vmem:[%s7997_s10 + $0x142] sm:$0xf] }
  0x2d   : > { %v469_v61 = vld [vmem:[%s7997_s10 + $0x13a] sm:$0xff]  ;;  %v471_v1 = vld [vmem:[%s7997_s10 + $0x142] sm:$0xff] }
  0x2e   : > { %6185 = vrot.lane.b32.xlu1 %v6184_v41, %s7918_s11  ;;  %v459_v41 = vld [vmem:[%s7997_s10 + $0xea] sm:$0xff]  ;;  %v474_v6 = vld [vmem:[%s7997_s10 + $0x13] sm:$0xff]  ;;  %v475_v7 = vld [vmem:[%s7997_s10 + $0x1b] sm:$0xff] }
  0x2f   : > { %6180 = vrot.lane.b32.xlu0 %v6179_v42, %s7918_s11  ;;  %v456_v42 = vld [vmem:[%s7997_s10 + $0xd2] sm:$0xff]  ;;  %v6294_v44 = vpack.i.bf16 %v459_v41, %v458_v40  ;;  %v6429_v10 = vpack.i.bf16 %v475_v7, %v474_v6  ;;  %v479_v12 = vld [vmem:[%s7997_s10 + $0x3b] sm:$0xff]  ;;  %v480_v23 = vld [vmem:[%s7997_s10 + $0x43] sm:$0xff] }
  0x30   : > { %v6289_v45 = vpack.i.bf16 %v457_v43, %v456_v42  ;;  %v478_v11 = vld [vmem:[%s7997_s10 + $0x33] sm:$0xff]  ;;  %v487_v29 = vld [vmem:[%s7997_s10 + $0x7b] sm:$0xff]  ;;  %v484_v31 = vld [vmem:[%s7997_s10 + $0x63] sm:$0xff] }
  0x31   : > { %v6439_v18 = vpack.i.bf16 %v479_v12, %v478_v11  ;;  %v486_v28 = vld [vmem:[%s7997_s10 + $0x73] sm:$0xff]  ;;  %v491_v37 = vld [vmem:[%s7997_s10 + $0x9b] sm:$0xff]  ;;  %v489_v40 = vld [vmem:[%s7997_s10 + $0x8b] sm:$0xff] }
  0x32   : > { %6195 = vrot.lane.b32.xlu1 %v6194_v47, %s7918_s11  ;;  %v463_v47 = vld [vmem:[%s7997_s10 + $0x10a] sm:$0xff]  ;;  %v6459_v34 = vpack.i.bf16 %v487_v29, %v486_v28  ;;  %v490_v36 = vld [vmem:[%s7997_s10 + $0x93] sm:$0xff]  ;;  %v548_v0 = vld [vmem:[%s7997_s10 + $0x11c] sm:$0xff] }
  0x33   : > { %6190 = vrot.lane.b32.xlu0 %v6189_v48, %s7918_s11  ;;  %v460_v48 = vld [vmem:[%s7997_s10 + $0xf2] sm:$0xff]  ;;  %v6304_v50 = vpack.i.bf16 %v463_v47, %v462_v46  ;;  %v6469_v42 = vpack.i.bf16 %v491_v37, %v490_v36  ;;  %v492_v47 = vld [vmem:[%s7997_s10 + $0xa3] sm:$0xff] }
  0x34   : > { %v6299_v51 = vpack.i.bf16 %v461_v49, %v460_v48  ;;  %v493_v48 = vld [vmem:[%s7997_s10 + $0xab] sm:$0xff]  ;;  %v506_v7 = vld [vmem:[%s7997_s10 + $0x113] sm:$0xff]  ;;  %v504_v12 = vld [vmem:[%s7997_s10 + $0x103] sm:$0xff] }
  0x35   : > { %v517_v37 = vld [vmem:[%s7997_s10 + $0x24] sm:$0xff] }
  0x36   : > { %6205 = vrot.lane.b32.xlu1 %v6204_v53, %s7918_s11  ;;  %v467_v53 = vld [vmem:[%s7997_s10 + $0x12a] sm:$0xff] }
  0x37   : > { %6200 = vrot.lane.b32.xlu0 %v6199_v54, %s7918_s11  ;;  %v464_v54 = vld [vmem:[%s7997_s10 + $0x112] sm:$0xff]  ;;  %v6314_v56 = vpack.i.bf16 %v467_v53, %v466_v52  ;;  %v499_v53 = vld [vmem:[%s7997_s10 + $0xdb] sm:$0xff] }
  0x38   : > { %v6309_v57 = vpack.i.bf16 %v465_v55, %v464_v54  ;;  %v498_v52 = vld [vmem:[%s7997_s10 + $0xd3] sm:$0xff]  ;;  %v496_v55 = vld [vmem:[%s7997_s10 + $0xc3] sm:$0xff] }
  0x3a   : > { %6215 = vrot.lane.b32.xlu1 %v6214_v59, %s7918_s11  ;;  %v3216_v59 = vld [vmem:[#allocation2 + $0x2] sm:$0xff] }
  0x3b   : > { %6210 = vrot.lane.b32.xlu0 %v6209_v60, %s7918_s11  ;;  %v468_v60 = vld [vmem:[%s7997_s10 + $0x132] sm:$0xff]  ;;  %v6324_v62 = vpack.i.bf16 %v3216_v59, %v470_v58  ;;  %v6489_v58 = vpack.i.bf16 %v499_v53, %v498_v52  ;;  %v520_v53 = vld [vmem:[%s7997_s10 + $0x3c] sm:$0xff] }
  0x3c   : > { %v6319_v63 = vpack.i.bf16 %v469_v61, %v468_v60  ;;  %v502_v60 = vld [vmem:[%s7997_s10 + $0xf3] sm:$0xff]  ;;  %v503_v61 = vld [vmem:[%s7997_s10 + $0xfb] sm:$0xff] }
  0x3d   : > { %v519_v52 = vld [vmem:[%s7997_s10 + $0x34] sm:$0xff] }
  0x3e   : > { %6225 = vrot.lane.b32.xlu1 %v6224_v2, %s7919_s12  ;;  %v472_v2 = vld [vmem:[%s7997_s10 + $0x14a] sm:$0xff] }
  0x3f   : > { %6220 = vrot.lane.b32.xlu0 %v6219_v3, %s7918_s11  ;;  %v6424_v5 = vpack.i.bf16 %v472_v2, %v471_v1  ;;  %v501_v1 = vld [vmem:[%s7997_s10 + $0xeb] sm:$0xff] }
  0x42   : > { %6235 = vrot.lane.b32.xlu1 %v8067_v8, %s7919_s12 }
  0x43   : > { %6230 = vrot.lane.b32.xlu0 %v8070_v9, %s7919_s12 }
  0x46   : > { %6245 = vrot.lane.b32.xlu1 %v8078_v14, %s7919_s12 }
  0x47   : > { %6240 = vrot.lane.b32.xlu0 %v8082_v15, %s7919_s12 }
  0x4a   : > { %6255 = vrot.lane.b32.xlu1 %v8090_v20, %s7919_s12 }
  0x4b   : > { %6250 = vrot.lane.b32.xlu0 %v8094_v21, %s7919_s12 }
  0x4e   : > { %6265 = vrot.lane.b32.xlu1 %v6264_v26, %s7919_s12 }
  0x4f   : > { %6260 = vrot.lane.b32.xlu0 %v6259_v27, %s7919_s12 }
  0x52   : > { %6275 = vrot.lane.b32.xlu1 %v6274_v32, %s7919_s12 }
  0x53   : > { %6270 = vrot.lane.b32.xlu0 %v6269_v33, %s7919_s12 }
  0x56   : > { %6285 = vrot.lane.b32.xlu1 %v6284_v38, %s7919_s12 }
  0x57   : > { %6280 = vrot.lane.b32.xlu0 %v6279_v39, %s7919_s12 }
  0x5a   : > { %6295 = vrot.lane.b32.xlu1 %v6294_v44, %s7919_s12 }
  0x5b   : > { %6290 = vrot.lane.b32.xlu0 %v6289_v45, %s7919_s12 }
  0x5e   : > { %6305 = vrot.lane.b32.xlu1 %v6304_v50, %s7919_s12 }
  0x5f   : > { %6300 = vrot.lane.b32.xlu0 %v6299_v51, %s7919_s12 }
  0x62   : > { %6315 = vrot.lane.b32.xlu1 %v6314_v56, %s7919_s12 }
  0x63   : > { %6310 = vrot.lane.b32.xlu0 %v6309_v57, %s7919_s12 }
  0x66   : > { %6325 = vrot.lane.b32.xlu1 %v6324_v62, %s7919_s12 }
  0x67   : > { %6320 = vrot.lane.b32.xlu0 %v6319_v63, %s7919_s12 }
  0x6a   : > { %6335 = vrot.lane.b32.xlu1 %v8067_v8, %s7920_s13 }
  0x6b   : > { %6330 = vrot.lane.b32.xlu0 %v8070_v9, %s7920_s13 }
  0x6e   : > { %6345 = vrot.lane.b32.xlu1 %v8078_v14, %s7920_s13  ;;  %v473_v14 = vld [vmem:[%s7997_s10 + $0x152] sm:$0xf] }
  0x6f   : > { %6340 = vrot.lane.b32.xlu0 %v8082_v15, %s7920_s13  ;;  %v476_v15 = vld [vmem:[%s7997_s10 + $0x23] sm:$0xff] }
  0x70   : > { %v6434_v19 = vpack.i.bf16 %v477_v16, %v476_v15 }
  0x72   : > { %6355 = vrot.lane.b32.xlu1 %v8090_v20, %s7920_s13  ;;  %v482_v20 = vld [vmem:[%s7997_s10 + $0x53] sm:$0xff] }
  0x73   : > { %6350 = vrot.lane.b32.xlu0 %v8094_v21, %s7920_s13  ;;  %v483_v21 = vld [vmem:[%s7997_s10 + $0x5b] sm:$0xff] }
  0x76   : > { %6365 = vrot.lane.b32.xlu1 %v6264_v26, %s7920_s13  ;;  %v6449_v26 = vpack.i.bf16 %v483_v21, %v482_v20  ;;  %v511_v20 = vld [vmem:[%s7997_s10 + $0x13b] sm:$0xff] }
  0x77   : > { %6360 = vrot.lane.b32.xlu0 %v6259_v27, %s7920_s13  ;;  %v6444_v27 = vpack.i.bf16 %v481_v24, %v480_v23  ;;  %v508_v23 = vld [vmem:[%s7997_s10 + $0x123] sm:$0xff]  ;;  %v509_v24 = vld [vmem:[%s7997_s10 + $0x12b] sm:$0xff] }
  0x78   : > { %v6514_v28 = vpack.i.bf16 %v509_v24, %v508_v23  ;;  %v533_v24 = vld [vmem:[%s7997_s10 + $0xa4] sm:$0xff] }
  0x7a   : > { %6375 = vrot.lane.b32.xlu1 %v6274_v32, %s7920_s13  ;;  %v485_v32 = vld [vmem:[%s7997_s10 + $0x6b] sm:$0xff] }
  0x7b   : > { %6370 = vrot.lane.b32.xlu0 %v6269_v33, %s7920_s13  ;;  %v6454_v35 = vpack.i.bf16 %v485_v32, %v484_v31  ;;  %v512_v31 = vld [vmem:[%s7997_s10 + $0x143] sm:$0xff]  ;;  %v513_v32 = vld [vmem:[%s7997_s10 + $0x14b] sm:$0xff] }
  0x7c   : > { %v6524_v36 = vpack.i.bf16 %v513_v32, %v512_v31  ;;  %v531_v31 = vld [vmem:[%s7997_s10 + $0x94] sm:$0xff]  ;;  %v532_v32 = vld [vmem:[%s7997_s10 + $0x9c] sm:$0xff] }
  0x7e   : > { %6385 = vrot.lane.b32.xlu1 %v6284_v38, %s7920_s13 }
  0x7f   : > { %6380 = vrot.lane.b32.xlu0 %v6279_v39, %s7920_s13  ;;  %v488_v39 = vld [vmem:[%s7997_s10 + $0x83] sm:$0xff] }
  0x80   : > { %v6464_v43 = vpack.i.bf16 %v489_v40, %v488_v39  ;;  %v518_v39 = vld [vmem:[%s7997_s10 + $0x2c] sm:$0xff] }
  0x82   : > { %6395 = vrot.lane.b32.xlu1 %v6294_v44, %s7920_s13  ;;  %v494_v44 = vld [vmem:[%s7997_s10 + $0xb3] sm:$0xff] }
  0x83   : > { %6390 = vrot.lane.b32.xlu0 %v6289_v45, %s7920_s13  ;;  %v495_v45 = vld [vmem:[%s7997_s10 + $0xbb] sm:$0xff] }
  0x86   : > { %6405 = vrot.lane.b32.xlu1 %v6304_v50, %s7920_s13  ;;  %v6479_v50 = vpack.i.bf16 %v495_v45, %v494_v44  ;;  %v8288_v45 = vpack.i.bf16 %v518_v39, %v517_v37  ;;  %v8352_v37 = vpack.i.bf16 %v532_v32, %v531_v31  ;;  %v537_v39 = vld [vmem:[%s7997_s10 + $0xc4] sm:$0xff]  ;;  %v543_v32 = vld [vmem:[%s7997_s10 + $0xf4] sm:$0xff] }
  0x87   : > { %6400 = vrot.lane.b32.xlu0 %v6299_v51, %s7920_s13  ;;  %v6474_v51 = vpack.i.bf16 %v493_v48, %v492_v47  ;;  %v521_v48 = vld [vmem:[%s7997_s10 + $0x44] sm:$0xff] }
  0x88   : > { %v8165_v3 = vpop.permute.xlu1 %6130 }
  0x89   : > { %v8167_v4 = vpop.permute.xlu0 %6120 }
  0x8a   : > { %6415 = vrot.lane.b32.xlu1 %v6314_v56, %s7920_s13  ;;  %v497_v56 = vld [vmem:[%s7997_s10 + $0xcb] sm:$0xff] }
  0x8b   : > { %6410 = vrot.lane.b32.xlu0 %v6309_v57, %s7920_s13  ;;  %v6484_v59 = vpack.i.bf16 %v497_v56, %v496_v55 }
  0x8c   : > { %v8173_v8 = vpop.permute.xlu1 %6135 }
  0x8d   : > { %v8175_v9 = vpop.permute.xlu0 %6125 }
  0x8e   : > { %6425 = vrot.lane.b32.xlu1 %v6424_v5, %s7920_s13  ;;  %v6499_v5 = vpack.i.bf16 %v503_v61, %v502_v60  ;;  %v526_v60 = vld [vmem:[%s7997_s10 + $0x6c] sm:$0xff] }
  0x8f   : > { %6420 = vrot.lane.b32.xlu0 %v6319_v63, %s7920_s13  ;;  %v500_v63 = vld [vmem:[%s7997_s10 + $0xe3] sm:$0xff] }
  0x90   : > { %v8181_v13 = vpop.permute.xlu1 %6145  ;;  %v6494_v6 = vpack.i.bf16 %v501_v1, %v500_v63  ;;  %v523_v63 = vld [vmem:[%s7997_s10 + $0x54] sm:$0xff]  ;;  %v524_v1 = vld [vmem:[%s7997_s10 + $0x5c] sm:$0xff] }
  0x91   : > { %v8186_v17 = vpop.permute.xlu0 %6140 }
  0x92   : > { %6430 = vrot.lane.b32.xlu1 %v6429_v10, %s7921_s14  ;;  %v507_v10 = vld [vmem:[%s7997_s10 + $0x11b] sm:$0xff] }
  0x93   : > { %1052 = vrot.lane.b32.xlu0 %v473_v14, %s7920_s13  ;;  %v505_v14 = vld [vmem:[%s7997_s10 + $0x10b] sm:$0xff]  ;;  %v6509_v16 = vpack.i.bf16 %v507_v10, %v506_v7  ;;  %v8320_v7 = vpack.i.bf16 %v524_v1, %v523_v63  ;;  %v539_v1 = vld [vmem:[%s7997_s10 + $0xd4] sm:$0xff] }
  0x94   : > { %v8192_v22 = vpop.permute.xlu1 %6155  ;;  %v529_v10 = vld [vmem:[%s7997_s10 + $0x84] sm:$0xff] }
  0x95   : > { %v8196_v25 = vpop.permute.xlu0 %6150 }
  0x96   : > { %6440 = vrot.lane.b32.xlu1 %v6439_v18, %s7921_s14  ;;  %v6504_v18 = vpack.i.bf16 %v505_v14, %v504_v12  ;;  %v530_v12 = vld [vmem:[%s7997_s10 + $0x8c] sm:$0xff] }
  0x97   : > { %6435 = vrot.lane.b32.xlu0 %v6434_v19, %s7921_s14  ;;  %v510_v19 = vld [vmem:[%s7997_s10 + $0x133] sm:$0xff] }
  0x98   : > { %v8202_v30 = vpop.permute.xlu1 %6165 }
  0x99   : > { %v8206_v33 = vpop.permute.xlu0 %6160 }
  0x9a   : > { %6450 = vrot.lane.b32.xlu1 %v6449_v26, %s7921_s14 }
  0x9b   : > { %6445 = vrot.lane.b32.xlu0 %v6444_v27, %s7921_s14  ;;  %v6519_v27 = vpack.i.bf16 %v511_v20, %v510_v19  ;;  %v8332_v20 = vpack.i.bf16 %v530_v12, %v529_v10  ;;  %v540_v10 = vld [vmem:[%s7997_s10 + $0xdc] sm:$0xff] }
  0x9c   : > { %v8212_v38 = vpop.permute.xlu1 %6175 }
  0x9d   : > { %11341 = vst [vmem:[#allocation3_spill] sm:$0xff] %v8212_v38  ;;  %v8216_v41 = vpop.permute.xlu0 %6170  ;;  %v355_v38 = vld [vmem:[%s7997_s10 + $0x38] sm:$0xff] }
  0x9e   : > { %11342 = vst [vmem:[#allocation4_spill] sm:$0xff] %v8216_v41  ;;  %6460 = vrot.lane.b32.xlu1 %v6459_v34, %s7921_s14  ;;  %v6137_v41 = vunpack.i.l.bf16 %v8173_v8 }
  0x9f   : > { %6455 = vrot.lane.b32.xlu0 %v6454_v35, %s7921_s14  ;;  %v514_v35 = vld [vmem:[%s7997_s10 + $0x153] sm:$0xf] }
  0xa0   : > { %v8222_v46 = vpop.permute.xlu1 %6185 }
  0xa1   : > { %11343 = vst [vmem:[#allocation5_spill] sm:$0xff] %v8222_v46  ;;  %v8226_v49 = vpop.permute.xlu0 %6180 }
  0xa2   : > { %11344 = vst [vmem:[#allocation6_spill] sm:$0xff] %v8226_v49  ;;  %6470 = vrot.lane.b32.xlu1 %v6469_v42, %s7921_s14  ;;  %v515_v42 = vld [vmem:[%s7997_s10 + $0x14] sm:$0xff] }
  0xa3   : > { %6465 = vrot.lane.b32.xlu0 %v6464_v43, %s7921_s14  ;;  %v516_v43 = vld [vmem:[%s7997_s10 + $0x1c] sm:$0xff] }
  0xa4   : > { %v8232_v54 = vpop.permute.xlu1 %6195  ;;  %v6529_v47 = vpack.i.bf16 %v516_v43, %v515_v42  ;;  %v538_v42 = vld [vmem:[%s7997_s10 + $0xcc] sm:$0xff] }
  0xa5   : > { %11345 = vst [vmem:[#allocation7_spill] sm:$0xff] %v8232_v54  ;;  %v8236_v57 = vpop.permute.xlu0 %6190 }
  0xa6   : > { %11346 = vst [vmem:[#allocation8_spill] sm:$0xff] %v8236_v57  ;;  %6480 = vrot.lane.b32.xlu1 %v6479_v50, %s7921_s14  ;;  %v522_v50 = vld [vmem:[%s7997_s10 + $0x4c] sm:$0xff] }
  0xa7   : > { %6475 = vrot.lane.b32.xlu0 %v6474_v51, %s7921_s14  ;;  %v8301_v56 = vpack.i.bf16 %v522_v50, %v521_v48  ;;  %v536_v48 = vld [vmem:[%s7997_s10 + $0xbc] sm:$0xff] }
  0xa8   : > { %v8242_v62 = vpop.permute.xlu1 %6205 }
  0xa9   : > { %11347 = vst [vmem:[#allocation9_spill] sm:$0xff] %v8242_v62  ;;  %v8246_v2 = vpop.permute.xlu0 %6200  ;;  %v564_v62 = vld [vmem:[%s7997_s10 + $0x4d] sm:$0xff] }
  0xaa   : > { %11348 = vst [vmem:[#allocation10_spill] sm:$0xff] %v8246_v2  ;;  %6490 = vrot.lane.b32.xlu1 %v6489_v58, %s7921_s14  ;;  %v8304_v58 = vpack.i.bf16 %v520_v53, %v519_v52  ;;  %v8364_v52 = vpack.i.bf16 %v538_v42, %v537_v39  ;;  %v544_v39 = vld [vmem:[%s7997_s10 + $0xfc] sm:$0xff]  ;;  %v563_v2 = vld [vmem:[%s7997_s10 + $0x45] sm:$0xff] }
  0xab   : > { %6485 = vrot.lane.b32.xlu0 %v6484_v59, %s7921_s14  ;;  %v525_v59 = vld [vmem:[%s7997_s10 + $0x64] sm:$0xff] }
  0xac   : > { %v8252_v11 = vpop.permute.xlu1 %6215 }
  0xad   : > { %11349 = vst [vmem:[#allocation11_spill] sm:$0xff] %v8252_v11  ;;  %v8256_v15 = vpop.permute.xlu0 %6210 }
  0xae   : > { %11350 = vst [vmem:[#allocation12_spill] sm:$0xff] %v8256_v15  ;;  %6500 = vrot.lane.b32.xlu1 %v6499_v5, %s7921_s14  ;;  %v554_v15 = vld [vmem:[%s7997_s10 + $0x14c] sm:$0xff] }
  0xaf   : > { %6495 = vrot.lane.b32.xlu0 %v6494_v6, %s7921_s14  ;;  %v8316_v6 = vpack.i.bf16 %v526_v60, %v525_v59  ;;  %v541_v59 = vld [vmem:[%s7997_s10 + $0xe4] sm:$0xff]  ;;  %v542_v60 = vld [vmem:[%s7997_s10 + $0xec] sm:$0xff] }
  0xb0   : > { %v8262_v21 = vpop.permute.xlu1 %6225 }
  0xb1   : > { %v8266_v26 = vpop.permute.xlu0 %6220 }
  0xb2   : > { %11351 = vst [vmem:[#allocation13_spill] sm:$0xff] %v8266_v26  ;;  %6510 = vrot.lane.b32.xlu1 %v6509_v16, %s7921_s14  ;;  %v527_v16 = vld [vmem:[%s7997_s10 + $0x74] sm:$0xff] }
  0xb3   : > { %6505 = vrot.lane.b32.xlu0 %v6504_v18, %s7921_s14  ;;  %v528_v18 = vld [vmem:[%s7997_s10 + $0x7c] sm:$0xff] }
  0xb4   : > { %v8270_v29 = vpop.permute.xlu1 %6235  ;;  %v8336_v23 = vpack.i.bf16 %v528_v18, %v527_v16  ;;  %v8380_v16 = vpack.i.bf16 %v542_v60, %v541_v59  ;;  %v8384_v18 = vpack.i.bf16 %v540_v10, %v539_v1  ;;  %v549_v59 = vld [vmem:[%s7997_s10 + $0x124] sm:$0xff]  ;;  %v550_v60 = vld [vmem:[%s7997_s10 + $0x12c] sm:$0xff]  ;;  %v547_v10 = vld [vmem:[%s7997_s10 + $0x114] sm:$0xff] }
  0xb5   : > { %v8274_v34 = vpop.permute.xlu0 %6230 }
  0xb6   : > { %6520 = vrot.lane.b32.xlu1 %v6519_v27, %s7921_s14  ;;  %v534_v27 = vld [vmem:[%s7997_s10 + $0xac] sm:$0xff] }
  0xb7   : > { %6515 = vrot.lane.b32.xlu0 %v6514_v28, %s7921_s14 }
  0xb8   : > { %v8281_v40 = vpop.permute.xlu1 %6245 }
  0xb9   : > { %v8285_v44 = vpop.permute.xlu0 %6240 }
  0xba   : > { %1216 = vrot.lane.b32.xlu1 %v514_v35, %s7921_s14 }
  0xbb   : > { %6525 = vrot.lane.b32.xlu0 %v6524_v36, %s7921_s14  ;;  %v8348_v36 = vpack.i.bf16 %v534_v27, %v533_v24  ;;  %v545_v24 = vld [vmem:[%s7997_s10 + $0x104] sm:$0xff]  ;;  %v546_v27 = vld [vmem:[%s7997_s10 + $0x10c] sm:$0xff] }
  0xbc   : > { %v8293_v51 = vpop.permute.xlu1 %6255 }
  0xbd   : > { %11352 = vst [vmem:[#allocation14_spill] sm:$0xff] %v8293_v51  ;;  %v8297_v55 = vpop.permute.xlu0 %6250  ;;  %v6147_v51 = vunpack.i.l.bf16 %v8181_v13 }
  0xbe   : > { %11353 = vst [vmem:[#allocation15_spill] sm:$0xff] %v8297_v55  ;;  %6535 = vrot.lane.b32.xlu1 %v8288_v45, %s7922_s15  ;;  %v356_v55 = vld [vmem:[%s7997_s10 + $0x40] sm:$0xff] }
  0xbf   : > { %6530 = vrot.lane.b32.xlu0 %v6529_v47, %s7922_s15  ;;  %v535_v47 = vld [vmem:[%s7997_s10 + $0xb4] sm:$0xff] }
  0xc0   : > { %v8308_v61 = vpop.permute.xlu1 %6265  ;;  %v8368_v53 = vpack.i.bf16 %v536_v48, %v535_v47  ;;  %v6604_v47 = vpack.i.bf16 %v546_v27, %v545_v24  ;;  %v6599_v48 = vpack.i.bf16 %v544_v39, %v543_v32  ;;  %v6609_v24 = vpack.i.bf16 %v548_v0, %v547_v10  ;;  %v553_v27 = vld [vmem:[%s7997_s10 + $0x144] sm:$0xff]  ;;  %v551_v32 = vld [vmem:[%s7997_s10 + $0x134] sm:$0xff]  ;;  %v552_v39 = vld [vmem:[%s7997_s10 + $0x13c] sm:$0xff] }
  0xc1   : > { %11354 = vst [vmem:[#allocation16_spill] sm:$0xff] %v8308_v61  ;;  %v8312_v5 = vpop.permute.xlu0 %6260 }
  0xc2   : > { %11355 = vst [vmem:[#allocation17_spill] sm:$0xff] %v8312_v5  ;;  %6545 = vrot.lane.b32.xlu1 %v8301_v56, %s7922_s15  ;;  %v6123_v5 = vunpack.i.h.bf16 %v8167_v4 }
  0xc3   : > { %6540 = vrot.lane.b32.xlu0 %v8304_v58, %s7922_s15 }
  0xc4   : > { %v8324_v14 = vpop.permute.xlu1 %6275 }
  0xc5   : > { %11356 = vst [vmem:[#allocation18_spill] sm:$0xff] %v8324_v14  ;;  %v8328_v19 = vpop.permute.xlu0 %6270  ;;  %v607_v14 = vld [vmem:[%s7997_s10 + $0x5e] sm:$0xff] }
  0xc6   : > { %11357 = vst [vmem:[#allocation19_spill] sm:$0xff] %v8328_v19  ;;  %6555 = vrot.lane.b32.xlu1 %v8316_v6, %s7922_s15 }
  0xc7   : > { %6550 = vrot.lane.b32.xlu0 %v8320_v7, %s7922_s15 }
  0xc8   : > { %v8340_v28 = vpop.permute.xlu1 %6285 }
  0xc9   : > { %11358 = vst [vmem:[#allocation20_spill] sm:$0xff] %v8340_v28  ;;  %v8344_v35 = vpop.permute.xlu0 %6280 }
  0xca   : > { %11359 = vst [vmem:[#allocation21_spill] sm:$0xff] %v8344_v35  ;;  %6565 = vrot.lane.b32.xlu1 %v8332_v20, %s7922_s15 }
  0xcb   : > { %6560 = vrot.lane.b32.xlu0 %v8336_v23, %s7922_s15 }
  0xcc   : > { %v8356_v43 = vpop.permute.xlu1 %6295 }
  0xcd   : > { %11360 = vst [vmem:[#allocation22_spill] sm:$0xff] %v8356_v43  ;;  %v8360_v50 = vpop.permute.xlu0 %6290  ;;  %v568_v43 = vld [vmem:[%s7997_s10 + $0x6d] sm:$0xff] }
  0xce   : > { %11361 = vst [vmem:[#allocation23_spill] sm:$0xff] %v8360_v50  ;;  %6575 = vrot.lane.b32.xlu1 %v8348_v36, %s7922_s15 }
  0xcf   : > { %6570 = vrot.lane.b32.xlu0 %v8352_v37, %s7922_s15 }
  0xd0   : > { %v8372_v63 = vpop.permute.xlu1 %6305 }
  0xd1   : > { %11362 = vst [vmem:[#allocation24_spill] sm:$0xff] %v8372_v63  ;;  %v8376_v12 = vpop.permute.xlu0 %6300 }
  0xd2   : > { %11363 = vst [vmem:[#allocation25_spill] sm:$0xff] %v8376_v12  ;;  %6585 = vrot.lane.b32.xlu1 %v8364_v52, %s7922_s15 }
  0xd3   : > { %6580 = vrot.lane.b32.xlu0 %v8368_v53, %s7922_s15 }
  0xd4   : > { %v8388_v31 = vpop.permute.xlu1 %6315 }
  0xd5   : > { %11364 = vst [vmem:[#allocation26_spill] sm:$0xff] %v8388_v31  ;;  %v8392_v42 = vpop.permute.xlu0 %6310  ;;  %v6614_v31 = vpack.i.bf16 %v550_v60, %v549_v59  ;;  %v555_v60 = vld [vmem:[%s7997_s10 + $0x154] sm:$0xf] }
  0xd6   : > { %11365 = vst [vmem:[#allocation27_spill] sm:$0xff] %v8392_v42  ;;  %6595 = vrot.lane.b32.xlu1 %v8380_v16, %s7922_s15 }
  0xd7   : > { %6590 = vrot.lane.b32.xlu0 %v8384_v18, %s7922_s15 }
  0xd8   : > { %v8400_v1 = vpop.permute.xlu1 %6325 }
  0xd9   : > { %11366 = vst [vmem:[#allocation28_spill] sm:$0xff] %v8400_v1  ;;  %v8404_v26 = vpop.permute.xlu0 %6320  ;;  %v6624_v1 = vpack.i.bf16 %v554_v15, %v553_v27 }
  0xda   : > { %11367 = vst [vmem:[#allocation29_spill] sm:$0xff] %v8404_v26  ;;  %6605 = vrot.lane.b32.xlu1 %v6604_v47, %s7922_s15  ;;  %v6619_v26 = vpack.i.bf16 %v552_v39, %v551_v32 }
  0xdb   : > { %6600 = vrot.lane.b32.xlu0 %v6599_v48, %s7922_s15 }
  0xdc   : > { %v8410_v11 = vpop.permute.xlu1 %6335 }
  0xdd   : > { %v8414_v42 = vpop.permute.xlu0 %6330 }
  0xde   : > { %6615 = vrot.lane.b32.xlu1 %v6614_v31, %s7922_s15 }
  0xdf   : > { %6610 = vrot.lane.b32.xlu0 %v6609_v24, %s7922_s15 }
  0xe0   : > { %v8418_v63 = vpop.permute.xlu1 %6345 }
  0xe1   : > { %v8420_v59 = vpop.permute.xlu0 %6340 }
  0xe2   : > { %6625 = vrot.lane.b32.xlu1 %v6624_v1, %s7922_s15 }
  0xe3   : > { %6620 = vrot.lane.b32.xlu0 %v6619_v26, %s7922_s15 }
  0xe4   : > { %v8424_v0 = vpop.permute.xlu1 %6355 }
  0xe5   : > { %11368 = vst [vmem:[#allocation30_spill] sm:$0xff] %v8424_v0  ;;  %v8427_v10 = vpop.permute.xlu0 %6350 }
  0xe6   : > { %6630 = vrot.lane.b32.xlu1 %v8288_v45, %s7923_s16 }
  0xe7   : > { %1380 = vrot.lane.b32.xlu0 %v555_v60, %s7922_s15 }
  0xe8   : > { %v8432_v15 = vpop.permute.xlu1 %6365 }
  0xe9   : > { %11369 = vst [vmem:[#allocation31_spill] sm:$0xff] %v8432_v15  ;;  %v8434_v27 = vpop.permute.xlu0 %6360  ;;  %v353_v15 = vld [vmem:[%s7997_s10 + $0x28] sm:$0xff] }
  0xea   : > { %11370 = vst [vmem:[#allocation32_spill] sm:$0xff] %v8434_v27  ;;  %6640 = vrot.lane.b32.xlu1 %v8301_v56, %s7923_s16  ;;  %v350_v27 = vld [vmem:[%s7997_s10 + $0x10] sm:$0xff] }
  0xeb   : > { %6635 = vrot.lane.b32.xlu0 %v8304_v58, %s7923_s16 }
  0xec   : > { %v8440_v32 = vpop.permute.xlu1 %6375 }
  0xed   : > { %11371 = vst [vmem:[#allocation33_spill] sm:$0xff] %v8440_v32  ;;  %v8442_v39 = vpop.permute.xlu0 %6370 }
  0xee   : > { %11372 = vst [vmem:[#allocation34_spill] sm:$0xff] %v8442_v39  ;;  %6650 = vrot.lane.b32.xlu1 %v8316_v6, %s7923_s16 }
  0xef   : > { %6645 = vrot.lane.b32.xlu0 %v8320_v7, %s7923_s16 }
  0xf0   : > { %v8448_v45 = vpop.permute.xlu1 %6385 }
  0xf1   : > { %11373 = vst [vmem:[#allocation35_spill] sm:$0xff] %v8448_v45  ;;  %v8450_v60 = vpop.permute.xlu0 %6380  ;;  %v596_v45 = vld [vmem:[%s7997_s10 + $0x14d] sm:$0xff] }
  0xf2   : > { %11374 = vst [vmem:[#allocation36_spill] sm:$0xff] %v8450_v60  ;;  %6660 = vrot.lane.b32.xlu1 %v8332_v20, %s7923_s16  ;;  %v606_v60 = vld [vmem:[%s7997_s10 + $0x56] sm:$0xff] }
  0xf3   : > { %6655 = vrot.lane.b32.xlu0 %v8336_v23, %s7923_s16 }
  0xf4   : > { %v8456_v56 = vpop.permute.xlu1 %6395 }
  0xf5   : > { %11375 = vst [vmem:[#allocation37_spill] sm:$0xff] %v8456_v56  ;;  %v8458_v58 = vpop.permute.xlu0 %6390 }
  0xf6   : > { %11376 = vst [vmem:[#allocation38_spill] sm:$0xff] %v8458_v58  ;;  %6670 = vrot.lane.b32.xlu1 %v8348_v36, %s7923_s16 }
  0xf7   : > { %6665 = vrot.lane.b32.xlu0 %v8352_v37, %s7923_s16 }
  0xf8   : > { %v8464_v6 = vpop.permute.xlu1 %6405 }
  0xf9   : > { %11377 = vst [vmem:[#allocation39_spill] sm:$0xff] %v8464_v6  ;;  %v8466_v7 = vpop.permute.xlu0 %6400 }
  0xfa   : > { %11378 = vst [vmem:[#allocation40_spill] sm:$0xff] %v8466_v7  ;;  %6680 = vrot.lane.b32.xlu1 %v8364_v52, %s7923_s16 }
  0xfb   : > { %6675 = vrot.lane.b32.xlu0 %v8368_v53, %s7923_s16 }
  0xfc   : > { %v8472_v20 = vpop.permute.xlu1 %6415 }
  0xfd   : > { %11379 = vst [vmem:[#allocation41_spill] sm:$0xff] %v8472_v20  ;;  %v8474_v23 = vpop.permute.xlu0 %6410 }
  0xfe   : > { %11380 = vst [vmem:[#allocation42_spill] sm:$0xff] %v8474_v23  ;;  %6690 = vrot.lane.b32.xlu1 %v8380_v16, %s7923_s16  ;;  %v560_v23 = vld [vmem:[%s7997_s10 + $0x2d] sm:$0xff] }
  0xff   : > { %6685 = vrot.lane.b32.xlu0 %v8384_v18, %s7923_s16  ;;  %v556_v18 = vld [vmem:[%s7997_s10 + $0x154] sm:$0xff] }
 0x100   : > { %v8480_v36 = vpop.permute.xlu1 %6425 }
 0x101   : > { %11381 = vst [vmem:[#allocation43_spill] sm:$0xff] %v8480_v36  ;;  %v8482_v37 = vpop.permute.xlu0 %6420  ;;  %v557_v36 = vld [vmem:[%s7997_s10 + $0x15c] sm:$0xff] }
 0x102   : > { %11382 = vst [vmem:[#allocation44_spill] sm:$0xff] %v8482_v37  ;;  %6700 = vrot.lane.b32.xlu1 %v6604_v47, %s7923_s16  ;;  %v558_v47 = vld [vmem:[%s7997_s10 + $0x164] sm:$0xf] }
 0x103   : > { %6695 = vrot.lane.b32.xlu0 %v6599_v48, %s7923_s16  ;;  %v6724_v48 = vpack.i.bf16 %v557_v36, %v556_v18  ;;  %v566_v36 = vld [vmem:[%s7997_s10 + $0x5d] sm:$0xff] }
 0x104   : > { %v8486_v52 = vpop.permute.xlu1 %6430 }
 0x105   : > { %v8488_v53 = vpop.permute.xlu0 %1052 }
 0x106   : > { %11383 = vst [vmem:[#allocation45_spill] sm:$0xff] %v8488_v53  ;;  %6710 = vrot.lane.b32.xlu1 %v6614_v31, %s7923_s16  ;;  %v561_v53 = vld [vmem:[%s7997_s10 + $0x35] sm:$0xff]  ;;  %v562_v31 = vld [vmem:[%s7997_s10 + $0x3d] sm:$0xff] }
 0x107   : > { %6705 = vrot.lane.b32.xlu0 %v6609_v24, %s7923_s16  ;;  %v559_v24 = vld [vmem:[%s7997_s10 + $0x25] sm:$0xff]  ;;  %v6734_v12 = vpack.i.bf16 %v562_v31, %v561_v53  ;;  %v569_v53 = vld [vmem:[%s7997_s10 + $0x75] sm:$0xff] }
 0x108   : > { %v8492_v16 = vpop.permute.xlu1 %6440 }
 0x109   : > { %v8496_v37 = vpop.permute.xlu0 %6435 }
 0x10a   : > { %6720 = vrot.lane.b32.xlu1 %v6624_v1, %s7923_s16  ;;  %v565_v1 = vld [vmem:[%s7997_s10 + $0x55] sm:$0xff] }
 0x10b   : > { %6715 = vrot.lane.b32.xlu0 %v6619_v26, %s7923_s16  ;;  %v6729_v26 = vpack.i.bf16 %v560_v23, %v559_v24  ;;  %v6739_v23 = vpack.i.bf16 %v564_v62, %v563_v2  ;;  %v567_v24 = vld [vmem:[%s7997_s10 + $0x65] sm:$0xff]  ;;  %v574_v62 = vld [vmem:[%s7997_s10 + $0x9d] sm:$0xff] }
 0x10c   : > { %v8503_v20 = vpop.permute.xlu1 %6450 }
 0x10d   : > { %v8507_v6 = vpop.permute.xlu0 %6445 }
 0x10e   : > { %1506 = vrot.lane.b32.xlu1 %v558_v47, %s7923_s16  ;;  %v6744_v47 = vpack.i.bf16 %v566_v36, %v565_v1  ;;  %v571_v1 = vld [vmem:[%s7997_s10 + $0x85] sm:$0xff]  ;;  %v572_v36 = vld [vmem:[%s7997_s10 + $0x8d] sm:$0xff] }
 0x10f   : > { %6725 = vrot.lane.b32.xlu0 %v6724_v48, %s7923_s16  ;;  %v570_v48 = vld [vmem:[%s7997_s10 + $0x7d] sm:$0xff] }
 0x110   : > { %v8513_v18 = vpop.permute.xlu1 %6460  ;;  %v6754_v50 = vpack.i.bf16 %v570_v48, %v569_v53  ;;  %v575_v48 = vld [vmem:[%s7997_s10 + $0xa5] sm:$0xff] }
 0x111   : > { %11384 = vst [vmem:[#allocation46_spill] sm:$0xff] %v8513_v18  ;;  %v8517_v7 = vpop.permute.xlu0 %6455  ;;  %v6127_v18 = vunpack.i.l.bf16 %v8175_v9 }
 0x112   : > { %11385 = vst [vmem:[#allocation47_spill] sm:$0xff] %v8517_v7  ;;  %6735 = vrot.lane.b32.xlu1 %v6734_v12, %s7924_s17  ;;  %v6749_v12 = vpack.i.bf16 %v568_v43, %v567_v24  ;;  %v578_v43 = vld [vmem:[%s7997_s10 + $0xbd] sm:$0xff]  ;;  %v576_v24 = vld [vmem:[%s7997_s10 + $0xad] sm:$0xff] }
 0x113   : > { %6730 = vrot.lane.b32.xlu0 %v6729_v26, %s7924_s17  ;;  %v573_v26 = vld [vmem:[%s7997_s10 + $0x95] sm:$0xff] }
 0x114   : > { %v8523_v31 = vpop.permute.xlu1 %6470  ;;  %v6764_v58 = vpack.i.bf16 %v574_v62, %v573_v26  ;;  %v581_v26 = vld [vmem:[%s7997_s10 + $0xd5] sm:$0xff]  ;;  %v582_v62 = vld [vmem:[%s7997_s10 + $0xdd] sm:$0xff] }
 0x115   : > { %11386 = vst [vmem:[#allocation48_spill] sm:$0xff] %v8523_v31  ;;  %v8527_v56 = vpop.permute.xlu0 %6465 }
 0x116   : > { %11387 = vst [vmem:[#allocation49_spill] sm:$0xff] %v8527_v56  ;;  %6745 = vrot.lane.b32.xlu1 %v6744_v47, %s7924_s17  ;;  %v6759_v47 = vpack.i.bf16 %v572_v36, %v571_v1  ;;  %v579_v36 = vld [vmem:[%s7997_s10 + $0xc5] sm:$0xff] }
 0x117   : > { %6740 = vrot.lane.b32.xlu0 %v6739_v23, %s7924_s17  ;;  %v577_v23 = vld [vmem:[%s7997_s10 + $0xb5] sm:$0xff] }
 0x118   : > { %v8533_v2 = vpop.permute.xlu1 %6480  ;;  %v6774_v54 = vpack.i.bf16 %v578_v43, %v577_v23  ;;  %v11394_v23 = vmov 0.0   ;;  %v6784_v43 = vpack.i.bf16 %v582_v62, %v581_v26  ;;  %v589_v62 = vld [vmem:[%s7997_s10 + $0x115] sm:$0xff] }
 0x119   : > { %11388 = vst [vmem:[#allocation50_spill] sm:$0xff] %v8533_v2  ;;  %v8537_v57 = vpop.permute.xlu0 %6475  ;;  %5920 = vmatprep.mubr.msk.bf16.mxu0 %vm7925_vm2, %v11394_v23  ;;  %6014 = vmatprep.mubr.msk.bf16.mxu1 %vm7925_vm2, %v11394_v23  ;;  %2842 = vst.msk [vmem:[#allocation2 + $0x10] sm:$0x7] %vm2841_vm11, %v11394_v23 }
 0x11a   : > { %11389 = vst [vmem:[#allocation51_spill] sm:$0xff] %v8537_v57  ;;  %6755 = vrot.lane.b32.xlu1 %v6754_v50, %s7924_s17  ;;  %v7731_v50 = vld [vmem:[%s11210_s2] sm:$0xff]   ;;  %2845 = vst.msk [vmem:[#allocation2 + $0x167] sm:$0x7] %vm2841_vm11, %v11394_v23 }
 0x11b   : > { %6750 = vrot.lane.b32.xlu0 %v6749_v12, %s7924_s17  ;;  %v6769_v12 = vpack.i.bf16 %v576_v24, %v575_v48  ;;  %5911 = vmatpush3.bf16.msra.mxu0 %v7731_v50  ;;  %v585_v24 = vld [vmem:[%s7997_s10 + $0xf5] sm:$0xff] }
 0x11c   : > { %v8543_v53 = vpop.permute.xlu1 %6490  ;;  %5912 = vmatprep.subr.bf16.mxu0 %v11394_v23 }
 0x11d   : > { %11390 = vst [vmem:[#allocation52_spill] sm:$0xff] %v8543_v53  ;;  %v8547_v28 = vpop.permute.xlu0 %6485  ;;  %v580_v53 = vld [vmem:[%s7997_s10 + $0xcd] sm:$0xff] }
 0x11e   : > { %11391 = vst [vmem:[#allocation53_spill] sm:$0xff] %v8547_v28  ;;  %6765 = vrot.lane.b32.xlu1 %v6764_v58, %s7924_s17  ;;  %v6779_v48 = vpack.i.bf16 %v580_v53, %v579_v36  ;;  %v584_v28 = vld [vmem:[%s7997_s10 + $0xed] sm:$0xff]  ;;  %v590_v36 = vld [vmem:[%s7997_s10 + $0x11d] sm:$0xff] }
 0x11f   : > { %6760 = vrot.lane.b32.xlu0 %v6759_v47, %s7924_s17  ;;  %v7732_v47 = vld [vmem:[%s11210_s2 + $0x8] sm:$0xff]   ;;  %v7733_v53 = vld [vmem:[%s11210_s2 + $0x10] sm:$0xff]  }
 0x120   : > { %v8556_v1 = vpop.permute.xlu1 %6500  ;;  %5913 = vmatpush3.bf16.msra.mxu0 %v7732_v47 }
 0x121   : > { %11392 = vst [vmem:[#allocation54_spill] sm:$0xff] %v8556_v1  ;;  %v8560_v58 = vpop.permute.xlu0 %6495  ;;  %v586_v1 = vld [vmem:[%s7997_s10 + $0xfd] sm:$0xff]  ;;  %5914 = vmatprep.subr.bf16.mxu0 %v11394_v23 }
 0x122   : > { %11393 = vst [vmem:[#allocation55_spill] sm:$0xff] %v8560_v58  ;;  %6775 = vrot.lane.b32.xlu1 %v6774_v54, %s7924_s17  ;;  %v583_v58 = vld [vmem:[%s7997_s10 + $0xe5] sm:$0xff]  ;;  %v6794_v26 = vpack.i.bf16 %v586_v1, %v585_v24  ;;  %v6804_v1 = vpack.i.bf16 %v590_v36, %v589_v62  ;;  %v594_v24 = vld [vmem:[%s7997_s10 + $0x13d] sm:$0xff]  ;;  %v597_v62 = vld [vmem:[%s7997_s10 + $0x155] sm:$0xff] }
 0x123   : > { %6770 = vrot.lane.b32.xlu0 %v6769_v12, %s7924_s17  ;;  %v6789_v12 = vpack.i.bf16 %v584_v28, %v583_v58  ;;  %v7734_v28 = vld [vmem:[%s11210_s2 + $0x18] sm:$0xff]  }
 0x124   : > { %v8570_v50 = vpop.permute.xlu1 %6510  ;;  %5915 = vmatpush3.bf16.msra.mxu0 %v7733_v53  ;;  %v591_v53 = vld [vmem:[%s7997_s10 + $0x125] sm:$0xff]  ;;  %v598_v36 = vld [vmem:[%s7997_s10 + $0x15d] sm:$0xff] }
 0x125   : > { %11395 = vst [vmem:[#allocation56_spill] sm:$0xff] %v8570_v50  ;;  %v8574_v54 = vpop.permute.xlu0 %6505  ;;  %v587_v50 = vld [vmem:[%s7997_s10 + $0x105] sm:$0xff]  ;;  %5916 = vmatprep.subr.bf16.mxu0 %v11394_v23 }
 0x126   : > { %11396 = vst [vmem:[#allocation57_spill] sm:$0xff] %v8574_v54  ;;  %6785 = vrot.lane.b32.xlu1 %v6784_v43, %s7924_s17  ;;  %v588_v54 = vld [vmem:[%s7997_s10 + $0x10d] sm:$0xff] }
 0x127   : > { %6780 = vrot.lane.b32.xlu0 %v6779_v48, %s7924_s17  ;;  %v6799_v58 = vpack.i.bf16 %v588_v54, %v587_v50  ;;  %v593_v48 = vld [vmem:[%s7997_s10 + $0x135] sm:$0xff] }
 0x128   : > { %v8584_v47 = vpop.permute.xlu1 %6520  ;;  %5917 = vmatpush3.bf16.msra.mxu0 %v7734_v28  ;;  %v6814_v50 = vpack.i.bf16 %v594_v24, %v593_v48  ;;  %v601_v48 = vld [vmem:[%s7997_s10 + $0x2e] sm:$0xff] }
 0x129   : > { %11397 = vst [vmem:[#allocation58_spill] sm:$0xff] %v8584_v47  ;;  %v8588_v43 = vpop.permute.xlu0 %6515  ;;  %5918 = vmatprep.subr.bf16.mxu0 %v11394_v23 }
 0x12a   : > { %11398 = vst [vmem:[#allocation59_spill] sm:$0xff] %v8588_v43  ;;  %6795 = vrot.lane.b32.xlu1 %v6794_v26, %s7924_s17  ;;  %v592_v43 = vld [vmem:[%s7997_s10 + $0x12d] sm:$0xff] }
 0x12b   : > { %6790 = vrot.lane.b32.xlu0 %v6789_v12, %s7924_s17  ;;  %v7735_v12 = vld [vmem:[%s11210_s2 + $0x20] ss:$0 sps:$4 sm:$0xff]   ;;  %v6809_v54 = vpack.i.bf16 %v592_v43, %v591_v53 }
 0x12c   : > { %v8598_v47 = vpop.permute.xlu1 %1216  ;;  %v2336_v28 = vsel %vm2334_vm1, %v7735_v12, 0 }
 0x12d   : > { %11399 = vst [vmem:[#allocation60_spill] sm:$0xff] %v8598_v47  ;;  %v8602_v26 = vpop.permute.xlu0 %6525  ;;  %5919 = vmatpush3.bf16.msra.mxu0 %v2336_v28 }
 0x12e   : > { %11400 = vst [vmem:[#allocation61_spill] sm:$0xff] %v8602_v26  ;;  %6805 = vrot.lane.b32.xlu1 %v6804_v1, %s7924_s17  ;;  %v595_v26 = vld [vmem:[%s7997_s10 + $0x145] sm:$0xff]  ;;  %v6824_v1 = vpack.i.bf16 %v598_v36, %v597_v62  ;;  %v602_v62 = vld [vmem:[%s7997_s10 + $0x36] sm:$0xff] }
 0x12f   : > { %6800 = vrot.lane.b32.xlu0 %v6799_v58, %s7924_s17  ;;  %v6819_v43 = vpack.i.bf16 %v596_v45, %v595_v26  ;;  %v600_v58 = vld [vmem:[%s7997_s10 + $0x26] sm:$0xff]  ;;  %v605_v45 = vld [vmem:[%s7997_s10 + $0x4e] sm:$0xff]  ;;  %v603_v36 = vld [vmem:[%s7997_s10 + $0x3e] sm:$0xff] }
 0x130   : > { %v8613_v47 = vpop.permute.xlu1 %6535  ;;  %v6829_v12 = vpack.i.bf16 %v601_v48, %v600_v58  ;;  %v608_v58 = vld [vmem:[%s7997_s10 + $0x66] sm:$0xff]  ;;  %v609_v48 = vld [vmem:[%s7997_s10 + $0x6e] sm:$0xff] }
 0x131   : > { %v8617_v35 = vpop.permute.xlu0 %6530  ;;  %v6849_v57 = vpack.i.bf16 %v609_v48, %v608_v58  ;;  %v614_v58 = vld [vmem:[%s7997_s10 + $0x96] sm:$0xff]  ;;  %v615_v48 = vld [vmem:[%s7997_s10 + $0x9e] sm:$0xff] }
 0x132   : > { %6815 = vrot.lane.b32.xlu1 %v6814_v50, %s7924_s17  ;;  %v604_v50 = vld [vmem:[%s7997_s10 + $0x46] sm:$0xff] }
 0x133   : > { %6810 = vrot.lane.b32.xlu0 %v6809_v54, %s7924_s17  ;;  %v599_v54 = vld [vmem:[%s7997_s10 + $0x165] sm:$0xf] }
 0x134   : > { %v8627_v24 = vpop.permute.xlu1 %6545 }
 0x135   : > { %v8629_v53 = vpop.permute.xlu0 %6540 }
 0x136   : > { %6825 = vrot.lane.b32.xlu1 %v6824_v1, %s7924_s17  ;;  %v6839_v1 = vpack.i.bf16 %v605_v45, %v604_v50  ;;  %v612_v50 = vld [vmem:[%s7997_s10 + $0x86] sm:$0xff]  ;;  %v613_v45 = vld [vmem:[%s7997_s10 + $0x8e] sm:$0xff] }
 0x137   : > { %6820 = vrot.lane.b32.xlu0 %v6819_v43, %s7924_s17  ;;  %v6834_v43 = vpack.i.bf16 %v603_v36, %v602_v62  ;;  %v610_v62 = vld [vmem:[%s7997_s10 + $0x76] sm:$0xff]  ;;  %v611_v36 = vld [vmem:[%s7997_s10 + $0x7e] sm:$0xff]  ;;  %v6859_v19 = vpack.i.bf16 %v613_v45, %v612_v50  ;;  %v621_v50 = vld [vmem:[%s7997_s10 + $0xce] sm:$0xff] }
 0x138   : > { %v8635_v26 = vpop.permute.xlu1 %6555 }
 0x139   : > { %11401 = vst [vmem:[#allocation62_spill] sm:$0xff] %v8635_v26  ;;  %v8640_v28 = vpop.permute.xlu0 %6550  ;;  %v6143_v26 = vunpack.i.h.bf16 %v8186_v17 }
 0x13a   : > { %6830 = vrot.lane.b32.xlu1 %v6829_v12, %s7926_s30  ;;  %v6844_v12 = vpack.i.bf16 %v607_v14, %v606_v60  ;;  %v617_v14 = vld [vmem:[%s7997_s10 + $0xae] sm:$0xff] }
 0x13b   : > { %1670 = vrot.lane.b32.xlu0 %v599_v54, %s7924_s17 }
 0x13c   : > { %v8646_v2 = vpop.permute.xlu1 %6565 }
 0x13d   : > { %11402 = vst [vmem:[#allocation63_spill] sm:$0xff] %v8646_v2  ;;  %v8650_v49 = vpop.permute.xlu0 %6560 }
 0x13e   : > { %11403 = vst [vmem:[#allocation64_spill] sm:$0xff] %v8650_v49  ;;  %6840 = vrot.lane.b32.xlu1 %v6839_v1, %s7926_s30  ;;  %v6854_v1 = vpack.i.bf16 %v611_v36, %v610_v62  ;;  %v618_v62 = vld [vmem:[%s7997_s10 + $0xb6] sm:$0xff]  ;;  %v619_v36 = vld [vmem:[%s7997_s10 + $0xbe] sm:$0xff] }
 0x13f   : > { %6835 = vrot.lane.b32.xlu0 %v6834_v43, %s7926_s30  ;;  %v616_v43 = vld [vmem:[%s7997_s10 + $0xa6] sm:$0xff]  ;;  %v354_v49 = vld [vmem:[%s7997_s10 + $0x30] sm:$0xff] }
 0x140   : > { %v8656_v54 = vpop.permute.xlu1 %6575  ;;  %v6869_v46 = vpack.i.bf16 %v617_v14, %v616_v43  ;;  %v625_v43 = vld [vmem:[%s7997_s10 + $0xee] sm:$0xff] }
 0x141   : > { %11404 = vst [vmem:[#allocation65_spill] sm:$0xff] %v8656_v54  ;;  %v8660_v32 = vpop.permute.xlu0 %6570 }
 0x142   : > { %11405 = vst [vmem:[#allocation66_spill] sm:$0xff] %v8660_v32  ;;  %6850 = vrot.lane.b32.xlu1 %v6849_v57, %s7926_s30  ;;  %v6864_v57 = vpack.i.bf16 %v615_v48, %v614_v58  ;;  %v622_v58 = vld [vmem:[%s7997_s10 + $0xd6] sm:$0xff]  ;;  %v623_v48 = vld [vmem:[%s7997_s10 + $0xde] sm:$0xff] }
 0x143   : > { %6845 = vrot.lane.b32.xlu0 %v6844_v12, %s7926_s30  ;;  %v620_v12 = vld [vmem:[%s7997_s10 + $0xc6] sm:$0xff] }
 0x144   : > { %v8666_v60 = vpop.permute.xlu1 %6585 }
 0x145   : > { %11406 = vst [vmem:[#allocation67_spill] sm:$0xff] %v8666_v60  ;;  %v8670_v54 = vpop.permute.xlu0 %6580 }
 0x146   : > { %11407 = vst [vmem:[#allocation68_spill] sm:$0xff] %v8670_v54  ;;  %6860 = vrot.lane.b32.xlu1 %v6859_v19, %s7926_s30  ;;  %v6879_v54 = vpack.i.bf16 %v621_v50, %v620_v12  ;;  %v6874_v19 = vpack.i.bf16 %v619_v36, %v618_v62  ;;  %v629_v12 = vld [vmem:[%s7997_s10 + $0x10e] sm:$0xff]  ;;  %v626_v62 = vld [vmem:[%s7997_s10 + $0xf6] sm:$0xff]  ;;  %v627_v36 = vld [vmem:[%s7997_s10 + $0xfe] sm:$0xff] }
 0x147   : > { %6855 = vrot.lane.b32.xlu0 %v6854_v1, %s7926_s30  ;;  %v624_v1 = vld [vmem:[%s7997_s10 + $0xe6] sm:$0xff] }
 0x148   : > { %v8676_v45 = vpop.permute.xlu1 %6595 }
 0x149   : > { %11408 = vst [vmem:[#allocation69_spill] sm:$0xff] %v8676_v45  ;;  %v8680_v60 = vpop.permute.xlu0 %6590 }
 0x14a   : > { %11409 = vst [vmem:[#allocation70_spill] sm:$0xff] %v8680_v60  ;;  %6870 = vrot.lane.b32.xlu1 %v6869_v46, %s7926_s30  ;;  %v6889_v60 = vpack.i.bf16 %v625_v43, %v624_v1  ;;  %v6884_v46 = vpack.i.bf16 %v623_v48, %v622_v58  ;;  %v633_v1 = vld [vmem:[%s7997_s10 + $0x12e] sm:$0xff]  ;;  %v630_v58 = vld [vmem:[%s7997_s10 + $0x116] sm:$0xff]  ;;  %v631_v48 = vld [vmem:[%s7997_s10 + $0x11e] sm:$0xff] }
 0x14b   : > { %6865 = vrot.lane.b32.xlu0 %v6864_v57, %s7926_s30  ;;  %v628_v57 = vld [vmem:[%s7997_s10 + $0x106] sm:$0xff] }
 0x14c   : > { %v8686_v14 = vpop.permute.xlu1 %6605 }
 0x14d   : > { %11410 = vst [vmem:[#allocation71_spill] sm:$0xff] %v8686_v14  ;;  %v8690_v45 = vpop.permute.xlu0 %6600 }
 0x14e   : > { %11411 = vst [vmem:[#allocation72_spill] sm:$0xff] %v8690_v45  ;;  %6880 = vrot.lane.b32.xlu1 %v6879_v54, %s7926_s30  ;;  %v6899_v45 = vpack.i.bf16 %v629_v12, %v628_v57  ;;  %v6894_v54 = vpack.i.bf16 %v627_v36, %v626_v62  ;;  %v636_v57 = vld [vmem:[%s7997_s10 + $0x146] sm:$0xff]  ;;  %v634_v62 = vld [vmem:[%s7997_s10 + $0x136] sm:$0xff]  ;;  %v635_v36 = vld [vmem:[%s7997_s10 + $0x13e] sm:$0xff] }
 0x14f   : > { %6875 = vrot.lane.b32.xlu0 %v6874_v19, %s7926_s30  ;;  %v632_v19 = vld [vmem:[%s7997_s10 + $0x126] sm:$0xff] }
 0x150   : > { %v8696_v50 = vpop.permute.xlu1 %6615 }
 0x151   : > { %11412 = vst [vmem:[#allocation73_spill] sm:$0xff] %v8696_v50  ;;  %v8700_v14 = vpop.permute.xlu0 %6610 }
 0x152   : > { %11413 = vst [vmem:[#allocation74_spill] sm:$0xff] %v8700_v14  ;;  %6890 = vrot.lane.b32.xlu1 %v6889_v60, %s7926_s30  ;;  %v6909_v14 = vpack.i.bf16 %v633_v1, %v632_v19  ;;  %v6904_v60 = vpack.i.bf16 %v631_v48, %v630_v58  ;;  %v638_v19 = vld [vmem:[%s7997_s10 + $0x156] sm:$0xff]  ;;  %v640_v58 = vld [vmem:[%s7997_s10 + $0x166] sm:$0xf] }
 0x153   : > { %6885 = vrot.lane.b32.xlu0 %v6884_v46, %s7926_s30  ;;  %v637_v46 = vld [vmem:[%s7997_s10 + $0x14e] sm:$0xff] }
 0x154   : > { %v8706_v43 = vpop.permute.xlu1 %6625 }
 0x155   : > { %11414 = vst [vmem:[#allocation75_spill] sm:$0xff] %v8706_v43  ;;  %v8710_v50 = vpop.permute.xlu0 %6620 }
 0x156   : > { %11415 = vst [vmem:[#allocation76_spill] sm:$0xff] %v8710_v50  ;;  %6900 = vrot.lane.b32.xlu1 %v6899_v45, %s7926_s30  ;;  %v6919_v50 = vpack.i.bf16 %v637_v46, %v636_v57  ;;  %v6914_v45 = vpack.i.bf16 %v635_v36, %v634_v62  ;;  %v7927_v62 = vmov 0  }
 0x157   : > { %6895 = vrot.lane.b32.xlu0 %v6894_v54, %s7926_s30  ;;  %v639_v54 = vld [vmem:[%s7997_s10 + $0x15e] sm:$0xff]  ;;  %6930 = vset.pattern.permute.xlu1 %v7927_v62 }
 0x158   : > { %v8716_v12 = vpop.permute.xlu1 %6630  ;;  %v6924_v48 = vpack.i.bf16 %v639_v54, %v638_v19  ;;  %6929 = vset.pattern.permute.xlu0 %v7927_v62  ;;  %v309_v19 = vld [vmem:[%s11209_s1 + $0x10] sm:$0xff]  ;;  %v307_v62 = vld [vmem:[%s11209_s1] sm:$0xff] }
 0x159   : > { %v8720_v43 = vpop.permute.xlu0 %1380 }
 0x15a   : > { %11416 = vst [vmem:[#allocation77_spill] sm:$0xff] %v8720_v43  ;;  %6910 = vrot.lane.b32.xlu1 %v6909_v14, %s7926_s30 }
 0x15b   : > { %6905 = vrot.lane.b32.xlu0 %v6904_v60, %s7926_s30 }
 0x15c   : > { %v8724_v32 = vpop.permute.xlu1 %6640 }
 0x15d   : > { %v8728_v1 = vpop.permute.xlu0 %6635 }
 0x15e   : > { %6920 = vrot.lane.b32.xlu1 %v6919_v50, %s7926_s30  ;;  %v308_v50 = vld [vmem:[%s11209_s1 + $0x8] sm:$0xff] }
 0x15f   : > { %6915 = vrot.lane.b32.xlu0 %v6914_v45, %s7926_s30 }
 0x160   : > { %v8733_v31 = vpop.permute.xlu1 %6650 }
 0x161   : > { %11417 = vst [vmem:[#allocation78_spill] sm:$0xff] %v8733_v31  ;;  %v8735_v43 = vpop.permute.xlu0 %6645 }
 0x162   : > { %1834 = vrot.lane.b32.xlu1 %v640_v58, %s7926_s30 }
 0x163   : > { %6925 = vrot.lane.b32.xlu0 %v6924_v48, %s7926_s30  ;;  %v311_v48 = vld [vmem:[%s11209_s1 + $0x20] sm:$0xff] }
 0x164   : > { %v8739_v14 = vpop.permute.xlu1 %6660 }
 0x165   : > { %11418 = vst [vmem:[#allocation79_spill] sm:$0xff] %v8739_v14  ;;  %v8741_v60 = vpop.permute.xlu0 %6655  ;;  %v349_v14 = vld [vmem:[%s7997_s10 + $0x8] sm:$0xff] }
 0x166   : > { %11419 = vst [vmem:[#allocation80_spill] sm:$0xff] %v8741_v60  ;;  %2853 = vperm.xlu1 %6930, %v308_v50   ;;  %v358_v60 = vld [vmem:[%s7997_s10 + $0x50] sm:$0xff] }
 0x167   : > { %2848 = vperm.xlu0 %6929, %v307_v62   ;;  %v312_v62 = vld [vmem:[%s11209_s1 + $0x28] sm:$0xff] }
 0x168   : > { %v8743_v57 = vpop.permute.xlu1 %6670 }
 0x169   : > { %11420 = vst [vmem:[#allocation81_spill] sm:$0xff] %v8743_v57  ;;  %v8745_v46 = vpop.permute.xlu0 %6665 }
 0x16a   : > { %11421 = vst [vmem:[#allocation82_spill] sm:$0xff] %v8745_v46  ;;  %2858 = vperm.xlu1 %6930, %v309_v19   ;;  %v313_v19 = vld [vmem:[%s11209_s1 + $0x30] sm:$0xff] }
 0x16c   : > { %v8750_v36 = vpop.permute.xlu1 %6680 }
 0x16d   : > { %11422 = vst [vmem:[#allocation83_spill] sm:$0xff] %v8750_v36  ;;  %v8752_v45 = vpop.permute.xlu0 %6675  ;;  %v310_v36 = vld [vmem:[%s11209_s1 + $0x18] sm:$0xff] }
 0x16e   : > { %11423 = vst [vmem:[#allocation84_spill] sm:$0xff] %v8752_v45  ;;  %2868 = vperm.xlu1 %6930, %v311_v48   ;;  %2863 = vperm.xlu0 %6929, %v310_v36   ;;  %v315_v48 = vld [vmem:[%s11209_s1 + $0x40] sm:$0xff]  ;;  %v314_v36 = vld [vmem:[%s11209_s1 + $0x38] sm:$0xff] }
 0x170   : > { %v8757_v54 = vpop.permute.xlu1 %6690 }
 0x171   : > { %11424 = vst [vmem:[#allocation85_spill] sm:$0xff] %v8757_v54  ;;  %v8759_v58 = vpop.permute.xlu0 %6685 }
 0x172   : > { %11425 = vst [vmem:[#allocation86_spill] sm:$0xff] %v8759_v58  ;;  %2878 = vperm.xlu1 %6930, %v313_v19   ;;  %2873 = vperm.xlu0 %6929, %v312_v62   ;;  %v317_v19 = vld [vmem:[%s11209_s1 + $0x50] sm:$0xff]  ;;  %v316_v62 = vld [vmem:[%s11209_s1 + $0x48] sm:$0xff] }
 0x174   : > { %v8767_v50 = vpop.permute.xlu1 %6700 }
 0x175   : > { %11426 = vst [vmem:[#allocation87_spill] sm:$0xff] %v8767_v50  ;;  %v8772_v54 = vpop.permute.xlu0 %6695 }
 0x176   : > { %11427 = vst [vmem:[#allocation88_spill] sm:$0xff] %v8772_v54  ;;  %2888 = vperm.xlu1 %6930, %v315_v48   ;;  %2883 = vperm.xlu0 %6929, %v314_v36   ;;  %v319_v48 = vld [vmem:[%s11209_s1 + $0x60] sm:$0xff]  ;;  %v318_v36 = vld [vmem:[%s11209_s1 + $0x58] sm:$0xff] }
 0x178   : > { %v8777_v58 = vpop.permute.xlu1 %6710 }
 0x179   : > { %11428 = vst [vmem:[#allocation89_spill] sm:$0xff] %v8777_v58  ;;  %v8779_v45 = vpop.permute.xlu0 %6705 }
 0x17a   : > { %11429 = vst [vmem:[#allocation90_spill] sm:$0xff] %v8779_v45  ;;  %2898 = vperm.xlu1 %6930, %v317_v19   ;;  %2893 = vperm.xlu0 %6929, %v316_v62   ;;  %v321_v19 = vld [vmem:[%s11209_s1 + $0x70] sm:$0xff]  ;;  %v320_v62 = vld [vmem:[%s11209_s1 + $0x68] sm:$0xff] }
 0x17c   : > { %v8787_v50 = vpop.permute.xlu1 %6720 }
 0x17d   : > { %11430 = vst [vmem:[#allocation91_spill] sm:$0xff] %v8787_v50  ;;  %v8792_v58 = vpop.permute.xlu0 %6715 }
 0x17e   : > { %11431 = vst [vmem:[#allocation92_spill] sm:$0xff] %v8792_v58  ;;  %2908 = vperm.xlu1 %6930, %v319_v48   ;;  %2903 = vperm.xlu0 %6929, %v318_v36   ;;  %v323_v48 = vld [vmem:[%s11209_s1 + $0x80] sm:$0xff]  ;;  %v322_v36 = vld [vmem:[%s11209_s1 + $0x78] sm:$0xff] }
 0x180   : > { %v8797_v45 = vpop.permute.xlu1 %1506 }
 0x181   : > { %11432 = vst [vmem:[#allocation93_spill] sm:$0xff] %v8797_v45  ;;  %v8799_v54 = vpop.permute.xlu0 %6725 }
 0x182   : > { %11433 = vst [vmem:[#allocation94_spill] sm:$0xff] %v8799_v54  ;;  %2918 = vperm.xlu1 %6930, %v321_v19   ;;  %2913 = vperm.xlu0 %6929, %v320_v62   ;;  %v325_v19 = vld [vmem:[%s11209_s1 + $0x90] sm:$0xff]  ;;  %v324_v62 = vld [vmem:[%s11209_s1 + $0x88] sm:$0xff] }
 0x184   : > { %v8807_v50 = vpop.permute.xlu1 %6735 }
 0x185   : > { %v8812_v45 = vpop.permute.xlu0 %6730 }
 0x186   : > { %2928 = vperm.xlu1 %6930, %v323_v48   ;;  %2923 = vperm.xlu0 %6929, %v322_v36   ;;  %v327_v48 = vld [vmem:[%s11209_s1 + $0xa0] sm:$0xff]  ;;  %v326_v36 = vld [vmem:[%s11209_s1 + $0x98] sm:$0xff] }
 0x188   : > { %v8817_v54 = vpop.permute.xlu1 %6745 }
 0x189   : > { %v8819_v58 = vpop.permute.xlu0 %6740 }
 0x18a   : > { %2938 = vperm.xlu1 %6930, %v325_v19   ;;  %2933 = vperm.xlu0 %6929, %v324_v62  }
 0x18c   : > { %v8827_v57 = vpop.permute.xlu1 %6755 }
 0x18d   : > { %11434 = vst [vmem:[#allocation95_spill] sm:$0xff] %v8827_v57  ;;  %v8832_v39 = vpop.permute.xlu0 %6750  ;;  %v351_v57 = vld [vmem:[%s7997_s10 + $0x18] sm:$0xff] }
 0x18e   : > { %11435 = vst [vmem:[#allocation96_spill] sm:$0xff] %v8832_v39  ;;  %2948 = vperm.xlu1 %6930, %v327_v48   ;;  %2943 = vperm.xlu0 %6929, %v326_v36   ;;  %v331_v48 = vld [vmem:[%s11209_s1 + $0xc0] sm:$0xff]  ;;  %v357_v39 = vld [vmem:[%s7997_s10 + $0x48] sm:$0xff] }
 0x190   : > { %v8837_v61 = vpop.permute.xlu1 %6765 }
 0x191   : > { %11436 = vst [vmem:[#allocation97_spill] sm:$0xff] %v8837_v61  ;;  %v8839_v46 = vpop.permute.xlu0 %6760  ;;  %v329_v61 = vld [vmem:[%s11209_s1 + $0xb0] sm:$0xff] }
 0x192   : > { %11437 = vst [vmem:[#allocation98_spill] sm:$0xff] %v8839_v46  ;;  %2958 = vperm.xlu1 %6930, %v329_v61   ;;  %v330_v61 = vld [vmem:[%s11209_s1 + $0xb8] sm:$0xff] }
 0x194   : > { %v8847_v2 = vpop.permute.xlu1 %6775 }
 0x195   : > { %11438 = vst [vmem:[#allocation99_spill] sm:$0xff] %v8847_v2  ;;  %v8852_v19 = vpop.permute.xlu0 %6770  ;;  %v328_v2 = vld [vmem:[%s11209_s1 + $0xa8] sm:$0xff] }
 0x196   : > { %11439 = vst [vmem:[#allocation100_spill] sm:$0xff] %v8852_v19  ;;  %2953 = vperm.xlu0 %6929, %v328_v2   ;;  %v6132_v19 = vunpack.i.l.bf16 %v8165_v3  ;;  %2968 = vperm.xlu1 %6930, %v331_v48   ;;  %v6122_v2 = vunpack.i.l.bf16 %v8167_v4  ;;  %v333_v48 = vld [vmem:[%s11209_s1 + $0xd0] sm:$0xff]  ;;  %v6128_v4 = vunpack.i.h.bf16 %v8175_v9  ;;  %v6142_v9 = vunpack.i.l.bf16 %v8186_v17 }
 0x198   : > { %v8857_v56 = vpop.permute.xlu1 %6785 }
 0x199   : > { %11440 = vst [vmem:[#allocation101_spill] sm:$0xff] %v8857_v56  ;;  %v8859_v62 = vpop.permute.xlu0 %6780  ;;  %v6133_v56 = vunpack.i.h.bf16 %v8165_v3  ;;  %v6138_v3 = vunpack.i.h.bf16 %v8173_v8  ;;  %v6148_v8 = vunpack.i.h.bf16 %v8181_v13  ;;  %v359_v13 = vld [vmem:[%s7997_s10 + $0x58] sm:$0xff] }
 0x19a   : > { %11441 = vst [vmem:[#allocation102_spill] sm:$0xff] %v8859_v62  ;;  %v352_v62 = vld [vmem:[%s7997_s10 + $0x20] sm:$0xff]  ;;  %2963 = vperm.xlu0 %6929, %v330_v61   ;;  %2978 = vperm.xlu1 %6930, %v333_v48   ;;  %v1880_v48 = vsel %vm1877_vm0, %v350_v27, %v6127_v18  ;;  %v6232_v27 = vunpack.i.l.bf16 %v8274_v34  ;;  %v8938_v18 = vsel %vm1877_vm0, %v356_v55, %v6142_v9  ;;  %v6332_v55 = vunpack.i.l.bf16 %v8414_v42 }
 0x19b   : > { %v8904_v0 = vsel %vm1877_vm0, %v353_v15, %v6133_v56  ;;  %v8917_v17 = vsel %vm1877_vm0, %v355_v38, %v6138_v3  ;;  %v6228_v15 = vunpack.i.h.bf16 %v8262_v21  ;;  %v6227_v56 = vunpack.i.l.bf16 %v8262_v21 }
 0x19c   : > { %v8868_v36 = vpop.permute.xlu1 %6795  ;;  %v6233_v38 = vunpack.i.h.bf16 %v8274_v34  ;;  %v8935_v21 = vsel %vm1877_vm0, %v359_v13, %v6148_v8  ;;  %v6337_v3 = vunpack.i.l.bf16 %v8410_v11  ;;  %v6333_v9 = vunpack.i.h.bf16 %v8414_v42 }
 0x19d   : > { %11442 = vst [vmem:[#allocation103_spill] sm:$0xff] %v8868_v36  ;;  %v8879_v46 = vpop.permute.xlu0 %6790  ;;  %v348_v36 = vld [vmem:[%s7997_s10] sm:$0xff]  ;;  %v1922_v13 = vsel %vm1919_vm3, %v1880_v48, %v6232_v27  ;;  %v6533_v34 = vunpack.i.h.bf16 %v8617_v35  ;;  %v336_v27 = vld [vmem:[%s11209_s1 + $0xe8] sm:$0xff] }
 0x19e   : > { %11443 = vst [vmem:[#allocation104_spill] sm:$0xff] %v8879_v46  ;;  %v8894_v46 = vsel %vm1877_vm0, %v352_v62, %v6132_v19  ;;  %v1878_v61 = vsel %vm1877_vm0, %v348_v36, %v6122_v2  ;;  %v1879_v19 = vsel %vm1877_vm0, %v349_v14, %v6123_v5  ;;  %v8909_v62 = vsel %vm1877_vm0, %v354_v49, %v6137_v41  ;;  %v335_v5 = vld [vmem:[%s11209_s1 + $0xe0] sm:$0xff]  ;;  %v332_v41 = vld [vmem:[%s11209_s1 + $0xc8] sm:$0xff] }
 0x19f   : > { %v1881_v49 = vsel %vm1877_vm0, %v351_v57, %v6128_v4  ;;  %v8930_v14 = vsel %vm1877_vm0, %v358_v60, %v6147_v51  ;;  %2973 = vperm.xlu0 %6929, %v332_v41   ;;  %v8941_v36 = vsel %vm1877_vm0, %v357_v39, %v6143_v26  ;;  %2988 = vperm.xlu1 %6930, %v335_v5   ;;  %v334_v51 = vld [vmem:[%s11209_s1 + $0xd8] sm:$0xff]  ;;  %v337_v39 = vld [vmem:[%s11209_s1 + $0xf0] sm:$0xff]  ;;  %v6433_v41 = vunpack.i.h.bf16 %v8486_v52 }
 0x1a0   : > { %v8901_v7 = vpop.permute.xlu1 %6805  ;;  %v1920_v26 = vsel %vm1919_vm3, %v1878_v61, %v6227_v56  ;;  %v1921_v8 = vsel %vm1919_vm3, %v1879_v19, %v6228_v15  ;;  %v1923_v5 = vsel %vm1919_vm3, %v1881_v49, %v6233_v38  ;;  %v6432_v60 = vunpack.i.l.bf16 %v8486_v52  ;;  %v339_v38 = vld [vmem:[%s11209_s1 + $0x100] sm:$0xff] }
 0x1a1   : > { %v8914_v31 = vpop.permute.xlu0 %6800  ;;  %v6338_v2 = vunpack.i.h.bf16 %v8410_v11  ;;  %v6532_v61 = vunpack.i.l.bf16 %v8617_v35  ;;  %v1964_v42 = vsel %vm1961_vm4, %v1922_v13, %v6337_v3  ;;  %v1962_v48 = vsel %vm1961_vm4, %v1920_v26, %v6332_v55 }
 0x1a2   : > { %v6633_v15 = vunpack.i.h.bf16 %v8716_v12  ;;  %v6632_v56 = vunpack.i.l.bf16 %v8716_v12  ;;  %v1963_v11 = vsel %vm1961_vm4, %v1921_v8, %v6333_v9  ;;  %v6733_v49 = vunpack.i.h.bf16 %v8812_v45 }
 0x1a3   : > { %2983 = vperm.xlu0 %6929, %v334_v51   ;;  %2998 = vperm.xlu1 %6930, %v337_v39   ;;  %v6732_v35 = vunpack.i.l.bf16 %v8812_v45  ;;  %v2004_v51 = vsel %vm2003_vm5, %v1962_v48, %v6432_v60  ;;  %v2005_v12 = vsel %vm2003_vm5, %v1963_v11, %v6433_v41  ;;  %v6438_v3 = vunpack.i.h.bf16 %v8496_v37  ;;  %v338_v60 = vld [vmem:[%s11209_s1 + $0xf8] sm:$0xff] }
 0x1a4   : > { %v8944_v57 = vpop.permute.xlu1 %6815  ;;  %v6437_v55 = vunpack.i.l.bf16 %v8496_v37  ;;  %v6538_v39 = vunpack.i.h.bf16 %v8613_v47  ;;  %v2046_v45 = vsel %vm2045_vm6, %v2004_v51, %v6532_v61  ;;  %v2047_v26 = vsel %vm2045_vm6, %v2005_v12, %v6533_v34  ;;  %v341_v34 = vld [vmem:[%s11209_s1 + $0x110] sm:$0xff] }
 0x1a5   : > { %v8953_v4 = vpop.permute.xlu0 %6810  ;;  %v2088_v9 = vsel %vm2087_vm7, %v2046_v45, %v6632_v56  ;;  %v2089_v13 = vsel %vm2087_vm7, %v2047_v26, %v6633_v15  ;;  %v6537_v61 = vunpack.i.l.bf16 %v8613_v47  ;;  %v6638_v56 = vunpack.i.h.bf16 %v8728_v1 }
 0x1a6   : > { %v2130_v11 = vsel %vm2129_vm8, %v2088_v9, %v6732_v35  ;;  %v6637_v15 = vunpack.i.l.bf16 %v8728_v1  ;;  %v1965_v12 = vsel %vm1961_vm4, %v1923_v5, %v6338_v2  ;;  %v6738_v45 = vunpack.i.h.bf16 %v8807_v50 }
 0x1a7   : > { %2993 = vperm.xlu0 %6929, %v336_v27   ;;  %3008 = vperm.xlu1 %6930, %v339_v38   ;;  %v2131_v38 = vsel %vm2129_vm8, %v2089_v13, %v6733_v49  ;;  %v6737_v47 = vunpack.i.l.bf16 %v8807_v50  ;;  %v362_v49 = vld [vmem:[%s7997_s10 + $0x70] sm:$0xff]  ;;  %v6152_v26 = vunpack.i.l.bf16 %v8196_v25  ;;  %v2006_v1 = vsel %vm2003_vm5, %v1964_v42, %v6437_v55  ;;  %v343_v50 = vld [vmem:[%s11209_s1 + $0x120] sm:$0xff]  ;;  %v363_v42 = vld [vmem:[%s7997_s10 + $0x78] sm:$0xff] }
 0x1a8   : > { %v8968_v19 = vpop.permute.xlu1 %6825  ;;  %v2007_v9 = vsel %vm2003_vm5, %v1965_v12, %v6438_v3  ;;  %v6238_v3 = vunpack.i.h.bf16 %v8270_v29  ;;  %v6342_v55 = vunpack.i.l.bf16 %v8420_v59 }
 0x1a9   : > { %v8974_v52 = vpop.permute.xlu0 %6820  ;;  %v2049_v2 = vsel %vm2045_vm6, %v2007_v9, %v6538_v39 }
 0x1aa   : > { %v2091_v39 = vsel %vm2087_vm7, %v2049_v2, %v6638_v56  ;;  %v342_v56 = vld [vmem:[%s11209_s1 + $0x118] sm:$0xff] }
 0x1ab   : > { %3003 = vperm.xlu0 %6929, %v338_v60   ;;  %3018 = vperm.xlu1 %6930, %v341_v34   ;;  %v2048_v60 = vsel %vm2045_vm6, %v2006_v1, %v6537_v61  ;;  %v11444_v61 = vunpack.i.l.bf16 %v8192_v22  ;;  %v6543_v1 = vunpack.i.h.bf16 %v8629_v53 }
 0x1ac   : > { %v6831_v8 = vpop.permute.xlu1 %6830  ;;  %v2090_v34 = vsel %vm2087_vm7, %v2048_v60, %v6637_v15  ;;  %v6443_v15 = vunpack.i.h.bf16 %v8492_v16  ;;  %v1925_v60 = vsel %vm1919_vm3, %v8904_v0, %v6238_v3 }
 0x1ad   : > { %v6833_v41 = vunpack.i.h.bf16 %v6831_v8  ;;  %v6832_v37 = vunpack.i.l.bf16 %v6831_v8  ;;  %v8997_v48 = vpop.permute.xlu0 %1670  ;;  %v6237_v8 = vunpack.i.l.bf16 %v8270_v29  ;;  %v2132_v29 = vsel %vm2129_vm8, %v2090_v34, %v6737_v47 }
 0x1ae   : > { %v11445_v47 = vunpack.i.h.bf16 %v8192_v22  ;;  %v6643_v22 = vunpack.i.h.bf16 %v8724_v32 }
 0x1af   : > { %v2172_v27 = vsel %vm2171_vm9, %v2130_v11, %v6832_v37  ;;  %v2173_v51 = vsel %vm2171_vm9, %v2131_v38, %v6833_v41  ;;  %v340_v37 = vld [vmem:[%s11209_s1 + $0x108] sm:$0xff]  ;;  %v9036_v11 = vsel %vm1877_vm0, %v362_v49, %v11444_v61  ;;  %v6343_v38 = vunpack.i.h.bf16 %v8420_v59  ;;  %3028 = vperm.xlu1 %6930, %v343_v50   ;;  %v345_v59 = vld [vmem:[%s11209_s1 + $0x130] sm:$0xff] }
 0x1b0   : > { %v2213_v35 = vpack.c.bf16 %v2173_v51, %v2172_v27  ;;  %3013 = vperm.xlu0 %6929, %v340_v37   ;;  %v2133_v27 = vsel %vm2129_vm8, %v2091_v39, %v6738_v45  ;;  %v6442_v51 = vunpack.i.l.bf16 %v8492_v16  ;;  %v9054_v45 = vsel %vm1877_vm0, %v363_v42, %v11445_v47  ;;  %v6841_v9 = vpop.permute.xlu1 %6840  ;;  %v344_v61 = vld [vmem:[%s11209_s1 + $0x128] sm:$0xff] }
 0x1b1   : > { %v6836_v13 = vpop.permute.xlu0 %6835  ;;  %v1924_v49 = vsel %vm1919_vm3, %v8894_v46, %v6237_v8  ;;  %v6542_v16 = vunpack.i.l.bf16 %v8629_v53  ;;  %v6743_v46 = vunpack.i.h.bf16 %v8819_v58  ;;  %v6742_v8 = vunpack.i.l.bf16 %v8819_v58  ;;  %v361_v53 = vld [vmem:[%s7997_s10 + $0x68] sm:$0xff]  ;;  %v347_v58 = vld [vmem:[%s11209_s1 + $0x140] sm:$0xf] }
 0x1b2   : > { %v6838_v5 = vunpack.i.h.bf16 %v6836_v13  ;;  %v6837_v41 = vunpack.i.l.bf16 %v6836_v13  ;;  %5921 = vmatmul.mubr.msk.bf16.vlgmr.msra.gmra.mrb[0].mxu0 %vm2270_vm10, %v2213_v35  ;;  %v360_v13 = vld [vmem:[%s7997_s10 + $0x60] sm:$0xff]  ;;  %v1966_v2 = vsel %vm1961_vm4, %v1924_v49, %v6342_v55  ;;  %v6843_v42 = vunpack.i.h.bf16 %v6841_v9 }
 0x1b3   : > { %5924 = vmatprep.mubr.msk.bf16.mxu0 %vm7925_vm2, %v11394_v23  ;;  %3038 = vperm.xlu1 %6930, %v345_v59   ;;  %v2008_v37 = vsel %vm2003_vm5, %v1966_v2, %v6442_v51  ;;  %v6842_v3 = vunpack.i.l.bf16 %v6841_v9  ;;  %v9073_v55 = vsel %vm1877_vm0, %v360_v13, %v6152_v26  ;;  %v6347_v26 = vunpack.i.l.bf16 %v8418_v63 }
 0x1b4   : > { %v2174_v12 = vsel %vm2171_vm9, %v2132_v29, %v6837_v41  ;;  %v2175_v35 = vsel %vm2171_vm9, %v2133_v27, %v6838_v5  ;;  %v6642_v5 = vunpack.i.l.bf16 %v8724_v32  ;;  %3023 = vperm.xlu0 %6929, %v342_v56   ;;  %v1967_v41 = vsel %vm1961_vm4, %v1925_v60, %v6343_v38 }
 0x1b5   : > { %v2214_v50 = vpack.c.bf16 %v2175_v35, %v2174_v12  ;;  %v2009_v0 = vsel %vm2003_vm5, %v1967_v41, %v6443_v15  ;;  %v6242_v32 = vunpack.i.l.bf16 %v8285_v44  ;;  %v2050_v34 = vsel %vm2045_vm6, %v2008_v37, %v6542_v16  ;;  %v346_v35 = vld [vmem:[%s11209_s1 + $0x138] sm:$0xff]  ;;  %v6846_v13 = vpop.permute.xlu0 %6845 }
 0x1b6   : > { %v2051_v39 = vsel %vm2045_vm6, %v2009_v0, %v6543_v1  ;;  %v6243_v38 = vunpack.i.h.bf16 %v8285_v44  ;;  %v2092_v29 = vsel %vm2087_vm7, %v2050_v34, %v6642_v5  ;;  %v11446_v56 = vunpack.i.h.bf16 %v8196_v25 }
 0x1b7   : > { %v2093_v27 = vsel %vm2087_vm7, %v2051_v39, %v6643_v22  ;;  %v6348_v51 = vunpack.i.h.bf16 %v8418_v63  ;;  %v2134_v12 = vsel %vm2129_vm8, %v2092_v29, %v6742_v8  ;;  %3048 = vperm.xlu1 %6930, %v347_v58   ;;  %v6448_v59 = vunpack.i.h.bf16 %v8507_v6 }
 0x1b8   : > { %3033 = vperm.xlu0 %6929, %v344_v61   ;;  %v9094_v15 = vsel %vm1877_vm0, %v361_v53, %v11446_v56  ;;  %v2135_v44 = vsel %vm2129_vm8, %v2093_v27, %v6743_v46  ;;  %v6447_v47 = vunpack.i.l.bf16 %v8507_v6  ;;  %v2176_v25 = vsel %vm2171_vm9, %v2134_v12, %v6842_v3  ;;  %v6851_v12 = vpop.permute.xlu1 %6850 }
 0x1b9   : > { %v2177_v49 = vsel %vm2171_vm9, %v2135_v44, %v6843_v42  ;;  %v6168_v1 = vunpack.i.h.bf16 %v8202_v30  ;;  %v1926_v63 = vsel %vm1919_vm3, %v8909_v62, %v6242_v32  ;;  %v6548_v16 = vunpack.i.h.bf16 %v8627_v24  ;;  %v366_v44 = vld [vmem:[%s7997_s10 + $0x90] sm:$0xff] }
 0x1ba   : > { %5925 = vmatmul.mubr.msk.bf16.gmra.mrb[4].mxu0 %vm2270_vm10, %v2214_v50  ;;  %v6547_v9 = vunpack.i.l.bf16 %v8627_v24  ;;  %v1927_v60 = vsel %vm1919_vm3, %v8917_v17, %v6243_v38  ;;  %v1968_v2 = vsel %vm1961_vm4, %v1926_v63, %v6347_v26  ;;  %v6648_v6 = vunpack.i.h.bf16 %v8735_v43  ;;  %v11448_v63 = vld [vmem:[#allocation96_spill] sm:$0xff] }
 0x1bb   : > { %5928 = vmatprep.mubr.msk.bf16.mxu0 %vm7925_vm2, %v11394_v23  ;;  %v6647_v22 = vunpack.i.l.bf16 %v8735_v43  ;;  %v1969_v5 = vsel %vm1961_vm4, %v1927_v60, %v6348_v51  ;;  %v6748_v41 = vunpack.i.h.bf16 %v8817_v54  ;;  %v6747_v62 = vunpack.i.l.bf16 %v8817_v54 }
 0x1bc   : > { %3043 = vperm.xlu0 %6929, %v346_v35   ;;  %v2215_v46 = vpack.c.bf16 %v2177_v49, %v2176_v25  ;;  %v2010_v24 = vsel %vm2003_vm5, %v1968_v2, %v6447_v47  ;;  %v2011_v8 = vsel %vm2003_vm5, %v1969_v5, %v6448_v59  ;;  %v6848_v50 = vunpack.i.h.bf16 %v6846_v13  ;;  %v11447_v59 = vld [vmem:[#allocation78_spill] sm:$0xff] }
 0x1bd   : > { %v6847_v17 = vunpack.i.l.bf16 %v6846_v13  ;;  %v6167_v53 = vunpack.i.l.bf16 %v8202_v30  ;;  %v6247_v37 = vunpack.i.l.bf16 %v8281_v40  ;;  %v2052_v43 = vsel %vm2045_vm6, %v2010_v24, %v6547_v9 }
 0x1be   : > { %v2053_v0 = vsel %vm2045_vm6, %v2011_v8, %v6548_v16  ;;  %v6248_v42 = vunpack.i.h.bf16 %v8281_v40  ;;  %v6352_v54 = vunpack.i.l.bf16 %v8427_v10  ;;  %v2094_v3 = vsel %vm2087_vm7, %v2052_v43, %v6647_v22  ;;  %v11449_v22 = vld [vmem:[#allocation15_spill] sm:$0xff]  ;;  %v11450_v8 = vld [vmem:[#allocation30_spill] sm:$0xff] }
 0x1bf   : > { %v2095_v32 = vsel %vm2087_vm7, %v2053_v0, %v6648_v6  ;;  %v6163_v34 = vunpack.i.h.bf16 %v8206_v33  ;;  %v6353_v39 = vunpack.i.h.bf16 %v8427_v10  ;;  %v2136_v58 = vsel %vm2129_vm8, %v2094_v3, %v6747_v62 }
 0x1c0   : > { %v2137_v61 = vsel %vm2129_vm8, %v2095_v32, %v6748_v41  ;;  %v6453_v40 = vunpack.i.h.bf16 %v8503_v20  ;;  %v6452_v38 = vunpack.i.l.bf16 %v8503_v20  ;;  %v2178_v26 = vsel %vm2171_vm9, %v2136_v58, %v6847_v17 }
 0x1c1   : > { %v2179_v29 = vsel %vm2171_vm9, %v2137_v61, %v6848_v50  ;;  %v6162_v27 = vunpack.i.l.bf16 %v8206_v33  ;;  %v1928_v56 = vsel %vm1919_vm3, %v8938_v18, %v6247_v37  ;;  %v6553_v10 = vunpack.i.h.bf16 %v8640_v28  ;;  %v11457_v33 = vld [vmem:[#allocation3_spill] sm:$0xff] }
 0x1c2   : > { %5929 = vmatmul.mubr.msk.bf16.gmra.mrb[8].mxu0 %vm2270_vm10, %v2215_v46  ;;  %v6552_v51 = vunpack.i.l.bf16 %v8640_v28  ;;  %v1929_v35 = vsel %vm1919_vm3, %v8941_v36, %v6248_v42  ;;  %v1970_v20 = vsel %vm1961_vm4, %v1928_v56, %v6352_v54  ;;  %v6653_v47 = vunpack.i.h.bf16 %v11447_v59  ;;  %v367_v28 = vld [vmem:[%s7997_s10 + $0x98] sm:$0xff]  ;;  %v364_v46 = vld [vmem:[%s7997_s10 + $0x80] sm:$0xff]  ;;  %v11451_v54 = vld [vmem:[#allocation47_spill] sm:$0xff] }
 0x1c3   : > { %5932 = vmatprep.mubr.msk.bf16.mxu0 %vm7925_vm2, %v11394_v23  ;;  %v6652_v25 = vunpack.i.l.bf16 %v11447_v59  ;;  %v1971_v49 = vsel %vm1961_vm4, %v1929_v35, %v6353_v39  ;;  %v6753_v18 = vunpack.i.h.bf16 %v11448_v63  ;;  %v6752_v16 = vunpack.i.l.bf16 %v11448_v63  ;;  %v11454_v35 = vld [vmem:[#allocation95_spill] sm:$0xff] }
 0x1c4   : > { %v2216_v9 = vpack.c.bf16 %v2179_v29, %v2178_v26  ;;  %v2012_v13 = vsel %vm2003_vm5, %v1970_v20, %v6452_v38  ;;  %v2013_v60 = vsel %vm2003_vm5, %v1971_v49, %v6453_v40  ;;  %v6853_v36 = vunpack.i.h.bf16 %v6851_v12  ;;  %v6856_v26 = vpop.permute.xlu0 %6855  ;;  %v365_v29 = vld [vmem:[%s7997_s10 + $0x88] sm:$0xff] }
 0x1c5   : > { %v6852_v2 = vunpack.i.l.bf16 %v6851_v12  ;;  %v9158_v6 = vsel %vm1877_vm0, %v366_v44, %v6167_v53  ;;  %v6252_v5 = vunpack.i.l.bf16 %v11449_v22  ;;  %v2054_v41 = vsel %vm2045_vm6, %v2012_v13, %v6552_v51  ;;  %v11453_v51 = vld [vmem:[#allocation80_spill] sm:$0xff] }
 0x1c6   : > { %v2055_v62 = vsel %vm2045_vm6, %v2013_v60, %v6553_v10  ;;  %v6253_v24 = vunpack.i.h.bf16 %v11449_v22  ;;  %v6357_v50 = vunpack.i.l.bf16 %v11450_v8  ;;  %v2096_v17 = vsel %vm2087_vm7, %v2054_v41, %v6652_v25  ;;  %v11456_v60 = vld [vmem:[#allocation32_spill] sm:$0xff] }
 0x1c7   : > { %v2097_v37 = vsel %vm2087_vm7, %v2055_v62, %v6653_v47  ;;  %v9174_v53 = vsel %vm1877_vm0, %v367_v28, %v6168_v1  ;;  %v6358_v43 = vunpack.i.h.bf16 %v11450_v8  ;;  %v2138_v0 = vsel %vm2129_vm8, %v2096_v17, %v6752_v16  ;;  %v11452_v1 = vld [vmem:[#allocation62_spill] sm:$0xff] }
 0x1c8   : > { %v2139_v42 = vsel %vm2129_vm8, %v2097_v37, %v6753_v18  ;;  %v6458_v3 = vunpack.i.h.bf16 %v11451_v54  ;;  %v6457_v32 = vunpack.i.l.bf16 %v11451_v54  ;;  %v2180_v39 = vsel %vm2171_vm9, %v2138_v0, %v6852_v2  ;;  %v11455_v18 = vld [vmem:[#allocation14_spill] sm:$0xff]  ;;  %v11459_v0 = vld [vmem:[#allocation64_spill] sm:$0xff] }
 0x1c9   : > { %v2181_v58 = vsel %vm2171_vm9, %v2139_v42, %v6853_v36  ;;  %v9184_v61 = vsel %vm1877_vm0, %v364_v46, %v6162_v27  ;;  %v1930_v30 = vsel %vm1919_vm3, %v8930_v14, %v6252_v5  ;;  %v6558_v40 = vunpack.i.h.bf16 %v11452_v1  ;;  %v11458_v46 = vld [vmem:[#allocation46_spill] sm:$0xff] }
 0x1ca   : > { %5933 = vmatmul.mubr.msk.bf16.gmra.mrb[12].mxu0 %vm2270_vm10, %v2216_v9  ;;  %v6557_v38 = vunpack.i.l.bf16 %v11452_v1  ;;  %v1931_v56 = vsel %vm1919_vm3, %v8935_v21, %v6253_v24  ;;  %v1972_v10 = vsel %vm1961_vm4, %v1930_v30, %v6357_v50  ;;  %v6658_v12 = vunpack.i.h.bf16 %v11453_v51 }
 0x1cb   : > { %5936 = vmatprep.mubr.msk.bf16.mxu0 %vm7925_vm2, %v11394_v23  ;;  %v6657_v44 = vunpack.i.l.bf16 %v11453_v51  ;;  %v1973_v27 = vsel %vm1961_vm4, %v1931_v56, %v6358_v43  ;;  %v6758_v20 = vunpack.i.h.bf16 %v11454_v35  ;;  %v6757_v14 = vunpack.i.l.bf16 %v11454_v35 }
 0x1cc   : > { %v2217_v59 = vpack.c.bf16 %v2181_v58, %v2180_v39  ;;  %v2014_v47 = vsel %vm2003_vm5, %v1972_v10, %v6457_v32  ;;  %v2015_v25 = vsel %vm2003_vm5, %v1973_v27, %v6458_v3  ;;  %v6858_v49 = vunpack.i.h.bf16 %v6856_v26  ;;  %v6861_v3 = vpop.permute.xlu1 %6860  ;;  %v11460_v58 = vld [vmem:[#allocation79_spill] sm:$0xff]  ;;  %v11463_v27 = vld [vmem:[#allocation17_spill] sm:$0xff] }
 0x1cd   : > { %v6857_v63 = vunpack.i.l.bf16 %v6856_v26  ;;  %v9204_v21 = vsel %vm1877_vm0, %v365_v29, %v6163_v34  ;;  %v6257_v16 = vunpack.i.l.bf16 %v11455_v18  ;;  %v2056_v9 = vsel %vm2045_vm6, %v2014_v47, %v6557_v38  ;;  %v11461_v38 = vld [vmem:[#allocation98_spill] sm:$0xff] }
 0x1ce   : > { %v2057_v28 = vsel %vm2045_vm6, %v2015_v25, %v6558_v40  ;;  %v6258_v13 = vunpack.i.h.bf16 %v11455_v18  ;;  %v6362_v36 = vunpack.i.l.bf16 %v11456_v60  ;;  %v2098_v2 = vsel %vm2087_vm7, %v2056_v9, %v6657_v44  ;;  %v11464_v25 = vld [vmem:[#allocation31_spill] sm:$0xff] }
 0x1cf   : > { %v2099_v22 = vsel %vm2087_vm7, %v2057_v28, %v6658_v12  ;;  %v6178_v34 = vunpack.i.h.bf16 %v11457_v33  ;;  %v6363_v5 = vunpack.i.h.bf16 %v11456_v60  ;;  %v2140_v41 = vsel %vm2129_vm8, %v2098_v2, %v6757_v14  ;;  %v11462_v12 = vld [vmem:[#allocation4_spill] sm:$0xff]  ;;  %v11465_v60 = vld [vmem:[#allocation49_spill] sm:$0xff] }
 0x1d0   : > { %v2141_v62 = vsel %vm2129_vm8, %v2099_v22, %v6758_v20  ;;  %v6463_v24 = vunpack.i.h.bf16 %v11458_v46  ;;  %v6462_v8 = vunpack.i.l.bf16 %v11458_v46  ;;  %v2182_v50 = vsel %vm2171_vm9, %v2140_v41, %v6857_v63  ;;  %v11466_v46 = vld [vmem:[#allocation63_spill] sm:$0xff] }
 0x1d1   : > { %v2183_v17 = vsel %vm2171_vm9, %v2141_v62, %v6858_v49  ;;  %v6177_v37 = vunpack.i.l.bf16 %v11457_v33  ;;  %v1932_v43 = vsel %vm1919_vm3, %v9073_v55, %v6257_v16  ;;  %v6563_v42 = vunpack.i.h.bf16 %v11459_v0 }
 0x1d2   : > { %5937 = vmatmul.mubr.msk.bf16.gmra.mrb[16].mxu0 %vm2270_vm10, %v2217_v59  ;;  %v6562_v54 = vunpack.i.l.bf16 %v11459_v0  ;;  %v1933_v32 = vsel %vm1919_vm3, %v9094_v15, %v6258_v13  ;;  %v1974_v39 = vsel %vm1961_vm4, %v1932_v43, %v6362_v36  ;;  %v6663_v30 = vunpack.i.h.bf16 %v11460_v58  ;;  %v370_v59 = vld [vmem:[%s7997_s10 + $0xb0] sm:$0xff] }
 0x1d3   : > { %5940 = vmatprep.mubr.msk.bf16.mxu0 %vm7925_vm2, %v11394_v23  ;;  %v6662_v1 = vunpack.i.l.bf16 %v11460_v58  ;;  %v1975_v40 = vsel %vm1961_vm4, %v1933_v32, %v6363_v5  ;;  %v6763_v26 = vunpack.i.h.bf16 %v11461_v38  ;;  %v6762_v55 = vunpack.i.l.bf16 %v11461_v38  ;;  %v11468_v32 = vld [vmem:[#allocation97_spill] sm:$0xff] }
 0x1d4   : > { %v2218_v29 = vpack.c.bf16 %v2183_v17, %v2182_v50  ;;  %v2016_v56 = vsel %vm2003_vm5, %v1974_v39, %v6462_v8  ;;  %v2017_v10 = vsel %vm2003_vm5, %v1975_v40, %v6463_v24  ;;  %v6863_v51 = vunpack.i.h.bf16 %v6861_v3  ;;  %v6866_v50 = vpop.permute.xlu0 %6865  ;;  %v371_v17 = vld [vmem:[%s7997_s10 + $0xb8] sm:$0xff] }
 0x1d5   : > { %v6862_v15 = vunpack.i.l.bf16 %v6861_v3  ;;  %v6173_v44 = vunpack.i.h.bf16 %v11462_v12  ;;  %v6262_v35 = vunpack.i.l.bf16 %v11463_v27  ;;  %v2058_v20 = vsel %vm2045_vm6, %v2016_v56, %v6562_v54 }
 0x1d6   : > { %v2059_v14 = vsel %vm2045_vm6, %v2017_v10, %v6563_v42  ;;  %v6263_v47 = vunpack.i.h.bf16 %v11463_v27  ;;  %v6367_v49 = vunpack.i.l.bf16 %v11464_v25  ;;  %v2100_v63 = vsel %vm2087_vm7, %v2058_v20, %v6662_v1  ;;  %v11467_v42 = vld [vmem:[#allocation82_spill] sm:$0xff] }
 0x1d7   : > { %v2101_v18 = vsel %vm2087_vm7, %v2059_v14, %v6663_v30  ;;  %v6172_v16 = vunpack.i.l.bf16 %v11462_v12  ;;  %v6368_v9 = vunpack.i.h.bf16 %v11464_v25  ;;  %v2142_v28 = vsel %vm2129_vm8, %v2100_v63, %v6762_v55  ;;  %v368_v30 = vld [vmem:[%s7997_s10 + $0xa0] sm:$0xff]  ;;  %v11469_v55 = vld [vmem:[#allocation16_spill] sm:$0xff]  ;;  %v11470_v12 = vld [vmem:[#allocation34_spill] sm:$0xff] }
 0x1d8   : > { %v2143_v13 = vsel %vm2129_vm8, %v2101_v18, %v6763_v26  ;;  %v6468_v36 = vunpack.i.h.bf16 %v11465_v60  ;;  %v6467_v2 = vunpack.i.l.bf16 %v11465_v60  ;;  %v2184_v22 = vsel %vm2171_vm9, %v2142_v28, %v6862_v15  ;;  %v11472_v28 = vld [vmem:[#allocation66_spill] sm:$0xff] }
 0x1d9   : > { %v2185_v5 = vsel %vm2171_vm9, %v2143_v13, %v6863_v51  ;;  %v9260_v41 = vsel %vm1877_vm0, %v370_v59, %v6177_v37  ;;  %v1934_v62 = vsel %vm1919_vm3, %v9036_v11, %v6262_v35  ;;  %v6568_v24 = vunpack.i.h.bf16 %v11466_v46  ;;  %v369_v51 = vld [vmem:[%s7997_s10 + $0xa8] sm:$0xff] }
 0x1da   : > { %5941 = vmatmul.mubr.msk.bf16.gmra.mrb[20].mxu0 %vm2270_vm10, %v2218_v29  ;;  %v6567_v8 = vunpack.i.l.bf16 %v11466_v46  ;;  %v1935_v43 = vsel %vm1919_vm3, %v9054_v45, %v6263_v47  ;;  %v1976_v0 = vsel %vm1961_vm4, %v1934_v62, %v6367_v49  ;;  %v6668_v54 = vunpack.i.h.bf16 %v11467_v42  ;;  %v11471_v47 = vld [vmem:[#allocation48_spill] sm:$0xff] }
 0x1db   : > { %5944 = vmatprep.mubr.msk.bf16.mxu0 %vm7925_vm2, %v11394_v23  ;;  %v6667_v37 = vunpack.i.l.bf16 %v11467_v42  ;;  %v1977_v3 = vsel %vm1961_vm4, %v1935_v43, %v6368_v9  ;;  %v6768_v11 = vunpack.i.h.bf16 %v11468_v32  ;;  %v6767_v39 = vunpack.i.l.bf16 %v11468_v32 }
 0x1dc   : > { %v2219_v58 = vpack.c.bf16 %v2185_v5, %v2184_v22  ;;  %v2018_v1 = vsel %vm2003_vm5, %v1976_v0, %v6467_v2  ;;  %v2019_v40 = vsel %vm2003_vm5, %v1977_v3, %v6468_v36  ;;  %v6868_v45 = vunpack.i.h.bf16 %v6866_v50  ;;  %v6871_v36 = vpop.permute.xlu1 %6870  ;;  %v11473_v5 = vld [vmem:[#allocation81_spill] sm:$0xff] }
 0x1dd   : > { %v6867_v38 = vunpack.i.l.bf16 %v6866_v50  ;;  %v9281_v26 = vsel %vm1877_vm0, %v371_v17, %v6178_v34  ;;  %v6267_v29 = vunpack.i.l.bf16 %v11469_v55  ;;  %v2060_v56 = vsel %vm2045_vm6, %v2018_v1, %v6567_v8 }
 0x1de   : > { %v2061_v10 = vsel %vm2045_vm6, %v2019_v40, %v6568_v24  ;;  %v6268_v15 = vunpack.i.h.bf16 %v11469_v55  ;;  %v6372_v27 = vunpack.i.l.bf16 %v11470_v12  ;;  %v2102_v35 = vsel %vm2087_vm7, %v2060_v56, %v6667_v37  ;;  %v11474_v24 = vld [vmem:[#allocation100_spill] sm:$0xff]  ;;  %v11476_v37 = vld [vmem:[#allocation19_spill] sm:$0xff] }
 0x1df   : > { %v2103_v33 = vsel %vm2087_vm7, %v2061_v10, %v6668_v54  ;;  %v9295_v34 = vsel %vm1877_vm0, %v368_v30, %v6172_v16  ;;  %v6373_v20 = vunpack.i.h.bf16 %v11470_v12  ;;  %v2144_v14 = vsel %vm2129_vm8, %v2102_v35, %v6767_v39  ;;  %v11478_v56 = vld [vmem:[#allocation51_spill] sm:$0xff] }
 0x1e0   : > { %v2145_v59 = vsel %vm2129_vm8, %v2103_v33, %v6768_v11  ;;  %v6473_v25 = vunpack.i.h.bf16 %v11471_v47  ;;  %v6472_v49 = vunpack.i.l.bf16 %v11471_v47  ;;  %v2186_v63 = vsel %vm2171_vm9, %v2144_v14, %v6867_v38  ;;  %v6876_v47 = vpop.permute.xlu0 %6875 }
 0x1e1   : > { %v2187_v18 = vsel %vm2171_vm9, %v2145_v59, %v6868_v45  ;;  %v9305_v9 = vsel %vm1877_vm0, %v369_v51, %v6173_v44  ;;  %v1936_v16 = vsel %vm1919_vm3, %v9184_v61, %v6267_v29  ;;  %v6573_v13 = vunpack.i.h.bf16 %v11472_v28 }
 0x1e2   : > { %5945 = vmatmul.mubr.msk.bf16.gmra.mrb[24].mxu0 %vm2270_vm10, %v2219_v58  ;;  %v6572_v60 = vunpack.i.l.bf16 %v11472_v28  ;;  %v1937_v2 = vsel %vm1919_vm3, %v9204_v21, %v6268_v15  ;;  %v1978_v22 = vsel %vm1961_vm4, %v1936_v16, %v6372_v27  ;;  %v6673_v62 = vunpack.i.h.bf16 %v11473_v5  ;;  %v11475_v21 = vld [vmem:[#allocation5_spill] sm:$0xff]  ;;  %v11479_v27 = vld [vmem:[#allocation6_spill] sm:$0xff] }
 0x1e3   : > { %5948 = vmatprep.mubr.msk.bf16.mxu0 %vm7925_vm2, %v11394_v23  ;;  %v6672_v46 = vunpack.i.l.bf16 %v11473_v5  ;;  %v1979_v44 = vsel %vm1961_vm4, %v1937_v2, %v6373_v20  ;;  %v6773_v8 = vunpack.i.h.bf16 %v11474_v24  ;;  %v6772_v61 = vunpack.i.l.bf16 %v11474_v24  ;;  %v11477_v58 = vld [vmem:[#allocation33_spill] sm:$0xff]  ;;  %v374_v2 = vld [vmem:[%s7997_s10 + $0xd0] sm:$0xff] }
 0x1e4   : > { %v2220_v50 = vpack.c.bf16 %v2187_v18, %v2186_v63  ;;  %v2020_v17 = vsel %vm2003_vm5, %v1978_v22, %v6472_v49  ;;  %v2021_v43 = vsel %vm2003_vm5, %v1979_v44, %v6473_v25  ;;  %v6873_v0 = vunpack.i.h.bf16 %v6871_v36  ;;  %v11480_v20 = vld [vmem:[#allocation65_spill] sm:$0xff]  ;;  %v11481_v63 = vld [vmem:[#allocation84_spill] sm:$0xff]  ;;  %v11483_v44 = vld [vmem:[#allocation18_spill] sm:$0xff] }
 0x1e5   : > { %v6872_v42 = vunpack.i.l.bf16 %v6871_v36  ;;  %v6188_v54 = vunpack.i.h.bf16 %v11475_v21  ;;  %v6272_v3 = vunpack.i.l.bf16 %v11476_v37  ;;  %v2062_v32 = vsel %vm2045_vm6, %v2020_v17, %v6572_v60 }
 0x1e6   : > { %v2063_v11 = vsel %vm2045_vm6, %v2021_v43, %v6573_v13  ;;  %v6273_v39 = vunpack.i.h.bf16 %v11476_v37  ;;  %v6377_v30 = vunpack.i.l.bf16 %v11477_v58  ;;  %v2104_v1 = vsel %vm2087_vm7, %v2062_v32, %v6672_v46  ;;  %v11482_v13 = vld [vmem:[#allocation99_spill] sm:$0xff]  ;;  %v11484_v43 = vld [vmem:[#allocation36_spill] sm:$0xff] }
 0x1e7   : > { %v2105_v40 = vsel %vm2087_vm7, %v2063_v11, %v6673_v62  ;;  %v6187_v45 = vunpack.i.l.bf16 %v11475_v21  ;;  %v6378_v38 = vunpack.i.h.bf16 %v11477_v58  ;;  %v2146_v55 = vsel %vm2129_vm8, %v2104_v1, %v6772_v61 }
 0x1e8   : > { %v2147_v29 = vsel %vm2129_vm8, %v2105_v40, %v6773_v8  ;;  %v6478_v10 = vunpack.i.h.bf16 %v11478_v56  ;;  %v6477_v51 = vunpack.i.l.bf16 %v11478_v56  ;;  %v2188_v15 = vsel %vm2171_vm9, %v2146_v55, %v6872_v42  ;;  %v11486_v55 = vld [vmem:[#allocation68_spill] sm:$0xff] }
 0x1e9   : > { %v2189_v12 = vsel %vm2171_vm9, %v2147_v29, %v6873_v0  ;;  %v6183_v35 = vunpack.i.h.bf16 %v11479_v27  ;;  %v1938_v33 = vsel %vm1919_vm3, %v9158_v6, %v6272_v3  ;;  %v6578_v14 = vunpack.i.h.bf16 %v11480_v20 }
 0x1ea   : > { %5949 = vmatmul.mubr.msk.bf16.gmra.mrb[28].mxu0 %vm2270_vm10, %v2220_v50  ;;  %v6577_v59 = vunpack.i.l.bf16 %v11480_v20  ;;  %v1939_v25 = vsel %vm1919_vm3, %v9174_v53, %v6273_v39  ;;  %v1980_v49 = vsel %vm1961_vm4, %v1938_v33, %v6377_v30  ;;  %v6678_v18 = vunpack.i.h.bf16 %v11481_v63  ;;  %v375_v50 = vld [vmem:[%s7997_s10 + $0xd8] sm:$0xff]  ;;  %v11485_v39 = vld [vmem:[#allocation50_spill] sm:$0xff]  ;;  %v11487_v33 = vld [vmem:[#allocation83_spill] sm:$0xff] }
 0x1eb   : > { %5952 = vmatprep.mubr.msk.bf16.mxu0 %vm7925_vm2, %v11394_v23  ;;  %v6677_v16 = vunpack.i.l.bf16 %v11481_v63  ;;  %v1981_v28 = vsel %vm1961_vm4, %v1939_v25, %v6378_v38  ;;  %v6778_v60 = vunpack.i.h.bf16 %v11482_v13  ;;  %v6777_v6 = vunpack.i.l.bf16 %v11482_v13  ;;  %v11489_v13 = vld [vmem:[#allocation21_spill] sm:$0xff] }
 0x1ec   : > { %v2221_v36 = vpack.c.bf16 %v2189_v12, %v2188_v15  ;;  %v2022_v22 = vsel %vm2003_vm5, %v1980_v49, %v6477_v51  ;;  %v2023_v5 = vsel %vm2003_vm5, %v1981_v28, %v6478_v10  ;;  %v6878_v53 = vunpack.i.h.bf16 %v6876_v47  ;;  %v6881_v10 = vpop.permute.xlu1 %6880  ;;  %v372_v51 = vld [vmem:[%s7997_s10 + $0xc0] sm:$0xff]  ;;  %v373_v49 = vld [vmem:[%s7997_s10 + $0xc8] sm:$0xff] }
 0x1ed   : > { %v6877_v62 = vunpack.i.l.bf16 %v6876_v47  ;;  %v6182_v46 = vunpack.i.l.bf16 %v11479_v27  ;;  %v6277_v24 = vunpack.i.l.bf16 %v11483_v44  ;;  %v2064_v8 = vsel %vm2045_vm6, %v2022_v22, %v6577_v59  ;;  %v11488_v59 = vld [vmem:[#allocation102_spill] sm:$0xff]  ;;  %v11490_v22 = vld [vmem:[#allocation35_spill] sm:$0xff] }
 0x1ee   : > { %v2065_v61 = vsel %vm2045_vm6, %v2023_v5, %v6578_v14  ;;  %v6278_v17 = vunpack.i.h.bf16 %v11483_v44  ;;  %v6382_v0 = vunpack.i.l.bf16 %v11484_v43  ;;  %v2106_v42 = vsel %vm2087_vm7, %v2064_v8, %v6677_v16 }
 0x1ef   : > { %v2107_v21 = vsel %vm2087_vm7, %v2065_v61, %v6678_v18  ;;  %v9369_v37 = vsel %vm1877_vm0, %v374_v2, %v6187_v45  ;;  %v6383_v3 = vunpack.i.h.bf16 %v11484_v43  ;;  %v2148_v32 = vsel %vm2129_vm8, %v2106_v42, %v6777_v6  ;;  %v11491_v61 = vld [vmem:[#allocation53_spill] sm:$0xff]  ;;  %v11492_v42 = vld [vmem:[#allocation7_spill] sm:$0xff] }
 0x1f0   : > { %v2149_v11 = vsel %vm2129_vm8, %v2107_v21, %v6778_v60  ;;  %v6483_v58 = vunpack.i.h.bf16 %v11485_v39  ;;  %v6482_v30 = vunpack.i.l.bf16 %v11485_v39  ;;  %v2190_v1 = vsel %vm2171_vm9, %v2148_v32, %v6877_v62 }
 0x1f1   : > { %v2191_v40 = vsel %vm2171_vm9, %v2149_v11, %v6878_v53  ;;  %v9379_v38 = vsel %vm1877_vm0, %v375_v50, %v6188_v54  ;;  %v1940_v45 = vsel %vm1919_vm3, %v9295_v34, %v6277_v24  ;;  %v6583_v29 = vunpack.i.h.bf16 %v11486_v55  ;;  %v6886_v11 = vpop.permute.xlu0 %6885 }
 0x1f2   : > { %5953 = vmatmul.mubr.msk.bf16.gmra.mrb[32].mxu0 %vm2270_vm10, %v2221_v36  ;;  %v6582_v56 = vunpack.i.l.bf16 %v11486_v55  ;;  %v1941_v15 = vsel %vm1919_vm3, %v9305_v9, %v6278_v17  ;;  %v1982_v12 = vsel %vm1961_vm4, %v1940_v45, %v6382_v0  ;;  %v6683_v20 = vunpack.i.h.bf16 %v11487_v33  ;;  %v11495_v55 = vld [vmem:[#allocation101_spill] sm:$0xff] }
 0x1f3   : > { %5956 = vmatprep.mubr.msk.bf16.mxu0 %vm7925_vm2, %v11394_v23  ;;  %v6682_v14 = vunpack.i.l.bf16 %v11487_v33  ;;  %v1983_v54 = vsel %vm1961_vm4, %v1941_v15, %v6383_v3  ;;  %v6783_v47 = vunpack.i.h.bf16 %v11488_v59  ;;  %v6782_v34 = vunpack.i.l.bf16 %v11488_v59  ;;  %v11496_v33 = vld [vmem:[#allocation20_spill] sm:$0xff] }
 0x1f4   : > { %v2222_v25 = vpack.c.bf16 %v2191_v40, %v2190_v1  ;;  %v2024_v63 = vsel %vm2003_vm5, %v1982_v12, %v6482_v30  ;;  %v2025_v18 = vsel %vm2003_vm5, %v1983_v54, %v6483_v58  ;;  %v6883_v16 = vunpack.i.h.bf16 %v6881_v10  ;;  %v11494_v30 = vld [vmem:[#allocation86_spill] sm:$0xff] }
 0x1f5   : > { %v6882_v9 = vunpack.i.l.bf16 %v6881_v10  ;;  %v1902_v28 = vsel %vm1877_vm0, %v372_v51, %v6182_v46  ;;  %v6282_v60 = vunpack.i.l.bf16 %v11489_v13  ;;  %v2066_v6 = vsel %vm2045_vm6, %v2024_v63, %v6582_v56  ;;  %v11498_v63 = vld [vmem:[#allocation8_spill] sm:$0xff] }
 0x1f6   : > { %v2067_v36 = vsel %vm2045_vm6, %v2025_v18, %v6583_v29  ;;  %v6283_v2 = vunpack.i.h.bf16 %v11489_v13  ;;  %v6387_v5 = vunpack.i.l.bf16 %v11490_v22  ;;  %v2108_v53 = vsel %vm2087_vm7, %v2066_v6, %v6682_v14 }
 0x1f7   : > { %v2109_v62 = vsel %vm2087_vm7, %v2067_v36, %v6683_v20  ;;  %v1903_v46 = vsel %vm1877_vm0, %v373_v49, %v6183_v35  ;;  %v6388_v44 = vunpack.i.h.bf16 %v11490_v22  ;;  %v2150_v24 = vsel %vm2129_vm8, %v2108_v53, %v6782_v34  ;;  %v11493_v35 = vld [vmem:[#allocation67_spill] sm:$0xff] }
 0x1f8   : > { %v2151_v8 = vsel %vm2129_vm8, %v2109_v62, %v6783_v47  ;;  %v6488_v50 = vunpack.i.h.bf16 %v11491_v61  ;;  %v6487_v17 = vunpack.i.l.bf16 %v11491_v61  ;;  %v2192_v43 = vsel %vm2171_vm9, %v2150_v24, %v6882_v9  ;;  %v11497_v47 = vld [vmem:[#allocation38_spill] sm:$0xff]  ;;  %v378_v61 = vld [vmem:[%s7997_s10 + $0xf0] sm:$0xff] }
 0x1f9   : > { %v2193_v0 = vsel %vm2171_vm9, %v2151_v8, %v6883_v16  ;;  %v6198_v21 = vunpack.i.h.bf16 %v11492_v42  ;;  %v1942_v27 = vsel %vm1919_vm3, %v9260_v41, %v6282_v60  ;;  %v6588_v3 = vunpack.i.h.bf16 %v11493_v35  ;;  %v11499_v60 = vld [vmem:[#allocation52_spill] sm:$0xff]  ;;  %v11500_v62 = vld [vmem:[#allocation70_spill] sm:$0xff]  ;;  %v6891_v8 = vpop.permute.xlu1 %6890 }
 0x1fa   : > { %5957 = vmatmul.mubr.msk.bf16.gmra.mrb[36].mxu0 %vm2270_vm10, %v2222_v25  ;;  %v6587_v32 = vunpack.i.l.bf16 %v11493_v35  ;;  %v1943_v39 = vsel %vm1919_vm3, %v9281_v26, %v6283_v2  ;;  %v1984_v58 = vsel %vm1961_vm4, %v1942_v27, %v6387_v5  ;;  %v6688_v1 = vunpack.i.h.bf16 %v11494_v30 }
 0x1fb   : > { %5960 = vmatprep.mubr.msk.bf16.mxu0 %vm7925_vm2, %v11394_v23  ;;  %v6687_v40 = vunpack.i.l.bf16 %v11494_v30  ;;  %v1985_v45 = vsel %vm1961_vm4, %v1943_v39, %v6388_v44  ;;  %v6788_v29 = vunpack.i.h.bf16 %v11495_v55  ;;  %v6787_v41 = vunpack.i.l.bf16 %v11495_v55  ;;  %v379_v39 = vld [vmem:[%s7997_s10 + $0xf8] sm:$0xff] }
 0x1fc   : > { %v2223_v56 = vpack.c.bf16 %v2193_v0, %v2192_v43  ;;  %v2026_v10 = vsel %vm2003_vm5, %v1984_v58, %v6487_v17  ;;  %v2027_v51 = vsel %vm2003_vm5, %v1985_v45, %v6488_v50  ;;  %v6888_v15 = vunpack.i.h.bf16 %v6886_v11  ;;  %v11501_v43 = vld [vmem:[#allocation85_spill] sm:$0xff]  ;;  %v11503_v45 = vld [vmem:[#allocation23_spill] sm:$0xff] }
 0x1fd   : > { %v6887_v12 = vunpack.i.l.bf16 %v6886_v11  ;;  %v6197_v26 = vunpack.i.l.bf16 %v11492_v42  ;;  %v6287_v20 = vunpack.i.l.bf16 %v11496_v33  ;;  %v2068_v14 = vsel %vm2045_vm6, %v2026_v10, %v6587_v32 }
 0x1fe   : > { %v2069_v54 = vsel %vm2045_vm6, %v2027_v51, %v6588_v3  ;;  %v6288_v59 = vunpack.i.h.bf16 %v11496_v33  ;;  %v6392_v34 = vunpack.i.l.bf16 %v11497_v47  ;;  %v2110_v25 = vsel %vm2087_vm7, %v2068_v14, %v6687_v40  ;;  %v11502_v3 = vld [vmem:[#allocation104_spill] sm:$0xff]  ;;  %v11504_v51 = vld [vmem:[#allocation37_spill] sm:$0xff] }
 0x1ff   : > { %v2111_v49 = vsel %vm2087_vm7, %v2069_v54, %v6688_v1  ;;  %v6193_v18 = vunpack.i.h.bf16 %v11498_v63  ;;  %v6393_v16 = vunpack.i.h.bf16 %v11497_v47  ;;  %v2152_v9 = vsel %vm2129_vm8, %v2110_v25, %v6787_v41 }
 0x200   : > { %v2153_v13 = vsel %vm2129_vm8, %v2111_v49, %v6788_v29  ;;  %v6493_v6 = vunpack.i.h.bf16 %v11499_v60  ;;  %v6492_v36 = vunpack.i.l.bf16 %v11499_v60  ;;  %v2194_v2 = vsel %vm2171_vm9, %v2152_v9, %v6887_v12  ;;  %v6896_v60 = vpop.permute.xlu0 %6895 }
 0x201   : > { %v2195_v22 = vsel %vm2171_vm9, %v2153_v13, %v6888_v15  ;;  %v6192_v5 = vunpack.i.l.bf16 %v11498_v63  ;;  %v1944_v53 = vsel %vm1919_vm3, %v1902_v28, %v6287_v20  ;;  %v6593_v44 = vunpack.i.h.bf16 %v11500_v62  ;;  %v11511_v63 = vld [vmem:[#allocation9_spill] sm:$0xff] }
 0x202   : > { %5961 = vmatmul.mubr.msk.bf16.gmra.mrb[40].mxu0 %vm2270_vm10, %v2223_v56  ;;  %v6592_v24 = vunpack.i.l.bf16 %v11500_v62  ;;  %v1945_v50 = vsel %vm1919_vm3, %v1903_v46, %v6288_v59  ;;  %v1986_v17 = vsel %vm1961_vm4, %v1944_v53, %v6392_v34  ;;  %v6693_v0 = vunpack.i.h.bf16 %v11501_v43  ;;  %v376_v56 = vld [vmem:[%s7997_s10 + $0xe0] sm:$0xff]  ;;  %v11505_v59 = vld [vmem:[#allocation55_spill] sm:$0xff] }
 0x203   : > { %5964 = vmatprep.mubr.msk.bf16.mxu0 %vm7925_vm2, %v11394_v23  ;;  %v6692_v27 = vunpack.i.l.bf16 %v11501_v43  ;;  %v1987_v35 = vsel %vm1961_vm4, %v1945_v50, %v6393_v16  ;;  %v6793_v32 = vunpack.i.h.bf16 %v11502_v3  ;;  %v6792_v28 = vunpack.i.l.bf16 %v11502_v3 }
 0x204   : > { %v2224_v11 = vpack.c.bf16 %v2195_v22, %v2194_v2  ;;  %v2028_v58 = vsel %vm2003_vm5, %v1986_v17, %v6492_v36  ;;  %v2029_v30 = vsel %vm2003_vm5, %v1987_v35, %v6493_v6  ;;  %v6893_v46 = vunpack.i.h.bf16 %v6891_v8  ;;  %v377_v6 = vld [vmem:[%s7997_s10 + $0xe8] sm:$0xff]  ;;  %v11507_v22 = vld [vmem:[#allocation88_spill] sm:$0xff] }
 0x205   : > { %v6892_v1 = vunpack.i.l.bf16 %v6891_v8  ;;  %v9468_v40 = vsel %vm1877_vm0, %v378_v61, %v6197_v26  ;;  %v6292_v55 = vunpack.i.l.bf16 %v11503_v45  ;;  %v2070_v29 = vsel %vm2045_vm6, %v2028_v58, %v6592_v24 }
 0x206   : > { %v2071_v41 = vsel %vm2045_vm6, %v2029_v30, %v6593_v44  ;;  %v6293_v10 = vunpack.i.h.bf16 %v11503_v45  ;;  %v6397_v15 = vunpack.i.l.bf16 %v11504_v51  ;;  %v2112_v12 = vsel %vm2087_vm7, %v2070_v29, %v6692_v27  ;;  %v11508_v44 = vld [vmem:[#allocation103_spill] sm:$0xff]  ;;  %v11512_v45 = vld [vmem:[#allocation54_spill] sm:$0xff] }
 0x207   : > { %v2113_v33 = vsel %vm2087_vm7, %v2071_v41, %v6693_v0  ;;  %v9484_v26 = vsel %vm1877_vm0, %v379_v39, %v6198_v21  ;;  %v6398_v20 = vunpack.i.h.bf16 %v11504_v51  ;;  %v2154_v14 = vsel %vm2129_vm8, %v2112_v12, %v6792_v28  ;;  %v11506_v21 = vld [vmem:[#allocation69_spill] sm:$0xff]  ;;  %v11509_v0 = vld [vmem:[#allocation22_spill] sm:$0xff]  ;;  %v11510_v28 = vld [vmem:[#allocation40_spill] sm:$0xff] }
 0x208   : > { %v2155_v54 = vsel %vm2129_vm8, %v2113_v33, %v6793_v32  ;;  %v6498_v47 = vunpack.i.h.bf16 %v11505_v59  ;;  %v6497_v34 = vunpack.i.l.bf16 %v11505_v59  ;;  %v2196_v25 = vsel %vm2171_vm9, %v2154_v14, %v6892_v1  ;;  %v11514_v59 = vld [vmem:[#allocation87_spill] sm:$0xff] }
 0x209   : > { %v2197_v49 = vsel %vm2171_vm9, %v2155_v54, %v6893_v46  ;;  %v1906_v16 = vsel %vm1877_vm0, %v376_v56, %v6192_v5  ;;  %v1946_v42 = vsel %vm1919_vm3, %v9369_v37, %v6292_v55  ;;  %v6598_v9 = vunpack.i.h.bf16 %v11506_v21 }
 0x20a   : > { %5965 = vmatmul.mubr.msk.bf16.gmra.mrb[44].mxu0 %vm2270_vm10, %v2224_v11  ;;  %v6597_v13 = vunpack.i.l.bf16 %v11506_v21  ;;  %v1947_v36 = vsel %vm1919_vm3, %v9379_v38, %v6293_v10  ;;  %v1988_v2 = vsel %vm1961_vm4, %v1946_v42, %v6397_v15  ;;  %v6698_v53 = vunpack.i.h.bf16 %v11507_v22  ;;  %v11513_v15 = vld [vmem:[#allocation72_spill] sm:$0xff] }
 0x20b   : > { %5968 = vmatprep.mubr.msk.bf16.mxu0 %vm7925_vm2, %v11394_v23  ;;  %v6697_v62 = vunpack.i.l.bf16 %v11507_v22  ;;  %v1989_v5 = vsel %vm1961_vm4, %v1947_v36, %v6398_v20  ;;  %v6798_v24 = vunpack.i.h.bf16 %v11508_v44  ;;  %v6797_v37 = vunpack.i.l.bf16 %v11508_v44  ;;  %v6901_v20 = vpop.permute.xlu1 %6900 }
 0x20c   : > { %v2225_v8 = vpack.c.bf16 %v2197_v49, %v2196_v25  ;;  %v2030_v61 = vsel %vm2003_vm5, %v1988_v2, %v6497_v34  ;;  %v2031_v50 = vsel %vm2003_vm5, %v1989_v5, %v6498_v47  ;;  %v6898_v17 = vunpack.i.h.bf16 %v6896_v60  ;;  %v11516_v2 = vld [vmem:[#allocation25_spill] sm:$0xff] }
 0x20d   : > { %v6897_v43 = vunpack.i.l.bf16 %v6896_v60  ;;  %v1907_v38 = vsel %vm1877_vm0, %v377_v6, %v6193_v18  ;;  %v6297_v27 = vunpack.i.l.bf16 %v11509_v0  ;;  %v2072_v35 = vsel %vm2045_vm6, %v2030_v61, %v6597_v13  ;;  %v11515_v6 = vld [vmem:[#allocation10_spill] sm:$0xff]  ;;  %v11518_v61 = vld [vmem:[#allocation57_spill] sm:$0xff] }
 0x20e   : > { %v2073_v3 = vsel %vm2045_vm6, %v2031_v50, %v6598_v9  ;;  %v6298_v32 = vunpack.i.h.bf16 %v11509_v0  ;;  %v6402_v11 = vunpack.i.l.bf16 %v11510_v28  ;;  %v2114_v39 = vsel %vm2087_vm7, %v2072_v35, %v6697_v62 }
 0x20f   : > { %v2115_v58 = vsel %vm2087_vm7, %v2073_v3, %v6698_v53  ;;  %v6208_v18 = vunpack.i.h.bf16 %v11511_v63  ;;  %v6403_v30 = vunpack.i.h.bf16 %v11510_v28  ;;  %v2156_v46 = vsel %vm2129_vm8, %v2114_v39, %v6797_v37  ;;  %v6906_v39 = vpop.permute.xlu0 %6905 }
 0x210   : > { %v2157_v1 = vsel %vm2129_vm8, %v2115_v58, %v6798_v24  ;;  %v6503_v55 = vunpack.i.h.bf16 %v11512_v45  ;;  %v6502_v29 = vunpack.i.l.bf16 %v11512_v45  ;;  %v2198_v41 = vsel %vm2171_vm9, %v2156_v46, %v6897_v43  ;;  %v382_v58 = vld [vmem:[%s7997_s10 + $0x110] sm:$0xff] }
 0x211   : > { %v2199_v56 = vsel %vm2171_vm9, %v2157_v1, %v6898_v17  ;;  %v6207_v10 = vunpack.i.l.bf16 %v11511_v63  ;;  %v1948_v51 = vsel %vm1919_vm3, %v1906_v16, %v6297_v27  ;;  %v6603_v12 = vunpack.i.h.bf16 %v11513_v15  ;;  %v11520_v1 = vld [vmem:[#allocation90_spill] sm:$0xff]  ;;  %v11528_v63 = vld [vmem:[#allocation11_spill] sm:$0xff] }
 0x212   : > { %5969 = vmatmul.mubr.msk.bf16.gmra.mrb[48].mxu0 %vm2270_vm10, %v2225_v8  ;;  %v6602_v33 = vunpack.i.l.bf16 %v11513_v15  ;;  %v1949_v14 = vsel %vm1919_vm3, %v1907_v38, %v6298_v32  ;;  %v1990_v54 = vsel %vm1961_vm4, %v1948_v51, %v6402_v11  ;;  %v6703_v47 = vunpack.i.h.bf16 %v11514_v59  ;;  %v11519_v32 = vld [vmem:[#allocation71_spill] sm:$0xff]  ;;  %v380_v51 = vld [vmem:[%s7997_s10 + $0x100] sm:$0xff] }
 0x213   : > { %5972 = vmatprep.mubr.msk.bf16.mxu0 %vm7925_vm2, %v11394_v23  ;;  %v6702_v34 = vunpack.i.l.bf16 %v11514_v59  ;;  %v1991_v25 = vsel %vm1961_vm4, %v1949_v14, %v6403_v30  ;;  %v6803_v49 = vunpack.i.h.bf16 %v8914_v31  ;;  %v6802_v42 = vunpack.i.l.bf16 %v8914_v31  ;;  %v11517_v31 = vld [vmem:[#allocation39_spill] sm:$0xff]  ;;  %v11521_v14 = vld [vmem:[#allocation24_spill] sm:$0xff] }
 0x214   : > { %v2226_v16 = vpack.c.bf16 %v2199_v56, %v2198_v41  ;;  %v2032_v21 = vsel %vm2003_vm5, %v1990_v54, %v6502_v29  ;;  %v2033_v9 = vsel %vm2003_vm5, %v1991_v25, %v6503_v55  ;;  %v6903_v13 = vunpack.i.h.bf16 %v6901_v20  ;;  %v11522_v25 = vld [vmem:[#allocation42_spill] sm:$0xff] }
 0x215   : > { %v6902_v60 = vunpack.i.l.bf16 %v6901_v20  ;;  %v6203_v36 = vunpack.i.h.bf16 %v11515_v6  ;;  %v6302_v22 = vunpack.i.l.bf16 %v11516_v2  ;;  %v2074_v53 = vsel %vm2045_vm6, %v2032_v21, %v6602_v33 }
 0x216   : > { %v2075_v62 = vsel %vm2045_vm6, %v2033_v9, %v6603_v12  ;;  %v6303_v5 = vunpack.i.h.bf16 %v11516_v2  ;;  %v6407_v44 = vunpack.i.l.bf16 %v11517_v31  ;;  %v2116_v24 = vsel %vm2087_vm7, %v2074_v53, %v6702_v34  ;;  %v381_v34 = vld [vmem:[%s7997_s10 + $0x108] sm:$0xff] }
 0x217   : > { %v2117_v37 = vsel %vm2087_vm7, %v2075_v62, %v6703_v47  ;;  %v6408_v8 = vunpack.i.h.bf16 %v11517_v31  ;;  %v6508_v50 = vunpack.i.h.bf16 %v11518_v61  ;;  %v2158_v17 = vsel %vm2129_vm8, %v2116_v24, %v6802_v42  ;;  %v11524_v31 = vld [vmem:[#allocation74_spill] sm:$0xff] }
 0x218   : > { %v2159_v43 = vsel %vm2129_vm8, %v2117_v37, %v6803_v49  ;;  %v6507_v38 = vunpack.i.l.bf16 %v11518_v61  ;;  %v2200_v0 = vsel %vm2171_vm9, %v2158_v17, %v6902_v60  ;;  %v6202_v35 = vunpack.i.l.bf16 %v11515_v6  ;;  %v11523_v60 = vld [vmem:[#allocation56_spill] sm:$0xff]  ;;  %v6911_v37 = vpop.permute.xlu1 %6910  ;;  %v11525_v17 = vld [vmem:[#allocation89_spill] sm:$0xff] }
 0x219   : > { %v2201_v27 = vsel %vm2171_vm9, %v2159_v43, %v6903_v13  ;;  %v1950_v3 = vsel %vm1919_vm3, %v9468_v40, %v6302_v22  ;;  %v6608_v28 = vunpack.i.h.bf16 %v11519_v32  ;;  %v6607_v11 = vunpack.i.l.bf16 %v11519_v32 }
 0x21a   : > { %5973 = vmatmul.mubr.msk.bf16.gmra.mrb[52].mxu0 %vm2270_vm10, %v2226_v16  ;;  %v1951_v30 = vsel %vm1919_vm3, %v9484_v26, %v6303_v5  ;;  %v1992_v46 = vsel %vm1961_vm4, %v1950_v3, %v6407_v44  ;;  %v6708_v45 = vunpack.i.h.bf16 %v11520_v1  ;;  %v6707_v40 = vunpack.i.l.bf16 %v11520_v1 }
 0x21b   : > { %5976 = vmatprep.mubr.msk.bf16.mxu0 %vm7925_vm2, %v11394_v23  ;;  %v1993_v55 = vsel %vm1961_vm4, %v1951_v30, %v6408_v8  ;;  %v6808_v29 = vunpack.i.h.bf16 %v8901_v7  ;;  %v6807_v41 = vunpack.i.l.bf16 %v8901_v7  ;;  %v2227_v56 = vpack.c.bf16 %v2201_v27, %v2200_v0  ;;  %v383_v8 = vld [vmem:[%s7997_s10 + $0x118] sm:$0xff] }
 0x21c   : > { %v2034_v15 = vsel %vm2003_vm5, %v1992_v46, %v6507_v38  ;;  %v2035_v12 = vsel %vm2003_vm5, %v1993_v55, %v6508_v50  ;;  %v6908_v26 = vunpack.i.h.bf16 %v6906_v39  ;;  %v6907_v33 = vunpack.i.l.bf16 %v6906_v39 }
 0x21d   : > { %v1912_v20 = vsel %vm1877_vm0, %v382_v58, %v6207_v10  ;;  %v6307_v54 = vunpack.i.l.bf16 %v11521_v14  ;;  %v2076_v59 = vsel %vm2045_vm6, %v2034_v15, %v6607_v11  ;;  %v2077_v47 = vsel %vm2045_vm6, %v2035_v12, %v6608_v28  ;;  %v11526_v58 = vld [vmem:[#allocation27_spill] sm:$0xff] }
 0x21e   : > { %v6308_v7 = vunpack.i.h.bf16 %v11521_v14  ;;  %v6412_v49 = vunpack.i.l.bf16 %v11522_v25  ;;  %v2118_v42 = vsel %vm2087_vm7, %v2076_v59, %v6707_v40  ;;  %v2119_v16 = vsel %vm2087_vm7, %v2077_v47, %v6708_v45  ;;  %v11527_v45 = vld [vmem:[#allocation41_spill] sm:$0xff]  ;;  %v11529_v15 = vld [vmem:[#allocation59_spill] sm:$0xff] }
 0x21f   : > { %v1910_v10 = vsel %vm1877_vm0, %v380_v51, %v6202_v35  ;;  %v6413_v21 = vunpack.i.h.bf16 %v11522_v25  ;;  %v2160_v9 = vsel %vm2129_vm8, %v2118_v42, %v6807_v41  ;;  %v2161_v13 = vsel %vm2129_vm8, %v2119_v16, %v6808_v29 }
 0x220   : > { %v6513_v6 = vunpack.i.h.bf16 %v11523_v60  ;;  %v6512_v2 = vunpack.i.l.bf16 %v11523_v60  ;;  %v2202_v22 = vsel %vm2171_vm9, %v2160_v9, %v6907_v33  ;;  %v2203_v53 = vsel %vm2171_vm9, %v2161_v13, %v6908_v26 }
 0x221   : > { %v1911_v62 = vsel %vm1877_vm0, %v381_v34, %v6203_v36  ;;  %v1952_v5 = vsel %vm1919_vm3, %v1910_v10, %v6307_v54  ;;  %v6613_v44 = vunpack.i.h.bf16 %v11524_v31  ;;  %v6612_v24 = vunpack.i.l.bf16 %v11524_v31  ;;  %v11530_v54 = vld [vmem:[#allocation12_spill] sm:$0xff]  ;;  %v11531_v34 = vld [vmem:[#allocation73_spill] sm:$0xff] }
 0x222   : > { %5977 = vmatmul.mubr.msk.bf16.gmra.mrb[56].mxu0 %vm2270_vm10, %v2227_v56  ;;  %v1953_v61 = vsel %vm1919_vm3, %v1911_v62, %v6308_v7  ;;  %v1994_v50 = vsel %vm1961_vm4, %v1952_v5, %v6412_v49  ;;  %v6713_v43 = vunpack.i.h.bf16 %v11525_v17  ;;  %v6712_v38 = vunpack.i.l.bf16 %v11525_v17  ;;  %v6916_v49 = vpop.permute.xlu0 %6915  ;;  %v11532_v10 = vld [vmem:[#allocation92_spill] sm:$0xff] }
 0x223   : > { %5980 = vmatprep.mubr.msk.bf16.mxu0 %vm7925_vm2, %v11394_v23  ;;  %v1995_v0 = vsel %vm1961_vm4, %v1953_v61, %v6413_v21  ;;  %v6813_v36 = vunpack.i.h.bf16 %v8953_v4  ;;  %v6812_v27 = vunpack.i.l.bf16 %v8953_v4  ;;  %v2228_v35 = vpack.c.bf16 %v2203_v53, %v2202_v22  ;;  %v385_v61 = vld [vmem:[%s7997_s10 + $0x128] sm:$0xff] }
 0x224   : > { %v2036_v3 = vsel %vm2003_vm5, %v1994_v50, %v6512_v2  ;;  %v2037_v32 = vsel %vm2003_vm5, %v1995_v0, %v6513_v6  ;;  %v6913_v28 = vunpack.i.h.bf16 %v6911_v37  ;;  %v6912_v11 = vunpack.i.l.bf16 %v6911_v37  ;;  %v384_v2 = vld [vmem:[%s7997_s10 + $0x120] sm:$0xff]  ;;  %v11534_v50 = vld [vmem:[#allocation44_spill] sm:$0xff] }
 0x225   : > { %v1913_v39 = vsel %vm1877_vm0, %v383_v8, %v6208_v18  ;;  %v6312_v30 = vunpack.i.l.bf16 %v11526_v58  ;;  %v2078_v46 = vsel %vm2045_vm6, %v2036_v3, %v6612_v24  ;;  %v2079_v1 = vsel %vm2045_vm6, %v2037_v32, %v6613_v44  ;;  %v11533_v44 = vld [vmem:[#allocation26_spill] sm:$0xff] }
 0x226   : > { %v6313_v4 = vunpack.i.h.bf16 %v11526_v58  ;;  %v6417_v40 = vunpack.i.l.bf16 %v11527_v45  ;;  %v2120_v55 = vsel %vm2087_vm7, %v2078_v46, %v6712_v38  ;;  %v2121_v29 = vsel %vm2087_vm7, %v2079_v1, %v6713_v43  ;;  %v11535_v3 = vld [vmem:[#allocation58_spill] sm:$0xff]  ;;  %v11536_v46 = vld [vmem:[#allocation76_spill] sm:$0xff] }
 0x227   : > { %v6217_v18 = vunpack.i.l.bf16 %v11528_v63  ;;  %v6418_v41 = vunpack.i.h.bf16 %v11527_v45  ;;  %v2162_v56 = vsel %vm2129_vm8, %v2120_v55, %v6812_v27  ;;  %v2163_v51 = vsel %vm2129_vm8, %v2121_v29, %v6813_v36  ;;  %v6921_v45 = vpop.permute.xlu1 %6920  ;;  %v11537_v29 = vld [vmem:[#allocation91_spill] sm:$0xff] }
 0x228   : > { %v6518_v12 = vunpack.i.h.bf16 %v11529_v15  ;;  %v6517_v26 = vunpack.i.l.bf16 %v11529_v15  ;;  %v2204_v33 = vsel %vm2171_vm9, %v2162_v56, %v6912_v11  ;;  %v2205_v14 = vsel %vm2171_vm9, %v2163_v51, %v6913_v28 }
 0x229   : > { %v6212_v59 = vunpack.i.l.bf16 %v11530_v54  ;;  %v1954_v47 = vsel %vm1919_vm3, %v1912_v20, %v6312_v30  ;;  %v6618_v7 = vunpack.i.h.bf16 %v11531_v34  ;;  %v6617_v25 = vunpack.i.l.bf16 %v11531_v34 }
 0x22a   : > { %5981 = vmatmul.mubr.msk.bf16.gmra.mrb[60].mxu0 %vm2270_vm10, %v2228_v35  ;;  %v1955_v42 = vsel %vm1919_vm3, %v1913_v39, %v6313_v4  ;;  %v1996_v16 = vsel %vm1961_vm4, %v1954_v47, %v6417_v40  ;;  %v6718_v21 = vunpack.i.h.bf16 %v11532_v10  ;;  %v6717_v9 = vunpack.i.l.bf16 %v11532_v10  ;;  %v11539_v10 = vld [vmem:[#allocation43_spill] sm:$0xff] }
 0x22b   : > { %5984 = vmatprep.mubr.msk.bf16.mxu0 %vm7925_vm2, %v11394_v23  ;;  %v1997_v13 = vsel %vm1961_vm4, %v1955_v42, %v6418_v41  ;;  %v6818_v60 = vunpack.i.h.bf16 %v8944_v57  ;;  %v6817_v20 = vunpack.i.l.bf16 %v8944_v57  ;;  %v2229_v6 = vpack.c.bf16 %v2205_v14, %v2204_v33  ;;  %v386_v33 = vld [vmem:[%s7997_s10 + $0x130] sm:$0xff] }
 0x22c   : > { %v2038_v22 = vsel %vm2003_vm5, %v1996_v16, %v6517_v26  ;;  %v2039_v53 = vsel %vm2003_vm5, %v1997_v13, %v6518_v12  ;;  %v6918_v62 = vunpack.i.h.bf16 %v6916_v49  ;;  %v6917_v5 = vunpack.i.l.bf16 %v6916_v49  ;;  %v387_v16 = vld [vmem:[%s7997_s10 + $0x138] sm:$0xff] }
 0x22d   : > { %v6213_v31 = vunpack.i.h.bf16 %v11530_v54  ;;  %v6317_v24 = vunpack.i.l.bf16 %v11533_v44  ;;  %v2080_v37 = vsel %vm2045_vm6, %v2038_v22, %v6617_v25  ;;  %v2081_v8 = vsel %vm2045_vm6, %v2039_v53, %v6618_v7  ;;  %v11538_v7 = vld [vmem:[#allocation29_spill] sm:$0xff] }
 0x22e   : > { %v6318_v57 = vunpack.i.h.bf16 %v11533_v44  ;;  %v6422_v17 = vunpack.i.l.bf16 %v11534_v50  ;;  %v2122_v43 = vsel %vm2087_vm7, %v2080_v37, %v6717_v9  ;;  %v2123_v38 = vsel %vm2087_vm7, %v2081_v8, %v6718_v21  ;;  %v11540_v22 = vld [vmem:[#allocation61_spill] sm:$0xff]  ;;  %v6926_v8 = vpop.permute.xlu0 %6925 }
 0x22f   : > { %v1914_v0 = vsel %vm1877_vm0, %v384_v2, %v6212_v59  ;;  %v6423_v36 = vunpack.i.h.bf16 %v11534_v50  ;;  %v2164_v27 = vsel %vm2129_vm8, %v2122_v43, %v6817_v20  ;;  %v2165_v35 = vsel %vm2129_vm8, %v2123_v38, %v6818_v60  ;;  %v11542_v50 = vld [vmem:[#allocation94_spill] sm:$0xff] }
 0x230   : > { %v6523_v32 = vunpack.i.h.bf16 %v11535_v3  ;;  %v6522_v28 = vunpack.i.l.bf16 %v11535_v3  ;;  %v2206_v11 = vsel %vm2171_vm9, %v2164_v27, %v6917_v5  ;;  %v2207_v39 = vsel %vm2171_vm9, %v2165_v35, %v6918_v62 }
 0x231   : > { %v1915_v58 = vsel %vm1877_vm0, %v385_v61, %v6213_v31  ;;  %v1956_v30 = vsel %vm1919_vm3, %v1914_v0, %v6317_v24  ;;  %v6623_v1 = vunpack.i.h.bf16 %v11536_v46  ;;  %v6622_v4 = vunpack.i.l.bf16 %v11536_v46  ;;  %v11541_v24 = vld [vmem:[#allocation75_spill] sm:$0xff]  ;;  %v11544_v46 = vld [vmem:[#allocation28_spill] sm:$0xff] }
 0x232   : > { %5985 = vmatmul.mubr.msk.bf16.gmra.mrb[64].mxu0 %vm2270_vm10, %v2229_v6  ;;  %v1957_v40 = vsel %vm1919_vm3, %v1915_v58, %v6318_v57  ;;  %v1998_v55 = vsel %vm1961_vm4, %v1956_v30, %v6422_v17  ;;  %v6723_v41 = vunpack.i.h.bf16 %v11537_v29  ;;  %v6722_v56 = vunpack.i.l.bf16 %v11537_v29 }
 0x233   : > { %5988 = vmatprep.mubr.msk.bf16.mxu0 %vm7925_vm2, %v11394_v23  ;;  %v1999_v51 = vsel %vm1961_vm4, %v1957_v40, %v6423_v36  ;;  %v6823_v15 = vunpack.i.h.bf16 %v8974_v52  ;;  %v6822_v12 = vunpack.i.l.bf16 %v8974_v52  ;;  %v2230_v26 = vpack.c.bf16 %v2207_v39, %v2206_v11  ;;  %v11543_v11 = vld [vmem:[#allocation13_spill] sm:$0xff] }
 0x234   : > { %v2040_v14 = vsel %vm2003_vm5, %v1998_v55, %v6522_v28  ;;  %v2041_v54 = vsel %vm2003_vm5, %v1999_v51, %v6523_v32  ;;  %v6923_v59 = vunpack.i.h.bf16 %v6921_v45  ;;  %v6922_v47 = vunpack.i.l.bf16 %v6921_v45 }
 0x235   : > { %v6218_v34 = vunpack.i.h.bf16 %v11528_v63  ;;  %v6322_v25 = vunpack.i.l.bf16 %v11538_v7  ;;  %v2082_v49 = vsel %vm2045_vm6, %v2040_v14, %v6622_v4  ;;  %v2083_v42 = vsel %vm2045_vm6, %v2041_v54, %v6623_v1  ;;  %v388_v4 = vld [vmem:[%s7997_s10 + $0x140] sm:$0xf] }
 0x236   : > { %v6323_v52 = vunpack.i.h.bf16 %v11538_v7  ;;  %v6427_v21 = vunpack.i.l.bf16 %v11539_v10  ;;  %v2124_v9 = vsel %vm2087_vm7, %v2082_v49, %v6722_v56  ;;  %v2125_v13 = vsel %vm2087_vm7, %v2083_v42, %v6723_v41  ;;  %v11547_v54 = vld [vmem:[#allocation77_spill] sm:$0xff] }
 0x237   : > { %v1916_v60 = vsel %vm1877_vm0, %v386_v33, %v6217_v18  ;;  %v6428_v20 = vunpack.i.h.bf16 %v11539_v10  ;;  %v2166_v6 = vsel %vm2129_vm8, %v2124_v9, %v6822_v12  ;;  %v2167_v2 = vsel %vm2129_vm8, %v2125_v13, %v6823_v15  ;;  %v11545_v15 = vld [vmem:[#allocation45_spill] sm:$0xff]  ;;  %v11546_v33 = vld [vmem:[#allocation60_spill] sm:$0xff] }
 0x238   : > { %v6528_v53 = vunpack.i.h.bf16 %v11540_v22  ;;  %v6527_v62 = vunpack.i.l.bf16 %v11540_v22  ;;  %v2208_v5 = vsel %vm2171_vm9, %v2166_v6, %v6922_v47  ;;  %v2209_v31 = vsel %vm2171_vm9, %v2167_v2, %v6923_v59  ;;  %v1835_v47 = vpop.permute.xlu1 %1834  ;;  %v9757_v10 = vld [vmem:[%s11212_s4] ss:$0 sm:$0xff] }
 0x239   : > { %v1917_v44 = vsel %vm1877_vm0, %v387_v16, %v6218_v34  ;;  %v1958_v63 = vsel %vm1919_vm3, %v1916_v60, %v6322_v25  ;;  %v6628_v18 = vunpack.i.h.bf16 %v11541_v24  ;;  %v6627_v37 = vunpack.i.l.bf16 %v11541_v24  ;;  %v11548_v34 = vld [vmem:[#allocation93_spill] sm:$0xff] }
 0x23a   : > { %5989 = vmatmul.mubr.msk.bf16.gmra.mrb[68].mxu0 %vm2270_vm10, %v2230_v26  ;;  %v1959_v61 = vsel %vm1919_vm3, %v1917_v44, %v6323_v52  ;;  %v2000_v57 = vsel %vm1961_vm4, %v1958_v63, %v6427_v21  ;;  %v6728_v17 = vunpack.i.h.bf16 %v11542_v50  ;;  %v6727_v43 = vunpack.i.l.bf16 %v11542_v50  ;;  %v9752_v16 = vld [vmem:[%s11211_s3] ss:$0 sm:$0xff] }
 0x23b   : > { %5992 = vmatprep.mubr.msk.bf16.mxu0 %vm7925_vm2, %v11394_v23  ;;  %v2001_v38 = vsel %vm1961_vm4, %v1959_v61, %v6428_v20  ;;  %v6828_v0 = vunpack.i.h.bf16 %v8968_v19  ;;  %v6827_v36 = vunpack.i.l.bf16 %v8968_v19  ;;  %v2231_v27 = vpack.c.bf16 %v2209_v31, %v2208_v5 }
 0x23c   : > { %v2042_v35 = vsel %vm2003_vm5, %v2000_v57, %v6527_v62  ;;  %v2043_v3 = vsel %vm2003_vm5, %v2001_v38, %v6528_v53  ;;  %v6928_v32 = vunpack.i.h.bf16 %v6926_v8  ;;  %v6927_v28 = vunpack.i.l.bf16 %v6926_v8 }
 0x23d   : > { %v6222_v39 = vunpack.i.l.bf16 %v11543_v11  ;;  %v2084_v58 = vsel %vm2045_vm6, %v2042_v35, %v6627_v37  ;;  %v2085_v30 = vsel %vm2045_vm6, %v2043_v3, %v6628_v18  ;;  %v6327_v1 = vunpack.i.l.bf16 %v11544_v46 }
 0x23e   : > { %v2126_v19 = vsel %vm2087_vm7, %v2084_v58, %v6727_v43  ;;  %v2127_v45 = vsel %vm2087_vm7, %v2085_v30, %v6728_v17  ;;  %v2849_v58 = vpop.permute.xlu0 %2848 }
 0x23f   : > { %v2168_v40 = vsel %vm2129_vm8, %v2126_v19, %v6827_v36  ;;  %v2169_v55 = vsel %vm2129_vm8, %v2127_v45, %v6828_v0  ;;  %v1918_v56 = vsel %vm1877_vm0, %v388_v4, %v6222_v39  ;;  %v2854_v45 = vpop.permute.xlu1 %2853 }
 0x240   : > { %v2210_v29 = vsel %vm2171_vm9, %v2168_v40, %v6927_v28  ;;  %v2211_v41 = vsel %vm2171_vm9, %v2169_v55, %v6928_v32  ;;  %v1960_v51 = vsel %vm1919_vm3, %v1918_v56, %v6327_v1 }
 0x241   : > { %v2002_v12 = vsel %vm1961_vm4, %v1960_v51, %v11545_v15  ;;  %v2232_v26 = vpack.c.bf16 %v2211_v41, %v2210_v29 }
 0x242   : > { %5993 = vmatmul.mubr.msk.bf16.gmra.mrb[72].mxu0 %vm2270_vm10, %v2231_v27  ;;  %v2044_v14 = vsel %vm2003_vm5, %v2002_v12, %v11546_v33 }
 0x243   : > { %5996 = vmatprep.mubr.msk.bf16.mxu0 %vm7925_vm2, %v11394_v23  ;;  %v2086_v59 = vsel %vm2045_vm6, %v2044_v14, %v11547_v54 }
 0x244   : > { %v2128_v7 = vsel %vm2087_vm7, %v2086_v59, %v11548_v34 }
 0x245   : > { %v2170_v25 = vsel %vm2129_vm8, %v2128_v7, %v8997_v48 }
 0x246   : > { %v2212_v49 = vsel %vm2171_vm9, %v2170_v25, %v1835_v47  ;;  %v2859_v25 = vpop.permute.xlu1 %2858 }
 0x247   : > { %v2233_v42 = vpack.c.bf16 %v2212_v49, %v2212_v49 }
 0x24a   : > { %5997 = vmatmul.mubr.msk.bf16.gmra.mrb[76].mxu0 %vm2270_vm10, %v2232_v26 }
 0x24b   : > { %6000 = vmatprep.mubr.msk.bf16.mxu0 %vm7925_vm2, %v11394_v23 }
 0x252   : > { %6001 = vmatmul.mubr.msk.bf16.gmra.mrb[80].mxu0 %vm2270_vm10, %v2233_v42 }
 0x285   : > { %v2372_v52 = vpop.f32.mrb[0].mxu0 }
 0x286   : > { %v2545_v21 = vmul.f32 %v9752_v16, %v2372_v52  ;;  %v5922_v9 = vpop.f32.mrb[1].mxu0  ;;  %v3176_v52 = vld [vmem:[#allocation2 + $0x9] sm:$0xff] }
 0x287   : > { %v2375_v48 = vpop.f32.mrb[2].mxu0 }
 0x288   : > { %v2593_v13 = vadd.f32 %v9757_v10, %v2545_v21  ;;  %v2546_v60 = vmul.f32 %v9752_v16, %v2375_v48  ;;  %v5923_v20 = vpop.f32.mrb[3].mxu0  ;;  %v2864_v48 = vpop.permute.xlu0 %2863 }
 0x28a   : > { %v2675_v6 = vmul.f32 0.70710677, %v2593_v13  ;;  %v2594_v2 = vadd.f32 %v9757_v10, %v2546_v60  ;;  %v2634_v43 = vmul.f32 0.5, %v2593_v13 }
 0x28c   : > { %7741 = verf.f32 %v2675_v6  ;;  %v2676_v22 = vmul.f32 0.70710677, %v2594_v2  ;;  %v2635_v28 = vmul.f32 0.5, %v2594_v2 }
 0x28d   : > { %v2380_v53 = vpop.f32.mrb[4].mxu0 }
 0x28e   : > { %7743 = verf.f32 %v2676_v22  ;;  %v2547_v62 = vmul.f32 %v9752_v16, %v2380_v53  ;;  %v5926_v5 = vpop.f32.mrb[5].mxu0 }
 0x28f   : > { %v2383_v31 = vpop.f32.mrb[6].mxu0 }
 0x290   : > { %v2595_v44 = vadd.f32 %v9757_v10, %v2547_v62  ;;  %v2548_v63 = vmul.f32 %v9752_v16, %v2383_v31  ;;  %v5927_v24 = vpop.f32.mrb[7].mxu0 }
 0x292   : > { %v2677_v18 = vmul.f32 0.70710677, %v2595_v44  ;;  %v2596_v37 = vadd.f32 %v9757_v10, %v2548_v63  ;;  %v2636_v15 = vmul.f32 0.5, %v2595_v44 }
 0x294   : > { %7745 = verf.f32 %v2677_v18  ;;  %v2678_v8 = vmul.f32 0.70710677, %v2596_v37  ;;  %v2637_v34 = vmul.f32 0.5, %v2596_v37 }
 0x295   : > { %v2388_v61 = vpop.f32.mrb[8].mxu0 }
 0x296   : > { %v7742_v57 = vpop.eup %7741  ;;  %7747 = verf.f32 %v2678_v8  ;;  %v2549_v50 = vmul.f32 %v9752_v16, %v2388_v61  ;;  %v5930_v17 = vpop.f32.mrb[9].mxu0 }
 0x297   : > { %v2757_v38 = vadd.f32 1.0, %v7742_v57  ;;  %v2391_v0 = vpop.f32.mrb[10].mxu0 }
 0x298   : > { %v7744_v36 = vpop.eup %7743  ;;  %v2597_v27 = vadd.f32 %v9757_v10, %v2549_v50  ;;  %v2550_v35 = vmul.f32 %v9752_v16, %v2391_v0  ;;  %v5931_v3 = vpop.f32.mrb[11].mxu0 }
 0x299   : > { %v2798_v32 = vmul.f32 %v2757_v38, %v2634_v43  ;;  %v2758_v39 = vadd.f32 1.0, %v7744_v36  ;;  %v2869_v50 = vpop.permute.xlu1 %2868  ;;  %v2874_v36 = vpop.permute.xlu0 %2873 }
 0x29a   : > { %v2679_v30 = vmul.f32 0.70710677, %v2597_v27  ;;  %v2598_v1 = vadd.f32 %v9757_v10, %v2550_v35  ;;  %v2638_v5 = vmul.f32 0.5, %v2597_v27 }
 0x29b   : > { %v3051_v4 = vmul.f32 %v2849_v58, %v2798_v32  ;;  %v2799_v19 = vmul.f32 %v2758_v39, %v2635_v28 }
 0x29c   : > { %7749 = verf.f32 %v2679_v30  ;;  %v2680_v40 = vmul.f32 0.70710677, %v2598_v1  ;;  %v2639_v61 = vmul.f32 0.5, %v2598_v1 }
 0x29d   : > { %3092 = vst.msk [vmem:[#allocation2 + $0x13] sm:$0xff] %vm1877_vm0, %v3051_v4  ;;  %v3052_v55 = vmul.f32 %v2854_v45, %v2799_v19  ;;  %v2396_v29 = vpop.f32.mrb[12].mxu0 }
 0x29e   : > { %v7746_v41 = vpop.eup %7745  ;;  %7751 = verf.f32 %v2680_v40  ;;  %v2551_v56 = vmul.f32 %v9752_v16, %v2396_v29  ;;  %v5934_v51 = vpop.f32.mrb[13].mxu0 }
 0x29f   : > { %3093 = vst.msk [vmem:[#allocation2 + $0x1b] sm:$0xff] %vm1877_vm0, %v3052_v55  ;;  %v2759_v12 = vadd.f32 1.0, %v7746_v41  ;;  %v2399_v26 = vpop.f32.mrb[14].mxu0 }
 0x2a0   : > { %v7748_v33 = vpop.eup %7747  ;;  %v2599_v14 = vadd.f32 %v9757_v10, %v2551_v56  ;;  %v2552_v54 = vmul.f32 %v9752_v16, %v2399_v26  ;;  %v5935_v59 = vpop.f32.mrb[15].mxu0 }
 0x2a1   : > { %v2800_v47 = vmul.f32 %v2759_v12, %v2636_v15  ;;  %v2760_v7 = vadd.f32 1.0, %v7748_v33  ;;  %v2879_v12 = vpop.permute.xlu1 %2878 }
 0x2a2   : > { %v2681_v49 = vmul.f32 0.70710677, %v2599_v14  ;;  %v2600_v42 = vadd.f32 %v9757_v10, %v2552_v54  ;;  %v2640_v4 = vmul.f32 0.5, %v2599_v14  ;;  %v2884_v14 = vpop.permute.xlu0 %2883 }
 0x2a3   : > { %v3053_v21 = vmul.f32 %v2859_v25, %v2800_v47  ;;  %v2801_v9 = vmul.f32 %v2760_v7, %v2637_v34 }
 0x2a4   : > { %7753 = verf.f32 %v2681_v49  ;;  %v2682_v13 = vmul.f32 0.70710677, %v2600_v42  ;;  %v3177_v60 = vld [vmem:[#allocation2 + $0x11] sm:$0xff]  ;;  %v2641_v51 = vmul.f32 0.5, %v2600_v42 }
 0x2a5   : > { %3094 = vst.msk [vmem:[#allocation2 + $0x23] sm:$0xff] %vm1877_vm0, %v3053_v21  ;;  %v3054_v20 = vmul.f32 %v2864_v48, %v2801_v9  ;;  %v2404_v6 = vpop.f32.mrb[16].mxu0  ;;  %v6931_v2 = vpack.i.bf16 %v3177_v60, %v3176_v52 }
 0x2a6   : > { %v7750_v22 = vpop.eup %7749  ;;  %7755 = verf.f32 %v2682_v13  ;;  %v2553_v53 = vmul.f32 %v9752_v16, %v2404_v6  ;;  %v5938_v62 = vpop.f32.mrb[17].mxu0  ;;  %v3178_v35 = vld [vmem:[#allocation2 + $0x19] sm:$0xff] }
 0x2a7   : > { %3095 = vst.msk [vmem:[#allocation2 + $0x2b] sm:$0xff] %vm1877_vm0, %v3054_v20  ;;  %v2761_v31 = vadd.f32 1.0, %v7750_v22  ;;  %6932 = vrot.lane.b32.xlu0 %v6931_v2, %s7918_s11  ;;  %v2407_v44 = vpop.f32.mrb[18].mxu0 }
 0x2a8   : > { %v7752_v63 = vpop.eup %7751  ;;  %v2601_v24 = vadd.f32 %v9757_v10, %v2553_v53  ;;  %v2554_v18 = vmul.f32 %v9752_v16, %v2407_v44  ;;  %v5939_v37 = vpop.f32.mrb[19].mxu0 }
 0x2a9   : > { %v2802_v8 = vmul.f32 %v2761_v31, %v2638_v5  ;;  %v2762_v57 = vadd.f32 1.0, %v7752_v63  ;;  %v2889_v31 = vpop.permute.xlu1 %2888 }
 0x2aa   : > { %v2683_v17 = vmul.f32 0.70710677, %v2601_v24  ;;  %v2602_v43 = vadd.f32 %v9757_v10, %v2554_v18  ;;  %v2642_v48 = vmul.f32 0.5, %v2601_v24  ;;  %v2894_v24 = vpop.permute.xlu0 %2893 }
 0x2ab   : > { %v3055_v38 = vmul.f32 %v2869_v50, %v2802_v8  ;;  %v2803_v0 = vmul.f32 %v2762_v57, %v2639_v61 }
 0x2ac   : > { %7757 = verf.f32 %v2683_v17  ;;  %v2684_v27 = vmul.f32 0.70710677, %v2602_v43  ;;  %v3179_v3 = vld [vmem:[#allocation2 + $0x21] sm:$0xff]  ;;  %v2643_v62 = vmul.f32 0.5, %v2602_v43 }
 0x2ad   : > { %3096 = vst.msk [vmem:[#allocation2 + $0x33] sm:$0xff] %vm1877_vm0, %v3055_v38  ;;  %v3056_v32 = vmul.f32 %v2874_v36, %v2803_v0  ;;  %v2412_v28 = vpop.f32.mrb[20].mxu0  ;;  %v6936_v39 = vpack.i.bf16 %v3179_v3, %v3178_v35 }
 0x2ae   : > { %v7754_v58 = vpop.eup %7753  ;;  %7759 = verf.f32 %v2684_v27  ;;  %v2555_v30 = vmul.f32 %v9752_v16, %v2412_v28  ;;  %v5942_v1 = vpop.f32.mrb[21].mxu0  ;;  %v3180_v34 = vld [vmem:[#allocation2 + $0x29] sm:$0xff] }
 0x2af   : > { %3097 = vst.msk [vmem:[#allocation2 + $0x3b] sm:$0xff] %vm1877_vm0, %v3056_v32  ;;  %v2763_v19 = vadd.f32 1.0, %v7754_v58  ;;  %6937 = vrot.lane.b32.xlu1 %v6936_v39, %s7918_s11  ;;  %v2415_v45 = vpop.f32.mrb[22].mxu0 }
 0x2b0   : > { %v7756_v40 = vpop.eup %7755  ;;  %v2603_v55 = vadd.f32 %v9757_v10, %v2555_v30  ;;  %v2556_v29 = vmul.f32 %v9752_v16, %v2415_v45  ;;  %v5943_v41 = vpop.f32.mrb[23].mxu0 }
 0x2b1   : > { %v2804_v56 = vmul.f32 %v2763_v19, %v2640_v4  ;;  %v2764_v15 = vadd.f32 1.0, %v7756_v40  ;;  %v2899_v19 = vpop.permute.xlu1 %2898 }
 0x2b2   : > { %v2685_v26 = vmul.f32 0.70710677, %v2603_v55  ;;  %v2604_v33 = vadd.f32 %v9757_v10, %v2556_v29  ;;  %v2644_v27 = vmul.f32 0.5, %v2603_v55  ;;  %v2904_v55 = vpop.permute.xlu0 %2903 }
 0x2b3   : > { %v3057_v54 = vmul.f32 %v2879_v12, %v2804_v56  ;;  %v2805_v59 = vmul.f32 %v2764_v15, %v2641_v51 }
 0x2b4   : > { %7761 = verf.f32 %v2685_v26  ;;  %v2686_v47 = vmul.f32 0.70710677, %v2604_v33  ;;  %v3181_v7 = vld [vmem:[#allocation2 + $0x31] sm:$0xff]  ;;  %v2645_v1 = vmul.f32 0.5, %v2604_v33 }
 0x2b5   : > { %3098 = vst.msk [vmem:[#allocation2 + $0x43] sm:$0xff] %vm1877_vm0, %v3057_v54  ;;  %v3058_v25 = vmul.f32 %v2884_v14, %v2805_v59  ;;  %v2420_v49 = vpop.f32.mrb[24].mxu0  ;;  %v6941_v52 = vpack.i.bf16 %v3181_v7, %v3180_v34 }
 0x2b6   : > { %v7758_v21 = vpop.eup %7757  ;;  %7763 = verf.f32 %v2686_v47  ;;  %v2557_v42 = vmul.f32 %v9752_v16, %v2420_v49  ;;  %v5946_v9 = vpop.f32.mrb[25].mxu0  ;;  %v3182_v61 = vld [vmem:[#allocation2 + $0x39] sm:$0xff] }
 0x2b7   : > { %3099 = vst.msk [vmem:[#allocation2 + $0x4b] sm:$0xff] %vm1877_vm0, %v3058_v25  ;;  %v2765_v13 = vadd.f32 1.0, %v7758_v21  ;;  %6942 = vrot.lane.b32.xlu0 %v6941_v52, %s7918_s11  ;;  %v2423_v60 = vpop.f32.mrb[26].mxu0 }
 0x2b8   : > { %v7760_v20 = vpop.eup %7759  ;;  %v2605_v6 = vadd.f32 %v9757_v10, %v2557_v42  ;;  %v2558_v2 = vmul.f32 %v9752_v16, %v2423_v60  ;;  %v5947_v22 = vpop.f32.mrb[27].mxu0 }
 0x2b9   : > { %v2806_v53 = vmul.f32 %v2765_v13, %v2642_v48  ;;  %v2766_v5 = vadd.f32 1.0, %v7760_v20  ;;  %v2909_v13 = vpop.permute.xlu1 %2908 }
 0x2ba   : > { %v2687_v44 = vmul.f32 0.70710677, %v2605_v6  ;;  %v2606_v63 = vadd.f32 %v9757_v10, %v2558_v2  ;;  %v2646_v47 = vmul.f32 0.5, %v2605_v6  ;;  %v2914_v6 = vpop.permute.xlu0 %2913 }
 0x2bb   : > { %v3059_v18 = vmul.f32 %v2889_v31, %v2806_v53  ;;  %v2807_v37 = vmul.f32 %v2766_v5, %v2643_v62 }
 0x2bc   : > { %7765 = verf.f32 %v2687_v44  ;;  %v2688_v8 = vmul.f32 0.70710677, %v2606_v63  ;;  %v3183_v57 = vld [vmem:[#allocation2 + $0x41] sm:$0xff]  ;;  %v2647_v9 = vmul.f32 0.5, %v2606_v63 }
 0x2bd   : > { %3100 = vst.msk [vmem:[#allocation2 + $0x53] sm:$0xff] %vm1877_vm0, %v3059_v18  ;;  %v3060_v50 = vmul.f32 %v2894_v24, %v2807_v37  ;;  %v2428_v17 = vpop.f32.mrb[28].mxu0  ;;  %v6946_v38 = vpack.i.bf16 %v3183_v57, %v3182_v61 }
 0x2be   : > { %v7762_v0 = vpop.eup %7761  ;;  %7767 = verf.f32 %v2688_v8  ;;  %v2559_v43 = vmul.f32 %v9752_v16, %v2428_v17  ;;  %v5950_v36 = vpop.f32.mrb[29].mxu0  ;;  %v3184_v51 = vld [vmem:[#allocation2 + $0x49] sm:$0xff] }
 0x2bf   : > { %3101 = vst.msk [vmem:[#allocation2 + $0x5b] sm:$0xff] %vm1877_vm0, %v3060_v50  ;;  %v2767_v35 = vadd.f32 1.0, %v7762_v0  ;;  %6947 = vrot.lane.b32.xlu1 %v6946_v38, %s7918_s11  ;;  %v2431_v3 = vpop.f32.mrb[30].mxu0 }
 0x2c0   : > { %v7764_v32 = vpop.eup %7763  ;;  %v2607_v28 = vadd.f32 %v9757_v10, %v2559_v43  ;;  %v2560_v39 = vmul.f32 %v9752_v16, %v2431_v3  ;;  %v5951_v58 = vpop.f32.mrb[31].mxu0 }
 0x2c1   : > { %v2808_v30 = vmul.f32 %v2767_v35, %v2644_v27  ;;  %v2768_v4 = vadd.f32 1.0, %v7764_v32  ;;  %v2919_v35 = vpop.permute.xlu1 %2918 }
 0x2c2   : > { %v2689_v45 = vmul.f32 0.70710677, %v2607_v28  ;;  %v2608_v40 = vadd.f32 %v9757_v10, %v2560_v39  ;;  %v2648_v8 = vmul.f32 0.5, %v2607_v28  ;;  %v2924_v28 = vpop.permute.xlu0 %2923 }
 0x2c3   : > { %v3061_v29 = vmul.f32 %v2899_v19, %v2808_v30  ;;  %v2809_v41 = vmul.f32 %v2768_v4, %v2645_v1 }
 0x2c4   : > { %7769 = verf.f32 %v2689_v45  ;;  %v2690_v56 = vmul.f32 0.70710677, %v2608_v40  ;;  %v3185_v15 = vld [vmem:[#allocation2 + $0x51] sm:$0xff]  ;;  %v2649_v36 = vmul.f32 0.5, %v2608_v40 }
 0x2c5   : > { %3102 = vst.msk [vmem:[#allocation2 + $0x63] sm:$0xff] %vm1877_vm0, %v3061_v29  ;;  %v3062_v12 = vmul.f32 %v2904_v55, %v2809_v41  ;;  %v2436_v26 = vpop.f32.mrb[32].mxu0  ;;  %v6951_v54 = vpack.i.bf16 %v3185_v15, %v3184_v51  ;;  %v9821_v51 = vld [vmem:[#allocation2 + $0x12] sm:$0xff] }
 0x2c6   : > { %v7766_v59 = vpop.eup %7765  ;;  %7771 = verf.f32 %v2690_v56  ;;  %v2561_v33 = vmul.f32 %v9752_v16, %v2436_v26  ;;  %v5954_v14 = vpop.f32.mrb[33].mxu0  ;;  %v3186_v62 = vld [vmem:[#allocation2 + $0x59] sm:$0xff]  ;;  %v3217_v56 = vld [vmem:[#allocation2 + $0xa] sm:$0xff] }
 0x2c7   : > { %3103 = vst.msk [vmem:[#allocation2 + $0x6b] sm:$0xff] %vm1877_vm0, %v3062_v12  ;;  %v2769_v34 = vadd.f32 1.0, %v7766_v59  ;;  %6952 = vrot.lane.b32.xlu0 %v6951_v54, %s7918_s11  ;;  %v2439_v7 = vpop.f32.mrb[34].mxu0 }
 0x2c8   : > { %v7768_v25 = vpop.eup %7767  ;;  %v2609_v49 = vadd.f32 %v9757_v10, %v2561_v33  ;;  %v2562_v52 = vmul.f32 %v9752_v16, %v2439_v7  ;;  %v5955_v21 = vpop.f32.mrb[35].mxu0 }
 0x2c9   : > { %v2810_v42 = vmul.f32 %v2769_v34, %v2646_v47  ;;  %v2770_v48 = vadd.f32 1.0, %v7768_v25  ;;  %v6966_v25 = vpack.i.bf16 %v9821_v51, %v3217_v56 }
 0x2ca   : > { %v2691_v60 = vmul.f32 0.70710677, %v2609_v49  ;;  %v2610_v20 = vadd.f32 %v9757_v10, %v2562_v52  ;;  %v2650_v15 = vmul.f32 0.5, %v2609_v49  ;;  %v2929_v52 = vpop.permute.xlu1 %2928 }
 0x2cb   : > { %v3063_v2 = vmul.f32 %v2909_v13, %v2810_v42  ;;  %v2811_v22 = vmul.f32 %v2770_v48, %v2647_v9  ;;  %v2934_v48 = vpop.permute.xlu0 %2933 }
 0x2cc   : > { %7773 = verf.f32 %v2691_v60  ;;  %v2692_v53 = vmul.f32 0.70710677, %v2610_v20  ;;  %v3187_v5 = vld [vmem:[#allocation2 + $0x61] sm:$0xff]  ;;  %v2651_v34 = vmul.f32 0.5, %v2610_v20 }
 0x2cd   : > { %3104 = vst.msk [vmem:[#allocation2 + $0x73] sm:$0xff] %vm1877_vm0, %v3063_v2  ;;  %v3064_v31 = vmul.f32 %v2914_v6, %v2811_v22  ;;  %v2444_v44 = vpop.f32.mrb[36].mxu0  ;;  %v6956_v18 = vpack.i.bf16 %v3187_v5, %v3186_v62 }
 0x2ce   : > { %v7770_v37 = vpop.eup %7769  ;;  %7775 = verf.f32 %v2692_v53  ;;  %v2563_v63 = vmul.f32 %v9752_v16, %v2444_v44  ;;  %v5958_v24 = vpop.f32.mrb[37].mxu0  ;;  %v3188_v1 = vld [vmem:[#allocation2 + $0x69] sm:$0xff] }
 0x2cf   : > { %3105 = vst.msk [vmem:[#allocation2 + $0x7b] sm:$0xff] %vm1877_vm0, %v3064_v31  ;;  %v2771_v61 = vadd.f32 1.0, %v7770_v37  ;;  %6957 = vrot.lane.b32.xlu1 %v6956_v18, %s7918_s11  ;;  %v2447_v57 = vpop.f32.mrb[38].mxu0  ;;  %v9838_v31 = vld [vmem:[#allocation2 + $0x22] sm:$0xff] }
 0x2d0   : > { %v7772_v50 = vpop.eup %7771  ;;  %v2611_v17 = vadd.f32 %v9757_v10, %v2563_v63  ;;  %v2564_v38 = vmul.f32 %v9752_v16, %v2447_v57  ;;  %v5959_v0 = vpop.f32.mrb[39].mxu0  ;;  %v9846_v57 = vld [vmem:[#allocation2 + $0x1a] sm:$0xff] }
 0x2d1   : > { %v2812_v43 = vmul.f32 %v2771_v61, %v2648_v8  ;;  %v2772_v27 = vadd.f32 1.0, %v7772_v50 }
 0x2d2   : > { %v2693_v3 = vmul.f32 0.70710677, %v2611_v17  ;;  %v2612_v32 = vadd.f32 %v9757_v10, %v2564_v38  ;;  %v2652_v44 = vmul.f32 0.5, %v2611_v17  ;;  %v2939_v17 = vpop.permute.xlu1 %2938 }
 0x2d3   : > { %v3065_v39 = vmul.f32 %v2919_v35, %v2812_v43  ;;  %v2813_v58 = vmul.f32 %v2772_v27, %v2649_v36  ;;  %v6976_v43 = vpack.i.bf16 %v9838_v31, %v9846_v57  ;;  %v9854_v35 = vld [vmem:[#allocation2 + $0x42] sm:$0xff] }
 0x2d4   : > { %7777 = verf.f32 %v2693_v3  ;;  %v2694_v30 = vmul.f32 0.70710677, %v2612_v32  ;;  %v3189_v4 = vld [vmem:[#allocation2 + $0x71] sm:$0xff]  ;;  %v2653_v38 = vmul.f32 0.5, %v2612_v32 }
 0x2d5   : > { %3106 = vst.msk [vmem:[#allocation2 + $0x83] sm:$0xff] %vm1877_vm0, %v3065_v39  ;;  %v3066_v19 = vmul.f32 %v2924_v28, %v2813_v58  ;;  %v2452_v45 = vpop.f32.mrb[40].mxu0  ;;  %v6961_v29 = vpack.i.bf16 %v3189_v4, %v3188_v1  ;;  %v2944_v58 = vpop.permute.xlu0 %2943  ;;  %v9858_v28 = vld [vmem:[#allocation2 + $0x3a] sm:$0xff] }
 0x2d6   : > { %v7774_v41 = vpop.eup %7773  ;;  %7779 = verf.f32 %v2694_v30  ;;  %v2565_v40 = vmul.f32 %v9752_v16, %v2452_v45  ;;  %v5962_v55 = vpop.f32.mrb[41].mxu0  ;;  %v3190_v60 = vld [vmem:[#allocation2 + $0x79] sm:$0xff]  ;;  %v6991_v45 = vpack.i.bf16 %v9854_v35, %v9858_v28 }
 0x2d7   : > { %3107 = vst.msk [vmem:[#allocation2 + $0x8b] sm:$0xff] %vm1877_vm0, %v3066_v19  ;;  %v2773_v12 = vadd.f32 1.0, %v7774_v41  ;;  %6962 = vrot.lane.b32.xlu0 %v6961_v29, %s7918_s11  ;;  %v2455_v26 = vpop.f32.mrb[42].mxu0  ;;  %v9863_v41 = vld [vmem:[#allocation2 + $0x32] sm:$0xff] }
 0x2d8   : > { %v7776_v54 = vpop.eup %7775  ;;  %v9826_v59 = vadd.f32 %v9757_v10, %v2565_v40  ;;  %v2566_v33 = vmul.f32 %v9752_v16, %v2455_v26  ;;  %v5963_v14 = vpop.f32.mrb[43].mxu0 }
 0x2d9   : > { %v2814_v47 = vmul.f32 %v2773_v12, %v2650_v15  ;;  %v2774_v7 = vadd.f32 1.0, %v7776_v54  ;;  %v9866_v15 = vld [vmem:[#allocation2 + $0x62] sm:$0xff] }
 0x2da   : > { %v2695_v21 = vmul.f32 0.70710677, %v9826_v59  ;;  %v9832_v49 = vadd.f32 %v9757_v10, %v2566_v33  ;;  %v2654_v54 = vmul.f32 0.5, %v9826_v59 }
 0x2db   : > { %v3067_v42 = vmul.f32 %v2929_v52, %v2814_v47  ;;  %v2815_v9 = vmul.f32 %v2774_v7, %v2651_v34  ;;  %6967 = vrot.lane.b32.xlu0 %v6966_v25, %s7919_s12  ;;  %v9876_v47 = vld [vmem:[#allocation2 + $0x2a] sm:$0xff] }
 0x2dc   : > { %7781 = verf.f32 %v2695_v21  ;;  %v2696_v13 = vmul.f32 0.70710677, %v9832_v49  ;;  %v3191_v2 = vld [vmem:[#allocation2 + $0x81] sm:$0xff]  ;;  %v6986_v59 = vpack.i.bf16 %v9863_v41, %v9876_v47 }
 0x2dd   : > { %3108 = vst.msk [vmem:[#allocation2 + $0x93] sm:$0xff] %vm1877_vm0, %v3067_v42  ;;  %v3068_v20 = vmul.f32 %v2934_v48, %v2815_v9  ;;  %v2460_v22 = vpop.f32.mrb[44].mxu0  ;;  %v6971_v6 = vpack.i.bf16 %v3191_v2, %v3190_v60  ;;  %v9884_v42 = vld [vmem:[#allocation2 + $0x5a] sm:$0xff]  ;;  %v2655_v48 = vmul.f32 0.5, %v9832_v49  ;;  %v2949_v2 = vpop.permute.xlu1 %2948 }
 0x2de   : > { %v7778_v53 = vpop.eup %7777  ;;  %7783 = verf.f32 %v2696_v13  ;;  %v2567_v62 = vmul.f32 %v9752_v16, %v2460_v22  ;;  %v5966_v5 = vpop.f32.mrb[45].mxu0  ;;  %v3192_v30 = vld [vmem:[#allocation2 + $0x89] sm:$0xff]  ;;  %v7001_v60 = vpack.i.bf16 %v9866_v15, %v9884_v42 }
 0x2df   : > { %3109 = vst.msk [vmem:[#allocation2 + $0x9b] sm:$0xff] %vm1877_vm0, %v3068_v20  ;;  %v2775_v18 = vadd.f32 1.0, %v7778_v53  ;;  %6972 = vrot.lane.b32.xlu1 %v6971_v6, %s7918_s11  ;;  %v2463_v37 = vpop.f32.mrb[46].mxu0  ;;  %v9895_v6 = vld [vmem:[#allocation2 + $0x52] sm:$0xff]  ;;  %v2954_v5 = vpop.permute.xlu0 %2953 }
 0x2e0   : > { %v7780_v63 = vpop.eup %7779  ;;  %v9843_v24 = vadd.f32 %v9757_v10, %v2567_v62  ;;  %v2568_v8 = vmul.f32 %v9752_v16, %v2463_v37  ;;  %v5967_v61 = vpop.f32.mrb[47].mxu0 }
 0x2e1   : > { %v2816_v50 = vmul.f32 %v2775_v18, %v2652_v44  ;;  %v2776_v0 = vadd.f32 1.0, %v7780_v63  ;;  %v9900_v44 = vld [vmem:[#allocation2 + $0x4a] sm:$0xff] }
 0x2e2   : > { %v2697_v36 = vmul.f32 0.70710677, %v9843_v24  ;;  %v9852_v27 = vadd.f32 %v9757_v10, %v2568_v8  ;;  %v6996_v61 = vpack.i.bf16 %v9895_v6, %v9900_v44 }
 0x2e3   : > { %v3069_v3 = vmul.f32 %v2939_v17, %v2816_v50  ;;  %v2817_v39 = vmul.f32 %v2776_v0, %v2653_v38  ;;  %6977 = vrot.lane.b32.xlu1 %v6976_v43, %s7919_s12  ;;  %v9905_v38 = vld [vmem:[#allocation2 + $0x72] sm:$0xff] }
 0x2e4   : > { %7785 = verf.f32 %v2697_v36  ;;  %v2698_v32 = vmul.f32 0.70710677, %v9852_v27  ;;  %v3193_v1 = vld [vmem:[#allocation2 + $0x91] sm:$0xff]  ;;  %v9908_v36 = vld [vmem:[#allocation2 + $0x82] sm:$0xff] }
 0x2e5   : > { %3110 = vst.msk [vmem:[#allocation2 + $0xa3] sm:$0xff] %vm1877_vm0, %v3069_v3  ;;  %v3070_v4 = vmul.f32 %v2944_v58, %v2817_v39  ;;  %v2468_v19 = vpop.f32.mrb[48].mxu0  ;;  %v6981_v29 = vpack.i.bf16 %v3193_v1, %v3192_v30  ;;  %v9870_v26 = vld [vmem:[#allocation2 + $0x92] sm:$0xff]  ;;  %v2656_v58 = vmul.f32 0.5, %v9843_v24  ;;  %v9918_v1 = vld [vmem:[#allocation2 + $0x6a] sm:$0xff] }
 0x2e6   : > { %v7782_v40 = vpop.eup %7781  ;;  %7787 = verf.f32 %v2698_v32  ;;  %v2569_v55 = vmul.f32 %v9752_v16, %v2468_v19  ;;  %v5970_v56 = vpop.f32.mrb[49].mxu0  ;;  %v9868_v12 = vld [vmem:[#allocation2 + $0x9a] sm:$0xff]  ;;  %v7006_v24 = vpack.i.bf16 %v9905_v38, %v9918_v1 }
 0x2e7   : > { %3111 = vst.msk [vmem:[#allocation2 + $0xab] sm:$0xff] %vm1877_vm0, %v3070_v4  ;;  %v2777_v33 = vadd.f32 1.0, %v7782_v40  ;;  %6992 = vrot.lane.b32.xlu1 %v6991_v45, %s7919_s12  ;;  %6982 = vrot.lane.b32.xlu0 %v6981_v29, %s7918_s11  ;;  %v2471_v14 = vpop.f32.mrb[50].mxu0  ;;  %v3194_v18 = vld [vmem:[#allocation2 + $0x99] sm:$0xff] }
 0x2e8   : > { %v7784_v7 = vpop.eup %7783  ;;  %v9881_v25 = vadd.f32 %v9757_v10, %v2569_v55  ;;  %v2570_v52 = vmul.f32 %v9752_v16, %v2471_v14  ;;  %v5971_v21 = vpop.f32.mrb[51].mxu0  ;;  %v9928_v55 = vld [vmem:[#allocation2 + $0x7a] sm:$0xff] }
 0x2e9   : > { %v2818_v9 = vmul.f32 %v2777_v33, %v2654_v54  ;;  %v2778_v13 = vadd.f32 1.0, %v7784_v7  ;;  %v2657_v54 = vmul.f32 0.5, %v9852_v27  ;;  %v7016_v14 = vpack.i.bf16 %v9908_v36, %v9928_v55  ;;  %v2959_v7 = vpop.permute.xlu1 %2958 }
 0x2ea   : > { %v2699_v20 = vmul.f32 0.70710677, %v9881_v25  ;;  %v9893_v22 = vadd.f32 %v9757_v10, %v2570_v52 }
 0x2eb   : > { %v3071_v53 = vmul.f32 %v2949_v2, %v2818_v9  ;;  %v2819_v62 = vmul.f32 %v2778_v13, %v2655_v48  ;;  %7002 = vrot.lane.b32.xlu1 %v7001_v60, %s7919_s12  ;;  %6987 = vrot.lane.b32.xlu0 %v6986_v59, %s7919_s12  ;;  %v2964_v48 = vpop.permute.xlu0 %2963 }
 0x2ec   : > { %7789 = verf.f32 %v2699_v20  ;;  %v2700_v49 = vmul.f32 0.70710677, %v9893_v22  ;;  %v3195_v37 = vld [vmem:[#allocation2 + $0xa1] sm:$0xff] }
 0x2ed   : > { %3112 = vst.msk [vmem:[#allocation2 + $0xb3] sm:$0xff] %vm1877_vm0, %v3071_v53  ;;  %v3072_v63 = vmul.f32 %v2954_v5, %v2819_v62  ;;  %v2476_v8 = vpop.f32.mrb[52].mxu0  ;;  %v7011_v50 = vpack.i.bf16 %v3195_v37, %v3194_v18  ;;  %v9910_v3 = vld [vmem:[#allocation2 + $0xa2] sm:$0xff] }
 0x2ee   : > { %v7786_v0 = vpop.eup %7785  ;;  %7791 = verf.f32 %v2700_v49  ;;  %v2571_v43 = vmul.f32 %v9752_v16, %v2476_v8  ;;  %v5974_v17 = vpop.f32.mrb[53].mxu0  ;;  %v9912_v39 = vld [vmem:[#allocation2 + $0xaa] sm:$0xff]  ;;  %v7031_v53 = vpack.i.bf16 %v9910_v3, %v9868_v12  ;;  %v2658_v8 = vmul.f32 0.5, %v9881_v25  ;;  %v3318_v34 = vld [vmem:[#allocation2 + $0x9c] sm:$0xff] }
 0x2ef   : > { %3113 = vst.msk [vmem:[#allocation2 + $0xbb] sm:$0xff] %vm1877_vm0, %v3072_v63  ;;  %v2779_v32 = vadd.f32 1.0, %v7786_v0  ;;  %6997 = vrot.lane.b32.xlu0 %v6996_v61, %s7919_s12  ;;  %7012 = vrot.lane.b32.xlu1 %v7011_v50, %s7918_s11  ;;  %v2479_v30 = vpop.f32.mrb[54].mxu0  ;;  %v3196_v13 = vld [vmem:[#allocation2 + $0xa9] sm:$0xff]  ;;  %v2659_v25 = vmul.f32 0.5, %v9893_v22 }
 0x2f0   : > { %v7788_v19 = vpop.eup %7787  ;;  %v9923_v45 = vadd.f32 %v9757_v10, %v2571_v43  ;;  %v2572_v29 = vmul.f32 %v9752_v16, %v2479_v30  ;;  %v5975_v40 = vpop.f32.mrb[55].mxu0  ;;  %v9958_v30 = vld [vmem:[#allocation2 + $0x8a] sm:$0xff] }
 0x2f1   : > { %v2820_v56 = vmul.f32 %v2779_v32, %v2656_v58  ;;  %v2780_v33 = vadd.f32 1.0, %v7788_v19  ;;  %v7026_v40 = vpack.i.bf16 %v9870_v26, %v9958_v30 }
 0x2f2   : > { %v2701_v52 = vmul.f32 0.70710677, %v9923_v45  ;;  %v9935_v21 = vadd.f32 %v9757_v10, %v2572_v29 }
 0x2f3   : > { %v3073_v59 = vmul.f32 %v2959_v7, %v2820_v56  ;;  %v2821_v9 = vmul.f32 %v2780_v33, %v2657_v54  ;;  %7007 = vrot.lane.b32.xlu0 %v7006_v24, %s7919_s12  ;;  %7017 = vrot.lane.b32.xlu1 %v7016_v14, %s7919_s12  ;;  %v2969_v24 = vpop.permute.xlu1 %2968  ;;  %v2974_v7 = vpop.permute.xlu0 %2973 }
 0x2f4   : > { %7793 = verf.f32 %v2701_v52  ;;  %v2702_v27 = vmul.f32 0.70710677, %v9935_v21  ;;  %v3197_v60 = vld [vmem:[#allocation2 + $0xb1] sm:$0xff] }
 0x2f5   : > { %3114 = vst.msk [vmem:[#allocation2 + $0xc3] sm:$0xff] %vm1877_vm0, %v3073_v59  ;;  %v3074_v2 = vmul.f32 %v2964_v48, %v2821_v9  ;;  %v2484_v20 = vpop.f32.mrb[56].mxu0  ;;  %v7021_v62 = vpack.i.bf16 %v3197_v60, %v3196_v13  ;;  %v9944_v37 = vld [vmem:[#allocation2 + $0xb2] sm:$0xff] }
 0x2f6   : > { %v7790_v5 = vpop.eup %7789  ;;  %7795 = verf.f32 %v2702_v27  ;;  %v2573_v49 = vmul.f32 %v9752_v16, %v2484_v20  ;;  %v5978_v18 = vpop.f32.mrb[57].mxu0  ;;  %v9946_v63 = vld [vmem:[#allocation2 + $0xba] sm:$0xff]  ;;  %v7036_v27 = vpack.i.bf16 %v9944_v37, %v9912_v39 }
 0x2f7   : > { %3115 = vst.msk [vmem:[#allocation2 + $0xcb] sm:$0xff] %vm1877_vm0, %v3074_v2  ;;  %v2781_v61 = vadd.f32 1.0, %v7790_v5  ;;  %7032 = vrot.lane.b32.xlu1 %v7031_v53, %s7919_s12  ;;  %7022 = vrot.lane.b32.xlu0 %v7021_v62, %s7918_s11  ;;  %v2487_v50 = vpop.f32.mrb[58].mxu0  ;;  %v3198_v59 = vld [vmem:[#allocation2 + $0xb9] sm:$0xff]  ;;  %v2660_v5 = vmul.f32 0.5, %v9923_v45 }
 0x2f8   : > { %v7792_v43 = vpop.eup %7791  ;;  %v9955_v17 = vadd.f32 %v9757_v10, %v2573_v49  ;;  %v2574_v58 = vmul.f32 %v9752_v16, %v2487_v50  ;;  %v5979_v32 = vpop.f32.mrb[59].mxu0 }
 0x2f9   : > { %v2822_v19 = vmul.f32 %v2781_v61, %v2658_v8  ;;  %v2782_v29 = vadd.f32 1.0, %v7792_v43  ;;  %v3399_v8 = vld [vmem:[#allocation2 + $0x8e] sm:$0xff] }
 0x2fa   : > { %v2703_v56 = vmul.f32 0.70710677, %v9955_v17  ;;  %v9965_v54 = vadd.f32 %v9757_v10, %v2574_v58 }
 0x2fb   : > { %v3075_v33 = vmul.f32 %v2969_v24, %v2822_v19  ;;  %v2823_v14 = vmul.f32 %v2782_v29, %v2659_v25  ;;  %7027 = vrot.lane.b32.xlu0 %v7026_v40, %s7919_s12  ;;  %v2661_v19 = vmul.f32 0.5, %v9935_v21  ;;  %v2979_v29 = vpop.permute.xlu1 %2978 }
 0x2fc   : > { %7797 = verf.f32 %v2703_v56  ;;  %v2704_v52 = vmul.f32 0.70710677, %v9965_v54  ;;  %v3199_v22 = vld [vmem:[#allocation2 + $0xc1] sm:$0xff] }
 0x2fd   : > { %3116 = vst.msk [vmem:[#allocation2 + $0xd3] sm:$0xff] %vm1877_vm0, %v3075_v33  ;;  %v3076_v9 = vmul.f32 %v2974_v7, %v2823_v14  ;;  %v2492_v48 = vpop.f32.mrb[60].mxu0  ;;  %v7041_v13 = vpack.i.bf16 %v3199_v22, %v3198_v59  ;;  %v9973_v53 = vld [vmem:[#allocation2 + $0xc2] sm:$0xff]  ;;  %v2984_v14 = vpop.permute.xlu0 %2983 }
 0x2fe   : > { %v7794_v60 = vpop.eup %7793  ;;  %7799 = verf.f32 %v2704_v52  ;;  %v2575_v2 = vmul.f32 %v9752_v16, %v2492_v48  ;;  %v5982_v20 = vpop.f32.mrb[61].mxu0  ;;  %v9975_v62 = vld [vmem:[#allocation2 + $0xca] sm:$0xff]  ;;  %v7046_v25 = vpack.i.bf16 %v9973_v53, %v9946_v63 }
 0x2ff   : > { %3117 = vst.msk [vmem:[#allocation2 + $0xdb] sm:$0xff] %vm1877_vm0, %v3076_v9  ;;  %v2783_v49 = vadd.f32 1.0, %v7794_v60  ;;  %7037 = vrot.lane.b32.xlu0 %v7036_v27, %s7919_s12  ;;  %7042 = vrot.lane.b32.xlu1 %v7041_v13, %s7918_s11  ;;  %v2495_v18 = vpop.f32.mrb[62].mxu0  ;;  %v3200_v52 = vld [vmem:[#allocation2 + $0xc9] sm:$0xff]  ;;  %v7066_v9 = vpack.i.bf16 %v9876_v47, %v9838_v31 }
 0x300   : > { %v7796_v61 = vpop.eup %7795  ;;  %v9984_v50 = vadd.f32 %v9757_v10, %v2575_v2  ;;  %v2576_v43 = vmul.f32 %v9752_v16, %v2495_v18  ;;  %v5983_v58 = vpop.f32.mrb[63].mxu0  ;;  %v3315_v47 = vld [vmem:[#allocation2 + $0x84] sm:$0xff] }
 0x301   : > { %v2824_v32 = vmul.f32 %v2783_v49, %v2660_v5  ;;  %v2784_v45 = vadd.f32 1.0, %v7796_v61  ;;  %v2662_v5 = vmul.f32 0.5, %v9955_v17 }
 0x302   : > { %v2705_v40 = vmul.f32 0.70710677, %v9984_v50  ;;  %v9992_v24 = vadd.f32 %v9757_v10, %v2576_v43 }
 0x303   : > { %v3077_v56 = vmul.f32 %v2979_v29, %v2824_v32  ;;  %v2825_v33 = vmul.f32 %v2784_v45, %v2661_v19  ;;  %7047 = vrot.lane.b32.xlu1 %v7046_v25, %s7919_s12  ;;  %v7076_v32 = vpack.i.bf16 %v9900_v44, %v9854_v35  ;;  %v2663_v19 = vmul.f32 0.5, %v9965_v54  ;;  %v2989_v29 = vpop.permute.xlu1 %2988  ;;  %v2994_v44 = vpop.permute.xlu0 %2993 }
 0x304   : > { %7801 = verf.f32 %v2705_v40  ;;  %v2706_v7 = vmul.f32 0.70710677, %v9992_v24  ;;  %v3201_v21 = vld [vmem:[#allocation2 + $0xd1] sm:$0xff] }
 0x305   : > { %3118 = vst.msk [vmem:[#allocation2 + $0xe3] sm:$0xff] %vm1877_vm0, %v3077_v56  ;;  %v3078_v59 = vmul.f32 %v2984_v14, %v2825_v33  ;;  %v2500_v22 = vpop.f32.mrb[64].mxu0  ;;  %v7051_v48 = vpack.i.bf16 %v3201_v21, %v3200_v52  ;;  %v10000_v2 = vld [vmem:[#allocation2 + $0xd2] sm:$0xff]  ;;  %v7061_v21 = vpack.i.bf16 %v9846_v57, %v9821_v51 }
 0x306   : > { %v7798_v27 = vpop.eup %7797  ;;  %7803 = verf.f32 %v2706_v7  ;;  %v2577_v13 = vmul.f32 %v9752_v16, %v2500_v22  ;;  %v5986_v60 = vpop.f32.mrb[65].mxu0  ;;  %v10002_v20 = vld [vmem:[#allocation2 + $0xda] sm:$0xff]  ;;  %v7056_v25 = vpack.i.bf16 %v10000_v2, %v9975_v62 }
 0x307   : > { %3119 = vst.msk [vmem:[#allocation2 + $0xeb] sm:$0xff] %vm1877_vm0, %v3078_v59  ;;  %v2785_v49 = vadd.f32 1.0, %v7798_v27  ;;  %7067 = vrot.lane.b32.xlu1 %v7066_v9, %s7920_s13  ;;  %7052 = vrot.lane.b32.xlu0 %v7051_v48, %s7918_s11  ;;  %v2503_v31 = vpop.f32.mrb[66].mxu0  ;;  %v3202_v33 = vld [vmem:[#allocation2 + $0xd9] sm:$0xff] }
 0x308   : > { %v7800_v18 = vpop.eup %7799  ;;  %v10011_v61 = vadd.f32 %v9757_v10, %v2577_v13  ;;  %v2578_v43 = vmul.f32 %v9752_v16, %v2503_v31  ;;  %v5987_v58 = vpop.f32.mrb[67].mxu0  ;;  %v10023_v10 = vld [vmem:[%s11212_s4] ss:$0 sm:$0xff] }
 0x309   : > { %v2826_v17 = vmul.f32 %v2785_v49, %v2662_v5  ;;  %v2786_v45 = vadd.f32 1.0, %v7800_v18  ;;  %v10037_v9 = vld [vmem:[%s11211_s3] ss:$0 sm:$0xff]  ;;  %v2664_v5 = vmul.f32 0.5, %v9984_v50  ;;  %v3358_v49 = vld [vmem:[#allocation2 + $0x8d] sm:$0xff] }
 0x30a   : > { %v2707_v40 = vmul.f32 0.70710677, %v10011_v61  ;;  %v10026_v16 = vadd.f32 %v10023_v10, %v2578_v43 }
 0x30b   : > { %v3079_v56 = vmul.f32 %v2989_v29, %v2826_v17  ;;  %v2827_v35 = vmul.f32 %v2786_v45, %v2663_v19  ;;  %7077 = vrot.lane.b32.xlu1 %v7076_v32, %s7920_s13  ;;  %7057 = vrot.lane.b32.xlu0 %v7056_v25, %s7919_s12  ;;  %v7071_v32 = vpack.i.bf16 %v9858_v28, %v9863_v41  ;;  %v2665_v17 = vmul.f32 0.5, %v9992_v24  ;;  %v2999_v25 = vpop.permute.xlu1 %2998  ;;  %v3004_v28 = vpop.permute.xlu0 %3003 }
 0x30c   : > { %7805 = verf.f32 %v2707_v40  ;;  %v2708_v54 = vmul.f32 0.70710677, %v10026_v16  ;;  %v3203_v14 = vld [vmem:[#allocation2 + $0xe1] sm:$0xff] }
 0x30d   : > { %3120 = vst.msk [vmem:[#allocation2 + $0xf3] sm:$0xff] %vm1877_vm0, %v3079_v56  ;;  %v3080_v7 = vmul.f32 %v2994_v44, %v2827_v35  ;;  %v2508_v52 = vpop.f32.mrb[68].mxu0  ;;  %v7081_v59 = vpack.i.bf16 %v3203_v14, %v3202_v33  ;;  %v10040_v13 = vld [vmem:[#allocation2 + $0xe2] sm:$0xff]  ;;  %v7106_v14 = vpack.i.bf16 %v9918_v1, %v9866_v15 }
 0x30e   : > { %v7802_v22 = vpop.eup %7801  ;;  %7807 = verf.f32 %v2708_v54  ;;  %v2579_v48 = vmul.f32 %v10037_v9, %v2508_v52  ;;  %v5990_v27 = vpop.f32.mrb[69].mxu0  ;;  %v10042_v60 = vld [vmem:[#allocation2 + $0xea] sm:$0xff]  ;;  %v7086_v45 = vpack.i.bf16 %v10040_v13, %v10002_v20  ;;  %v3273_v1 = vld [vmem:[#allocation2 + $0x7b] sm:$0xff] }
 0x30f   : > { %3121 = vst.msk [vmem:[#allocation2 + $0xfb] sm:$0xff] %vm1877_vm0, %v3080_v7  ;;  %v2787_v51 = vadd.f32 1.0, %v7802_v22  ;;  %7062 = vrot.lane.b32.xlu0 %v7061_v21, %s7920_s13  ;;  %7082 = vrot.lane.b32.xlu1 %v7081_v59, %s7918_s11  ;;  %v2511_v57 = vpop.f32.mrb[70].mxu0  ;;  %v3204_v24 = vld [vmem:[#allocation2 + $0xe9] sm:$0xff]  ;;  %v2666_v27 = vmul.f32 0.5, %v10011_v61 }
 0x310   : > { %v7804_v31 = vpop.eup %7803  ;;  %v10051_v18 = vadd.f32 %v10023_v10, %v2579_v48  ;;  %v2580_v43 = vmul.f32 %v10037_v9, %v2511_v57  ;;  %v5991_v58 = vpop.f32.mrb[71].mxu0 }
 0x311   : > { %v2828_v50 = vmul.f32 %v2787_v51, %v2664_v5  ;;  %v2788_v19 = vadd.f32 1.0, %v7804_v31  ;;  %v7116_v58 = vpack.i.bf16 %v9958_v30, %v9908_v36  ;;  %v3014_v36 = vpop.permute.xlu0 %3013 }
 0x312   : > { %v2709_v29 = vmul.f32 0.70710677, %v10051_v18  ;;  %v10061_v40 = vadd.f32 %v10023_v10, %v2580_v43 }
 0x313   : > { %v3081_v56 = vmul.f32 %v2999_v25, %v2828_v50  ;;  %v2829_v35 = vmul.f32 %v2788_v19, %v2665_v17  ;;  %7072 = vrot.lane.b32.xlu0 %v7071_v32, %s7920_s13  ;;  %7087 = vrot.lane.b32.xlu1 %v7086_v45, %s7919_s12  ;;  %v2667_v32 = vmul.f32 0.5, %v10026_v16  ;;  %v3009_v19 = vpop.permute.xlu1 %3008 }
 0x314   : > { %7809 = verf.f32 %v2709_v29  ;;  %v2710_v41 = vmul.f32 0.70710677, %v10061_v40  ;;  %v3205_v44 = vld [vmem:[#allocation2 + $0xf1] sm:$0xff] }
 0x315   : > { %3122 = vst.msk [vmem:[#allocation2 + $0x103] sm:$0xff] %vm1877_vm0, %v3081_v56  ;;  %v3082_v54 = vmul.f32 %v3004_v28, %v2829_v35  ;;  %v2516_v33 = vpop.f32.mrb[72].mxu0  ;;  %v7091_v7 = vpack.i.bf16 %v3205_v44, %v3204_v24  ;;  %v10070_v22 = vld [vmem:[#allocation2 + $0xf2] sm:$0xff]  ;;  %v7101_v24 = vpack.i.bf16 %v9884_v42, %v9895_v6  ;;  %v3397_v6 = vld [vmem:[#allocation2 + $0x7e] sm:$0xff] }
 0x316   : > { %v7806_v52 = vpop.eup %7805  ;;  %7811 = verf.f32 %v2710_v41  ;;  %v2581_v21 = vmul.f32 %v10037_v9, %v2516_v33  ;;  %v5994_v59 = vpop.f32.mrb[73].mxu0  ;;  %v10072_v48 = vld [vmem:[#allocation2 + $0xfa] sm:$0xff]  ;;  %v7096_v17 = vpack.i.bf16 %v10070_v22, %v10042_v60 }
 0x317   : > { %3123 = vst.msk [vmem:[#allocation2 + $0x10b] sm:$0xff] %vm1877_vm0, %v3082_v54  ;;  %v2789_v5 = vadd.f32 1.0, %v7806_v52  ;;  %7107 = vrot.lane.b32.xlu1 %v7106_v14, %s7920_s13  ;;  %7092 = vrot.lane.b32.xlu0 %v7091_v7, %s7918_s11  ;;  %v2519_v15 = vpop.f32.mrb[74].mxu0  ;;  %v3206_v16 = vld [vmem:[#allocation2 + $0xf9] sm:$0xff] }
 0x318   : > { %v7808_v51 = vpop.eup %7807  ;;  %v10081_v57 = vadd.f32 %v10023_v10, %v2581_v21  ;;  %v2582_v31 = vmul.f32 %v10037_v9, %v2519_v15  ;;  %v5995_v43 = vpop.f32.mrb[75].mxu0  ;;  %v2668_v21 = vmul.f32 0.5, %v10051_v18 }
 0x319   : > { %v2830_v61 = vmul.f32 %v2789_v5, %v2666_v27  ;;  %v2790_v50 = vadd.f32 1.0, %v7808_v51  ;;  %v2669_v43 = vmul.f32 0.5, %v10061_v40  ;;  %v3301_v40 = vld [vmem:[#allocation2 + $0x14] sm:$0xff] }
 0x31a   : > { %v2711_v45 = vmul.f32 0.70710677, %v10081_v57  ;;  %v10091_v25 = vadd.f32 %v10023_v10, %v2582_v31  ;;  %v7111_v31 = vpack.i.bf16 %v9928_v55, %v9905_v38  ;;  %v3024_v38 = vpop.permute.xlu0 %3023 }
 0x31b   : > { %v3083_v29 = vmul.f32 %v3009_v19, %v2830_v61  ;;  %v2831_v56 = vmul.f32 %v2790_v50, %v2667_v32  ;;  %7117 = vrot.lane.b32.xlu1 %v7116_v58, %s7920_s13  ;;  %7097 = vrot.lane.b32.xlu0 %v7096_v17, %s7919_s12  ;;  %v3019_v32 = vpop.permute.xlu1 %3018  ;;  %v3302_v19 = vld [vmem:[#allocation2 + $0x1c] sm:$0xff] }
 0x31c   : > { %7813 = verf.f32 %v2711_v45  ;;  %v2712_v30 = vmul.f32 0.70710677, %v10091_v25  ;;  %v3207_v35 = vld [vmem:[#allocation2 + $0x101] sm:$0xff] }
 0x31d   : > { %3124 = vst.msk [vmem:[#allocation2 + $0x113] sm:$0xff] %vm1877_vm0, %v3083_v29  ;;  %v3084_v28 = vmul.f32 %v3014_v36, %v2831_v56  ;;  %v2524_v41 = vpop.f32.mrb[76].mxu0  ;;  %v7121_v44 = vpack.i.bf16 %v3207_v35, %v3206_v16  ;;  %v10100_v7 = vld [vmem:[#allocation2 + $0x102] sm:$0xff]  ;;  %v7146_v35 = vpack.i.bf16 %v3302_v19, %v3301_v40  ;;  %v3260_v40 = vld [vmem:[#allocation2 + $0x13] sm:$0xff] }
 0x31e   : > { %v7810_v54 = vpop.eup %7809  ;;  %7815 = verf.f32 %v2712_v30  ;;  %v2583_v33 = vmul.f32 %v10037_v9, %v2524_v41  ;;  %v5998_v14 = vpop.f32.mrb[77].mxu0  ;;  %v10102_v52 = vld [vmem:[#allocation2 + $0x10a] sm:$0xff]  ;;  %v7126_v61 = vpack.i.bf16 %v10100_v7, %v10072_v48 }
 0x31f   : > { %3125 = vst.msk [vmem:[#allocation2 + $0x11b] sm:$0xff] %vm1877_vm0, %v3084_v28  ;;  %v2791_v59 = vadd.f32 1.0, %v7810_v54  ;;  %7102 = vrot.lane.b32.xlu0 %v7101_v24, %s7920_s13  ;;  %7122 = vrot.lane.b32.xlu1 %v7121_v44, %s7918_s11  ;;  %v2527_v42 = vpop.f32.mrb[78].mxu0  ;;  %v3208_v56 = vld [vmem:[#allocation2 + $0x109] sm:$0xff]  ;;  %v7736_v24 = vld [vmem:[%s11213_s5] sm:$0xff]   ;;  %v3029_v19 = vpop.permute.xlu1 %3028 }
 0x320   : > { %v7812_v27 = vpop.eup %7811  ;;  %v10111_v5 = vadd.f32 %v10023_v10, %v2583_v33  ;;  %v2584_v15 = vmul.f32 %v10037_v9, %v2527_v42  ;;  %v5999_v51 = vpop.f32.mrb[79].mxu0  ;;  %v3346_v41 = vld [vmem:[#allocation2 + $0x2d] sm:$0xff]  ;;  %6005 = vmatpush3.bf16.msra.mxu1 %v7736_v24 }
 0x321   : > { %v2832_v18 = vmul.f32 %v2791_v59, %v2668_v21  ;;  %v2792_v58 = vadd.f32 1.0, %v7812_v27  ;;  %v2670_v59 = vmul.f32 0.5, %v10081_v57  ;;  %v7737_v57 = vld [vmem:[%s11213_s5 + $0x8] sm:$0xff]   ;;  %6006 = vmatprep.subr.bf16.mxu1 %v11394_v23 }
 0x322   : > { %v2713_v50 = vmul.f32 0.70710677, %v10111_v5  ;;  %v10121_v17 = vadd.f32 %v10023_v10, %v2584_v15  ;;  %v3345_v15 = vld [vmem:[#allocation2 + $0x25] sm:$0xff] }
 0x323   : > { %v3085_v45 = vmul.f32 %v3019_v32, %v2832_v18  ;;  %v2833_v29 = vmul.f32 %v2792_v58, %v2669_v43  ;;  %7112 = vrot.lane.b32.xlu0 %v7111_v31, %s7920_s13  ;;  %7127 = vrot.lane.b32.xlu1 %v7126_v61, %s7919_s12  ;;  %v7156_v43 = vpack.i.bf16 %v3346_v41, %v3345_v15  ;;  %v2671_v61 = vmul.f32 0.5, %v10091_v25 }
 0x324   : > { %7817 = verf.f32 %v2713_v50  ;;  %v2714_v55 = vmul.f32 0.70710677, %v10121_v17  ;;  %v3209_v36 = vld [vmem:[#allocation2 + $0x111] sm:$0xff]  ;;  %6007 = vmatpush3.bf16.msra.mxu1 %v7737_v57 }
 0x325   : > { %3126 = vst.msk [vmem:[#allocation2 + $0x123] sm:$0xff] %vm1877_vm0, %v3085_v45  ;;  %v3086_v30 = vmul.f32 %v3024_v38, %v2833_v29  ;;  %v2532_v16 = vpop.f32.mrb[80].mxu0  ;;  %v7131_v28 = vpack.i.bf16 %v3209_v36, %v3208_v56  ;;  %v10131_v14 = vld [vmem:[#allocation2 + $0x112] sm:$0xff]  ;;  %v3261_v45 = vld [vmem:[#allocation2 + $0x1b] sm:$0xff]  ;;  %6008 = vmatprep.subr.bf16.mxu1 %v11394_v23 }
 0x326   : > { %v7814_v44 = vpop.eup %7813  ;;  %7819 = verf.f32 %v2714_v55  ;;  %v2585_v54 = vmul.f32 %v10037_v9, %v2532_v16  ;;  %v6002_v33 = vpop.f32.mrb[81].mxu0  ;;  %v10133_v21 = vld [vmem:[#allocation2 + $0x11a] sm:$0xff]  ;;  %v7136_v50 = vpack.i.bf16 %v10131_v14, %v10102_v52 }
 0x327   : > { %3127 = vst.msk [vmem:[#allocation2 + $0x12b] sm:$0xff] %vm1877_vm0, %v3086_v30  ;;  %v2793_v42 = vadd.f32 1.0, %v7814_v44  ;;  %7147 = vrot.lane.b32.xlu1 %v7146_v35, %s7922_s15  ;;  %7132 = vrot.lane.b32.xlu0 %v7131_v28, %s7918_s11  ;;  %v2535_v27 = vpop.f32.mrb[82].mxu0  ;;  %v3034_v55 = vpop.permute.xlu0 %3033  ;;  %v3210_v25 = vld [vmem:[#allocation2 + $0x119] sm:$0xff]  ;;  %v7141_v30 = vpack.i.bf16 %v3261_v45, %v3260_v40  ;;  %v3304_v35 = vld [vmem:[#allocation2 + $0x2c] sm:$0xff] }
 0x328   : > { %v7816_v9 = vpop.eup %7815  ;;  %v10142_v31 = vadd.f32 %v10023_v10, %v2585_v54  ;;  %v6003_v18 = vpop.f32.mrb[83].mxu0  ;;  %v7738_v28 = vld [vmem:[%s11213_s5 + $0x10] sm:$0xff]   ;;  %v2672_v54 = vmul.f32 0.5, %v10111_v5  ;;  %v7740_v40 = vld [vmem:[%s11213_s5 + $0x20] ss:$0 sps:$4 sm:$0xff]  }
 0x329   : > { %v2834_v58 = vmul.f32 %v2793_v42, %v2670_v59  ;;  %v2794_v32 = vadd.f32 1.0, %v7816_v9  ;;  %v3303_v59 = vld [vmem:[#allocation2 + $0x24] sm:$0xff]  ;;  %6009 = vmatpush3.bf16.msra.mxu1 %v7738_v28  ;;  %v7739_v9 = vld [vmem:[%s11213_s5 + $0x18] sm:$0xff]   ;;  %v5112_v28 = vsel %vm2334_vm1, %v7740_v40, 0 }
 0x32a   : > { %v2715_v10 = vmul.f32 0.70710677, %v10142_v31  ;;  %v7151_v15 = vpack.i.bf16 %v3304_v35, %v3303_v59  ;;  %6010 = vmatprep.subr.bf16.mxu1 %v11394_v23  ;;  %v3314_v42 = vld [vmem:[#allocation2 + $0x7c] sm:$0xff] }
 0x32b   : > { %v3087_v29 = vmul.f32 %v3029_v19, %v2834_v58  ;;  %v2835_v38 = vmul.f32 %v2794_v32, %v2671_v61  ;;  %7157 = vrot.lane.b32.xlu1 %v7156_v43, %s7924_s17  ;;  %7137 = vrot.lane.b32.xlu0 %v7136_v50, %s7919_s12  ;;  %v2673_v43 = vmul.f32 0.5, %v10121_v17  ;;  %v3039_v58 = vpop.permute.xlu1 %3038  ;;  %v3263_v61 = vld [vmem:[#allocation2 + $0x2b] sm:$0xff]  ;;  %v3044_v19 = vpop.permute.xlu0 %3043 }
 0x32c   : > { %7821 = verf.f32 %v2715_v10  ;;  %v3211_v56 = vld [vmem:[#allocation2 + $0x121] sm:$0xff] }
 0x32d   : > { %3128 = vst.msk [vmem:[#allocation2 + $0x133] sm:$0xff] %vm1877_vm0, %v3087_v29  ;;  %v3088_v36 = vmul.f32 %v3034_v55, %v2835_v38  ;;  %v7161_v16 = vpack.i.bf16 %v3211_v56, %v3210_v25  ;;  %v10159_v24 = vld [vmem:[#allocation2 + $0x122] sm:$0xff]  ;;  %6011 = vmatpush3.bf16.msra.mxu1 %v7739_v9 }
 0x32e   : > { %v7818_v41 = vpop.eup %7817  ;;  %11549 = vst [vmem:[#allocation78_spill] sm:$0xff] %v10159_v24  ;;  %v10161_v44 = vld [vmem:[#allocation2 + $0x12a] sm:$0xff]  ;;  %v7166_v57 = vpack.i.bf16 %v10159_v24, %v10133_v21  ;;  %6012 = vmatprep.subr.bf16.mxu1 %v11394_v23  ;;  %v3306_v56 = vld [vmem:[#allocation2 + $0x3c] sm:$0xff] }
 0x32f   : > { %3129 = vst.msk [vmem:[#allocation2 + $0x13b] sm:$0xff] %vm1877_vm0, %v3088_v36  ;;  %v2795_v33 = vadd.f32 1.0, %v7818_v41  ;;  %7142 = vrot.lane.b32.xlu0 %v7141_v30, %s7921_s14  ;;  %7162 = vrot.lane.b32.xlu1 %v7161_v16, %s7918_s11  ;;  %v3262_v10 = vld [vmem:[#allocation2 + $0x23] sm:$0xff]  ;;  %v2674_v16 = vmul.f32 0.5, %v10142_v31  ;;  %v3049_v9 = vpop.permute.xlu1 %3048  ;;  %v3387_v31 = vld [vmem:[#allocation2 + $0x2e] sm:$0xff] }
 0x330   : > { %v7820_v27 = vpop.eup %7819  ;;  %v3212_v45 = vld [vmem:[#allocation2 + $0x129] sm:$0xff]  ;;  %v7186_v38 = vpack.i.bf16 %v3263_v61, %v3262_v10  ;;  %v3389_v10 = vld [vmem:[#allocation2 + $0x3e] sm:$0xff] }
 0x331   : > { %v2836_v18 = vmul.f32 %v2795_v33, %v2672_v54  ;;  %v2796_v5 = vadd.f32 1.0, %v7820_v27  ;;  %v3305_v54 = vld [vmem:[#allocation2 + $0x34] sm:$0xff]  ;;  %6013 = vmatpush3.bf16.msra.mxu1 %v5112_v28  ;;  %v3326_v24 = vld [vmem:[#allocation2 + $0xdc] sm:$0xff] }
 0x332   : > { %v7196_v59 = vpack.i.bf16 %v3306_v56, %v3305_v54  ;;  %v3350_v54 = vld [vmem:[#allocation2 + $0x4d] sm:$0xff] }
 0x333   : > { %v3089_v32 = vmul.f32 %v3039_v58, %v2836_v18  ;;  %v2837_v50 = vmul.f32 %v2796_v5, %v2673_v43  ;;  %7152 = vrot.lane.b32.xlu0 %v7151_v15, %s7923_s16  ;;  %7167 = vrot.lane.b32.xlu1 %v7166_v57, %s7919_s12  ;;  %v3386_v43 = vld [vmem:[#allocation2 + $0x26] sm:$0xff] }
 0x334   : > { %v3213_v29 = vld [vmem:[#allocation2 + $0x131] sm:$0xff]  ;;  %v7181_v58 = vpack.i.bf16 %v3387_v31, %v3386_v43 }
 0x335   : > { %3130 = vst.msk [vmem:[#allocation2 + $0x143] sm:$0xff] %vm1877_vm0, %v3089_v32  ;;  %v3090_v17 = vmul.f32 %v3044_v19, %v2837_v50  ;;  %v7171_v55 = vpack.i.bf16 %v3213_v29, %v3212_v45  ;;  %v10183_v36 = vld [vmem:[#allocation2 + $0x132] sm:$0xff]  ;;  %v3348_v19 = vld [vmem:[#allocation2 + $0x3d] sm:$0xff]  ;;  %v10202_v45 = vpop.permute.xlu0 %6932 }
 0x336   : > { %v7822_v25 = vpop.eup %7821  ;;  %11550 = vst [vmem:[#allocation96_spill] sm:$0xff] %v10183_v36  ;;  %v10185_v30 = vld [vmem:[#allocation2 + $0x13a] sm:$0xff]  ;;  %v7176_v27 = vpack.i.bf16 %v10183_v36, %v10161_v44 }
 0x337   : > { %11551 = vst [vmem:[#allocation15_spill] sm:$0xff] %v10185_v30  ;;  %3131 = vst.msk [vmem:[#allocation2 + $0x14b] sm:$0xff] %vm1877_vm0, %v3090_v17  ;;  %v2797_v35 = vadd.f32 1.0, %v7822_v25  ;;  %7187 = vrot.lane.b32.xlu1 %v7186_v38, %s7921_s14  ;;  %7172 = vrot.lane.b32.xlu0 %v7171_v55, %s7918_s11  ;;  %v3214_v5 = vld [vmem:[#allocation2 + $0x139] sm:$0xff]  ;;  %v10206_v38 = vpop.permute.xlu1 %6937 }
 0x338   : > { %v3347_v29 = vld [vmem:[#allocation2 + $0x35] sm:$0xff] }
 0x339   : > { %v2838_v33 = vmul.f32 %v2797_v35, %v2674_v16  ;;  %v3388_v17 = vld [vmem:[#allocation2 + $0x36] sm:$0xff]  ;;  %v7201_v55 = vpack.i.bf16 %v3348_v19, %v3347_v29  ;;  %v10208_v56 = vpop.permute.xlu0 %6942 }
 0x33a   : > { %v7216_v40 = vpack.i.bf16 %v3389_v10, %v3388_v17  ;;  %v3265_v25 = vld [vmem:[#allocation2 + $0x3b] sm:$0xff]  ;;  %v3264_v16 = vld [vmem:[#allocation2 + $0x33] sm:$0xff] }
 0x33b   : > { %v3091_v18 = vmul.f32 %v3049_v9, %v2838_v33  ;;  %7197 = vrot.lane.b32.xlu1 %v7196_v59, %s7923_s16  ;;  %7177 = vrot.lane.b32.xlu0 %v7176_v27, %s7919_s12  ;;  %v10212_v35 = vpop.permute.xlu1 %6947  ;;  %v7221_v28 = vpack.i.bf16 %v3265_v25, %v3264_v16  ;;  %v3307_v27 = vld [vmem:[#allocation2 + $0x44] sm:$0xff]  ;;  %v3310_v10 = vld [vmem:[#allocation2 + $0x5c] sm:$0xff]  ;;  %v3309_v29 = vld [vmem:[#allocation2 + $0x54] sm:$0xff] }
 0x33c   : > { %v3215_v57 = vld [vmem:[#allocation2 + $0x141] sm:$0xf]  ;;  %v3349_v9 = vld [vmem:[#allocation2 + $0x45] sm:$0xff] }
 0x33d   : > { %3133 = vst.msk [vmem:[#allocation2 + $0x153] sm:$0xf] %vm3132_vm12, %v3091_v18  ;;  %v7206_v61 = vpack.i.bf16 %v3215_v57, %v3214_v5  ;;  %v3256_v32 = vld [vmem:[#allocation2 + $0x142] sm:$0xf]  ;;  %v10214_v33 = vpop.permute.xlu0 %6952  ;;  %v7236_v43 = vpack.i.bf16 %v3350_v54, %v3349_v9  ;;  %v3391_v5 = vld [vmem:[#allocation2 + $0x4e] sm:$0xff] }
 0x33e   : > { %v7211_v50 = vpack.i.bf16 %v3256_v32, %v10185_v30  ;;  %v3267_v57 = vld [vmem:[#allocation2 + $0x4b] sm:$0xff]  ;;  %v3266_v32 = vld [vmem:[#allocation2 + $0x43] sm:$0xff] }
 0x33f   : > { %7182 = vrot.lane.b32.xlu0 %v7181_v58, %s7926_s30  ;;  %7207 = vrot.lane.b32.xlu1 %v7206_v61, %s7918_s11  ;;  %v3390_v61 = vld [vmem:[#allocation2 + $0x46] sm:$0xff]  ;;  %v3352_v25 = vld [vmem:[#allocation2 + $0x5d] sm:$0xff] }
 0x340   : > { %v7241_v19 = vpack.i.bf16 %v3391_v5, %v3390_v61  ;;  %v3393_v16 = vld [vmem:[#allocation2 + $0x5e] sm:$0xff] }
 0x341   : > { %v10218_v31 = vpop.permute.xlu1 %6957  ;;  %v3269_v5 = vld [vmem:[#allocation2 + $0x5b] sm:$0xff] }
 0x343   : > { %7192 = vrot.lane.b32.xlu0 %v7151_v15, %s7922_s15  ;;  %7212 = vrot.lane.b32.xlu1 %v7211_v50, %s7919_s12  ;;  %v3308_v15 = vld [vmem:[#allocation2 + $0x4c] sm:$0xff] }
 0x344   : > { %v7231_v18 = vpack.i.bf16 %v3308_v15, %v3307_v27  ;;  %v3392_v15 = vld [vmem:[#allocation2 + $0x56] sm:$0xff] }
 0x347   : > { %7202 = vrot.lane.b32.xlu0 %v7201_v55, %s7924_s17  ;;  %7217 = vrot.lane.b32.xlu1 %v7216_v40, %s7926_s30  ;;  %v7256_v40 = vpack.i.bf16 %v3310_v10, %v3309_v29  ;;  %v3311_v10 = vld [vmem:[#allocation2 + $0x64] sm:$0xff] }
 0x348   : > { %v3353_v29 = vld [vmem:[#allocation2 + $0x65] sm:$0xff] }
 0x349   : > { %v10220_v58 = vpop.permute.xlu0 %6962 }
 0x34b   : > { %7222 = vrot.lane.b32.xlu0 %v7221_v28, %s7921_s14  ;;  %7227 = vrot.lane.b32.xlu1 %v7196_v59, %s7922_s15  ;;  %v7246_v59 = vpack.i.bf16 %v3267_v57, %v3266_v32  ;;  %v3351_v28 = vld [vmem:[#allocation2 + $0x55] sm:$0xff] }
 0x34c   : > { %v7261_v9 = vpack.i.bf16 %v3352_v25, %v3351_v28  ;;  %v3268_v57 = vld [vmem:[#allocation2 + $0x53] sm:$0xff] }
 0x34d   : > { %v10228_v17 = vpop.permute.xlu0 %6967 }
 0x34f   : > { %7232 = vrot.lane.b32.xlu0 %v7231_v18, %s7923_s16  ;;  %7237 = vrot.lane.b32.xlu1 %v7236_v43, %s7924_s17  ;;  %v7266_v43 = vpack.i.bf16 %v3393_v16, %v3392_v15 }
 0x351   : > { %v10224_v50 = vpop.permute.xlu1 %6972 }
 0x353   : > { %7242 = vrot.lane.b32.xlu0 %v7241_v19, %s7926_s30  ;;  %7247 = vrot.lane.b32.xlu1 %v7246_v59, %s7921_s14  ;;  %v3312_v19 = vld [vmem:[#allocation2 + $0x6c] sm:$0xff] }
 0x354   : > { %v3354_v59 = vld [vmem:[#allocation2 + $0x6d] sm:$0xff]  ;;  %v7281_v28 = vpack.i.bf16 %v3312_v19, %v3311_v10 }
 0x355   : > { %v10230_v55 = vpop.permute.xlu1 %6977  ;;  %v7286_v15 = vpack.i.bf16 %v3354_v59, %v3353_v29  ;;  %v3313_v19 = vld [vmem:[#allocation2 + $0x74] sm:$0xff]  ;;  %v3356_v29 = vld [vmem:[#allocation2 + $0x7d] sm:$0xff] }
 0x356   : > { %v7306_v10 = vpack.i.bf16 %v3314_v42, %v3313_v19  ;;  %v3272_v42 = vld [vmem:[#allocation2 + $0x73] sm:$0xff] }
 0x357   : > { %7252 = vrot.lane.b32.xlu0 %v7231_v18, %s7922_s15  ;;  %7257 = vrot.lane.b32.xlu1 %v7256_v40, %s7923_s16  ;;  %v7271_v18 = vpack.i.bf16 %v3269_v5, %v3268_v57  ;;  %v3394_v5 = vld [vmem:[#allocation2 + $0x66] sm:$0xff]  ;;  %v7321_v19 = vpack.i.bf16 %v3273_v1, %v3272_v42 }
 0x358   : > { %v3270_v57 = vld [vmem:[#allocation2 + $0x63] sm:$0xff] }
 0x359   : > { %v10234_v54 = vpop.permute.xlu1 %6992  ;;  %v10236_v27 = vpop.permute.xlu0 %6982  ;;  %v3398_v1 = vld [vmem:[#allocation2 + $0x86] sm:$0xff] }
 0x35a   : > { %11552 = vst [vmem:[#allocation30_spill] sm:$0xff] %v10236_v27  ;;  %v3274_v42 = vld [vmem:[#allocation2 + $0x83] sm:$0xff] }
 0x35b   : > { %7262 = vrot.lane.b32.xlu0 %v7261_v9, %s7924_s17  ;;  %7267 = vrot.lane.b32.xlu1 %v7266_v43, %s7926_s30  ;;  %v3395_v9 = vld [vmem:[#allocation2 + $0x6e] sm:$0xff] }
 0x35c   : > { %v3271_v43 = vld [vmem:[#allocation2 + $0x6b] sm:$0xff] }
 0x35d   : > { %v10240_v61 = vpop.permute.xlu1 %7002  ;;  %v10242_v32 = vpop.permute.xlu0 %6987 }
 0x35f   : > { %7272 = vrot.lane.b32.xlu0 %v7271_v18, %s7921_s14  ;;  %7277 = vrot.lane.b32.xlu1 %v7256_v40, %s7922_s15  ;;  %v7291_v18 = vpack.i.bf16 %v3395_v9, %v3394_v5  ;;  %v7296_v40 = vpack.i.bf16 %v3271_v43, %v3270_v57  ;;  %v3396_v9 = vld [vmem:[#allocation2 + $0x76] sm:$0xff] }
 0x360   : > { %v7316_v57 = vpack.i.bf16 %v3397_v6, %v3396_v9 }
 0x361   : > { %v10246_v25 = vpop.permute.xlu0 %6997  ;;  %v10248_v16 = vpop.permute.xlu1 %7012 }
 0x362   : > { %11553 = vst [vmem:[#allocation47_spill] sm:$0xff] %v10248_v16  ;;  %v3134_v16 = vld [vmem:[#allocation2] sm:$0xff] }
 0x363   : > { %7282 = vrot.lane.b32.xlu0 %v7281_v28, %s7923_s16  ;;  %7287 = vrot.lane.b32.xlu1 %v7286_v15, %s7924_s17  ;;  %v3355_v15 = vld [vmem:[#allocation2 + $0x75] sm:$0xff] }
 0x364   : > { %v7311_v5 = vpack.i.bf16 %v3356_v29, %v3355_v15  ;;  %v3357_v29 = vld [vmem:[#allocation2 + $0x85] sm:$0xff] }
 0x365   : > { %v10252_v41 = vpop.permute.xlu0 %7007  ;;  %v10254_v51 = vpop.permute.xlu1 %7017 }
 0x367   : > { %7292 = vrot.lane.b32.xlu0 %v7291_v18, %s7926_s30  ;;  %7297 = vrot.lane.b32.xlu1 %v7296_v40, %s7921_s14 }
 0x369   : > { %v10258_v59 = vpop.permute.xlu0 %7022  ;;  %v10262_v43 = vpop.permute.xlu1 %7032 }
 0x36a   : > { %11554 = vst [vmem:[#allocation62_spill] sm:$0xff] %v10258_v59  ;;  %11555 = vst [vmem:[#allocation80_spill] sm:$0xff] %v10262_v43  ;;  %v11568_v59 = vpack.i.bf16 %v9912_v39, %v9910_v3  ;;  %v11572_v43 = vpack.i.bf16 %v9946_v63, %v9944_v37  ;;  %v6934_v37 = vunpack.i.l.bf16 %v10202_v45 }
 0x36b   : > { %7302 = vrot.lane.b32.xlu0 %v7281_v28, %s7922_s15  ;;  %7307 = vrot.lane.b32.xlu1 %v7306_v10, %s7923_s16  ;;  %v3316_v28 = vld [vmem:[#allocation2 + $0x8c] sm:$0xff] }
 0x36c   : > { %v7331_v9 = vpack.i.bf16 %v3316_v28, %v3315_v47  ;;  %v3317_v47 = vld [vmem:[#allocation2 + $0x94] sm:$0xff] }
 0x36d   : > { %v10264_v18 = vpop.permute.xlu0 %7027 }
 0x36e   : > { %11556 = vst [vmem:[#allocation95_spill] sm:$0xff] %v10264_v18 }
 0x36f   : > { %7312 = vrot.lane.b32.xlu0 %v7311_v5, %s7924_s17  ;;  %7317 = vrot.lane.b32.xlu1 %v7316_v57, %s7926_s30  ;;  %v7336_v5 = vpack.i.bf16 %v3358_v49, %v3357_v29  ;;  %v3275_v57 = vld [vmem:[#allocation2 + $0x8b] sm:$0xff]  ;;  %v7356_v29 = vpack.i.bf16 %v3318_v34, %v3317_v47  ;;  %v3276_v34 = vld [vmem:[#allocation2 + $0x93] sm:$0xff] }
 0x370   : > { %v7346_v4 = vpack.i.bf16 %v3275_v57, %v3274_v42 }
 0x371   : > { %v10268_v40 = vpop.permute.xlu1 %7042  ;;  %v10272_v6 = vpop.permute.xlu0 %7037 }
 0x372   : > { %11557 = vst [vmem:[#allocation14_spill] sm:$0xff] %v10268_v40  ;;  %11558 = vst [vmem:[#allocation32_spill] sm:$0xff] %v10272_v6  ;;  %v3320_v40 = vld [vmem:[#allocation2 + $0xac] sm:$0xff]  ;;  %v11564_v6 = vpack.i.bf16 %v9868_v12, %v9870_v26 }
 0x373   : > { %7322 = vrot.lane.b32.xlu0 %v7321_v19, %s7921_s14  ;;  %7327 = vrot.lane.b32.xlu1 %v7306_v10, %s7922_s15  ;;  %v7341_v10 = vpack.i.bf16 %v3399_v8, %v3398_v1  ;;  %v3400_v8 = vld [vmem:[#allocation2 + $0x96] sm:$0xff] }
 0x375   : > { %v10274_v15 = vpop.permute.xlu1 %7047 }
 0x376   : > { %11559 = vst [vmem:[#allocation3_spill] sm:$0xff] %v10274_v15  ;;  %v3401_v15 = vld [vmem:[#allocation2 + $0x9e] sm:$0xff] }
 0x377   : > { %7332 = vrot.lane.b32.xlu0 %v7331_v9, %s7923_s16  ;;  %7337 = vrot.lane.b32.xlu1 %v7336_v5, %s7924_s17  ;;  %v3360_v5 = vld [vmem:[#allocation2 + $0x9d] sm:$0xff] }
 0x379   : > { %v10278_v0 = vpop.permute.xlu1 %7067  ;;  %v10280_v19 = vpop.permute.xlu0 %7052 }
 0x37a   : > { %11560 = vst [vmem:[#allocation46_spill] sm:$0xff] %v10280_v19  ;;  %v3359_v19 = vld [vmem:[#allocation2 + $0x95] sm:$0xff] }
 0x37b   : > { %7342 = vrot.lane.b32.xlu0 %v7341_v10, %s7926_s30  ;;  %7347 = vrot.lane.b32.xlu1 %v7346_v4, %s7921_s14  ;;  %v7361_v42 = vpack.i.bf16 %v3360_v5, %v3359_v19  ;;  %v7366_v4 = vpack.i.bf16 %v3401_v15, %v3400_v8  ;;  %v3277_v10 = vld [vmem:[#allocation2 + $0x9b] sm:$0xff]  ;;  %v3319_v15 = vld [vmem:[#allocation2 + $0xa4] sm:$0xff] }
 0x37c   : > { %v7386_v8 = vpack.i.bf16 %v3320_v40, %v3319_v15  ;;  %v3278_v40 = vld [vmem:[#allocation2 + $0xa3] sm:$0xff] }
 0x37d   : > { %v10284_v49 = vpop.permute.xlu1 %7077  ;;  %v10286_v28 = vpop.permute.xlu0 %7057 }
 0x37e   : > { %11561 = vst [vmem:[#allocation64_spill] sm:$0xff] %v10286_v28 }
 0x37f   : > { %7352 = vrot.lane.b32.xlu0 %v7331_v9, %s7922_s15  ;;  %7357 = vrot.lane.b32.xlu1 %v7356_v29, %s7923_s16  ;;  %v7376_v9 = vpack.i.bf16 %v3277_v10, %v3276_v34  ;;  %v3361_v10 = vld [vmem:[#allocation2 + $0xa5] sm:$0xff] }
 0x380   : > { %v3402_v34 = vld [vmem:[#allocation2 + $0xa6] sm:$0xff] }
 0x381   : > { %v10290_v57 = vpop.permute.xlu0 %7062  ;;  %v10292_v1 = vpop.permute.xlu1 %7082 }
 0x382   : > { %11562 = vst [vmem:[#allocation79_spill] sm:$0xff] %v10292_v1  ;;  %v3322_v1 = vld [vmem:[#allocation2 + $0xbc] sm:$0xff]  ;;  %v7065_v36 = vunpack.i.h.bf16 %v10290_v57  ;;  %v7064_v30 = vunpack.i.l.bf16 %v10290_v57 }
 0x383   : > { %7362 = vrot.lane.b32.xlu0 %v7361_v42, %s7924_s17  ;;  %7367 = vrot.lane.b32.xlu1 %v7366_v4, %s7926_s30  ;;  %v3362_v42 = vld [vmem:[#allocation2 + $0xad] sm:$0xff] }
 0x384   : > { %v3403_v4 = vld [vmem:[#allocation2 + $0xae] sm:$0xff]  ;;  %v7391_v26 = vpack.i.bf16 %v3362_v42, %v3361_v10 }
 0x385   : > { %v10296_v47 = vpop.permute.xlu0 %7072  ;;  %v10298_v28 = vpop.permute.xlu1 %7087  ;;  %v3321_v42 = vld [vmem:[#allocation2 + $0xb4] sm:$0xff] }
 0x386   : > { %11563 = vst [vmem:[#allocation98_spill] sm:$0xff] %v10298_v28 }
 0x387   : > { %7372 = vrot.lane.b32.xlu0 %v11564_v6, %s7920_s13  ;;  %7377 = vrot.lane.b32.xlu1 %v7376_v9, %s7921_s14  ;;  %v7396_v6 = vpack.i.bf16 %v3403_v4, %v3402_v34  ;;  %v3279_v9 = vld [vmem:[#allocation2 + $0xab] sm:$0xff]  ;;  %v7416_v34 = vpack.i.bf16 %v3322_v1, %v3321_v42  ;;  %v3280_v1 = vld [vmem:[#allocation2 + $0xb3] sm:$0xff] }
 0x389   : > { %v10305_v19 = vpop.permute.xlu1 %7107  ;;  %v10307_v5 = vpop.permute.xlu0 %7092 }
 0x38a   : > { %11565 = vst [vmem:[#allocation4_spill] sm:$0xff] %v10307_v5 }
 0x38b   : > { %7382 = vrot.lane.b32.xlu0 %v7356_v29, %s7922_s15  ;;  %7387 = vrot.lane.b32.xlu1 %v7386_v8, %s7923_s16  ;;  %v7406_v29 = vpack.i.bf16 %v3279_v9, %v3278_v40  ;;  %v3363_v9 = vld [vmem:[#allocation2 + $0xb5] sm:$0xff] }
 0x38c   : > { %v3404_v40 = vld [vmem:[#allocation2 + $0xb6] sm:$0xff] }
 0x38d   : > { %v10311_v28 = vpop.permute.xlu1 %7117  ;;  %v10313_v12 = vpop.permute.xlu0 %7097 }
 0x38e   : > { %11566 = vst [vmem:[#allocation17_spill] sm:$0xff] %v10313_v12  ;;  %v3324_v12 = vld [vmem:[#allocation2 + $0xcc] sm:$0xff] }
 0x38f   : > { %7392 = vrot.lane.b32.xlu0 %v7391_v26, %s7924_s17  ;;  %7397 = vrot.lane.b32.xlu1 %v7396_v6, %s7926_s30  ;;  %v3364_v26 = vld [vmem:[#allocation2 + $0xbd] sm:$0xff] }
 0x390   : > { %v3405_v6 = vld [vmem:[#allocation2 + $0xbe] sm:$0xff]  ;;  %v7421_v39 = vpack.i.bf16 %v3364_v26, %v3363_v9 }
 0x391   : > { %v10317_v15 = vpop.permute.xlu0 %7102  ;;  %v10319_v5 = vpop.permute.xlu1 %7122  ;;  %v3323_v26 = vld [vmem:[#allocation2 + $0xc4] sm:$0xff] }
 0x392   : > { %11567 = vst [vmem:[#allocation31_spill] sm:$0xff] %v10319_v5 }
 0x393   : > { %7402 = vrot.lane.b32.xlu0 %v11568_v59, %s7920_s13  ;;  %7407 = vrot.lane.b32.xlu1 %v7406_v29, %s7921_s14  ;;  %v7426_v59 = vpack.i.bf16 %v3405_v6, %v3404_v40  ;;  %v3281_v29 = vld [vmem:[#allocation2 + $0xbb] sm:$0xff]  ;;  %v7446_v40 = vpack.i.bf16 %v3324_v12, %v3323_v26  ;;  %v6328_v12 = vunpack.i.h.bf16 %v11544_v46  ;;  %v3135_v26 = vld [vmem:[#allocation2 + $0x8] sm:$0xff] }
 0x395   : > { %v10326_v4 = vpop.permute.xlu0 %7112  ;;  %v10328_v10 = vpop.permute.xlu1 %7127 }
 0x396   : > { %11569 = vst [vmem:[#allocation49_spill] sm:$0xff] %v10328_v10 }
 0x397   : > { %7412 = vrot.lane.b32.xlu0 %v7386_v8, %s7922_s15  ;;  %7417 = vrot.lane.b32.xlu1 %v7416_v34, %s7923_s16  ;;  %v7436_v8 = vpack.i.bf16 %v3281_v29, %v3280_v1  ;;  %v3365_v29 = vld [vmem:[#allocation2 + $0xc5] sm:$0xff] }
 0x398   : > { %v3406_v1 = vld [vmem:[#allocation2 + $0xc6] sm:$0xff] }
 0x399   : > { %v10332_v5 = vpop.permute.xlu1 %7147  ;;  %v10334_v3 = vpop.permute.xlu0 %7132 }
 0x39a   : > { %11570 = vst [vmem:[#allocation63_spill] sm:$0xff] %v10334_v3 }
 0x39b   : > { %7422 = vrot.lane.b32.xlu0 %v7421_v39, %s7924_s17  ;;  %7427 = vrot.lane.b32.xlu1 %v7426_v59, %s7926_s30  ;;  %v3366_v39 = vld [vmem:[#allocation2 + $0xcd] sm:$0xff] }
 0x39c   : > { %v3407_v59 = vld [vmem:[#allocation2 + $0xce] sm:$0xff] }
 0x39d   : > { %v10338_v42 = vpop.permute.xlu1 %7157  ;;  %v10340_v10 = vpop.permute.xlu0 %7137  ;;  %v7456_v3 = vpack.i.bf16 %v3407_v59, %v3406_v1  ;;  %v4664_v59 = vsel %vm1877_vm0, %v3135_v26, %v6934_v37  ;;  %v3325_v26 = vld [vmem:[#allocation2 + $0xd4] sm:$0xff] }
 0x39e   : > { %11571 = vst [vmem:[#allocation82_spill] sm:$0xff] %v10340_v10  ;;  %v6223_v10 = vunpack.i.h.bf16 %v11543_v11 }
 0x39f   : > { %7432 = vrot.lane.b32.xlu0 %v11572_v43, %s7920_s13  ;;  %7437 = vrot.lane.b32.xlu1 %v7436_v8, %s7921_s14  ;;  %v7451_v8 = vpack.i.bf16 %v3366_v39, %v3365_v29 }
 0x3a0   : > { %v4663_v39 = vsel %vm1877_vm0, %v3134_v16, %v6223_v10  ;;  %v11575_v16 = vpack.i.bf16 %v9975_v62, %v9973_v53  ;;  %v3368_v10 = vld [vmem:[#allocation2 + $0xdd] sm:$0xff]  ;;  %v10386_v62 = vpack.i.bf16 %v3326_v24, %v3325_v26  ;;  %v6939_v24 = vunpack.i.l.bf16 %v10206_v38 }
 0x3a1   : > { %v7143_v6 = vpop.permute.xlu0 %7142  ;;  %v10347_v9 = vpop.permute.xlu1 %7162  ;;  %v4704_v27 = vsel %vm1919_vm3, %v4663_v39, %v6328_v12  ;;  %v3367_v39 = vld [vmem:[#allocation2 + $0xd5] sm:$0xff] }
 0x3a2   : > { %11573 = vst [vmem:[#allocation97_spill] sm:$0xff] %v10347_v9  ;;  %v6969_v9 = vunpack.i.l.bf16 %v10228_v17  ;;  %v7145_v11 = vunpack.i.h.bf16 %v7143_v6  ;;  %v7144_v18 = vunpack.i.l.bf16 %v7143_v6  ;;  %v10376_v6 = vld [vmem:[#allocation2 + $0xdb] sm:$0xff] }
 0x3a3   : > { %7442 = vrot.lane.b32.xlu0 %v7416_v34, %s7922_s15  ;;  %7447 = vrot.lane.b32.xlu1 %v7446_v40, %s7923_s16  ;;  %v3283_v34 = vld [vmem:[#allocation2 + $0xcb] sm:$0xff] }
 0x3a4   : > { %v4705_v57 = vsel %vm1919_vm3, %v4664_v59, %v6969_v9  ;;  %v3284_v59 = vld [vmem:[#allocation2 + $0xd3] sm:$0xff] }
 0x3a5   : > { %v7153_v63 = vpop.permute.xlu0 %7152  ;;  %v10353_v43 = vpop.permute.xlu1 %7167 }
 0x3a6   : > { %11574 = vst [vmem:[#allocation16_spill] sm:$0xff] %v10353_v43  ;;  %v3282_v43 = vld [vmem:[#allocation2 + $0xc3] sm:$0xff]  ;;  %v7155_v9 = vunpack.i.h.bf16 %v7153_v63  ;;  %v7154_v12 = vunpack.i.l.bf16 %v7153_v63 }
 0x3a7   : > { %7452 = vrot.lane.b32.xlu0 %v7451_v8, %s7924_s17  ;;  %7457 = vrot.lane.b32.xlu1 %v7456_v3, %s7926_s30  ;;  %v7466_v1 = vpack.i.bf16 %v3283_v34, %v3282_v43  ;;  %v4746_v8 = vsel %vm1961_vm4, %v4705_v57, %v7065_v36  ;;  %v4745_v3 = vsel %vm1961_vm4, %v4704_v27, %v7064_v30  ;;  %v3409_v36 = vld [vmem:[#allocation2 + $0xde] sm:$0xff]  ;;  %v7150_v30 = vunpack.i.h.bf16 %v10332_v5 }
 0x3a8   : > { %v4787_v37 = vsel %vm2003_vm5, %v4746_v8, %v7145_v11  ;;  %v4786_v43 = vsel %vm2003_vm5, %v4745_v3, %v7144_v18  ;;  %v7149_v27 = vunpack.i.l.bf16 %v10332_v5  ;;  %v3408_v11 = vld [vmem:[#allocation2 + $0xd6] sm:$0xff]  ;;  %v7496_v18 = vpack.i.bf16 %v10376_v6, %v3284_v59 }
 0x3a9   : > { %v10363_v46 = vpop.permute.xlu1 %7187  ;;  %v10365_v29 = vpop.permute.xlu0 %7172  ;;  %v4828_v57 = vsel %vm2045_vm6, %v4787_v37, %v7150_v30  ;;  %v7486_v5 = vpack.i.bf16 %v3409_v36, %v3408_v11  ;;  %v6935_v8 = vunpack.i.h.bf16 %v10202_v45  ;;  %v6979_v6 = vunpack.i.l.bf16 %v10230_v55 }
 0x3aa   : > { %v4827_v63 = vsel %vm2045_vm6, %v4786_v43, %v7149_v27  ;;  %v7160_v37 = vunpack.i.h.bf16 %v10338_v42  ;;  %v7070_v36 = vunpack.i.h.bf16 %v10278_v0  ;;  %v7069_v45 = vunpack.i.l.bf16 %v10278_v0 }
 0x3ab   : > { %7462 = vrot.lane.b32.xlu0 %v11575_v16, %s7920_s13  ;;  %7467 = vrot.lane.b32.xlu1 %v7466_v1, %s7921_s14  ;;  %v7481_v1 = vpack.i.bf16 %v3368_v10, %v3367_v39  ;;  %v4868_v3 = vsel %vm2087_vm7, %v4827_v63, %v7154_v12  ;;  %v4869_v16 = vsel %vm2087_vm7, %v4828_v57, %v7155_v9  ;;  %v6970_v10 = vunpack.i.h.bf16 %v10228_v17  ;;  %v3136_v12 = vld [vmem:[#allocation2 + $0x10] sm:$0xff]  ;;  %v3137_v39 = vld [vmem:[#allocation2 + $0x18] sm:$0xff] }
 0x3ac   : > { %v7190_v9 = vunpack.i.h.bf16 %v10363_v46  ;;  %v7189_v17 = vunpack.i.l.bf16 %v10363_v46  ;;  %v4910_v11 = vsel %vm2129_vm8, %v4869_v16, %v7160_v37  ;;  %v4666_v0 = vsel %vm1877_vm0, %v3137_v39, %v6939_v24  ;;  %v3327_v24 = vld [vmem:[#allocation2 + $0xe4] sm:$0xff]  ;;  %v3370_v39 = vld [vmem:[#allocation2 + $0xed] sm:$0xff] }
 0x3ad   : > { %v10382_v34 = vpop.permute.xlu1 %7197  ;;  %v10384_v53 = vpop.permute.xlu0 %7177  ;;  %v4707_v46 = vsel %vm1919_vm3, %v4666_v0, %v6979_v6 }
 0x3af   : > { %7472 = vrot.lane.b32.xlu0 %v7446_v40, %s7922_s15  ;;  %7477 = vrot.lane.b32.xlu1 %v10386_v62, %s7923_s16  ;;  %v7159_v40 = vunpack.i.l.bf16 %v10338_v42  ;;  %v4665_v42 = vsel %vm1877_vm0, %v3136_v12, %v6935_v8 }
 0x3b1   : > { %v7183_v43 = vpop.permute.xlu0 %7182  ;;  %v10402_v26 = vpop.permute.xlu1 %7207  ;;  %v4909_v59 = vsel %vm2129_vm8, %v4868_v3, %v7159_v40 }
 0x3b2   : > { %11576 = vst [vmem:[#allocation34_spill] sm:$0xff] %v10402_v26  ;;  %v7185_v30 = vunpack.i.h.bf16 %v7183_v43  ;;  %v7184_v27 = vunpack.i.l.bf16 %v7183_v43  ;;  %v3328_v43 = vld [vmem:[#allocation2 + $0xec] sm:$0xff]  ;;  %v4706_v26 = vsel %vm1919_vm3, %v4665_v42, %v6970_v10  ;;  %v11577_v10 = vpack.i.bf16 %v10002_v20, %v10000_v2 }
 0x3b3   : > { %7482 = vrot.lane.b32.xlu0 %v7481_v1, %s7924_s17  ;;  %7487 = vrot.lane.b32.xlu1 %v7486_v5, %s7926_s30  ;;  %v4748_v1 = vsel %vm1961_vm4, %v4707_v46, %v7070_v36  ;;  %v4747_v5 = vsel %vm1961_vm4, %v4706_v26, %v7069_v45  ;;  %v10430_v6 = vpack.i.bf16 %v3328_v43, %v3327_v24  ;;  %v6944_v26 = vunpack.i.l.bf16 %v10208_v56  ;;  %v3139_v43 = vld [vmem:[#allocation2 + $0x28] sm:$0xff] }
 0x3b4   : > { %v4951_v63 = vsel %vm2171_vm9, %v4910_v11, %v7185_v30  ;;  %v4950_v57 = vsel %vm2171_vm9, %v4909_v59, %v7184_v27  ;;  %v6940_v30 = vunpack.i.h.bf16 %v10206_v38  ;;  %v4789_v27 = vsel %vm2003_vm5, %v4748_v1, %v7190_v9  ;;  %v3411_v11 = vld [vmem:[#allocation2 + $0xee] sm:$0xff] }
 0x3b5   : > { %v7193_v3 = vpop.permute.xlu0 %7192  ;;  %v10418_v40 = vpop.permute.xlu1 %7212  ;;  %v4991_v16 = vpack.c.bf16 %v4951_v63, %v4950_v57  ;;  %v4788_v12 = vsel %vm2003_vm5, %v4747_v5, %v7189_v17  ;;  %v6980_v36 = vunpack.i.h.bf16 %v10230_v55  ;;  %v6989_v2 = vunpack.i.l.bf16 %v10242_v32  ;;  %v3138_v5 = vld [vmem:[#allocation2 + $0x20] sm:$0xff] }
 0x3b6   : > { %v7195_v8 = vunpack.i.h.bf16 %v7193_v3  ;;  %v7194_v37 = vunpack.i.l.bf16 %v7193_v3  ;;  %v7075_v20 = vunpack.i.h.bf16 %v10296_v47  ;;  %v7200_v9 = vunpack.i.h.bf16 %v10382_v34 }
 0x3b7   : > { %7492 = vrot.lane.b32.xlu0 %v11577_v10, %s7920_s13  ;;  %6015 = vmatmul.mubr.msk.bf16.vlgmr.msra.gmra.mrb[0].mxu1 %vm2270_vm10, %v4991_v16  ;;  %v7199_v17 = vunpack.i.l.bf16 %v10382_v34  ;;  %v7074_v46 = vunpack.i.l.bf16 %v10296_v47  ;;  %v3410_v34 = vld [vmem:[#allocation2 + $0xe6] sm:$0xff] }
 0x3b8   : > { %v4830_v45 = vsel %vm2045_vm6, %v4789_v27, %v7195_v8  ;;  %v4829_v38 = vsel %vm2045_vm6, %v4788_v12, %v7194_v37  ;;  %7497 = vrot.lane.b32.xlu1 %v7496_v18, %s7921_s14  ;;  %6018 = vmatprep.mubr.msk.bf16.mxu1 %vm7925_vm2, %v11394_v23  ;;  %v3369_v18 = vld [vmem:[#allocation2 + $0xe5] sm:$0xff]  ;;  %v4668_v8 = vsel %vm1877_vm0, %v3139_v43, %v6944_v26 }
 0x3b9   : > { %v7203_v59 = vpop.permute.xlu0 %7202  ;;  %v7218_v55 = vpop.permute.xlu1 %7217  ;;  %v4870_v3 = vsel %vm2087_vm7, %v4829_v38, %v7199_v17  ;;  %v4871_v16 = vsel %vm2087_vm7, %v4830_v45, %v7200_v9  ;;  %v7511_v1 = vpack.i.bf16 %v3370_v39, %v3369_v18  ;;  %v7516_v47 = vpack.i.bf16 %v3411_v11, %v3410_v34 }
 0x3ba   : > { %v7205_v42 = vunpack.i.h.bf16 %v7203_v59  ;;  %v7204_v0 = vunpack.i.l.bf16 %v7203_v59  ;;  %v7220_v63 = vunpack.i.h.bf16 %v7218_v55  ;;  %v7219_v57 = vunpack.i.l.bf16 %v7218_v55 }
 0x3bb   : > { %7502 = vrot.lane.b32.xlu0 %v10386_v62, %s7922_s15  ;;  %v4667_v27 = vsel %vm1877_vm0, %v3138_v5, %v6940_v30  ;;  %v4709_v12 = vsel %vm1919_vm3, %v4668_v8, %v6989_v2  ;;  %v3287_v2 = vld [vmem:[#allocation2 + $0xeb] sm:$0xff]  ;;  %v11578_v8 = vpack.i.bf16 %v10042_v60, %v10040_v13 }
 0x3bc   : > { %v4911_v37 = vsel %vm2129_vm8, %v4870_v3, %v7204_v0  ;;  %v4912_v24 = vsel %vm2129_vm8, %v4871_v16, %v7205_v42  ;;  %7507 = vrot.lane.b32.xlu1 %v10430_v6, %s7923_s16  ;;  %v4708_v26 = vsel %vm1919_vm3, %v4667_v27, %v6980_v36  ;;  %v4750_v39 = vsel %vm1961_vm4, %v4709_v12, %v7075_v20  ;;  %v3372_v3 = vld [vmem:[#allocation2 + $0xfd] sm:$0xff]  ;;  %v3329_v12 = vld [vmem:[#allocation2 + $0xf4] sm:$0xff] }
 0x3bd   : > { %v4953_v10 = vsel %vm2171_vm9, %v4912_v24, %v7220_v63  ;;  %v4952_v62 = vsel %vm2171_vm9, %v4911_v37, %v7219_v57  ;;  %v7223_v45 = vpop.permute.xlu0 %7222  ;;  %v7228_v38 = vpop.permute.xlu1 %7227  ;;  %v4749_v59 = vsel %vm1961_vm4, %v4708_v26, %v7074_v46  ;;  %v3286_v63 = vld [vmem:[#allocation2 + $0xe3] sm:$0xff]  ;;  %v6945_v37 = vunpack.i.h.bf16 %v10208_v56 }
 0x3be   : > { %v7225_v9 = vunpack.i.h.bf16 %v7223_v45  ;;  %v7224_v17 = vunpack.i.l.bf16 %v7223_v45  ;;  %v7230_v55 = vunpack.i.h.bf16 %v7228_v38  ;;  %v7229_v11 = vunpack.i.l.bf16 %v7228_v38  ;;  %v3330_v46 = vld [vmem:[#allocation2 + $0xfc] sm:$0xff] }
 0x3bf   : > { %7512 = vrot.lane.b32.xlu0 %v7511_v1, %s7924_s17  ;;  %v4992_v30 = vpack.c.bf16 %v4953_v10, %v4952_v62  ;;  %v7526_v43 = vpack.i.bf16 %v3287_v2, %v3286_v63  ;;  %v6949_v24 = vunpack.i.l.bf16 %v10212_v35  ;;  %v3371_v10 = vld [vmem:[#allocation2 + $0xf5] sm:$0xff]  ;;  %v6994_v62 = vunpack.i.l.bf16 %v10234_v54 }
 0x3c0   : > { %v4791_v42 = vsel %vm2003_vm5, %v4750_v39, %v7225_v9  ;;  %v4790_v0 = vsel %vm2003_vm5, %v4749_v59, %v7224_v17  ;;  %7517 = vrot.lane.b32.xlu1 %v7516_v47, %s7926_s30  ;;  %v6990_v45 = vunpack.i.h.bf16 %v10242_v32  ;;  %v10480_v13 = vpack.i.bf16 %v3330_v46, %v3329_v12  ;;  %v3413_v59 = vld [vmem:[#allocation2 + $0xfe] sm:$0xff]  ;;  %v3412_v63 = vld [vmem:[#allocation2 + $0xf6] sm:$0xff] }
 0x3c1   : > { %6019 = vmatmul.mubr.msk.bf16.gmra.mrb[4].mxu1 %vm2270_vm10, %v4992_v30  ;;  %v7233_v36 = vpop.permute.xlu0 %7232  ;;  %v7238_v20 = vpop.permute.xlu1 %7237  ;;  %v4832_v16 = vsel %vm2045_vm6, %v4791_v42, %v7230_v55  ;;  %v4831_v1 = vsel %vm2045_vm6, %v4790_v0, %v7229_v11  ;;  %v7541_v60 = vpack.i.bf16 %v3372_v3, %v3371_v10  ;;  %v7080_v56 = vunpack.i.h.bf16 %v10284_v49  ;;  %v3140_v55 = vld [vmem:[#allocation2 + $0x30] sm:$0xff]  ;;  %v3141_v11 = vld [vmem:[#allocation2 + $0x38] sm:$0xff] }
 0x3c2   : > { %v7235_v57 = vunpack.i.h.bf16 %v7233_v36  ;;  %v7234_v18 = vunpack.i.l.bf16 %v7233_v36  ;;  %6022 = vmatprep.mubr.msk.bf16.mxu1 %vm7925_vm2, %v11394_v23  ;;  %v7240_v34 = vunpack.i.h.bf16 %v7238_v20  ;;  %v7239_v5 = vunpack.i.l.bf16 %v7238_v20  ;;  %v3288_v12 = vld [vmem:[#allocation2 + $0xf3] sm:$0xff] }
 0x3c3   : > { %7522 = vrot.lane.b32.xlu0 %v11578_v8, %s7920_s13  ;;  %v7079_v39 = vunpack.i.l.bf16 %v10284_v49  ;;  %v4669_v0 = vsel %vm1877_vm0, %v3140_v55, %v6945_v37  ;;  %v4670_v36 = vsel %vm1877_vm0, %v3141_v11, %v6949_v24  ;;  %v7546_v3 = vpack.i.bf16 %v3413_v59, %v3412_v63  ;;  %v3332_v59 = vld [vmem:[#allocation2 + $0x10c] sm:$0xff] }
 0x3c4   : > { %v4872_v47 = vsel %vm2087_vm7, %v4831_v1, %v7234_v18  ;;  %v4873_v27 = vsel %vm2087_vm7, %v4832_v16, %v7235_v57  ;;  %7527 = vrot.lane.b32.xlu1 %v7526_v43, %s7921_s14  ;;  %v4711_v57 = vsel %vm1919_vm3, %v4670_v36, %v6994_v62  ;;  %v4710_v18 = vsel %vm1919_vm3, %v4669_v0, %v6990_v45  ;;  %v3289_v16 = vld [vmem:[#allocation2 + $0xfb] sm:$0xff]  ;;  %v3331_v36 = vld [vmem:[#allocation2 + $0x104] sm:$0xff] }
 0x3c5   : > { %v7243_v38 = vpop.permute.xlu0 %7242  ;;  %v7248_v26 = vpop.permute.xlu1 %7247  ;;  %v4913_v30 = vsel %vm2129_vm8, %v4872_v47, %v7239_v5  ;;  %v4914_v2 = vsel %vm2129_vm8, %v4873_v27, %v7240_v34  ;;  %v4752_v1 = vsel %vm1961_vm4, %v4711_v57, %v7080_v56  ;;  %v4751_v34 = vsel %vm1961_vm4, %v4710_v18, %v7079_v39 }
 0x3c6   : > { %v7245_v9 = vunpack.i.h.bf16 %v7243_v38  ;;  %v7244_v17 = vunpack.i.l.bf16 %v7243_v38  ;;  %v7250_v42 = vunpack.i.h.bf16 %v7248_v26  ;;  %v7249_v32 = vunpack.i.l.bf16 %v7248_v26 }
 0x3c7   : > { %7532 = vrot.lane.b32.xlu0 %v10430_v6, %s7922_s15  ;;  %v6954_v10 = vunpack.i.l.bf16 %v10214_v33  ;;  %v7556_v38 = vpack.i.bf16 %v3289_v16, %v3288_v12  ;;  %v6950_v26 = vunpack.i.h.bf16 %v10212_v35  ;;  %v6995_v56 = vunpack.i.h.bf16 %v10234_v54 }
 0x3c8   : > { %v4954_v49 = vsel %vm2171_vm9, %v4913_v30, %v7244_v17  ;;  %v4955_v20 = vsel %vm2171_vm9, %v4914_v2, %v7245_v9  ;;  %7537 = vrot.lane.b32.xlu1 %v10480_v13, %s7923_s16  ;;  %v4793_v37 = vsel %vm2003_vm5, %v4752_v1, %v7250_v42  ;;  %v4792_v24 = vsel %vm2003_vm5, %v4751_v34, %v7249_v32  ;;  %v3143_v42 = vld [vmem:[#allocation2 + $0x48] sm:$0xff] }
 0x3c9   : > { %v7253_v43 = vpop.permute.xlu0 %7252  ;;  %v7258_v46 = vpop.permute.xlu1 %7257  ;;  %v4993_v6 = vpack.c.bf16 %v4955_v20, %v4954_v49  ;;  %v7105_v39 = vunpack.i.h.bf16 %v10317_v15  ;;  %v7104_v32 = vunpack.i.l.bf16 %v10317_v15  ;;  %v11579_v54 = vpack.i.bf16 %v10072_v48, %v10070_v22  ;;  %v3142_v49 = vld [vmem:[#allocation2 + $0x40] sm:$0xff] }
 0x3ca   : > { %v7255_v5 = vunpack.i.h.bf16 %v7253_v43  ;;  %v7254_v8 = vunpack.i.l.bf16 %v7253_v43  ;;  %v7260_v47 = vunpack.i.h.bf16 %v7258_v46  ;;  %v7259_v27 = vunpack.i.l.bf16 %v7258_v46 }
 0x3cb   : > { %7542 = vrot.lane.b32.xlu0 %v7541_v60, %s7924_s17  ;;  %6023 = vmatmul.mubr.msk.bf16.gmra.mrb[8].mxu1 %vm2270_vm10, %v4993_v6  ;;  %v6999_v60 = vunpack.i.l.bf16 %v10246_v25  ;;  %v4672_v20 = vsel %vm1877_vm0, %v3143_v42, %v6954_v10  ;;  %v10523_v15 = vpack.i.bf16 %v3332_v59, %v3331_v36  ;;  %v4671_v18 = vsel %vm1877_vm0, %v3142_v49, %v6950_v26 }
 0x3cc   : > { %v4833_v62 = vsel %vm2045_vm6, %v4792_v24, %v7254_v8  ;;  %v4834_v45 = vsel %vm2045_vm6, %v4793_v37, %v7255_v5  ;;  %7547 = vrot.lane.b32.xlu1 %v7546_v3, %s7926_s30  ;;  %6026 = vmatprep.mubr.msk.bf16.mxu1 %vm7925_vm2, %v11394_v23  ;;  %v4712_v6 = vsel %vm1919_vm3, %v4671_v18, %v6995_v56  ;;  %v3374_v5 = vld [vmem:[#allocation2 + $0x10d] sm:$0xff] }
 0x3cd   : > { %v7263_v9 = vpop.permute.xlu0 %7262  ;;  %v7268_v17 = vpop.permute.xlu1 %7267  ;;  %v4874_v0 = vsel %vm2087_vm7, %v4833_v62, %v7259_v27  ;;  %v4875_v35 = vsel %vm2087_vm7, %v4834_v45, %v7260_v47  ;;  %v4713_v43 = vsel %vm1919_vm3, %v4672_v20, %v6999_v60  ;;  %v4753_v8 = vsel %vm1961_vm4, %v4712_v6, %v7104_v32  ;;  %v3415_v27 = vld [vmem:[#allocation2 + $0x10e] sm:$0xff]  ;;  %v3373_v62 = vld [vmem:[#allocation2 + $0x105] sm:$0xff] }
 0x3ce   : > { %v7265_v55 = vunpack.i.h.bf16 %v7263_v9  ;;  %v7264_v11 = vunpack.i.l.bf16 %v7263_v9  ;;  %v7270_v30 = vunpack.i.h.bf16 %v7268_v17  ;;  %v7269_v2 = vunpack.i.l.bf16 %v7268_v17  ;;  %v3414_v56 = vld [vmem:[#allocation2 + $0x106] sm:$0xff] }
 0x3cf   : > { %7552 = vrot.lane.b32.xlu0 %v11579_v54, %s7920_s13  ;;  %v4754_v16 = vsel %vm1961_vm4, %v4713_v43, %v7105_v39  ;;  %v7571_v26 = vpack.i.bf16 %v3374_v5, %v3373_v62  ;;  %v7576_v9 = vpack.i.bf16 %v3415_v27, %v3414_v56  ;;  %v7000_v54 = vunpack.i.h.bf16 %v10246_v25  ;;  %v3334_v43 = vld [vmem:[#allocation2 + $0x11c] sm:$0xff] }
 0x3d0   : > { %v4915_v63 = vsel %vm2129_vm8, %v4874_v0, %v7264_v11  ;;  %v4916_v57 = vsel %vm2129_vm8, %v4875_v35, %v7265_v55  ;;  %7557 = vrot.lane.b32.xlu1 %v7556_v38, %s7921_s14  ;;  %v3290_v0 = vld [vmem:[#allocation2 + $0x103] sm:$0xff]  ;;  %v7004_v35 = vunpack.i.l.bf16 %v10240_v61  ;;  %v11580_v25 = vpack.i.bf16 %v10102_v52, %v10100_v7 }
 0x3d1   : > { %v4956_v46 = vsel %vm2171_vm9, %v4915_v63, %v7269_v2  ;;  %v4957_v22 = vsel %vm2171_vm9, %v4916_v57, %v7270_v30  ;;  %v7273_v48 = vpop.permute.xlu0 %7272  ;;  %v7278_v3 = vpop.permute.xlu1 %7277  ;;  %v6955_v30 = vunpack.i.h.bf16 %v10214_v33  ;;  %v6959_v2 = vunpack.i.l.bf16 %v10218_v31  ;;  %v3376_v52 = vld [vmem:[#allocation2 + $0x11d] sm:$0xff] }
 0x3d2   : > { %v7275_v1 = vunpack.i.h.bf16 %v7273_v48  ;;  %v7274_v34 = vunpack.i.l.bf16 %v7273_v48  ;;  %v7280_v37 = vunpack.i.h.bf16 %v7278_v3  ;;  %v7279_v24 = vunpack.i.l.bf16 %v7278_v3 }
 0x3d3   : > { %7562 = vrot.lane.b32.xlu0 %v10480_v13, %s7922_s15  ;;  %v4994_v47 = vpack.c.bf16 %v4957_v22, %v4956_v46  ;;  %v3291_v13 = vld [vmem:[#allocation2 + $0x10b] sm:$0xff]  ;;  %v7110_v63 = vunpack.i.h.bf16 %v10305_v19  ;;  %v7109_v33 = vunpack.i.l.bf16 %v10305_v19  ;;  %v3145_v22 = vld [vmem:[#allocation2 + $0x58] sm:$0xff] }
 0x3d4   : > { %v4795_v12 = vsel %vm2003_vm5, %v4754_v16, %v7275_v1  ;;  %v4794_v10 = vsel %vm2003_vm5, %v4753_v8, %v7274_v34  ;;  %7567 = vrot.lane.b32.xlu1 %v10523_v15, %s7923_s16  ;;  %v7586_v20 = vpack.i.bf16 %v3291_v13, %v3290_v0  ;;  %v3144_v46 = vld [vmem:[#allocation2 + $0x50] sm:$0xff]  ;;  %v4674_v19 = vsel %vm1877_vm0, %v3145_v22, %v6959_v2  ;;  %v3147_v22 = vld [vmem:[#allocation2 + $0x68] sm:$0xff] }
 0x3d5   : > { %6027 = vmatmul.mubr.msk.bf16.gmra.mrb[12].mxu1 %vm2270_vm10, %v4994_v47  ;;  %v7283_v45 = vpop.permute.xlu0 %7282  ;;  %v7288_v38 = vpop.permute.xlu1 %7287  ;;  %v4836_v17 = vsel %vm2045_vm6, %v4795_v12, %v7280_v37  ;;  %v4835_v59 = vsel %vm2045_vm6, %v4794_v10, %v7279_v24  ;;  %v4673_v1 = vsel %vm1877_vm0, %v3144_v46, %v6955_v30  ;;  %v3333_v8 = vld [vmem:[#allocation2 + $0x114] sm:$0xff]  ;;  %v4715_v37 = vsel %vm1919_vm3, %v4674_v19, %v7004_v35 }
 0x3d6   : > { %v7285_v60 = vunpack.i.h.bf16 %v7283_v45  ;;  %v7284_v39 = vunpack.i.l.bf16 %v7283_v45  ;;  %6030 = vmatprep.mubr.msk.bf16.mxu1 %vm7925_vm2, %v11394_v23  ;;  %v7290_v55 = vunpack.i.h.bf16 %v7288_v38  ;;  %v7289_v11 = vunpack.i.l.bf16 %v7288_v38  ;;  %v3375_v13 = vld [vmem:[#allocation2 + $0x115] sm:$0xff] }
 0x3d7   : > { %7572 = vrot.lane.b32.xlu0 %v7571_v26, %s7924_s17  ;;  %v4714_v24 = vsel %vm1919_vm3, %v4673_v1, %v7000_v54  ;;  %v10566_v7 = vpack.i.bf16 %v3334_v43, %v3333_v8  ;;  %v4756_v10 = vsel %vm1961_vm4, %v4715_v37, %v7110_v63  ;;  %v3417_v26 = vld [vmem:[#allocation2 + $0x11e] sm:$0xff]  ;;  %v3416_v30 = vld [vmem:[#allocation2 + $0x116] sm:$0xff]  ;;  %v6964_v2 = vunpack.i.l.bf16 %v10220_v58 }
 0x3d8   : > { %v4876_v42 = vsel %vm2087_vm7, %v4835_v59, %v7284_v39  ;;  %v4877_v32 = vsel %vm2087_vm7, %v4836_v17, %v7285_v60  ;;  %7577 = vrot.lane.b32.xlu1 %v7576_v9, %s7926_s30  ;;  %v4755_v62 = vsel %vm1961_vm4, %v4714_v24, %v7109_v33  ;;  %v6960_v17 = vunpack.i.h.bf16 %v10218_v31  ;;  %v3293_v35 = vld [vmem:[#allocation2 + $0x11b] sm:$0xff] }
 0x3d9   : > { %v7293_v36 = vpop.permute.xlu0 %7292  ;;  %v7298_v49 = vpop.permute.xlu1 %7297  ;;  %v4917_v48 = vsel %vm2129_vm8, %v4876_v42, %v7289_v11  ;;  %v4918_v3 = vsel %vm2129_vm8, %v4877_v32, %v7290_v55  ;;  %v7601_v11 = vpack.i.bf16 %v3376_v52, %v3375_v13  ;;  %v7009_v42 = vunpack.i.l.bf16 %v10252_v41  ;;  %v3146_v63 = vld [vmem:[#allocation2 + $0x60] sm:$0xff] }
 0x3da   : > { %v7295_v57 = vunpack.i.h.bf16 %v7293_v36  ;;  %v7294_v18 = vunpack.i.l.bf16 %v7293_v36  ;;  %v7300_v6 = vunpack.i.h.bf16 %v7298_v49  ;;  %v7299_v16 = vunpack.i.l.bf16 %v7298_v49 }
 0x3db   : > { %7582 = vrot.lane.b32.xlu0 %v11580_v25, %s7920_s13  ;;  %v7606_v0 = vpack.i.bf16 %v3417_v26, %v3416_v30  ;;  %v7115_v33 = vunpack.i.h.bf16 %v10326_v4  ;;  %v4675_v46 = vsel %vm1877_vm0, %v3146_v63, %v6960_v17  ;;  %v6965_v30 = vunpack.i.h.bf16 %v10220_v58 }
 0x3dc   : > { %v4958_v34 = vsel %vm2171_vm9, %v4917_v48, %v7294_v18  ;;  %v4959_v5 = vsel %vm2171_vm9, %v4918_v3, %v7295_v57  ;;  %7587 = vrot.lane.b32.xlu1 %v7586_v20, %s7921_s14  ;;  %v4797_v56 = vsel %vm2003_vm5, %v4756_v10, %v7300_v6  ;;  %v4796_v60 = vsel %vm2003_vm5, %v4755_v62, %v7299_v16  ;;  %v3336_v62 = vld [vmem:[#allocation2 + $0x12c] sm:$0xff] }
 0x3dd   : > { %v4995_v47 = vpack.c.bf16 %v4959_v5, %v4958_v34  ;;  %v7303_v27 = vpop.permute.xlu0 %7302  ;;  %v7308_v12 = vpop.permute.xlu1 %7307  ;;  %v7114_v57 = vunpack.i.l.bf16 %v10326_v4  ;;  %v4676_v16 = vsel %vm1877_vm0, %v3147_v22, %v6964_v2  ;;  %v11581_v10 = vpack.i.bf16 %v10133_v21, %v10131_v14  ;;  %v3378_v14 = vld [vmem:[#allocation2 + $0x12d] sm:$0xff] }
 0x3de   : > { %v7305_v45 = vunpack.i.h.bf16 %v7303_v27  ;;  %v7304_v38 = vunpack.i.l.bf16 %v7303_v27  ;;  %v7310_v39 = vunpack.i.h.bf16 %v7308_v12  ;;  %v7309_v9 = vunpack.i.l.bf16 %v7308_v12  ;;  %v3419_v21 = vld [vmem:[#allocation2 + $0x12e] sm:$0xff] }
 0x3df   : > { %7592 = vrot.lane.b32.xlu0 %v10523_v15, %s7922_s15  ;;  %6031 = vmatmul.mubr.msk.bf16.gmra.mrb[16].mxu1 %vm2270_vm10, %v4995_v47  ;;  %v7005_v15 = vunpack.i.h.bf16 %v10240_v61  ;;  %v3292_v61 = vld [vmem:[#allocation2 + $0x113] sm:$0xff]  ;;  %v4717_v5 = vsel %vm1919_vm3, %v4676_v16, %v7009_v42  ;;  %v6974_v2 = vunpack.i.l.bf16 %v10224_v50  ;;  %v7120_v58 = vunpack.i.h.bf16 %v10311_v28  ;;  %v3294_v16 = vld [vmem:[#allocation2 + $0x123] sm:$0xff] }
 0x3e0   : > { %v4837_v59 = vsel %vm2045_vm6, %v4796_v60, %v7304_v38  ;;  %v4838_v55 = vsel %vm2045_vm6, %v4797_v56, %v7305_v45  ;;  %7597 = vrot.lane.b32.xlu1 %v10566_v7, %s7923_s16  ;;  %6034 = vmatprep.mubr.msk.bf16.mxu1 %vm7925_vm2, %v11394_v23  ;;  %v7616_v6 = vpack.i.bf16 %v3293_v35, %v3292_v61  ;;  %v3335_v60 = vld [vmem:[#allocation2 + $0x124] sm:$0xff]  ;;  %v7019_v35 = vunpack.i.l.bf16 %v10254_v51 }
 0x3e1   : > { %v7313_v32 = vpop.permute.xlu0 %7312  ;;  %v7318_v31 = vpop.permute.xlu1 %7317  ;;  %v4878_v18 = vsel %vm2087_vm7, %v4837_v59, %v7309_v9  ;;  %v4879_v43 = vsel %vm2087_vm7, %v4838_v55, %v7310_v39  ;;  %v4716_v4 = vsel %vm1919_vm3, %v4675_v46, %v7005_v15  ;;  %v4758_v47 = vsel %vm1961_vm4, %v4717_v5, %v7115_v33 }
 0x3e2   : > { %v7315_v54 = vunpack.i.h.bf16 %v7313_v32  ;;  %v7314_v36 = vunpack.i.l.bf16 %v7313_v32  ;;  %v7320_v49 = vunpack.i.h.bf16 %v7318_v31  ;;  %v7319_v20 = vunpack.i.l.bf16 %v7318_v31  ;;  %v3377_v32 = vld [vmem:[#allocation2 + $0x125] sm:$0xff] }
 0x3e3   : > { %7602 = vrot.lane.b32.xlu0 %v7601_v11, %s7924_s17  ;;  %v4757_v27 = vsel %vm1961_vm4, %v4716_v4, %v7114_v57  ;;  %v10611_v13 = vpack.i.bf16 %v3336_v62, %v3335_v60  ;;  %v3418_v31 = vld [vmem:[#allocation2 + $0x126] sm:$0xff]  ;;  %v3337_v60 = vld [vmem:[#allocation2 + $0x134] sm:$0xff] }
 0x3e4   : > { %v4919_v48 = vsel %vm2129_vm8, %v4878_v18, %v7314_v36  ;;  %v4920_v3 = vsel %vm2129_vm8, %v4879_v43, %v7315_v54  ;;  %7607 = vrot.lane.b32.xlu1 %v7606_v0, %s7926_s30  ;;  %v7010_v0 = vunpack.i.h.bf16 %v10252_v41  ;;  %v3295_v57 = vld [vmem:[#allocation2 + $0x12b] sm:$0xff]  ;;  %v3149_v43 = vld [vmem:[#allocation2 + $0x78] sm:$0xff] }
 0x3e5   : > { %v4960_v25 = vsel %vm2171_vm9, %v4919_v48, %v7319_v20  ;;  %v4961_v1 = vsel %vm2171_vm9, %v4920_v3, %v7320_v49  ;;  %v7323_v19 = vpop.permute.xlu0 %7322  ;;  %v7328_v34 = vpop.permute.xlu1 %7327  ;;  %v7636_v49 = vpack.i.bf16 %v3419_v21, %v3418_v31  ;;  %v7119_v20 = vunpack.i.l.bf16 %v10311_v28  ;;  %v3148_v18 = vld [vmem:[#allocation2 + $0x70] sm:$0xff] }
 0x3e6   : > { %v4996_v8 = vpack.c.bf16 %v4961_v1, %v4960_v25  ;;  %v7325_v37 = vunpack.i.h.bf16 %v7323_v19  ;;  %v7324_v24 = vunpack.i.l.bf16 %v7323_v19  ;;  %v7330_v12 = vunpack.i.h.bf16 %v7328_v34 }
 0x3e7   : > { %v7329_v52 = vunpack.i.l.bf16 %v7328_v34  ;;  %7612 = vrot.lane.b32.xlu0 %v11581_v10, %s7920_s13  ;;  %v4677_v48 = vsel %vm1877_vm0, %v3148_v18, %v6965_v30  ;;  %v4678_v3 = vsel %vm1877_vm0, %v3149_v43, %v6974_v2  ;;  %v7646_v5 = vpack.i.bf16 %v3295_v57, %v3294_v16 }
 0x3e8   : > { %v4799_v45 = vsel %vm2003_vm5, %v4758_v47, %v7325_v37  ;;  %v4798_v38 = vsel %vm2003_vm5, %v4757_v27, %v7324_v24  ;;  %7617 = vrot.lane.b32.xlu1 %v7616_v6, %s7921_s14  ;;  %6035 = vmatmul.mubr.msk.bf16.gmra.mrb[20].mxu1 %vm2270_vm10, %v4996_v8  ;;  %v4718_v4 = vsel %vm1919_vm3, %v4677_v48, %v7010_v0  ;;  %v3338_v27 = vld [vmem:[#allocation2 + $0x13c] sm:$0xff] }
 0x3e9   : > { %v7333_v26 = vpop.permute.xlu0 %7332  ;;  %v7338_v56 = vpop.permute.xlu1 %7337  ;;  %6038 = vmatprep.mubr.msk.bf16.mxu1 %vm7925_vm2, %v11394_v23  ;;  %v4840_v17 = vsel %vm2045_vm6, %v4799_v45, %v7330_v12  ;;  %v4839_v59 = vsel %vm2045_vm6, %v4798_v38, %v7329_v52  ;;  %v4719_v25 = vsel %vm1919_vm3, %v4678_v3, %v7019_v35  ;;  %v4759_v37 = vsel %vm1961_vm4, %v4718_v4, %v7119_v20  ;;  %v11582_v45 = vld [vmem:[#allocation78_spill] sm:$0xff]  ;;  %v3379_v35 = vld [vmem:[#allocation2 + $0x135] sm:$0xff] }
 0x3ea   : > { %v7335_v39 = vunpack.i.h.bf16 %v7333_v26  ;;  %v7334_v9 = vunpack.i.l.bf16 %v7333_v26  ;;  %v7340_v55 = vunpack.i.h.bf16 %v7338_v56  ;;  %v7339_v11 = vunpack.i.l.bf16 %v7338_v56  ;;  %v3151_v20 = vld [vmem:[#allocation2 + $0x88] sm:$0xff] }
 0x3eb   : > { %7622 = vrot.lane.b32.xlu0 %v10566_v7, %s7922_s15  ;;  %v7631_v7 = vpack.i.bf16 %v3378_v14, %v3377_v32  ;;  %v4760_v8 = vsel %vm1961_vm4, %v4719_v25, %v7120_v58  ;;  %v11583_v38 = vpack.i.bf16 %v10161_v44, %v11582_v45  ;;  %v10653_v44 = vpack.i.bf16 %v3338_v27, %v3337_v60  ;;  %v11585_v32 = vld [vmem:[#allocation95_spill] sm:$0xff] }
 0x3ec   : > { %v4880_v15 = vsel %vm2087_vm7, %v4839_v59, %v7334_v9  ;;  %v4881_v42 = vsel %vm2087_vm7, %v4840_v17, %v7335_v39  ;;  %7627 = vrot.lane.b32.xlu1 %v10611_v13, %s7923_s16  ;;  %v6975_v39 = vunpack.i.h.bf16 %v10224_v50  ;;  %v11584_v9 = vld [vmem:[#allocation30_spill] sm:$0xff]  ;;  %v3380_v59 = vld [vmem:[#allocation2 + $0x13d] sm:$0xff]  ;;  %v7029_v31 = vunpack.i.l.bf16 %v11585_v32  ;;  %v11589_v60 = vld [vmem:[#allocation47_spill] sm:$0xff] }
 0x3ed   : > { %v7343_v54 = vpop.permute.xlu0 %7342  ;;  %v7348_v36 = vpop.permute.xlu1 %7347  ;;  %v4921_v61 = vsel %vm2129_vm8, %v4880_v15, %v7339_v11  ;;  %v4922_v46 = vsel %vm2129_vm8, %v4881_v42, %v7340_v55  ;;  %v6984_v14 = vunpack.i.l.bf16 %v11584_v9  ;;  %v3421_v15 = vld [vmem:[#allocation2 + $0x13e] sm:$0xff]  ;;  %v7020_v42 = vunpack.i.h.bf16 %v10254_v51  ;;  %v3420_v51 = vld [vmem:[#allocation2 + $0x136] sm:$0xff] }
 0x3ee   : > { %v7345_v63 = vunpack.i.h.bf16 %v7343_v54  ;;  %v7344_v33 = vunpack.i.l.bf16 %v7343_v54  ;;  %v7350_v41 = vunpack.i.h.bf16 %v7348_v36  ;;  %v7349_v22 = vunpack.i.l.bf16 %v7348_v36  ;;  %v3150_v54 = vld [vmem:[#allocation2 + $0x80] sm:$0xff] }
 0x3ef   : > { %7632 = vrot.lane.b32.xlu0 %v7631_v7, %s7924_s17  ;;  %v4679_v58 = vsel %vm1877_vm0, %v3150_v54, %v6975_v39  ;;  %v7666_v18 = vpack.i.bf16 %v3421_v15, %v3420_v51  ;;  %v4680_v43 = vsel %vm1877_vm0, %v3151_v20, %v6984_v14  ;;  %v7014_v39 = vunpack.i.l.bf16 %v11589_v60  ;;  %v3423_v15 = vld [vmem:[#allocation2 + $0x14e] sm:$0xff]  ;;  %v3422_v51 = vld [vmem:[#allocation2 + $0x146] sm:$0xff] }
 0x3f0   : > { %v4962_v6 = vsel %vm2171_vm9, %v4921_v61, %v7344_v33  ;;  %v4963_v28 = vsel %vm2171_vm9, %v4922_v46, %v7345_v63  ;;  %7637 = vrot.lane.b32.xlu1 %v7636_v49, %s7926_s30  ;;  %v4801_v12 = vsel %vm2003_vm5, %v4760_v8, %v7350_v41  ;;  %v4800_v52 = vsel %vm2003_vm5, %v4759_v37, %v7349_v22  ;;  %v3340_v37 = vld [vmem:[#allocation2 + $0x14c] sm:$0xff] }
 0x3f1   : > { %v4997_v1 = vpack.c.bf16 %v4963_v28, %v4962_v6  ;;  %v7353_v19 = vpop.permute.xlu0 %7352  ;;  %v7358_v34 = vpop.permute.xlu1 %7357  ;;  %v7661_v49 = vpack.i.bf16 %v3380_v59, %v3379_v35  ;;  %v4720_v22 = vsel %vm1919_vm3, %v4679_v58, %v7020_v42  ;;  %v4721_v48 = vsel %vm1919_vm3, %v4680_v43, %v7029_v31  ;;  %v3297_v28 = vld [vmem:[#allocation2 + $0x13b] sm:$0xff]  ;;  %v3382_v59 = vld [vmem:[#allocation2 + $0x14d] sm:$0xff]  ;;  %v3381_v35 = vld [vmem:[#allocation2 + $0x145] sm:$0xff] }
 0x3f2   : > { %v7355_v24 = vunpack.i.h.bf16 %v7353_v19  ;;  %v7354_v47 = vunpack.i.l.bf16 %v7353_v19  ;;  %v7360_v10 = vunpack.i.h.bf16 %v7358_v34  ;;  %v7359_v62 = vunpack.i.l.bf16 %v7358_v34  ;;  %v3296_v19 = vld [vmem:[#allocation2 + $0x133] sm:$0xff] }
 0x3f3   : > { %7642 = vrot.lane.b32.xlu0 %v11583_v38, %s7920_s13  ;;  %6039 = vmatmul.mubr.msk.bf16.gmra.mrb[24].mxu1 %vm2270_vm10, %v4997_v1  ;;  %v7676_v8 = vpack.i.bf16 %v3297_v28, %v3296_v19  ;;  %v11590_v42 = vld [vmem:[#allocation80_spill] sm:$0xff]  ;;  %v3152_v54 = vld [vmem:[#allocation2 + $0x90] sm:$0xff] }
 0x3f4   : > { %v4841_v26 = vsel %vm2045_vm6, %v4800_v52, %v7354_v47  ;;  %v4842_v56 = vsel %vm2045_vm6, %v4801_v12, %v7355_v24  ;;  %7647 = vrot.lane.b32.xlu1 %v7646_v5, %s7921_s14  ;;  %6042 = vmatprep.mubr.msk.bf16.mxu1 %vm7925_vm2, %v11394_v23  ;;  %v11586_v52 = vld [vmem:[#allocation15_spill] sm:$0xff]  ;;  %v7034_v31 = vunpack.i.l.bf16 %v11590_v42  ;;  %v3153_v58 = vld [vmem:[#allocation2 + $0x98] sm:$0xff] }
 0x3f5   : > { %v7363_v21 = vpop.permute.xlu0 %7362  ;;  %v7368_v17 = vpop.permute.xlu1 %7367  ;;  %v4882_v0 = vsel %vm2087_vm7, %v4841_v26, %v7359_v62  ;;  %v4883_v50 = vsel %vm2087_vm7, %v4842_v56, %v7360_v10  ;;  %v11587_v10 = vld [vmem:[#allocation96_spill] sm:$0xff]  ;;  %v3339_v26 = vld [vmem:[#allocation2 + $0x144] sm:$0xff]  ;;  %v6985_v56 = vunpack.i.h.bf16 %v11584_v9 }
 0x3f6   : > { %v7365_v55 = vunpack.i.h.bf16 %v7363_v21  ;;  %v7364_v11 = vunpack.i.l.bf16 %v7363_v21  ;;  %v7370_v30 = vunpack.i.h.bf16 %v7368_v17  ;;  %v7369_v2 = vunpack.i.l.bf16 %v7368_v17 }
 0x3f7   : > { %7652 = vrot.lane.b32.xlu0 %v10611_v13, %s7922_s15  ;;  %v11588_v62 = vpack.i.bf16 %v11586_v52, %v11587_v10  ;;  %v10689_v17 = vpack.i.bf16 %v3340_v37, %v3339_v26  ;;  %v11591_v26 = vld [vmem:[#allocation62_spill] sm:$0xff] }
 0x3f8   : > { %v4923_v36 = vsel %vm2129_vm8, %v4882_v0, %v7364_v11  ;;  %v4924_v7 = vsel %vm2129_vm8, %v4883_v50, %v7365_v55  ;;  %7657 = vrot.lane.b32.xlu1 %v10653_v44, %s7923_s16  ;;  %v7030_v0 = vunpack.i.h.bf16 %v11585_v32  ;;  %v4681_v32 = vsel %vm1877_vm0, %v3152_v54, %v6985_v56 }
 0x3f9   : > { %v4964_v63 = vsel %vm2171_vm9, %v4923_v36, %v7369_v2  ;;  %v4965_v33 = vsel %vm2171_vm9, %v4924_v7, %v7370_v30  ;;  %v7373_v57 = vpop.permute.xlu0 %7372  ;;  %v7378_v13 = vpop.permute.xlu1 %7377  ;;  %v7024_v56 = vunpack.i.l.bf16 %v11591_v26 }
 0x3fa   : > { %v4998_v61 = vpack.c.bf16 %v4965_v33, %v4964_v63  ;;  %v7375_v46 = vunpack.i.h.bf16 %v7373_v57  ;;  %v7374_v41 = vunpack.i.l.bf16 %v7373_v57  ;;  %v7380_v3 = vunpack.i.h.bf16 %v7378_v13 }
 0x3fb   : > { %v7379_v6 = vunpack.i.l.bf16 %v7378_v13  ;;  %7662 = vrot.lane.b32.xlu0 %v7661_v49, %s7924_s17  ;;  %v7691_v49 = vpack.i.bf16 %v3382_v59, %v3381_v35  ;;  %v7696_v57 = vpack.i.bf16 %v3423_v15, %v3422_v51  ;;  %v4682_v13 = vsel %vm1877_vm0, %v3153_v58, %v7014_v39  ;;  %v3383_v59 = vld [vmem:[#allocation2 + $0x155] sm:$0xff] }
 0x3fc   : > { %v4762_v16 = vsel %vm1961_vm4, %v4721_v48, %v7375_v46  ;;  %v4761_v4 = vsel %vm1961_vm4, %v4720_v22, %v7374_v41  ;;  %7667 = vrot.lane.b32.xlu1 %v7666_v18, %s7926_s30  ;;  %6043 = vmatmul.mubr.msk.bf16.gmra.mrb[28].mxu1 %vm2270_vm10, %v4998_v61  ;;  %v3258_v46 = vld [vmem:[#allocation2 + $0x14a] sm:$0xff]  ;;  %v4723_v41 = vsel %vm1919_vm3, %v4682_v13, %v7034_v31  ;;  %v3424_v31 = vld [vmem:[#allocation2 + $0x156] sm:$0xff] }
 0x3fd   : > { %v7383_v25 = vpop.permute.xlu0 %7382  ;;  %v7388_v1 = vpop.permute.xlu1 %7387  ;;  %6046 = vmatprep.mubr.msk.bf16.mxu1 %vm7925_vm2, %v11394_v23  ;;  %v4803_v24 = vsel %vm2003_vm5, %v4762_v16, %v7380_v3  ;;  %v4802_v47 = vsel %vm2003_vm5, %v4761_v4, %v7379_v6  ;;  %v4722_v22 = vsel %vm1919_vm3, %v4681_v32, %v7030_v0  ;;  %v3299_v6 = vld [vmem:[#allocation2 + $0x14b] sm:$0xff]  ;;  %v3257_v4 = vld [vmem:[#allocation2 + $0x142] sm:$0xff] }
 0x3fe   : > { %v7385_v34 = vunpack.i.h.bf16 %v7383_v25  ;;  %v7384_v5 = vunpack.i.l.bf16 %v7383_v25  ;;  %v7390_v27 = vunpack.i.h.bf16 %v7388_v1  ;;  %v7389_v12 = vunpack.i.l.bf16 %v7388_v1  ;;  %v3425_v0 = vld [vmem:[#allocation2 + $0x15e] sm:$0xff] }
 0x3ff   : > { %7672 = vrot.lane.b32.xlu0 %v11588_v62, %s7920_s13  ;;  %v7701_v19 = vpack.i.bf16 %v3258_v46, %v3257_v4  ;;  %v3259_v4 = vld [vmem:[#allocation2 + $0x152] sm:$0xf] }
 0x400   : > { %v4843_v45 = vsel %vm2045_vm6, %v4802_v47, %v7384_v5  ;;  %v4844_v38 = vsel %vm2045_vm6, %v4803_v24, %v7385_v34  ;;  %7677 = vrot.lane.b32.xlu1 %v7676_v8, %s7921_s14  ;;  %v3298_v34 = vld [vmem:[#allocation2 + $0x143] sm:$0xff]  ;;  %v3342_v24 = vld [vmem:[#allocation2 + $0x154] sm:$0xff] }
 0x401   : > { %v7393_v14 = vpop.permute.xlu0 %7392  ;;  %v7398_v21 = vpop.permute.xlu1 %7397  ;;  %v4884_v50 = vsel %vm2087_vm7, %v4843_v45, %v7389_v12  ;;  %v4885_v9 = vsel %vm2087_vm7, %v4844_v38, %v7390_v27  ;;  %v7706_v37 = vpack.i.bf16 %v3299_v6, %v3298_v34  ;;  %v3343_v47 = vld [vmem:[#allocation2 + $0x15c] sm:$0xff]  ;;  %v7015_v38 = vunpack.i.h.bf16 %v11589_v60 }
 0x402   : > { %v7395_v55 = vunpack.i.h.bf16 %v7393_v14  ;;  %v7394_v11 = vunpack.i.l.bf16 %v7393_v14  ;;  %v7400_v30 = vunpack.i.h.bf16 %v7398_v21  ;;  %v7399_v2 = vunpack.i.l.bf16 %v7398_v21 }
 0x403   : > { %7682 = vrot.lane.b32.xlu0 %v10653_v44, %s7922_s15  ;;  %v7716_v21 = vpack.i.bf16 %v3343_v47, %v3342_v24  ;;  %v7025_v24 = vunpack.i.h.bf16 %v11591_v26  ;;  %v11593_v47 = vld [vmem:[#allocation14_spill] sm:$0xff]  ;;  %v3156_v26 = vld [vmem:[#allocation2 + $0xb0] sm:$0xff] }
 0x404   : > { %v4925_v36 = vsel %vm2129_vm8, %v4884_v50, %v7394_v11  ;;  %v4926_v7 = vsel %vm2129_vm8, %v4885_v9, %v7395_v55  ;;  %7687 = vrot.lane.b32.xlu1 %v10689_v17, %s7923_s16  ;;  %v3384_v55 = vld [vmem:[#allocation2 + $0x15d] sm:$0xff]  ;;  %v7035_v50 = vunpack.i.h.bf16 %v11590_v42  ;;  %v3155_v42 = vld [vmem:[#allocation2 + $0xa8] sm:$0xff] }
 0x405   : > { %v4966_v20 = vsel %vm2171_vm9, %v4925_v36, %v7399_v2  ;;  %v4967_v63 = vsel %vm2171_vm9, %v4926_v7, %v7400_v30  ;;  %v7403_v33 = vpop.permute.xlu0 %7402  ;;  %v7408_v44 = vpop.permute.xlu1 %7407  ;;  %v11592_v9 = vld [vmem:[#allocation32_spill] sm:$0xff]  ;;  %v3154_v36 = vld [vmem:[#allocation2 + $0xa0] sm:$0xff]  ;;  %v7721_v51 = vpack.i.bf16 %v3384_v55, %v3383_v59 }
 0x406   : > { %v4999_v18 = vpack.c.bf16 %v4967_v63, %v4966_v20  ;;  %v7405_v43 = vunpack.i.h.bf16 %v7403_v33  ;;  %v7404_v61 = vunpack.i.l.bf16 %v7403_v33  ;;  %v7410_v48 = vunpack.i.h.bf16 %v7408_v44 }
 0x407   : > { %v7409_v3 = vunpack.i.l.bf16 %v7408_v44  ;;  %7692 = vrot.lane.b32.xlu0 %v7691_v49, %s7924_s17  ;;  %v7039_v35 = vunpack.i.l.bf16 %v11592_v9  ;;  %v4683_v32 = vsel %vm1877_vm0, %v3154_v36, %v7015_v38  ;;  %v7726_v44 = vpack.i.bf16 %v3425_v0, %v3424_v31  ;;  %v3157_v0 = vld [vmem:[#allocation2 + $0xb8] sm:$0xff] }
 0x408   : > { %v4764_v28 = vsel %vm1961_vm4, %v4723_v41, %v7405_v43  ;;  %v4763_v16 = vsel %vm1961_vm4, %v4722_v22, %v7404_v61  ;;  %7697 = vrot.lane.b32.xlu1 %v7696_v57, %s7926_s30  ;;  %6047 = vmatmul.mubr.msk.bf16.gmra.mrb[32].mxu1 %vm2270_vm10, %v4999_v18  ;;  %v4724_v43 = vsel %vm1919_vm3, %v4683_v32, %v7035_v50 }
 0x409   : > { %v7413_v25 = vpop.permute.xlu0 %7412  ;;  %v7418_v1 = vpop.permute.xlu1 %7417  ;;  %6050 = vmatprep.mubr.msk.bf16.mxu1 %vm7925_vm2, %v11394_v23  ;;  %v4805_v27 = vsel %vm2003_vm5, %v4764_v28, %v7410_v48  ;;  %v4804_v12 = vsel %vm2003_vm5, %v4763_v16, %v7409_v3  ;;  %v4685_v31 = vsel %vm1877_vm0, %v3156_v26, %v7025_v24 }
 0x40a   : > { %v7415_v5 = vunpack.i.h.bf16 %v7413_v25  ;;  %v7414_v8 = vunpack.i.l.bf16 %v7413_v25  ;;  %v7420_v52 = vunpack.i.h.bf16 %v7418_v1  ;;  %v7419_v10 = vunpack.i.l.bf16 %v7418_v1 }
 0x40b   : > { %7702 = vrot.lane.b32.xlu0 %v7701_v19, %s7920_s13 }
 0x40c   : > { %v4845_v62 = vsel %vm2045_vm6, %v4804_v12, %v7414_v8  ;;  %v4846_v45 = vsel %vm2045_vm6, %v4805_v27, %v7415_v5  ;;  %7707 = vrot.lane.b32.xlu1 %v7706_v37, %s7921_s14  ;;  %v3300_v5 = vld [vmem:[#allocation2 + $0x153] sm:$0xf]  ;;  %v7044_v27 = vunpack.i.l.bf16 %v11593_v47 }
 0x40d   : > { %v7423_v39 = vpop.permute.xlu0 %7422  ;;  %v7428_v14 = vpop.permute.xlu1 %7427  ;;  %v4886_v54 = vsel %vm2087_vm7, %v4845_v62, %v7419_v10  ;;  %v4887_v60 = vsel %vm2087_vm7, %v4846_v45, %v7420_v52  ;;  %v3344_v10 = vld [vmem:[#allocation2 + $0x164] sm:$0xf] }
 0x40e   : > { %v7425_v11 = vunpack.i.h.bf16 %v7423_v39  ;;  %v7424_v30 = vunpack.i.l.bf16 %v7423_v39  ;;  %v7430_v2 = vunpack.i.h.bf16 %v7428_v14  ;;  %v7429_v15 = vunpack.i.l.bf16 %v7428_v14  ;;  %v3341_v39 = vld [vmem:[#allocation2 + $0x154] sm:$0xf] }
 0x40f   : > { %7712 = vrot.lane.b32.xlu0 %v10689_v17, %s7922_s15  ;;  %v4684_v17 = vsel %vm1877_vm0, %v3155_v42, %v7024_v56  ;;  %v7040_v14 = vunpack.i.h.bf16 %v11592_v9  ;;  %v4686_v36 = vsel %vm1877_vm0, %v3157_v0, %v7044_v27  ;;  %v3158_v27 = vld [vmem:[#allocation2 + $0xc0] sm:$0xff] }
 0x410   : > { %v4927_v7 = vsel %vm2129_vm8, %v4886_v54, %v7424_v30  ;;  %v4928_v49 = vsel %vm2129_vm8, %v4887_v60, %v7425_v11  ;;  %7717 = vrot.lane.b32.xlu1 %v7716_v21, %s7923_s16  ;;  %v4725_v61 = vsel %vm1919_vm3, %v4684_v17, %v7039_v35  ;;  %v11594_v21 = vld [vmem:[#allocation3_spill] sm:$0xff]  ;;  %v3426_v60 = vld [vmem:[#allocation2 + $0x166] sm:$0xf] }
 0x411   : > { %v4968_v58 = vsel %vm2171_vm9, %v4927_v7, %v7429_v15  ;;  %v4969_v20 = vsel %vm2171_vm9, %v4928_v49, %v7430_v2  ;;  %v7433_v63 = vpop.permute.xlu0 %7432  ;;  %v7438_v33 = vpop.permute.xlu1 %7437  ;;  %v7049_v59 = vunpack.i.l.bf16 %v11594_v21  ;;  %v3385_v15 = vld [vmem:[#allocation2 + $0x165] sm:$0xf]  ;;  %v4726_v32 = vsel %vm1919_vm3, %v4685_v31, %v7040_v14 }
 0x412   : > { %v5000_v57 = vpack.c.bf16 %v4969_v20, %v4968_v58  ;;  %v7435_v13 = vunpack.i.h.bf16 %v7433_v63  ;;  %v7434_v18 = vunpack.i.l.bf16 %v7433_v63  ;;  %v7440_v46 = vunpack.i.h.bf16 %v7438_v33 }
 0x413   : > { %v7439_v41 = vunpack.i.l.bf16 %v7438_v33  ;;  %7722 = vrot.lane.b32.xlu0 %v7721_v51, %s7924_s17  ;;  %v4727_v42 = vsel %vm1919_vm3, %v4686_v36, %v7049_v59 }
 0x414   : > { %v4766_v22 = vsel %vm1961_vm4, %v4725_v61, %v7435_v13  ;;  %v4765_v48 = vsel %vm1961_vm4, %v4724_v43, %v7434_v18  ;;  %7727 = vrot.lane.b32.xlu1 %v7726_v44, %s7926_s30  ;;  %6051 = vmatmul.mubr.msk.bf16.gmra.mrb[36].mxu1 %vm2270_vm10, %v5000_v57 }
 0x415   : > { %v7443_v3 = vpop.permute.xlu0 %7442  ;;  %v7448_v6 = vpop.permute.xlu1 %7447  ;;  %6054 = vmatprep.mubr.msk.bf16.mxu1 %vm7925_vm2, %v11394_v23  ;;  %v4807_v25 = vsel %vm2003_vm5, %v4766_v22, %v7440_v46  ;;  %v4806_v1 = vsel %vm2003_vm5, %v4765_v48, %v7439_v41  ;;  %v7045_v48 = vunpack.i.h.bf16 %v11593_v47 }
 0x416   : > { %v7445_v28 = vunpack.i.h.bf16 %v7443_v3  ;;  %v7444_v16 = vunpack.i.l.bf16 %v7443_v3  ;;  %v7450_v19 = vunpack.i.h.bf16 %v7448_v6  ;;  %v7449_v34 = vunpack.i.l.bf16 %v7448_v6  ;;  %v11595_v3 = vld [vmem:[#allocation46_spill] sm:$0xff] }
 0x417   : > { %3838 = vrot.lane.b32.xlu0 %v3259_v4, %s7920_s13  ;;  %v7054_v6 = vunpack.i.l.bf16 %v11595_v3 }
 0x418   : > { %v4847_v8 = vsel %vm2045_vm6, %v4806_v1, %v7444_v16  ;;  %v4848_v37 = vsel %vm2045_vm6, %v4807_v25, %v7445_v28  ;;  %4002 = vrot.lane.b32.xlu1 %v3300_v5, %s7921_s14  ;;  %v11596_v5 = vld [vmem:[#allocation64_spill] sm:$0xff] }
 0x419   : > { %v7453_v12 = vpop.permute.xlu0 %7452  ;;  %v7458_v52 = vpop.permute.xlu1 %7457  ;;  %v4888_v55 = vsel %vm2087_vm7, %v4847_v8, %v7449_v34  ;;  %v4889_v11 = vsel %vm2087_vm7, %v4848_v37, %v7450_v19  ;;  %v7050_v34 = vunpack.i.h.bf16 %v11594_v21  ;;  %v7059_v8 = vunpack.i.l.bf16 %v11596_v5 }
 0x41a   : > { %v7455_v62 = vunpack.i.h.bf16 %v7453_v12  ;;  %v7454_v45 = vunpack.i.l.bf16 %v7453_v12  ;;  %v7460_v38 = vunpack.i.h.bf16 %v7458_v52  ;;  %v7459_v56 = vunpack.i.l.bf16 %v7458_v52 }
 0x41b   : > { %4166 = vrot.lane.b32.xlu0 %v3341_v39, %s7922_s15  ;;  %v4687_v52 = vsel %vm1877_vm0, %v3158_v27, %v7045_v48  ;;  %s6099_s15 = smul.u32 328, %s11609_s28 }
 0x41c   : > { %v4929_v30 = vsel %vm2129_vm8, %v4888_v55, %v7454_v45  ;;  %v4930_v2 = vsel %vm2129_vm8, %v4889_v11, %v7455_v62  ;;  %4292 = vrot.lane.b32.xlu1 %v3344_v10, %s7923_s16  ;;  %v3159_v10 = vld [vmem:[#allocation2 + $0xc8] sm:$0xff]  ;;  %v4728_v55 = vsel %vm1919_vm3, %v4687_v52, %v7050_v34 }
 0x41d   : > { %v4970_v50 = vsel %vm2171_vm9, %v4929_v30, %v7459_v56  ;;  %v4971_v9 = vsel %vm2171_vm9, %v4930_v2, %v7460_v38  ;;  %v7463_v35 = vpop.permute.xlu0 %7462  ;;  %v7468_v54 = vpop.permute.xlu1 %7467  ;;  %v4688_v56 = vsel %vm1877_vm0, %v3159_v10, %v7054_v6 }
 0x41e   : > { %v5001_v7 = vpack.c.bf16 %v4971_v9, %v4970_v50  ;;  %v7465_v49 = vunpack.i.h.bf16 %v7463_v35  ;;  %v7464_v51 = vunpack.i.l.bf16 %v7463_v35  ;;  %v7470_v58 = vunpack.i.h.bf16 %v7468_v54 }
 0x41f   : > { %v7469_v20 = vunpack.i.l.bf16 %v7468_v54  ;;  %4456 = vrot.lane.b32.xlu0 %v3385_v15, %s7924_s17  ;;  %v4729_v11 = vsel %vm1919_vm3, %v4688_v56, %v7059_v8 }
 0x420   : > { %v4768_v63 = vsel %vm1961_vm4, %v4727_v42, %v7465_v49  ;;  %v4767_v33 = vsel %vm1961_vm4, %v4726_v32, %v7464_v51  ;;  %6055 = vmatmul.mubr.msk.bf16.gmra.mrb[40].mxu1 %vm2270_vm10, %v5001_v7  ;;  %4620 = vrot.lane.b32.xlu1 %v3426_v60, %s7926_s30  ;;  %v7055_v51 = vunpack.i.h.bf16 %v11595_v3  ;;  %v7060_v32 = vunpack.i.h.bf16 %v11596_v5  ;;  %v3161_v3 = vld [vmem:[#allocation2 + $0xd8] sm:$0xff]  ;;  %s11007_s30 = scalar_lea.vmem %s11216_s8, %s6099_s15 }
 0x421   : > { %v7473_v44 = vpop.permute.xlu0 %7472  ;;  %v7478_v17 = vpop.permute.xlu1 %7477  ;;  %6058 = vmatprep.mubr.msk.bf16.mxu1 %vm7925_vm2, %v11394_v23  ;;  %v4809_v18 = vsel %vm2003_vm5, %v4768_v63, %v7470_v58  ;;  %v4808_v43 = vsel %vm2003_vm5, %v4767_v33, %v7469_v20  ;;  %v11597_v58 = vld [vmem:[#allocation79_spill] sm:$0xff]  ;;  %v11598_v63 = vld [vmem:[#allocation98_spill] sm:$0xff] }
 0x422   : > { %v7475_v57 = vunpack.i.h.bf16 %v7473_v44  ;;  %v7474_v13 = vunpack.i.l.bf16 %v7473_v44  ;;  %v7480_v61 = vunpack.i.h.bf16 %v7478_v17  ;;  %v7479_v46 = vunpack.i.l.bf16 %v7478_v17 }
 0x423   : > { %v7084_v20 = vunpack.i.l.bf16 %v11597_v58  ;;  %v7089_v33 = vunpack.i.l.bf16 %v11598_v63 }
 0x424   : > { %v4849_v41 = vsel %vm2045_vm6, %v4808_v43, %v7474_v13  ;;  %v4850_v22 = vsel %vm2045_vm6, %v4809_v18, %v7475_v57 }
 0x425   : > { %v7483_v28 = vpop.permute.xlu0 %7482  ;;  %v7488_v16 = vpop.permute.xlu1 %7487  ;;  %v4890_v37 = vsel %vm2087_vm7, %v4849_v41, %v7479_v46  ;;  %v4891_v24 = vsel %vm2087_vm7, %v4850_v22, %v7480_v61  ;;  %v3160_v46 = vld [vmem:[#allocation2 + $0xd0] sm:$0xff] }
 0x426   : > { %v7485_v4 = vunpack.i.h.bf16 %v7483_v28  ;;  %v7484_v25 = vunpack.i.l.bf16 %v7483_v28  ;;  %v7490_v1 = vunpack.i.h.bf16 %v7488_v16  ;;  %v7489_v19 = vunpack.i.l.bf16 %v7488_v16 }
 0x427   : > { %v4689_v48 = vsel %vm1877_vm0, %v3160_v46, %v7055_v51 }
 0x428   : > { %v4931_v12 = vsel %vm2129_vm8, %v4890_v37, %v7484_v25  ;;  %v4932_v47 = vsel %vm2129_vm8, %v4891_v24, %v7485_v4  ;;  %v4690_v4 = vsel %vm1877_vm0, %v3161_v3, %v7084_v20  ;;  %v4730_v5 = vsel %vm1919_vm3, %v4689_v48, %v7060_v32  ;;  %v3163_v32 = vld [vmem:[#allocation2 + $0xe8] sm:$0xff] }
 0x429   : > { %v4972_v62 = vsel %vm2171_vm9, %v4931_v12, %v7489_v19  ;;  %v4973_v45 = vsel %vm2171_vm9, %v4932_v47, %v7490_v1  ;;  %v7493_v38 = vpop.permute.xlu0 %7492  ;;  %v4731_v8 = vsel %vm1919_vm3, %v4690_v4, %v7089_v33 }
 0x42a   : > { %v5002_v39 = vpack.c.bf16 %v4973_v45, %v4972_v62  ;;  %v7495_v14 = vunpack.i.h.bf16 %v7493_v38  ;;  %v7494_v21 = vunpack.i.l.bf16 %v7493_v38  ;;  %v7498_v59 = vpop.permute.xlu1 %7497 }
 0x42b   : > { %v7500_v26 = vunpack.i.h.bf16 %v7498_v59  ;;  %v7499_v30 = vunpack.i.l.bf16 %v7498_v59  ;;  %v7085_v59 = vunpack.i.h.bf16 %v11597_v58 }
 0x42c   : > { %v4770_v2 = vsel %vm1961_vm4, %v4729_v11, %v7495_v14  ;;  %v4769_v15 = vsel %vm1961_vm4, %v4728_v55, %v7494_v21  ;;  %6059 = vmatmul.mubr.msk.bf16.gmra.mrb[44].mxu1 %vm2270_vm10, %v5002_v39  ;;  %v7090_v55 = vunpack.i.h.bf16 %v11598_v63 }
 0x42d   : > { %v7503_v31 = vpop.permute.xlu0 %7502  ;;  %6062 = vmatprep.mubr.msk.bf16.mxu1 %vm7925_vm2, %v11394_v23  ;;  %v4811_v35 = vsel %vm2003_vm5, %v4770_v2, %v7500_v26  ;;  %v4810_v54 = vsel %vm2003_vm5, %v4769_v15, %v7499_v30  ;;  %v11599_v26 = vld [vmem:[#allocation4_spill] sm:$0xff]  ;;  %v11600_v2 = vld [vmem:[#allocation17_spill] sm:$0xff] }
 0x42e   : > { %v7505_v0 = vunpack.i.h.bf16 %v7503_v31  ;;  %v7504_v50 = vunpack.i.l.bf16 %v7503_v31  ;;  %v7508_v9 = vpop.permute.xlu1 %7507  ;;  %v7094_v30 = vunpack.i.l.bf16 %v11599_v26  ;;  %v7099_v15 = vunpack.i.l.bf16 %v11600_v2 }
 0x42f   : > { %v7510_v60 = vunpack.i.h.bf16 %v7508_v9  ;;  %v7509_v36 = vunpack.i.l.bf16 %v7508_v9 }
 0x430   : > { %v4851_v7 = vsel %vm2045_vm6, %v4810_v54, %v7504_v50  ;;  %v4852_v49 = vsel %vm2045_vm6, %v4811_v35, %v7505_v0  ;;  %v4692_v63 = vsel %vm1877_vm0, %v3163_v32, %v7094_v30 }
 0x431   : > { %v7513_v42 = vpop.permute.xlu0 %7512  ;;  %v4892_v13 = vsel %vm2087_vm7, %v4851_v7, %v7509_v36  ;;  %v4893_v18 = vsel %vm2087_vm7, %v4852_v49, %v7510_v60  ;;  %v3162_v36 = vld [vmem:[#allocation2 + $0xe0] sm:$0xff] }
 0x432   : > { %v7515_v44 = vunpack.i.h.bf16 %v7513_v42  ;;  %v7514_v17 = vunpack.i.l.bf16 %v7513_v42  ;;  %v7518_v57 = vpop.permute.xlu1 %7517  ;;  %v4691_v51 = vsel %vm1877_vm0, %v3162_v36, %v7085_v59 }
 0x433   : > { %v7520_v43 = vunpack.i.h.bf16 %v7518_v57  ;;  %v7519_v61 = vunpack.i.l.bf16 %v7518_v57 }
 0x434   : > { %v4933_v41 = vsel %vm2129_vm8, %v4892_v13, %v7514_v17  ;;  %v4934_v22 = vsel %vm2129_vm8, %v4893_v18, %v7515_v44  ;;  %v4732_v13 = vsel %vm1919_vm3, %v4691_v51, %v7090_v55  ;;  %v4733_v18 = vsel %vm1919_vm3, %v4692_v63, %v7099_v15  ;;  %v3165_v55 = vld [vmem:[#allocation2 + $0xf8] sm:$0xff] }
 0x435   : > { %v4974_v6 = vsel %vm2171_vm9, %v4933_v41, %v7519_v61  ;;  %v4975_v28 = vsel %vm2171_vm9, %v4934_v22, %v7520_v43  ;;  %v7523_v16 = vpop.permute.xlu0 %7522 }
 0x436   : > { %v5003_v25 = vpack.c.bf16 %v4975_v28, %v4974_v6  ;;  %v7525_v1 = vunpack.i.h.bf16 %v7523_v16  ;;  %v7524_v19 = vunpack.i.l.bf16 %v7523_v16  ;;  %v7528_v34 = vpop.permute.xlu1 %7527 }
 0x437   : > { %v7530_v37 = vunpack.i.h.bf16 %v7528_v34  ;;  %v7529_v24 = vunpack.i.l.bf16 %v7528_v34  ;;  %v7095_v34 = vunpack.i.h.bf16 %v11599_v26 }
 0x438   : > { %v4772_v27 = vsel %vm1961_vm4, %v4731_v8, %v7525_v1  ;;  %v4771_v12 = vsel %vm1961_vm4, %v4730_v5, %v7524_v19  ;;  %6063 = vmatmul.mubr.msk.bf16.gmra.mrb[48].mxu1 %vm2270_vm10, %v5003_v25  ;;  %v7100_v5 = vunpack.i.h.bf16 %v11600_v2 }
 0x439   : > { %v7533_v47 = vpop.permute.xlu0 %7532  ;;  %6066 = vmatprep.mubr.msk.bf16.mxu1 %vm7925_vm2, %v11394_v23  ;;  %v4813_v45 = vsel %vm2003_vm5, %v4772_v27, %v7530_v37  ;;  %v4812_v38 = vsel %vm2003_vm5, %v4771_v12, %v7529_v24  ;;  %v11601_v37 = vld [vmem:[#allocation31_spill] sm:$0xff]  ;;  %v11602_v27 = vld [vmem:[#allocation49_spill] sm:$0xff] }
 0x43a   : > { %v7535_v52 = vunpack.i.h.bf16 %v7533_v47  ;;  %v7534_v10 = vunpack.i.l.bf16 %v7533_v47  ;;  %v7538_v62 = vpop.permute.xlu1 %7537  ;;  %v7124_v24 = vunpack.i.l.bf16 %v11601_v37  ;;  %v7129_v12 = vunpack.i.l.bf16 %v11602_v27 }
 0x43b   : > { %v7540_v56 = vunpack.i.h.bf16 %v7538_v62  ;;  %v7539_v39 = vunpack.i.l.bf16 %v7538_v62 }
 0x43c   : > { %v4853_v14 = vsel %vm2045_vm6, %v4812_v38, %v7534_v10  ;;  %v4854_v21 = vsel %vm2045_vm6, %v4813_v45, %v7535_v52  ;;  %v4694_v2 = vsel %vm1877_vm0, %v3165_v55, %v7124_v24 }
 0x43d   : > { %v7543_v11 = vpop.permute.xlu0 %7542  ;;  %v4894_v9 = vsel %vm2087_vm7, %v4853_v14, %v7539_v39  ;;  %v4895_v35 = vsel %vm2087_vm7, %v4854_v21, %v7540_v56  ;;  %v3164_v39 = vld [vmem:[#allocation2 + $0xf0] sm:$0xff] }
 0x43e   : > { %v7545_v31 = vunpack.i.h.bf16 %v7543_v11  ;;  %v7544_v0 = vunpack.i.l.bf16 %v7543_v11  ;;  %v7548_v50 = vpop.permute.xlu1 %7547  ;;  %v4693_v59 = vsel %vm1877_vm0, %v3164_v39, %v7095_v34 }
 0x43f   : > { %v7550_v54 = vunpack.i.h.bf16 %v7548_v50  ;;  %v7549_v60 = vunpack.i.l.bf16 %v7548_v50 }
 0x440   : > { %v4935_v7 = vsel %vm2129_vm8, %v4894_v9, %v7544_v0  ;;  %v4936_v49 = vsel %vm2129_vm8, %v4895_v35, %v7545_v31  ;;  %v4734_v9 = vsel %vm1919_vm3, %v4693_v59, %v7100_v5  ;;  %v4735_v35 = vsel %vm1919_vm3, %v4694_v2, %v7129_v12  ;;  %v3167_v5 = vld [vmem:[#allocation2 + $0x108] sm:$0xff] }
 0x441   : > { %v4976_v42 = vsel %vm2171_vm9, %v4935_v7, %v7549_v60  ;;  %v4977_v58 = vsel %vm2171_vm9, %v4936_v49, %v7550_v54  ;;  %v7553_v20 = vpop.permute.xlu0 %7552 }
 0x442   : > { %v5004_v33 = vpack.c.bf16 %v4977_v58, %v4976_v42  ;;  %v7555_v44 = vunpack.i.h.bf16 %v7553_v20  ;;  %v7554_v17 = vunpack.i.l.bf16 %v7553_v20  ;;  %v7558_v57 = vpop.permute.xlu1 %7557 }
 0x443   : > { %v7560_v43 = vunpack.i.h.bf16 %v7558_v57  ;;  %v7559_v61 = vunpack.i.l.bf16 %v7558_v57  ;;  %v7125_v57 = vunpack.i.h.bf16 %v11601_v37 }
 0x444   : > { %v4774_v46 = vsel %vm1961_vm4, %v4733_v18, %v7555_v44  ;;  %v4773_v41 = vsel %vm1961_vm4, %v4732_v13, %v7554_v17  ;;  %6067 = vmatmul.mubr.msk.bf16.gmra.mrb[52].mxu1 %vm2270_vm10, %v5004_v33  ;;  %v7130_v13 = vunpack.i.h.bf16 %v11602_v27 }
 0x445   : > { %v7563_v22 = vpop.permute.xlu0 %7562  ;;  %6070 = vmatprep.mubr.msk.bf16.mxu1 %vm7925_vm2, %v11394_v23  ;;  %v4815_v28 = vsel %vm2003_vm5, %v4774_v46, %v7560_v43  ;;  %v4814_v16 = vsel %vm2003_vm5, %v4773_v41, %v7559_v61  ;;  %v11603_v43 = vld [vmem:[#allocation63_spill] sm:$0xff]  ;;  %v11604_v46 = vld [vmem:[#allocation82_spill] sm:$0xff] }
 0x446   : > { %v7565_v48 = vunpack.i.h.bf16 %v7563_v22  ;;  %v7564_v3 = vunpack.i.l.bf16 %v7563_v22  ;;  %v7568_v6 = vpop.permute.xlu1 %7567  ;;  %v7134_v61 = vunpack.i.l.bf16 %v11603_v43  ;;  %v7139_v41 = vunpack.i.l.bf16 %v11604_v46 }
 0x447   : > { %v7570_v4 = vunpack.i.h.bf16 %v7568_v6  ;;  %v7569_v25 = vunpack.i.l.bf16 %v7568_v6 }
 0x448   : > { %v4855_v1 = vsel %vm2045_vm6, %v4814_v16, %v7564_v3  ;;  %v4856_v19 = vsel %vm2045_vm6, %v4815_v28, %v7565_v48  ;;  %v4696_v27 = vsel %vm1877_vm0, %v3167_v5, %v7134_v61 }
 0x449   : > { %v7573_v8 = vpop.permute.xlu0 %7572  ;;  %v4896_v62 = vsel %vm2087_vm7, %v4855_v1, %v7569_v25  ;;  %v4897_v45 = vsel %vm2087_vm7, %v4856_v19, %v7570_v4  ;;  %v3166_v25 = vld [vmem:[#allocation2 + $0x100] sm:$0xff] }
 0x44a   : > { %v7575_v47 = vunpack.i.h.bf16 %v7573_v8  ;;  %v7574_v52 = vunpack.i.l.bf16 %v7573_v8  ;;  %v7578_v10 = vpop.permute.xlu1 %7577  ;;  %v4695_v34 = vsel %vm1877_vm0, %v3166_v25, %v7125_v57 }
 0x44b   : > { %v7580_v38 = vunpack.i.h.bf16 %v7578_v10  ;;  %v7579_v56 = vunpack.i.l.bf16 %v7578_v10 }
 0x44c   : > { %v4937_v14 = vsel %vm2129_vm8, %v4896_v62, %v7574_v52  ;;  %v4938_v21 = vsel %vm2129_vm8, %v4897_v45, %v7575_v47  ;;  %v4736_v62 = vsel %vm1919_vm3, %v4695_v34, %v7130_v13  ;;  %v4737_v45 = vsel %vm1919_vm3, %v4696_v27, %v7139_v41  ;;  %v3169_v13 = vld [vmem:[#allocation2 + $0x118] sm:$0xff] }
 0x44d   : > { %v4978_v11 = vsel %vm2171_vm9, %v4937_v14, %v7579_v56  ;;  %v4979_v26 = vsel %vm2171_vm9, %v4938_v21, %v7580_v38  ;;  %v7583_v30 = vpop.permute.xlu0 %7582 }
 0x44e   : > { %v5005_v15 = vpack.c.bf16 %v4979_v26, %v4978_v11  ;;  %v7585_v31 = vunpack.i.h.bf16 %v7583_v30  ;;  %v7584_v0 = vunpack.i.l.bf16 %v7583_v30  ;;  %v7588_v50 = vpop.permute.xlu1 %7587 }
 0x44f   : > { %v7590_v54 = vunpack.i.h.bf16 %v7588_v50  ;;  %v7589_v60 = vunpack.i.l.bf16 %v7588_v50  ;;  %v7135_v50 = vunpack.i.h.bf16 %v11603_v43 }
 0x450   : > { %v4776_v36 = vsel %vm1961_vm4, %v4735_v35, %v7585_v31  ;;  %v4775_v7 = vsel %vm1961_vm4, %v4734_v9, %v7584_v0  ;;  %6071 = vmatmul.mubr.msk.bf16.gmra.mrb[56].mxu1 %vm2270_vm10, %v5005_v15  ;;  %v7140_v9 = vunpack.i.h.bf16 %v11604_v46 }
 0x451   : > { %v7593_v49 = vpop.permute.xlu0 %7592  ;;  %6074 = vmatprep.mubr.msk.bf16.mxu1 %vm7925_vm2, %v11394_v23  ;;  %v4817_v58 = vsel %vm2003_vm5, %v4776_v36, %v7590_v54  ;;  %v4816_v20 = vsel %vm2003_vm5, %v4775_v7, %v7589_v60  ;;  %v11605_v54 = vld [vmem:[#allocation97_spill] sm:$0xff]  ;;  %v11606_v36 = vld [vmem:[#allocation16_spill] sm:$0xff] }
 0x452   : > { %v7595_v51 = vunpack.i.h.bf16 %v7593_v49  ;;  %v7594_v32 = vunpack.i.l.bf16 %v7593_v49  ;;  %v7598_v42 = vpop.permute.xlu1 %7597  ;;  %v7164_v60 = vunpack.i.l.bf16 %v11605_v54  ;;  %v7169_v7 = vunpack.i.l.bf16 %v11606_v36 }
 0x453   : > { %v7600_v63 = vunpack.i.h.bf16 %v7598_v42  ;;  %v7599_v33 = vunpack.i.l.bf16 %v7598_v42 }
 0x454   : > { %v4857_v44 = vsel %vm2045_vm6, %v4816_v20, %v7594_v32  ;;  %v4858_v17 = vsel %vm2045_vm6, %v4817_v58, %v7595_v51  ;;  %v4698_v46 = vsel %vm1877_vm0, %v3169_v13, %v7164_v60 }
 0x455   : > { %v7603_v18 = vpop.permute.xlu0 %7602  ;;  %v4898_v6 = vsel %vm2087_vm7, %v4857_v44, %v7599_v33  ;;  %v4899_v28 = vsel %vm2087_vm7, %v4858_v17, %v7600_v63  ;;  %v3168_v33 = vld [vmem:[#allocation2 + $0x110] sm:$0xff] }
 0x456   : > { %v7605_v22 = vunpack.i.h.bf16 %v7603_v18  ;;  %v7604_v48 = vunpack.i.l.bf16 %v7603_v18  ;;  %v7608_v3 = vpop.permute.xlu1 %7607  ;;  %v4697_v57 = vsel %vm1877_vm0, %v3168_v33, %v7135_v50 }
 0x457   : > { %v7610_v16 = vunpack.i.h.bf16 %v7608_v3  ;;  %v7609_v4 = vunpack.i.l.bf16 %v7608_v3 }
 0x458   : > { %v4939_v1 = vsel %vm2129_vm8, %v4898_v6, %v7604_v48  ;;  %v4940_v19 = vsel %vm2129_vm8, %v4899_v28, %v7605_v22  ;;  %v4738_v6 = vsel %vm1919_vm3, %v4697_v57, %v7140_v9  ;;  %v4739_v28 = vsel %vm1919_vm3, %v4698_v46, %v7169_v7 }
 0x459   : > { %v4980_v8 = vsel %vm2171_vm9, %v4939_v1, %v7609_v4  ;;  %v4981_v37 = vsel %vm2171_vm9, %v4940_v19, %v7610_v16  ;;  %v7613_v24 = vpop.permute.xlu0 %7612 }
 0x45a   : > { %v5006_v12 = vpack.c.bf16 %v4981_v37, %v4980_v8  ;;  %v7615_v47 = vunpack.i.h.bf16 %v7613_v24  ;;  %v7614_v52 = vunpack.i.l.bf16 %v7613_v24  ;;  %v7618_v10 = vpop.permute.xlu1 %7617 }
 0x45b   : > { %v7620_v38 = vunpack.i.h.bf16 %v7618_v10  ;;  %v7619_v56 = vunpack.i.l.bf16 %v7618_v10  ;;  %v7165_v10 = vunpack.i.h.bf16 %v11605_v54 }
 0x45c   : > { %v4778_v39 = vsel %vm1961_vm4, %v4737_v45, %v7615_v47  ;;  %v4777_v14 = vsel %vm1961_vm4, %v4736_v62, %v7614_v52  ;;  %6075 = vmatmul.mubr.msk.bf16.gmra.mrb[60].mxu1 %vm2270_vm10, %v5006_v12  ;;  %v7170_v62 = vunpack.i.h.bf16 %v11606_v36 }
 0x45d   : > { %v7623_v21 = vpop.permute.xlu0 %7622  ;;  %6078 = vmatprep.mubr.msk.bf16.mxu1 %vm7925_vm2, %v11394_v23  ;;  %v4819_v26 = vsel %vm2003_vm5, %v4778_v39, %v7620_v38  ;;  %v4818_v30 = vsel %vm2003_vm5, %v4777_v14, %v7619_v56  ;;  %v7174_v38 = vunpack.i.l.bf16 %v10365_v29  ;;  %v7179_v56 = vunpack.i.l.bf16 %v10384_v53 }
 0x45e   : > { %v7625_v59 = vunpack.i.h.bf16 %v7623_v21  ;;  %v7624_v55 = vunpack.i.l.bf16 %v7623_v21  ;;  %v7628_v11 = vpop.permute.xlu1 %7627 }
 0x45f   : > { %v7630_v2 = vunpack.i.h.bf16 %v7628_v11  ;;  %v7629_v15 = vunpack.i.l.bf16 %v7628_v11 }
 0x460   : > { %v4859_v31 = vsel %vm2045_vm6, %v4818_v30, %v7624_v55  ;;  %v4860_v0 = vsel %vm2045_vm6, %v4819_v26, %v7625_v59  ;;  %v3170_v30 = vld [vmem:[#allocation2 + $0x120] sm:$0xff] }
 0x461   : > { %v7633_v35 = vpop.permute.xlu0 %7632  ;;  %v4900_v42 = vsel %vm2087_vm7, %v4859_v31, %v7629_v15  ;;  %v4901_v58 = vsel %vm2087_vm7, %v4860_v0, %v7630_v2  ;;  %v4699_v31 = vsel %vm1877_vm0, %v3170_v30, %v7165_v10  ;;  %v3171_v0 = vld [vmem:[#allocation2 + $0x128] sm:$0xff] }
 0x462   : > { %v7635_v49 = vunpack.i.h.bf16 %v7633_v35  ;;  %v7634_v51 = vunpack.i.l.bf16 %v7633_v35  ;;  %v7638_v32 = vpop.permute.xlu1 %7637  ;;  %v4700_v54 = vsel %vm1877_vm0, %v3171_v0, %v7174_v38 }
 0x463   : > { %v7640_v20 = vunpack.i.h.bf16 %v7638_v32  ;;  %v7639_v63 = vunpack.i.l.bf16 %v7638_v32  ;;  %v4741_v32 = vsel %vm1919_vm3, %v4700_v54, %v7179_v56 }
 0x464   : > { %v4941_v44 = vsel %vm2129_vm8, %v4900_v42, %v7634_v51  ;;  %v4942_v17 = vsel %vm2129_vm8, %v4901_v58, %v7635_v49  ;;  %v4740_v51 = vsel %vm1919_vm3, %v4699_v31, %v7170_v62 }
 0x465   : > { %v4982_v18 = vsel %vm2171_vm9, %v4941_v44, %v7639_v63  ;;  %v4983_v43 = vsel %vm2171_vm9, %v4942_v17, %v7640_v20  ;;  %v7643_v61 = vpop.permute.xlu0 %7642 }
 0x466   : > { %v5007_v41 = vpack.c.bf16 %v4983_v43, %v4982_v18  ;;  %v7645_v22 = vunpack.i.h.bf16 %v7643_v61  ;;  %v7644_v48 = vunpack.i.l.bf16 %v7643_v61  ;;  %v7648_v3 = vpop.permute.xlu1 %7647 }
 0x467   : > { %v7650_v16 = vunpack.i.h.bf16 %v7648_v3  ;;  %v7649_v4 = vunpack.i.l.bf16 %v7648_v3 }
 0x468   : > { %v4780_v25 = vsel %vm1961_vm4, %v4739_v28, %v7645_v22  ;;  %v4779_v1 = vsel %vm1961_vm4, %v4738_v6, %v7644_v48  ;;  %6079 = vmatmul.mubr.msk.bf16.gmra.mrb[64].mxu1 %vm2270_vm10, %v5007_v41  ;;  %v7175_v22 = vunpack.i.h.bf16 %v10365_v29  ;;  %v7180_v48 = vunpack.i.h.bf16 %v10384_v53  ;;  %v11607_v6 = vld [vmem:[#allocation34_spill] sm:$0xff] }
 0x469   : > { %v7653_v19 = vpop.permute.xlu0 %7652  ;;  %6082 = vmatprep.mubr.msk.bf16.mxu1 %vm7925_vm2, %v11394_v23  ;;  %v4821_v37 = vsel %vm2003_vm5, %v4780_v25, %v7650_v16  ;;  %v4820_v24 = vsel %vm2003_vm5, %v4779_v1, %v7649_v4  ;;  %v7209_v28 = vunpack.i.l.bf16 %v11607_v6  ;;  %v7214_v16 = vunpack.i.l.bf16 %v10418_v40 }
 0x46a   : > { %v7655_v34 = vunpack.i.h.bf16 %v7653_v19  ;;  %v7654_v5 = vunpack.i.l.bf16 %v7653_v19  ;;  %v7658_v8 = vpop.permute.xlu1 %7657 }
 0x46b   : > { %v7660_v27 = vunpack.i.h.bf16 %v7658_v8  ;;  %v7659_v12 = vunpack.i.l.bf16 %v7658_v8 }
 0x46c   : > { %v4861_v47 = vsel %vm2045_vm6, %v4820_v24, %v7654_v5  ;;  %v4862_v52 = vsel %vm2045_vm6, %v4821_v37, %v7655_v34  ;;  %v3172_v37 = vld [vmem:[#allocation2 + $0x130] sm:$0xff] }
 0x46d   : > { %v7663_v45 = vpop.permute.xlu0 %7662  ;;  %v4902_v59 = vsel %vm2087_vm7, %v4861_v47, %v7659_v12  ;;  %v4903_v55 = vsel %vm2087_vm7, %v4862_v52, %v7660_v27  ;;  %v4701_v53 = vsel %vm1877_vm0, %v3172_v37, %v7175_v22  ;;  %v3173_v27 = vld [vmem:[#allocation2 + $0x138] sm:$0xff] }
 0x46e   : > { %v7665_v39 = vunpack.i.h.bf16 %v7663_v45  ;;  %v7664_v14 = vunpack.i.l.bf16 %v7663_v45  ;;  %v7668_v21 = vpop.permute.xlu1 %7667  ;;  %v4702_v10 = vsel %vm1877_vm0, %v3173_v27, %v7209_v28 }
 0x46f   : > { %v7670_v11 = vunpack.i.h.bf16 %v7668_v21  ;;  %v7669_v26 = vunpack.i.l.bf16 %v7668_v21 }
 0x470   : > { %v4943_v2 = vsel %vm2129_vm8, %v4902_v59, %v7664_v14  ;;  %v4944_v15 = vsel %vm2129_vm8, %v4903_v55, %v7665_v39  ;;  %v4742_v39 = vsel %vm1919_vm3, %v4701_v53, %v7180_v48  ;;  %v4743_v14 = vsel %vm1919_vm3, %v4702_v10, %v7214_v16  ;;  %v5410_v16 = vld [vmem:[%s7997_s10 + $0x13] sm:$0xff] }
 0x471   : > { %v4984_v50 = vsel %vm2171_vm9, %v4943_v2, %v7669_v26  ;;  %v4985_v9 = vsel %vm2171_vm9, %v4944_v15, %v7670_v11  ;;  %v7673_v35 = vpop.permute.xlu0 %7672 }
 0x472   : > { %v5008_v60 = vpack.c.bf16 %v4985_v9, %v4984_v50  ;;  %v7675_v36 = vunpack.i.h.bf16 %v7673_v35  ;;  %v7674_v7 = vunpack.i.l.bf16 %v7673_v35  ;;  %v7678_v49 = vpop.permute.xlu1 %7677  ;;  %v7210_v35 = vunpack.i.h.bf16 %v11607_v6 }
 0x473   : > { %v7680_v42 = vunpack.i.h.bf16 %v7678_v49  ;;  %v7679_v58 = vunpack.i.l.bf16 %v7678_v49 }
 0x474   : > { %v4782_v20 = vsel %vm1961_vm4, %v4741_v32, %v7675_v36  ;;  %v4781_v63 = vsel %vm1961_vm4, %v4740_v51, %v7674_v7  ;;  %6083 = vmatmul.mubr.msk.bf16.gmra.mrb[68].mxu1 %vm2270_vm10, %v5008_v60  ;;  %v7215_v36 = vunpack.i.h.bf16 %v10418_v40  ;;  %v10971_v40 = vld [vmem:[%s11214_s6] ss:$0 sm:$0xff] }
 0x475   : > { %v7683_v33 = vpop.permute.xlu0 %7682  ;;  %6086 = vmatprep.mubr.msk.bf16.mxu1 %vm7925_vm2, %v11394_v23  ;;  %v4823_v13 = vsel %vm2003_vm5, %v4782_v20, %v7680_v42  ;;  %v4822_v18 = vsel %vm2003_vm5, %v4781_v63, %v7679_v58 }
 0x476   : > { %v7685_v44 = vunpack.i.h.bf16 %v7683_v33  ;;  %v7684_v17 = vunpack.i.l.bf16 %v7683_v33  ;;  %v7688_v57 = vpop.permute.xlu1 %7687  ;;  %v3174_v33 = vld [vmem:[#allocation2 + $0x140] sm:$0xf] }
 0x477   : > { %v7690_v43 = vunpack.i.h.bf16 %v7688_v57  ;;  %v7689_v61 = vunpack.i.l.bf16 %v7688_v57  ;;  %v4703_v57 = vsel %vm1877_vm0, %v3174_v33, %v7210_v35 }
 0x478   : > { %v4863_v46 = vsel %vm2045_vm6, %v4822_v18, %v7684_v17  ;;  %v4864_v41 = vsel %vm2045_vm6, %v4823_v13, %v7685_v44 }
 0x479   : > { %v7693_v3 = vpop.permute.xlu0 %7692  ;;  %v4905_v19 = vsel %vm2087_vm7, %v4864_v41, %v7690_v43  ;;  %v4904_v34 = vsel %vm2087_vm7, %v4863_v46, %v7689_v61  ;;  %v4744_v43 = vsel %vm1919_vm3, %v4703_v57, %v7215_v36  ;;  %v5415_v57 = vld [vmem:[%s7997_s10 + $0x3b] sm:$0xff] }
 0x47a   : > { %v7695_v4 = vunpack.i.h.bf16 %v7693_v3  ;;  %v7694_v25 = vunpack.i.l.bf16 %v7693_v3  ;;  %v7698_v1 = vpop.permute.xlu1 %7697  ;;  %v10980_v3 = vld [vmem:[%s11215_s7] ss:$0 sm:$0xff] }
 0x47b   : > { %v7700_v5 = vunpack.i.h.bf16 %v7698_v1  ;;  %v7699_v8 = vunpack.i.l.bf16 %v7698_v1 }
 0x47c   : > { %v4945_v24 = vsel %vm2129_vm8, %v4904_v34, %v7694_v25  ;;  %v4946_v29 = vsel %vm2129_vm8, %v4905_v19, %v7695_v4 }
 0x47d   : > { %v4986_v12 = vsel %vm2171_vm9, %v4945_v24, %v7699_v8  ;;  %v4987_v47 = vsel %vm2171_vm9, %v4946_v29, %v7700_v5  ;;  %v7703_v52 = vpop.permute.xlu0 %7702  ;;  %v5411_v8 = vld [vmem:[%s7997_s10 + $0x1b] sm:$0xff] }
 0x47e   : > { %v5009_v62 = vpack.c.bf16 %v4987_v47, %v4986_v12  ;;  %v7705_v45 = vunpack.i.h.bf16 %v7703_v52  ;;  %v7704_v38 = vunpack.i.l.bf16 %v7703_v52  ;;  %v7708_v56 = vpop.permute.xlu1 %7707 }
 0x47f   : > { %v7710_v21 = vunpack.i.h.bf16 %v7708_v56  ;;  %v7709_v59 = vunpack.i.l.bf16 %v7708_v56 }
 0x480   : > { %v4784_v55 = vsel %vm1961_vm4, %v4743_v14, %v7705_v45  ;;  %v4783_v11 = vsel %vm1961_vm4, %v4742_v39, %v7704_v38  ;;  %6087 = vmatmul.mubr.msk.bf16.gmra.mrb[72].mxu1 %vm2270_vm10, %v5009_v62 }
 0x481   : > { %v7713_v26 = vpop.permute.xlu0 %7712  ;;  %6090 = vmatprep.mubr.msk.bf16.mxu1 %vm7925_vm2, %v11394_v23  ;;  %v4825_v31 = vsel %vm2003_vm5, %v4784_v55, %v7710_v21  ;;  %v4824_v0 = vsel %vm2003_vm5, %v4783_v11, %v7709_v59  ;;  %v5412_v21 = vld [vmem:[%s7997_s10 + $0x23] sm:$0xff] }
 0x482   : > { %v7715_v30 = vunpack.i.h.bf16 %v7713_v26  ;;  %v7714_v2 = vunpack.i.l.bf16 %v7713_v26  ;;  %v7718_v15 = vpop.permute.xlu1 %7717 }
 0x483   : > { %v7720_v50 = vunpack.i.h.bf16 %v7718_v15  ;;  %v7719_v9 = vunpack.i.l.bf16 %v7718_v15 }
 0x484   : > { %v4865_v54 = vsel %vm2045_vm6, %v4824_v0, %v7714_v2  ;;  %v4866_v60 = vsel %vm2045_vm6, %v4825_v31, %v7715_v30  ;;  %v5413_v30 = vld [vmem:[%s7997_s10 + $0x2b] sm:$0xff] }
 0x485   : > { %v7723_v7 = vpop.permute.xlu0 %7722  ;;  %v4906_v42 = vsel %vm2087_vm7, %v4865_v54, %v7719_v9  ;;  %v4907_v58 = vsel %vm2087_vm7, %v4866_v60, %v7720_v50 }
 0x486   : > { %v7725_v49 = vunpack.i.h.bf16 %v7723_v7  ;;  %v7724_v51 = vunpack.i.l.bf16 %v7723_v7  ;;  %v7728_v32 = vpop.permute.xlu1 %7727 }
 0x487   : > { %v7730_v20 = vunpack.i.h.bf16 %v7728_v32  ;;  %v7729_v63 = vunpack.i.l.bf16 %v7728_v32 }
 0x488   : > { %v4947_v44 = vsel %vm2129_vm8, %v4906_v42, %v7724_v51  ;;  %v4948_v17 = vsel %vm2129_vm8, %v4907_v58, %v7725_v49  ;;  %v5414_v58 = vld [vmem:[%s7997_s10 + $0x33] sm:$0xff] }
 0x489   : > { %v4988_v13 = vsel %vm2171_vm9, %v4947_v44, %v7729_v63  ;;  %v4989_v18 = vsel %vm2171_vm9, %v4948_v17, %v7730_v20  ;;  %v3839_v61 = vpop.permute.xlu0 %3838 }
 0x48a   : > { %v5010_v46 = vpack.c.bf16 %v4989_v18, %v4988_v13  ;;  %v4003_v41 = vpop.permute.xlu1 %4002  ;;  %v4785_v22 = vsel %vm1961_vm4, %v4744_v43, %v3839_v61  ;;  %v5148_v48 = vpop.f32.mrb[0].mxu1 }
 0x48b   : > { %v5321_v6 = vmul.f32 %v10971_v40, %v5148_v48  ;;  %v6016_v28 = vpop.f32.mrb[1].mxu1  ;;  %v4826_v34 = vsel %vm2003_vm5, %v4785_v22, %v4003_v41 }
 0x48c   : > { %v5151_v4 = vpop.f32.mrb[2].mxu1  ;;  %6091 = vmatmul.mubr.msk.bf16.gmra.mrb[76].mxu1 %vm2270_vm10, %v5010_v46 }
 0x48d   : > { %v5369_v25 = vadd.f32 %v10980_v3, %v5321_v6  ;;  %v5322_v1 = vmul.f32 %v10971_v40, %v5151_v4  ;;  %v6017_v19 = vpop.f32.mrb[3].mxu1  ;;  %v4167_v5 = vpop.permute.xlu0 %4166  ;;  %6094 = vmatprep.mubr.msk.bf16.mxu1 %vm7925_vm2, %v11394_v23 }
 0x48e   : > { %v4867_v37 = vsel %vm2045_vm6, %v4826_v34, %v4167_v5  ;;  %v4293_v24 = vpop.permute.xlu1 %4292  ;;  %v5416_v34 = vld [vmem:[%s7997_s10 + $0x43] sm:$0xff] }
 0x48f   : > { %v5451_v29 = vadd.f32 %v5410_v16, %v5369_v25  ;;  %v5370_v53 = vadd.f32 %v10980_v3, %v5322_v1  ;;  %v4908_v47 = vsel %vm2087_vm7, %v4867_v37, %v4293_v24 }
 0x491   : > { %v5533_v27 = vmul.f32 0.70710677, %v5451_v29  ;;  %v5452_v12 = vadd.f32 %v5411_v8, %v5370_v53  ;;  %v4457_v52 = vpop.permute.xlu0 %4456  ;;  %v5492_v35 = vmul.f32 0.5, %v5451_v29  ;;  %v5417_v53 = vld [vmem:[%s7997_s10 + $0x4b] sm:$0xff] }
 0x492   : > { %v4949_v10 = vsel %vm2129_vm8, %v4908_v47, %v4457_v52  ;;  %v4621_v62 = vpop.permute.xlu1 %4620 }
 0x493   : > { %7823 = verf.f32 %v5533_v27  ;;  %v5534_v45 = vmul.f32 0.70710677, %v5452_v12  ;;  %v4990_v23 = vsel %vm2171_vm9, %v4949_v10, %v4621_v62  ;;  %v5493_v32 = vmul.f32 0.5, %v5452_v12 }
 0x494   : > { %v5011_v38 = vpack.c.bf16 %v4990_v23, %v4990_v23  ;;  %v5156_v56 = vpop.f32.mrb[4].mxu1 }
 0x495   : > { %7825 = verf.f32 %v5534_v45  ;;  %v5323_v39 = vmul.f32 %v10971_v40, %v5156_v56  ;;  %v6020_v14 = vpop.f32.mrb[5].mxu1 }
 0x496   : > { %v5159_v59 = vpop.f32.mrb[6].mxu1  ;;  %6095 = vmatmul.mubr.msk.bf16.gmra.mrb[80].mxu1 %vm2270_vm10, %v5011_v38 }
 0x497   : > { %v5371_v55 = vadd.f32 %v10980_v3, %v5323_v39  ;;  %v5324_v11 = vmul.f32 %v10971_v40, %v5159_v59  ;;  %v6021_v26 = vpop.f32.mrb[7].mxu1 }
 0x499   : > { %v5453_v2 = vadd.f32 %v5412_v21, %v5371_v55  ;;  %v5372_v15 = vadd.f32 %v10980_v3, %v5324_v11  ;;  %v5418_v11 = vld [vmem:[%s7997_s10 + $0x53] sm:$0xff] }
 0x49b   : > { %v5535_v31 = vmul.f32 0.70710677, %v5453_v2  ;;  %v5454_v0 = vadd.f32 %v5413_v30, %v5372_v15  ;;  %v5494_v22 = vmul.f32 0.5, %v5453_v2 }
 0x49d   : > { %v7824_v50 = vpop.eup %7823  ;;  %7827 = verf.f32 %v5535_v31  ;;  %v5536_v9 = vmul.f32 0.70710677, %v5454_v0  ;;  %v5495_v1 = vmul.f32 0.5, %v5454_v0  ;;  %v5419_v0 = vld [vmem:[%s7997_s10 + $0x5b] sm:$0xff] }
 0x49e   : > { %v5615_v54 = vadd.f32 1.0, %v7824_v50  ;;  %v5164_v60 = vpop.f32.mrb[8].mxu1 }
 0x49f   : > { %v7826_v36 = vpop.eup %7825  ;;  %7829 = verf.f32 %v5536_v9  ;;  %v5325_v7 = vmul.f32 %v10971_v40, %v5164_v60  ;;  %v6024_v49 = vpop.f32.mrb[9].mxu1 }
 0x4a0   : > { %v5656_v51 = vmul.f32 %v5615_v54, %v5492_v35  ;;  %v5616_v42 = vadd.f32 1.0, %v7826_v36  ;;  %v5167_v20 = vpop.f32.mrb[10].mxu1 }
 0x4a1   : > { %v5373_v63 = vadd.f32 %v10980_v3, %v5325_v7  ;;  %v5326_v33 = vmul.f32 %v10971_v40, %v5167_v20  ;;  %v6025_v44 = vpop.f32.mrb[11].mxu1 }
 0x4a2   : > { %5697 = vst.msk [vmem:[%s11007_s30] sm:$0xff] %vm1877_vm0, %v5656_v51  ;;  %v5657_v17 = vmul.f32 %v5616_v42, %v5493_v32 }
 0x4a3   : > { %v5455_v13 = vadd.f32 %v5414_v58, %v5373_v63  ;;  %v5374_v18 = vadd.f32 %v10980_v3, %v5326_v33  ;;  %v5420_v63 = vld [vmem:[%s7997_s10 + $0x63] sm:$0xff] }
 0x4a4   : > { %5698 = vst.msk [vmem:[%s11007_s30 + $0x8] sm:$0xff] %vm1877_vm0, %v5657_v17 }
 0x4a5   : > { %v5537_v43 = vmul.f32 0.70710677, %v5455_v13  ;;  %v5456_v61 = vadd.f32 %v5415_v57, %v5374_v18  ;;  %v5496_v45 = vmul.f32 0.5, %v5455_v13 }
 0x4a7   : > { %v7828_v46 = vpop.eup %7827  ;;  %7831 = verf.f32 %v5537_v43  ;;  %v5538_v41 = vmul.f32 0.70710677, %v5456_v61  ;;  %v5497_v59 = vmul.f32 0.5, %v5456_v61  ;;  %v5421_v43 = vld [vmem:[%s7997_s10 + $0x6b] sm:$0xff] }
 0x4a8   : > { %v5617_v48 = vadd.f32 1.0, %v7828_v46  ;;  %v5172_v6 = vpop.f32.mrb[12].mxu1 }
 0x4a9   : > { %v7830_v28 = vpop.eup %7829  ;;  %7833 = verf.f32 %v5538_v41  ;;  %v5327_v16 = vmul.f32 %v10971_v40, %v5172_v6  ;;  %v6028_v4 = vpop.f32.mrb[13].mxu1 }
 0x4aa   : > { %v5658_v25 = vmul.f32 %v5617_v48, %v5494_v22  ;;  %v5618_v19 = vadd.f32 1.0, %v7830_v28  ;;  %v5175_v5 = vpop.f32.mrb[14].mxu1 }
 0x4ab   : > { %v5375_v8 = vadd.f32 %v10980_v3, %v5327_v16  ;;  %v5328_v37 = vmul.f32 %v10971_v40, %v5175_v5  ;;  %v6029_v24 = vpop.f32.mrb[15].mxu1 }
 0x4ac   : > { %5699 = vst.msk [vmem:[%s11007_s30 + $0x10] sm:$0xff] %vm1877_vm0, %v5658_v25  ;;  %v5659_v29 = vmul.f32 %v5618_v19, %v5495_v1  ;;  %v5422_v24 = vld [vmem:[%s7997_s10 + $0x73] sm:$0xff] }
 0x4ad   : > { %v5457_v27 = vadd.f32 %v5416_v34, %v5375_v8  ;;  %v5376_v12 = vadd.f32 %v10980_v3, %v5328_v37 }
 0x4ae   : > { %5700 = vst.msk [vmem:[%s11007_s30 + $0x18] sm:$0xff] %vm1877_vm0, %v5659_v29 }
 0x4af   : > { %v5539_v47 = vmul.f32 0.70710677, %v5457_v27  ;;  %v5458_v52 = vadd.f32 %v5417_v53, %v5376_v12  ;;  %v5498_v49 = vmul.f32 0.5, %v5457_v27 }
 0x4b1   : > { %v7832_v10 = vpop.eup %7831  ;;  %7835 = verf.f32 %v5539_v47  ;;  %v5540_v62 = vmul.f32 0.70710677, %v5458_v52  ;;  %v5499_v20 = vmul.f32 0.5, %v5458_v52  ;;  %v5423_v52 = vld [vmem:[%s7997_s10 + $0x7b] sm:$0xff] }
 0x4b2   : > { %v5619_v23 = vadd.f32 1.0, %v7832_v10  ;;  %v5180_v38 = vpop.f32.mrb[16].mxu1 }
 0x4b3   : > { %v7834_v56 = vpop.eup %7833  ;;  %7837 = verf.f32 %v5540_v62  ;;  %v5329_v39 = vmul.f32 %v10971_v40, %v5180_v38  ;;  %v6032_v14 = vpop.f32.mrb[17].mxu1 }
 0x4b4   : > { %v5660_v21 = vmul.f32 %v5619_v23, %v5496_v45  ;;  %v5620_v55 = vadd.f32 1.0, %v7834_v56  ;;  %v5183_v26 = vpop.f32.mrb[18].mxu1 }
 0x4b5   : > { %v5377_v30 = vadd.f32 %v10980_v3, %v5329_v39  ;;  %v5330_v2 = vmul.f32 %v10971_v40, %v5183_v26  ;;  %v6033_v15 = vpop.f32.mrb[19].mxu1 }
 0x4b6   : > { %5701 = vst.msk [vmem:[%s11007_s30 + $0x20] sm:$0xff] %vm1877_vm0, %v5660_v21  ;;  %v5661_v31 = vmul.f32 %v5620_v55, %v5497_v59  ;;  %v5424_v15 = vld [vmem:[%s7997_s10 + $0x83] sm:$0xff] }
 0x4b7   : > { %v5459_v50 = vadd.f32 %v5418_v11, %v5377_v30  ;;  %v5378_v9 = vadd.f32 %v10980_v3, %v5330_v2 }
 0x4b8   : > { %5702 = vst.msk [vmem:[%s11007_s30 + $0x28] sm:$0xff] %vm1877_vm0, %v5661_v31 }
 0x4b9   : > { %v5541_v35 = vmul.f32 0.70710677, %v5459_v50  ;;  %v5460_v54 = vadd.f32 %v5419_v0, %v5378_v9  ;;  %v5500_v16 = vmul.f32 0.5, %v5459_v50 }
 0x4bb   : > { %v7836_v60 = vpop.eup %7835  ;;  %7839 = verf.f32 %v5541_v35  ;;  %v5542_v36 = vmul.f32 0.70710677, %v5460_v54  ;;  %v5188_v7 = vpop.f32.mrb[20].mxu1  ;;  %v5501_v8 = vmul.f32 0.5, %v5460_v54  ;;  %v5425_v54 = vld [vmem:[%s7997_s10 + $0x8b] sm:$0xff] }
 0x4bc   : > { %v5621_v51 = vadd.f32 1.0, %v7836_v60  ;;  %v5331_v32 = vmul.f32 %v10971_v40, %v5188_v7  ;;  %v6036_v42 = vpop.f32.mrb[21].mxu1 }
 0x4bd   : > { %v7838_v58 = vpop.eup %7837  ;;  %7841 = verf.f32 %v5542_v36  ;;  %v5191_v33 = vpop.f32.mrb[22].mxu1 }
 0x4be   : > { %v5662_v44 = vmul.f32 %v5621_v51, %v5498_v49  ;;  %v5622_v17 = vadd.f32 1.0, %v7838_v58  ;;  %v5379_v57 = vadd.f32 %v10980_v3, %v5331_v32  ;;  %v5332_v13 = vmul.f32 %v10971_v40, %v5191_v33  ;;  %v6037_v18 = vpop.f32.mrb[23].mxu1 }
 0x4bf   : > { %v5426_v18 = vld [vmem:[%s7997_s10 + $0x93] sm:$0xff] }
 0x4c0   : > { %5703 = vst.msk [vmem:[%s11007_s30 + $0x30] sm:$0xff] %vm1877_vm0, %v5662_v44  ;;  %v5663_v61 = vmul.f32 %v5622_v17, %v5499_v20  ;;  %v5461_v46 = vadd.f32 %v5420_v63, %v5379_v57  ;;  %v5380_v41 = vadd.f32 %v10980_v3, %v5332_v13 }
 0x4c2   : > { %5704 = vst.msk [vmem:[%s11007_s30 + $0x38] sm:$0xff] %vm1877_vm0, %v5663_v61  ;;  %v5543_v22 = vmul.f32 0.70710677, %v5461_v46  ;;  %v5462_v48 = vadd.f32 %v5421_v43, %v5380_v41  ;;  %v5502_v56 = vmul.f32 0.5, %v5461_v46 }
 0x4c4   : > { %7843 = verf.f32 %v5543_v22  ;;  %v5544_v6 = vmul.f32 0.70710677, %v5462_v48  ;;  %v5503_v30 = vmul.f32 0.5, %v5462_v48  ;;  %v5427_v48 = vld [vmem:[%s7997_s10 + $0x9b] sm:$0xff] }
 0x4c5   : > { %v7840_v28 = vpop.eup %7839 }
 0x4c6   : > { %v5623_v4 = vadd.f32 1.0, %v7840_v28  ;;  %7845 = verf.f32 %v5544_v6  ;;  %v5196_v25 = vpop.f32.mrb[24].mxu1 }
 0x4c7   : > { %v7842_v1 = vpop.eup %7841  ;;  %v5333_v19 = vmul.f32 %v10971_v40, %v5196_v25  ;;  %v6040_v34 = vpop.f32.mrb[25].mxu1 }
 0x4c8   : > { %v5664_v5 = vmul.f32 %v5623_v4, %v5500_v16  ;;  %v5624_v37 = vadd.f32 1.0, %v7842_v1  ;;  %v5199_v29 = vpop.f32.mrb[26].mxu1 }
 0x4c9   : > { %v5381_v53 = vadd.f32 %v10980_v3, %v5333_v19  ;;  %v5334_v27 = vmul.f32 %v10971_v40, %v5199_v29  ;;  %v6041_v12 = vpop.f32.mrb[27].mxu1 }
 0x4ca   : > { %5705 = vst.msk [vmem:[%s11007_s30 + $0x40] sm:$0xff] %vm1877_vm0, %v5664_v5  ;;  %v5665_v47 = vmul.f32 %v5624_v37, %v5501_v8 }
 0x4cb   : > { %v5463_v10 = vadd.f32 %v5422_v24, %v5381_v53  ;;  %v5382_v62 = vadd.f32 %v10980_v3, %v5334_v27 }
 0x4cc   : > { %5706 = vst.msk [vmem:[%s11007_s30 + $0x48] sm:$0xff] %vm1877_vm0, %v5665_v47  ;;  %v5428_v47 = vld [vmem:[%s7997_s10 + $0xa3] sm:$0xff] }
 0x4cd   : > { %v5545_v45 = vmul.f32 0.70710677, %v5463_v10  ;;  %v5464_v23 = vadd.f32 %v5423_v52, %v5382_v62  ;;  %v5504_v42 = vmul.f32 0.5, %v5463_v10 }
 0x4ce   : > { %v7844_v38 = vpop.eup %7843 }
 0x4cf   : > { %v5625_v39 = vadd.f32 1.0, %v7844_v38  ;;  %7847 = verf.f32 %v5545_v45  ;;  %v5546_v14 = vmul.f32 0.70710677, %v5464_v23  ;;  %v5204_v21 = vpop.f32.mrb[28].mxu1  ;;  %v5505_v44 = vmul.f32 0.5, %v5464_v23  ;;  %v5429_v23 = vld [vmem:[%s7997_s10 + $0xab] sm:$0xff] }
 0x4d0   : > { %v7846_v59 = vpop.eup %7845  ;;  %v5335_v55 = vmul.f32 %v10971_v40, %v5204_v21  ;;  %v6044_v11 = vpop.f32.mrb[29].mxu1 }
 0x4d1   : > { %v5666_v26 = vmul.f32 %v5625_v39, %v5502_v56  ;;  %v5626_v2 = vadd.f32 1.0, %v7846_v59  ;;  %7849 = verf.f32 %v5546_v14  ;;  %v5207_v31 = vpop.f32.mrb[30].mxu1 }
 0x4d2   : > { %v5383_v0 = vadd.f32 %v10980_v3, %v5335_v55  ;;  %v5336_v50 = vmul.f32 %v10971_v40, %v5207_v31  ;;  %v6045_v9 = vpop.f32.mrb[31].mxu1 }
 0x4d3   : > { %5707 = vst.msk [vmem:[%s11007_s30 + $0x50] sm:$0xff] %vm1877_vm0, %v5666_v26  ;;  %v5667_v35 = vmul.f32 %v5626_v2, %v5503_v30 }
 0x4d4   : > { %v5465_v60 = vadd.f32 %v5424_v15, %v5383_v0  ;;  %v5384_v36 = vadd.f32 %v10980_v3, %v5336_v50 }
 0x4d5   : > { %5708 = vst.msk [vmem:[%s11007_s30 + $0x58] sm:$0xff] %vm1877_vm0, %v5667_v35  ;;  %v5430_v35 = vld [vmem:[%s7997_s10 + $0xb3] sm:$0xff] }
 0x4d6   : > { %v5547_v7 = vmul.f32 0.70710677, %v5465_v60  ;;  %v5466_v49 = vadd.f32 %v5425_v54, %v5384_v36  ;;  %v5506_v1 = vmul.f32 0.5, %v5465_v60 }
 0x4d8   : > { %7851 = verf.f32 %v5547_v7  ;;  %v5548_v51 = vmul.f32 0.70710677, %v5466_v49  ;;  %v5507_v37 = vmul.f32 0.5, %v5466_v49  ;;  %v5431_v49 = vld [vmem:[%s7997_s10 + $0xbb] sm:$0xff] }
 0x4d9   : > { %v7848_v32 = vpop.eup %7847 }
 0x4da   : > { %v5627_v58 = vadd.f32 1.0, %v7848_v32  ;;  %7853 = verf.f32 %v5548_v51 }
 0x4db   : > { %v7850_v20 = vpop.eup %7849  ;;  %v5212_v63 = vpop.f32.mrb[32].mxu1 }
 0x4dc   : > { %v5668_v33 = vmul.f32 %v5627_v58, %v5504_v42  ;;  %v5628_v17 = vadd.f32 1.0, %v7850_v20  ;;  %v5337_v57 = vmul.f32 %v10971_v40, %v5212_v63  ;;  %v6048_v13 = vpop.f32.mrb[33].mxu1 }
 0x4dd   : > { %v5215_v43 = vpop.f32.mrb[34].mxu1 }
 0x4de   : > { %5709 = vst.msk [vmem:[%s11007_s30 + $0x60] sm:$0xff] %vm1877_vm0, %v5668_v33  ;;  %v5669_v61 = vmul.f32 %v5628_v17, %v5505_v44  ;;  %v5385_v46 = vadd.f32 %v10980_v3, %v5337_v57  ;;  %v5338_v41 = vmul.f32 %v10971_v40, %v5215_v43  ;;  %v6049_v22 = vpop.f32.mrb[35].mxu1 }
 0x4df   : > { %v5432_v22 = vld [vmem:[%s7997_s10 + $0xc3] sm:$0xff] }
 0x4e0   : > { %5710 = vst.msk [vmem:[%s11007_s30 + $0x68] sm:$0xff] %vm1877_vm0, %v5669_v61  ;;  %v5467_v6 = vadd.f32 %v5426_v18, %v5385_v46  ;;  %v5386_v28 = vadd.f32 %v10980_v3, %v5338_v41 }
 0x4e2   : > { %v7852_v16 = vpop.eup %7851  ;;  %v5549_v4 = vmul.f32 0.70710677, %v5467_v6  ;;  %v5468_v25 = vadd.f32 %v5427_v48, %v5386_v28  ;;  %v5508_v59 = vmul.f32 0.5, %v5467_v6 }
 0x4e3   : > { %v5629_v19 = vadd.f32 1.0, %v7852_v16 }
 0x4e4   : > { %v7854_v34 = vpop.eup %7853  ;;  %7855 = verf.f32 %v5549_v4  ;;  %v5550_v5 = vmul.f32 0.70710677, %v5468_v25  ;;  %v5509_v2 = vmul.f32 0.5, %v5468_v25  ;;  %v5433_v4 = vld [vmem:[%s7997_s10 + $0xcb] sm:$0xff] }
 0x4e5   : > { %v5670_v8 = vmul.f32 %v5629_v19, %v5506_v1  ;;  %v5630_v24 = vadd.f32 1.0, %v7854_v34 }
 0x4e6   : > { %7857 = verf.f32 %v5550_v5 }
 0x4e7   : > { %5711 = vst.msk [vmem:[%s11007_s30 + $0x70] sm:$0xff] %vm1877_vm0, %v5670_v8  ;;  %v5671_v29 = vmul.f32 %v5630_v24, %v5507_v37  ;;  %v5220_v53 = vpop.f32.mrb[36].mxu1 }
 0x4e8   : > { %v5339_v27 = vmul.f32 %v10971_v40, %v5220_v53  ;;  %v6052_v12 = vpop.f32.mrb[37].mxu1 }
 0x4e9   : > { %5712 = vst.msk [vmem:[%s11007_s30 + $0x78] sm:$0xff] %vm1877_vm0, %v5671_v29  ;;  %v5223_v52 = vpop.f32.mrb[38].mxu1 }
 0x4ea   : > { %v5387_v10 = vadd.f32 %v10980_v3, %v5339_v27  ;;  %v5340_v62 = vmul.f32 %v10971_v40, %v5223_v52  ;;  %v6053_v45 = vpop.f32.mrb[39].mxu1 }
 0x4eb   : > { %v5434_v45 = vld [vmem:[%s7997_s10 + $0xd3] sm:$0xff] }
 0x4ec   : > { %v5469_v38 = vadd.f32 %v5428_v47, %v5387_v10  ;;  %v5388_v56 = vadd.f32 %v10980_v3, %v5340_v62 }
 0x4ee   : > { %v7856_v39 = vpop.eup %7855  ;;  %v5551_v14 = vmul.f32 0.70710677, %v5469_v38  ;;  %v5470_v21 = vadd.f32 %v5429_v23, %v5388_v56  ;;  %v5510_v63 = vmul.f32 0.5, %v5469_v38 }
 0x4ef   : > { %v5631_v55 = vadd.f32 1.0, %v7856_v39 }
 0x4f0   : > { %v7858_v11 = vpop.eup %7857  ;;  %7859 = verf.f32 %v5551_v14  ;;  %v5552_v26 = vmul.f32 0.70710677, %v5470_v21  ;;  %v5511_v13 = vmul.f32 0.5, %v5470_v21  ;;  %v5435_v14 = vld [vmem:[%s7997_s10 + $0xdb] sm:$0xff] }
 0x4f1   : > { %v5672_v30 = vmul.f32 %v5631_v55, %v5508_v59  ;;  %v5632_v15 = vadd.f32 1.0, %v7858_v11 }
 0x4f2   : > { %7861 = verf.f32 %v5552_v26 }
 0x4f3   : > { %5713 = vst.msk [vmem:[%s11007_s30 + $0x80] sm:$0xff] %vm1877_vm0, %v5672_v30  ;;  %v5673_v31 = vmul.f32 %v5632_v15, %v5509_v2  ;;  %v5228_v0 = vpop.f32.mrb[40].mxu1 }
 0x4f4   : > { %v5341_v50 = vmul.f32 %v10971_v40, %v5228_v0  ;;  %v6056_v9 = vpop.f32.mrb[41].mxu1 }
 0x4f5   : > { %5714 = vst.msk [vmem:[%s11007_s30 + $0x88] sm:$0xff] %vm1877_vm0, %v5673_v31  ;;  %v5231_v54 = vpop.f32.mrb[42].mxu1 }
 0x4f6   : > { %v5389_v60 = vadd.f32 %v10980_v3, %v5341_v50  ;;  %v5342_v36 = vmul.f32 %v10971_v40, %v5231_v54  ;;  %v6057_v7 = vpop.f32.mrb[43].mxu1 }
 0x4f7   : > { %v5436_v7 = vld [vmem:[%s7997_s10 + $0xe3] sm:$0xff] }
 0x4f8   : > { %v5471_v51 = vadd.f32 %v5430_v35, %v5389_v60  ;;  %v5390_v32 = vadd.f32 %v10980_v3, %v5342_v36 }
 0x4fa   : > { %v7860_v42 = vpop.eup %7859  ;;  %v5553_v58 = vmul.f32 0.70710677, %v5471_v51  ;;  %v5472_v20 = vadd.f32 %v5431_v49, %v5390_v32  ;;  %v5512_v8 = vmul.f32 0.5, %v5471_v51 }
 0x4fb   : > { %v5633_v33 = vadd.f32 1.0, %v7860_v42 }
 0x4fc   : > { %v7862_v44 = vpop.eup %7861  ;;  %7863 = verf.f32 %v5553_v58  ;;  %v5554_v17 = vmul.f32 0.70710677, %v5472_v20  ;;  %v5513_v27 = vmul.f32 0.5, %v5472_v20  ;;  %v5437_v58 = vld [vmem:[%s7997_s10 + $0xeb] sm:$0xff] }
 0x4fd   : > { %v5674_v57 = vmul.f32 %v5633_v33, %v5510_v63  ;;  %v5634_v18 = vadd.f32 1.0, %v7862_v44 }
 0x4fe   : > { %7865 = verf.f32 %v5554_v17 }
 0x4ff   : > { %5715 = vst.msk [vmem:[%s11007_s30 + $0x90] sm:$0xff] %vm1877_vm0, %v5674_v57  ;;  %v5675_v43 = vmul.f32 %v5634_v18, %v5511_v13  ;;  %v5236_v61 = vpop.f32.mrb[44].mxu1 }
 0x500   : > { %v5343_v46 = vmul.f32 %v10971_v40, %v5236_v61  ;;  %v6060_v41 = vpop.f32.mrb[45].mxu1 }
 0x501   : > { %5716 = vst.msk [vmem:[%s11007_s30 + $0x98] sm:$0xff] %vm1877_vm0, %v5675_v43  ;;  %v5239_v48 = vpop.f32.mrb[46].mxu1 }
 0x502   : > { %v5391_v6 = vadd.f32 %v10980_v3, %v5343_v46  ;;  %v5344_v28 = vmul.f32 %v10971_v40, %v5239_v48  ;;  %v6061_v16 = vpop.f32.mrb[47].mxu1 }
 0x503   : > { %v5438_v16 = vld [vmem:[%s7997_s10 + $0xf3] sm:$0xff] }
 0x504   : > { %v5473_v25 = vadd.f32 %v5432_v22, %v5391_v6  ;;  %v5392_v1 = vadd.f32 %v10980_v3, %v5344_v28 }
 0x506   : > { %v7864_v19 = vpop.eup %7863  ;;  %v5555_v34 = vmul.f32 0.70710677, %v5473_v25  ;;  %v5474_v5 = vadd.f32 %v5433_v4, %v5392_v1  ;;  %v5514_v30 = vmul.f32 0.5, %v5473_v25 }
 0x507   : > { %v5635_v37 = vadd.f32 1.0, %v7864_v19 }
 0x508   : > { %v7866_v24 = vpop.eup %7865  ;;  %7867 = verf.f32 %v5555_v34  ;;  %v5556_v29 = vmul.f32 0.70710677, %v5474_v5  ;;  %v5515_v50 = vmul.f32 0.5, %v5474_v5  ;;  %v5439_v34 = vld [vmem:[%s7997_s10 + $0xfb] sm:$0xff] }
 0x509   : > { %v5676_v53 = vmul.f32 %v5635_v37, %v5512_v8  ;;  %v5636_v12 = vadd.f32 1.0, %v7866_v24 }
 0x50a   : > { %7869 = verf.f32 %v5556_v29 }
 0x50b   : > { %5717 = vst.msk [vmem:[%s11007_s30 + $0xa0] sm:$0xff] %vm1877_vm0, %v5676_v53  ;;  %v5677_v47 = vmul.f32 %v5636_v12, %v5513_v27  ;;  %v5244_v52 = vpop.f32.mrb[48].mxu1 }
 0x50c   : > { %v5345_v10 = vmul.f32 %v10971_v40, %v5244_v52  ;;  %v6064_v62 = vpop.f32.mrb[49].mxu1 }
 0x50d   : > { %5718 = vst.msk [vmem:[%s11007_s30 + $0xa8] sm:$0xff] %vm1877_vm0, %v5677_v47  ;;  %v5247_v23 = vpop.f32.mrb[50].mxu1 }
 0x50e   : > { %v5393_v38 = vadd.f32 %v10980_v3, %v5345_v10  ;;  %v5346_v56 = vmul.f32 %v10971_v40, %v5247_v23  ;;  %v6065_v39 = vpop.f32.mrb[51].mxu1 }
 0x50f   : > { %v5440_v39 = vld [vmem:[%s7997_s10 + $0x103] sm:$0xff] }
 0x510   : > { %v5475_v21 = vadd.f32 %v5434_v45, %v5393_v38  ;;  %v5394_v59 = vadd.f32 %v10980_v3, %v5346_v56 }
 0x512   : > { %v7868_v55 = vpop.eup %7867  ;;  %v5557_v11 = vmul.f32 0.70710677, %v5475_v21  ;;  %v5476_v26 = vadd.f32 %v5435_v14, %v5394_v59  ;;  %v5516_v57 = vmul.f32 0.5, %v5475_v21 }
 0x513   : > { %v5637_v2 = vadd.f32 1.0, %v7868_v55 }
 0x514   : > { %v7870_v15 = vpop.eup %7869  ;;  %7871 = verf.f32 %v5557_v11  ;;  %v5558_v31 = vmul.f32 0.70710677, %v5476_v26  ;;  %v5517_v46 = vmul.f32 0.5, %v5476_v26  ;;  %v5441_v11 = vld [vmem:[%s7997_s10 + $0x10b] sm:$0xff] }
 0x515   : > { %v5678_v0 = vmul.f32 %v5637_v2, %v5514_v30  ;;  %v5638_v9 = vadd.f32 1.0, %v7870_v15 }
 0x516   : > { %7873 = verf.f32 %v5558_v31 }
 0x517   : > { %5719 = vst.msk [vmem:[%s11007_s30 + $0xb0] sm:$0xff] %vm1877_vm0, %v5678_v0  ;;  %v5679_v35 = vmul.f32 %v5638_v9, %v5515_v50  ;;  %v5252_v54 = vpop.f32.mrb[52].mxu1 }
 0x518   : > { %v5347_v60 = vmul.f32 %v10971_v40, %v5252_v54  ;;  %v6068_v36 = vpop.f32.mrb[53].mxu1 }
 0x519   : > { %5720 = vst.msk [vmem:[%s11007_s30 + $0xb8] sm:$0xff] %vm1877_vm0, %v5679_v35  ;;  %v5255_v49 = vpop.f32.mrb[54].mxu1 }
 0x51a   : > { %v5395_v51 = vadd.f32 %v10980_v3, %v5347_v60  ;;  %v5348_v32 = vmul.f32 %v10971_v40, %v5255_v49  ;;  %v6069_v42 = vpop.f32.mrb[55].mxu1 }
 0x51b   : > { %v5442_v42 = vld [vmem:[%s7997_s10 + $0x113] sm:$0xff] }
 0x51c   : > { %v5477_v20 = vadd.f32 %v5436_v7, %v5395_v51  ;;  %v5396_v63 = vadd.f32 %v10980_v3, %v5348_v32 }
 0x51e   : > { %v7872_v33 = vpop.eup %7871  ;;  %v5559_v44 = vmul.f32 0.70710677, %v5477_v20  ;;  %v5478_v17 = vadd.f32 %v5437_v58, %v5396_v63  ;;  %v5518_v53 = vmul.f32 0.5, %v5477_v20 }
 0x51f   : > { %v5639_v13 = vadd.f32 1.0, %v7872_v33 }
 0x520   : > { %v7874_v18 = vpop.eup %7873  ;;  %7875 = verf.f32 %v5559_v44  ;;  %v5560_v43 = vmul.f32 0.70710677, %v5478_v17  ;;  %v5519_v10 = vmul.f32 0.5, %v5478_v17  ;;  %v5443_v44 = vld [vmem:[%s7997_s10 + $0x11b] sm:$0xff] }
 0x521   : > { %v5680_v61 = vmul.f32 %v5639_v13, %v5516_v57  ;;  %v5640_v41 = vadd.f32 1.0, %v7874_v18 }
 0x522   : > { %7877 = verf.f32 %v5560_v43 }
 0x523   : > { %5721 = vst.msk [vmem:[%s11007_s30 + $0xc0] sm:$0xff] %vm1877_vm0, %v5680_v61  ;;  %v5681_v22 = vmul.f32 %v5640_v41, %v5517_v46  ;;  %v5260_v48 = vpop.f32.mrb[56].mxu1 }
 0x524   : > { %v5349_v6 = vmul.f32 %v10971_v40, %v5260_v48  ;;  %v6072_v28 = vpop.f32.mrb[57].mxu1 }
 0x525   : > { %5722 = vst.msk [vmem:[%s11007_s30 + $0xc8] sm:$0xff] %vm1877_vm0, %v5681_v22  ;;  %v5263_v4 = vpop.f32.mrb[58].mxu1 }
 0x526   : > { %v5397_v25 = vadd.f32 %v10980_v3, %v5349_v6  ;;  %v5350_v1 = vmul.f32 %v10971_v40, %v5263_v4  ;;  %v6073_v19 = vpop.f32.mrb[59].mxu1 }
 0x527   : > { %v5444_v19 = vld [vmem:[%s7997_s10 + $0x123] sm:$0xff] }
 0x528   : > { %v5479_v5 = vadd.f32 %v5438_v16, %v5397_v25  ;;  %v5398_v8 = vadd.f32 %v10980_v3, %v5350_v1 }
 0x52a   : > { %v7876_v37 = vpop.eup %7875  ;;  %v5561_v24 = vmul.f32 0.70710677, %v5479_v5  ;;  %v5480_v29 = vadd.f32 %v5439_v34, %v5398_v8  ;;  %v5520_v0 = vmul.f32 0.5, %v5479_v5 }
 0x52b   : > { %v5641_v27 = vadd.f32 1.0, %v7876_v37 }
 0x52c   : > { %v7878_v12 = vpop.eup %7877  ;;  %7879 = verf.f32 %v5561_v24  ;;  %v5562_v47 = vmul.f32 0.70710677, %v5480_v29  ;;  %v5521_v60 = vmul.f32 0.5, %v5480_v29  ;;  %v5445_v24 = vld [vmem:[%s7997_s10 + $0x12b] sm:$0xff] }
 0x52d   : > { %v5682_v52 = vmul.f32 %v5641_v27, %v5518_v53  ;;  %v5642_v62 = vadd.f32 1.0, %v7878_v12 }
 0x52e   : > { %7881 = verf.f32 %v5562_v47 }
 0x52f   : > { %5723 = vst.msk [vmem:[%s11007_s30 + $0xd0] sm:$0xff] %vm1877_vm0, %v5682_v52  ;;  %v5683_v45 = vmul.f32 %v5642_v62, %v5519_v10  ;;  %v5268_v23 = vpop.f32.mrb[60].mxu1 }
 0x530   : > { %v5351_v38 = vmul.f32 %v10971_v40, %v5268_v23  ;;  %v6076_v56 = vpop.f32.mrb[61].mxu1 }
 0x531   : > { %5724 = vst.msk [vmem:[%s11007_s30 + $0xd8] sm:$0xff] %vm1877_vm0, %v5683_v45  ;;  %v5271_v14 = vpop.f32.mrb[62].mxu1 }
 0x532   : > { %v5399_v21 = vadd.f32 %v10980_v3, %v5351_v38  ;;  %v5352_v59 = vmul.f32 %v10971_v40, %v5271_v14  ;;  %v6077_v55 = vpop.f32.mrb[63].mxu1 }
 0x533   : > { %v5446_v55 = vld [vmem:[%s7997_s10 + $0x133] sm:$0xff] }
 0x534   : > { %v5481_v26 = vadd.f32 %v5440_v39, %v5399_v21  ;;  %v5400_v30 = vadd.f32 %v10980_v3, %v5352_v59 }
 0x536   : > { %v7880_v2 = vpop.eup %7879  ;;  %v5563_v15 = vmul.f32 0.70710677, %v5481_v26  ;;  %v5482_v31 = vadd.f32 %v5441_v11, %v5400_v30  ;;  %v5522_v61 = vmul.f32 0.5, %v5481_v26 }
 0x537   : > { %v5643_v50 = vadd.f32 1.0, %v7880_v2 }
 0x538   : > { %v7882_v9 = vpop.eup %7881  ;;  %7883 = verf.f32 %v5563_v15  ;;  %v5564_v35 = vmul.f32 0.70710677, %v5482_v31  ;;  %v5523_v6 = vmul.f32 0.5, %v5482_v31  ;;  %v5447_v15 = vld [vmem:[%s7997_s10 + $0x13b] sm:$0xff] }
 0x539   : > { %v5684_v54 = vmul.f32 %v5643_v50, %v5520_v0  ;;  %v5644_v36 = vadd.f32 1.0, %v7882_v9 }
 0x53a   : > { %7885 = verf.f32 %v5564_v35 }
 0x53b   : > { %5725 = vst.msk [vmem:[%s11007_s30 + $0xe0] sm:$0xff] %vm1877_vm0, %v5684_v54  ;;  %v5685_v7 = vmul.f32 %v5644_v36, %v5521_v60  ;;  %v5276_v49 = vpop.f32.mrb[64].mxu1 }
 0x53c   : > { %v5353_v51 = vmul.f32 %v10971_v40, %v5276_v49  ;;  %v6080_v32 = vpop.f32.mrb[65].mxu1 }
 0x53d   : > { %5726 = vst.msk [vmem:[%s11007_s30 + $0xe8] sm:$0xff] %vm1877_vm0, %v5685_v7  ;;  %v5279_v58 = vpop.f32.mrb[66].mxu1 }
 0x53e   : > { %v5401_v20 = vadd.f32 %v10980_v3, %v5353_v51  ;;  %v5354_v63 = vmul.f32 %v10971_v40, %v5279_v58  ;;  %v6081_v33 = vpop.f32.mrb[67].mxu1 }
 0x53f   : > { %v5448_v33 = vld [vmem:[%s7997_s10 + $0x143] sm:$0xff] }
 0x540   : > { %v5483_v17 = vadd.f32 %v5442_v42, %v5401_v20  ;;  %v5402_v57 = vadd.f32 %v10980_v3, %v5354_v63 }
 0x542   : > { %v7884_v13 = vpop.eup %7883  ;;  %v5565_v18 = vmul.f32 0.70710677, %v5483_v17  ;;  %v5484_v43 = vadd.f32 %v5443_v44, %v5402_v57  ;;  %v5524_v52 = vmul.f32 0.5, %v5483_v17  ;;  %v7907_v57 = vld [vmem:[%s11214_s6] ss:$0 sm:$0xff] }
 0x543   : > { %v5645_v46 = vadd.f32 1.0, %v7884_v13 }
 0x544   : > { %v7886_v41 = vpop.eup %7885  ;;  %7887 = verf.f32 %v5565_v18  ;;  %v5566_v22 = vmul.f32 0.70710677, %v5484_v43  ;;  %v5525_v38 = vmul.f32 0.5, %v5484_v43  ;;  %v5449_v43 = vld [vmem:[%s7997_s10 + $0x14b] sm:$0xff] }
 0x545   : > { %v5686_v48 = vmul.f32 %v5645_v46, %v5522_v61  ;;  %v5646_v28 = vadd.f32 1.0, %v7886_v41 }
 0x546   : > { %7889 = verf.f32 %v5566_v22 }
 0x547   : > { %5727 = vst.msk [vmem:[%s11007_s30 + $0xf0] sm:$0xff] %vm1877_vm0, %v5686_v48  ;;  %v5687_v16 = vmul.f32 %v5646_v28, %v5523_v6  ;;  %v5284_v4 = vpop.f32.mrb[68].mxu1 }
 0x548   : > { %v5355_v25 = vmul.f32 %v10971_v40, %v5284_v4  ;;  %v6084_v1 = vpop.f32.mrb[69].mxu1 }
 0x549   : > { %5728 = vst.msk [vmem:[%s11007_s30 + $0xf8] sm:$0xff] %vm1877_vm0, %v5687_v16  ;;  %v5287_v34 = vpop.f32.mrb[70].mxu1 }
 0x54a   : > { %v5403_v5 = vadd.f32 %v10980_v3, %v5355_v25  ;;  %v5356_v8 = vmul.f32 %v10971_v40, %v5287_v34  ;;  %v6085_v37 = vpop.f32.mrb[71].mxu1 }
 0x54c   : > { %v5485_v29 = vadd.f32 %v5444_v19, %v5403_v5  ;;  %v5404_v53 = vadd.f32 %v10980_v3, %v5356_v8  ;;  %v5450_v8 = vld [vmem:[%s7997_s10 + $0x153] sm:$0xf] }
 0x54e   : > { %v7888_v27 = vpop.eup %7887  ;;  %v5567_v12 = vmul.f32 0.70710677, %v5485_v29  ;;  %v5486_v47 = vadd.f32 %v5445_v24, %v5404_v53  ;;  %v5526_v54 = vmul.f32 0.5, %v5485_v29  ;;  %v7908_v24 = vld [vmem:[%s11215_s7] ss:$0 sm:$0xff] }
 0x54f   : > { %v5647_v10 = vadd.f32 1.0, %v7888_v27 }
 0x550   : > { %v7890_v62 = vpop.eup %7889  ;;  %7891 = verf.f32 %v5567_v12  ;;  %v5568_v45 = vmul.f32 0.70710677, %v5486_v47  ;;  %v5527_v51 = vmul.f32 0.5, %v5486_v47 }
 0x551   : > { %v5688_v23 = vmul.f32 %v5647_v10, %v5524_v52  ;;  %v5648_v56 = vadd.f32 1.0, %v7890_v62 }
 0x552   : > { %7893 = verf.f32 %v5568_v45 }
 0x553   : > { %5729 = vst.msk [vmem:[%s11007_s30 + $0x100] sm:$0xff] %vm1877_vm0, %v5688_v23  ;;  %v5689_v39 = vmul.f32 %v5648_v56, %v5525_v38  ;;  %v5292_v14 = vpop.f32.mrb[72].mxu1 }
 0x554   : > { %v5357_v21 = vmul.f32 %v10971_v40, %v5292_v14  ;;  %v6088_v59 = vpop.f32.mrb[73].mxu1 }
 0x555   : > { %5730 = vst.msk [vmem:[%s11007_s30 + $0x108] sm:$0xff] %vm1877_vm0, %v5689_v39  ;;  %v5295_v11 = vpop.f32.mrb[74].mxu1 }
 0x556   : > { %v5405_v26 = vadd.f32 %v10980_v3, %v5357_v21  ;;  %v5358_v30 = vmul.f32 %v10971_v40, %v5295_v11  ;;  %v6089_v2 = vpop.f32.mrb[75].mxu1 }
 0x558   : > { %v5487_v31 = vadd.f32 %v5446_v55, %v5405_v26  ;;  %v5406_v0 = vadd.f32 %v10980_v3, %v5358_v30 }
 0x55a   : > { %v7892_v50 = vpop.eup %7891  ;;  %v5569_v9 = vmul.f32 0.70710677, %v5487_v31  ;;  %v5488_v35 = vadd.f32 %v5447_v15, %v5406_v0  ;;  %v5528_v48 = vmul.f32 0.5, %v5487_v31 }
 0x55b   : > { %v5649_v60 = vadd.f32 1.0, %v7892_v50 }
 0x55c   : > { %v7894_v36 = vpop.eup %7893  ;;  %7895 = verf.f32 %v5569_v9  ;;  %v5570_v7 = vmul.f32 0.70710677, %v5488_v35  ;;  %v5529_v25 = vmul.f32 0.5, %v5488_v35 }
 0x55d   : > { %v5690_v49 = vmul.f32 %v5649_v60, %v5526_v54  ;;  %v5650_v32 = vadd.f32 1.0, %v7894_v36 }
 0x55e   : > { %7897 = verf.f32 %v5570_v7 }
 0x55f   : > { %5731 = vst.msk [vmem:[%s11007_s30 + $0x110] sm:$0xff] %vm1877_vm0, %v5690_v49  ;;  %v5691_v42 = vmul.f32 %v5650_v32, %v5527_v51  ;;  %v5300_v58 = vpop.f32.mrb[76].mxu1 }
 0x560   : > { %v5359_v20 = vmul.f32 %v10971_v40, %v5300_v58  ;;  %v6092_v63 = vpop.f32.mrb[77].mxu1 }
 0x561   : > { %5732 = vst.msk [vmem:[%s11007_s30 + $0x118] sm:$0xff] %vm1877_vm0, %v5691_v42  ;;  %v5303_v44 = vpop.f32.mrb[78].mxu1 }
 0x562   : > { %v5407_v17 = vadd.f32 %v10980_v3, %v5359_v20  ;;  %v5360_v13 = vmul.f32 %v7907_v57, %v5303_v44  ;;  %v6093_v18 = vpop.f32.mrb[79].mxu1 }
 0x564   : > { %v5489_v61 = vadd.f32 %v5448_v33, %v5407_v17  ;;  %v5408_v46 = vadd.f32 %v10980_v3, %v5360_v13 }
 0x566   : > { %v7896_v41 = vpop.eup %7895  ;;  %v5571_v40 = vmul.f32 0.70710677, %v5489_v61  ;;  %v5490_v22 = vadd.f32 %v5449_v43, %v5408_v46  ;;  %v5530_v52 = vmul.f32 0.5, %v5489_v61 }
 0x567   : > { %v5651_v6 = vadd.f32 1.0, %v7896_v41 }
 0x568   : > { %v7898_v28 = vpop.eup %7897  ;;  %7899 = verf.f32 %v5571_v40  ;;  %v5572_v16 = vmul.f32 0.70710677, %v5490_v22  ;;  %v5531_v23 = vmul.f32 0.5, %v5490_v22 }
 0x569   : > { %v5692_v4 = vmul.f32 %v5651_v6, %v5528_v48  ;;  %v5652_v1 = vadd.f32 1.0, %v7898_v28  ;;  %v5308_v19 = vpop.f32.mrb[80].mxu1 }
 0x56a   : > { %7901 = verf.f32 %v5572_v16  ;;  %v5361_v34 = vmul.f32 %v7907_v57, %v5308_v19  ;;  %v6096_v5 = vpop.f32.mrb[81].mxu1 }
 0x56b   : > { %5733 = vst.msk [vmem:[%s11007_s30 + $0x120] sm:$0xff] %vm1877_vm0, %v5692_v4  ;;  %v5693_v3 = vmul.f32 %v5652_v1, %v5529_v25  ;;  %v5311_v37 = vpop.f32.mrb[82].mxu1 }
 0x56c   : > { %v5409_v29 = vadd.f32 %v7908_v24, %v5361_v34  ;;  %v6097_v53 = vpop.f32.mrb[83].mxu1 }
 0x56d   : > { %5734 = vst.msk [vmem:[%s11007_s30 + $0x128] sm:$0xff] %vm1877_vm0, %v5693_v3 }
 0x56e   : > { %v5491_v27 = vadd.f32 %v5450_v8, %v5409_v29 }
 0x570   : > { %v5573_v12 = vmul.f32 0.70710677, %v5491_v27  ;;  %v5532_v14 = vmul.f32 0.5, %v5491_v27 }
 0x572   : > { %v7900_v47 = vpop.eup %7899  ;;  %7903 = verf.f32 %v5573_v12 }
 0x573   : > { %v5653_v10 = vadd.f32 1.0, %v7900_v47 }
 0x574   : > { %v7902_v62 = vpop.eup %7901 }
 0x575   : > { %v5694_v45 = vmul.f32 %v5653_v10, %v5530_v52  ;;  %v5654_v38 = vadd.f32 1.0, %v7902_v62 }
 0x577   : > { %5735 = vst.msk [vmem:[%s11007_s30 + $0x130] sm:$0xff] %vm1877_vm0, %v5694_v45  ;;  %v5695_v56 = vmul.f32 %v5654_v38, %v5531_v23 }
 0x579   : > { %5736 = vst.msk [vmem:[%s11007_s30 + $0x138] sm:$0xff] %vm1877_vm0, %v5695_v56 }
 0x57c   : > { %v7904_v39 = vpop.eup %7903 }
 0x57d   : > { %v5655_v21 = vadd.f32 1.0, %v7904_v39 }
 0x57f   : > { %v5696_v59 = vmul.f32 %v5655_v21, %v5532_v14 }
 0x581   : > { %5737 = vst.msk [vmem:[%s11007_s30 + $0x140] sm:$0xf] %vm3132_vm12, %v5696_v59 }
 0x582 PF: > { %s18_s27 = sadd.s32 1, %s7915_s27  }
 0x583   : > { %p15_p4 = scmp.ge.s32.totalorder %s18_s27, 4  }
 0x585   :  { %17 = sbr.rel (!%p15_p4) target bundleno = 1 (0x1), region = 82 }

</bundles_post_ra>
